<compile_context>
chip_gen: v6e
topology: v6e:2x2x1
jax: 0.10.0
libtpu: 0.0.40
codegen_flags: <defaults>
</compile_context>

<pallas_src>
import functools

import jax
import jax.numpy as jnp
from jax import lax
from jax.experimental import pallas as pl
from jax.experimental.pallas import tpu as pltpu


def _round_up(x, m):
    return (x + m - 1) // m * m


def _estimate_vmem_bytes(n_pad, q_tile, c, h, hd):
    """Rough per-core VMEM footprint (bytes), incl. pipeline buffers + scratch."""
    bf = 2
    c_l = _round_up(c, 128)           # lane padding of C-minor buffers
    hd_l = _round_up(hd, 128)         # lane padding of per-head scratch slabs
    weights = 4 * c * c_l * bf                      # wq/wk/wv/wp, single-buffered
    bias = 2 * c_l * 4
    xq = 2 * q_tile * c_l * bf                      # double-buffered query tile
    xkv = 2 * n_pad * c_l * bf                      # double-buffered full-seq rows
    out = 2 * q_tile * c_l * 4                      # double-buffered output tile
    kv_cache = 2 * h * n_pad * hd_l * bf            # K / V scratch caches
    qa_scratch = 2 * h * q_tile * hd_l * bf         # per-head Q / attn-out scratch
    live = 2 * q_tile * n_pad * 4 + 6 * q_tile * c_l * 4   # scores + temporaries
    return weights + bias + xq + xkv + out + kv_cache + qa_scratch + live


def _plan_tiling(n, c, h, *, budget_bytes=48 * 1024 * 1024):
    """Pick (q_tile, n_pad): keys padded to a multiple of a 128-aligned query
    tile, tile chosen to fit a v7x-safe VMEM budget (v5e/v6e have headroom)."""
    hd = c // h
    n128 = _round_up(n, 128)
    cands = [t for t in ((256, 128) if c >= 1024 else (512, 256, 128)) if t <= n128]
    if not cands:
        cands = [128]
    for t in cands:
        n_pad = _round_up(n, t)
        if _estimate_vmem_bytes(n_pad, t, c, h, hd) <= budget_bytes:
            return t, n_pad
    t = cands[-1]
    return t, _round_up(n, t)


def _attention_kernel(xq_ref, xkv_ref, wq_ref, wk_ref, wv_ref, wp_ref, b_ref,
                      o_ref, kc_ref, vc_ref, qh_ref, ah_ref,
                      *, num_heads, head_dim, seq_len):
    # xq_ref : (1, TQ, C) bf16       query rows of this tile
    # xkv_ref: (1, N_pad, C) bf16    full (padded) sequence rows
    # wq/wk/wv/wp_ref: (C, C) bf16 (scale folded into wq); b_ref: (1, C) f32
    # scratch: kc/vc (H, N_pad, hd) bf16; qh/ah (H, TQ, hd) bf16
    h_total, hd = num_heads, head_dim
    n_pad = kc_ref.shape[1]

    # ---- per-batch K/V cache fill: wide GEMMs, only on the first query tile ----
    @pl.when(pl.program_id(1) == 0)
    def _fill_kv_cache():
        xkv = xkv_ref[0]                                            # (N_pad, C)
        k_all = jnp.dot(xkv, wk_ref[...],
                        preferred_element_type=jnp.float32).astype(jnp.bfloat16)
        v_all = jnp.dot(xkv, wv_ref[...],
                        preferred_element_type=jnp.float32).astype(jnp.bfloat16)
        for h in range(h_total):              # static scatter: layout work only
            kc_ref[h] = k_all[:, h * hd:(h + 1) * hd]
            vc_ref[h] = v_all[:, h * hd:(h + 1) * hd]

    # ---- per-tile Q projection: one wide (TQ, C) @ (C, C) GEMM -----------------
    xq = xq_ref[0]                                                  # (TQ, C)
    q_all = jnp.dot(xq, wq_ref[...],
                    preferred_element_type=jnp.float32).astype(jnp.bfloat16)
    for h in range(h_total):
        qh_ref[h] = q_all[:, h * hd:(h + 1) * hd]

    # Additive mask for zero-padded key rows (softmax must ignore them).
    if seq_len != n_pad:
        key_ok = lax.broadcasted_iota(jnp.int32, (1, n_pad), 1) < seq_len
        neg = jnp.where(key_ok, 0.0, -1e30).astype(jnp.float32)    # (1, N_pad)
    else:
        neg = None

    # ---- per-head attention: bounded loop, one head's working set live --------
    def head_body(h, carry):
        q = qh_ref[h]                                               # (TQ, hd) bf16
        k = kc_ref[h]                                               # (N_pad, hd)
        v = vc_ref[h]                                               # (N_pad, hd)
        # q @ k^T as an NT matmul (contract last axes), f32 accumulation.
        s = lax.dot_general(q, k, (((1,), (1,)), ((), ())),
                            preferred_element_type=jnp.float32)     # (TQ, N_pad)
        if neg is not None:
            s = s + neg
        s = s - jnp.max(s, axis=-1, keepdims=True)
        p = jnp.exp(s)
        p = p * pl.reciprocal(jnp.sum(p, axis=-1, keepdims=True), approx=True)
        ah_ref[h] = jnp.dot(p.astype(jnp.bfloat16), v,
                            preferred_element_type=jnp.float32).astype(jnp.bfloat16)
        return carry

    lax.fori_loop(0, h_total, head_body, 0)

    # ---- fused output projection: ONE (TQ, C) @ (C, C) GEMM + bias ------------
    attn_cat = jnp.concatenate([ah_ref[h] for h in range(h_total)], axis=-1)
    out = jnp.dot(attn_cat, wp_ref[...], preferred_element_type=jnp.float32)
    o_ref[0] = (out + b_ref[...]).astype(o_ref.dtype)


def attention_forward(x, w_qkv, w_proj, b_proj, num_heads, *, q_tile=None):
    """x: (B, N, C); w_qkv: (C, 3C); w_proj: (C, C); b_proj: (C,)."""
    B, N, C = x.shape
    H = num_heads
    assert C % H == 0, "dim must be divisible by num_heads"
    hd = C // H
    scale = float(hd) ** -0.5

    if q_tile is None:
        q_tile, N_pad = _plan_tiling(N, C, H)
    else:
        q_tile = int(q_tile)
        N_pad = _round_up(N, q_tile)
    n_q = N_pad // q_tile

    # Split the fused qkv weight; fold the softmax scale into Wq (one-time XLA
    # work — removes the per-head in-kernel multiply + cast).
    wq = w_qkv[:, 0 * C:1 * C] * scale
    wk = w_qkv[:, 1 * C:2 * C]
    wv = w_qkv[:, 2 * C:3 * C]

    # bf16 MXU operands; bias stays f32 for the epilogue add.
    x_bf = x.astype(jnp.bfloat16)
    if N_pad != N:
        x_bf = jnp.pad(x_bf, ((0, 0), (0, N_pad - N), (0, 0)))
    wq, wk, wv, wp = (a.astype(jnp.bfloat16) for a in (wq, wk, wv, w_proj))
    b2 = b_proj.reshape(1, C).astype(jnp.float32)

    kernel = functools.partial(_attention_kernel, num_heads=H, head_dim=hd,
                               seq_len=N)

    vmem_est = _estimate_vmem_bytes(N_pad, q_tile, C, H, hd)
    vmem_limit = int(min(max(vmem_est + (8 << 20), 32 << 20), 96 << 20))

    def build(single_buffer_weights):
        # Grid-invariant weights / bias: single buffer (no pointless 2x VMEM).
        wkw = ({"pipeline_mode": pl.Buffered(1)} if single_buffer_weights else {})
        return pl.pallas_call(
            kernel,
            out_shape=jax.ShapeDtypeStruct((B, N_pad, C), x.dtype),
            grid_spec=pltpu.PrefetchScalarGridSpec(
                num_scalar_prefetch=0,
                grid=(B, n_q),
                in_specs=[
                    # Query rows of this tile (double-buffered, changes per step).
                    pl.BlockSpec((1, q_tile, C), lambda b, qi: (b, qi, 0)),
                    # Full-sequence rows for K/V; block index changes only with b.
                    pl.BlockSpec((1, N_pad, C), lambda b, qi: (b, 0, 0)),
                    pl.BlockSpec((C, C), lambda b, qi: (0, 0), **wkw),
                    pl.BlockSpec((C, C), lambda b, qi: (0, 0), **wkw),
                    pl.BlockSpec((C, C), lambda b, qi: (0, 0), **wkw),
                    pl.BlockSpec((C, C), lambda b, qi: (0, 0), **wkw),
                    pl.BlockSpec((1, C), lambda b, qi: (0, 0), **wkw),
                ],
                out_specs=pl.BlockSpec((1, q_tile, C), lambda b, qi: (b, qi, 0)),
                scratch_shapes=[
                    pltpu.VMEM((H, N_pad, hd), jnp.bfloat16),   # K cache
                    pltpu.VMEM((H, N_pad, hd), jnp.bfloat16),   # V cache
                    pltpu.VMEM((H, q_tile, hd), jnp.bfloat16),  # per-head Q
                    pltpu.VMEM((H, q_tile, hd), jnp.bfloat16),  # per-head attn out
                ],
            ),
            compiler_params=pltpu.CompilerParams(
                # qi axis is "arbitrary": the K/V scratch cache filled at qi == 0
                # is reused by later query tiles of the same batch.
                dimension_semantics=("parallel", "arbitrary"),
                vmem_limit_bytes=vmem_limit,
            ),
        )

    try:
        out = build(True)(x_bf, x_bf, wq, wk, wv, wp, b2)
    except Exception:
        # Fallback for jax versions without BlockSpec pipeline_mode support;
        # identical kernel, default double-buffered weights.
        out = build(False)(x_bf, x_bf, wq, wk, wv, wp, b2)

    return out[:, :N, :] if N_pad != N else out


def _reference(x, w_qkv, w_proj, b_proj, num_heads):
    B, N, C = x.shape
    hd = C // num_heads
    scale = float(hd) ** -0.5
    qkv = x @ w_qkv                                       # (B, N, 3C)
    qkv = qkv.reshape(B, N, 3, num_heads, hd).transpose(2, 0, 3, 1, 4)
    q, k, v = qkv[0] * scale, qkv[1], qkv[2]              # (B, H, N, hd)
    attn = jnp.einsum("bhqd,bhkd->bhqk", q, k)
    attn = jax.nn.softmax(attn, axis=-1)
    out = jnp.einsum("bhqk,bhkd->bhqd", attn, v)          # (B, H, N, hd)
    out = out.transpose(0, 2, 1, 3).reshape(B, N, C)
    return out @ w_proj + b_proj


if __name__ == "__main__":
    # Small shapes consistent with the module (dim=64, heads=8 -> head_dim=8).
    B, N, C = 2, 16, 64
    num_heads = 8

    key = jax.random.PRNGKey(0)
    k_x, k_qkv, k_proj, k_bias = jax.random.split(key, 4)

    x = jax.random.normal(k_x, (B, N, C), dtype=jnp.float32)
    # nn.Linear(dim, 3*dim, bias=False) / nn.Linear(dim, dim, bias=True),
    # stored pre-transposed for x @ W.
    w_qkv = jax.random.normal(k_qkv, (C, 3 * C), dtype=jnp.float32) * 0.1
    w_proj = jax.random.normal(k_proj, (C, C), dtype=jnp.float32) * 0.1
    b_proj = jax.random.normal(k_bias, (C,), dtype=jnp.float32) * 0.1

    out = attention_forward(x, w_qkv, w_proj, b_proj, num_heads)
    out = jax.block_until_ready(out)

    ref = _reference(x, w_qkv, w_proj, b_proj, num_heads)
    assert out.shape == (B, N, C)
    # bf16 matmul operands with f32 MXU accumulation (+ approx reciprocal).
    assert jnp.allclose(out, ref, atol=2e-2, rtol=2e-2), "mismatch vs reference"

    print("KERNEL_OK")
</pallas_src>

<mosaic_0001>
module attributes {stable_mosaic.version = 11 : i64} {
  func.func @_attention_kernel(%arg0: i32, %arg1: i32, %arg2: memref<1x128x64xbf16, #tpu.memory_space<vmem>>, %arg3: memref<1x128x64xbf16, #tpu.memory_space<vmem>>, %arg4: memref<64x64xbf16, #tpu.memory_space<vmem>>, %arg5: memref<64x64xbf16, #tpu.memory_space<vmem>>, %arg6: memref<64x64xbf16, #tpu.memory_space<vmem>>, %arg7: memref<64x64xbf16, #tpu.memory_space<vmem>>, %arg8: memref<1x64xf32, #tpu.memory_space<vmem>>, %arg9: memref<1x128x64xf32, #tpu.memory_space<vmem>>, %arg10: memref<8x128x8xbf16, #tpu.memory_space<vmem>>, %arg11: memref<8x128x8xbf16, #tpu.memory_space<vmem>>, %arg12: memref<8x128x8xbf16, #tpu.memory_space<vmem>>, %arg13: memref<8x128x8xbf16, #tpu.memory_space<vmem>>) attributes {dimension_semantics = [#tpu.dimension_semantics<parallel>, #tpu.dimension_semantics<arbitrary>], iteration_bounds = array<i64: 2, 1>, scalar_prefetch = 0 : i64, scratch_operands = 4 : i64, tpu.core_type = #tpu.core_type<tc>, window_params = [{transform_indices = @transform_0, window_bounds = array<i64: 1, 128, 64>}, {transform_indices = @transform_1, window_bounds = array<i64: 1, 128, 64>}, {pipeline_mode = #tpu.pipeline_mode<synchronous>, transform_indices = @transform_2, window_bounds = array<i64: 64, 64>}, {pipeline_mode = #tpu.pipeline_mode<synchronous>, transform_indices = @transform_3, window_bounds = array<i64: 64, 64>}, {pipeline_mode = #tpu.pipeline_mode<synchronous>, transform_indices = @transform_4, window_bounds = array<i64: 64, 64>}, {pipeline_mode = #tpu.pipeline_mode<synchronous>, transform_indices = @transform_5, window_bounds = array<i64: 64, 64>}, {pipeline_mode = #tpu.pipeline_mode<synchronous>, transform_indices = @transform_6, window_bounds = array<i64: 1, 64>}, {transform_indices = @transform_7, window_bounds = array<i64: 1, 128, 64>}]} {
    %c0_i32 = arith.constant 0 : i32
    %0 = arith.cmpi eq, %arg1, %c0_i32 : i32
    %1 = arith.extui %0 : i1 to i32
    %c0_i32_0 = arith.constant 0 : i32
    %2 = arith.cmpi ne, %1, %c0_i32_0 : i32
    scf.if %2 {
      %c0_58 = arith.constant 0 : index
      %c0_59 = arith.constant 0 : index
      %c0_60 = arith.constant 0 : index
      %72 = vector.load %arg3[%c0_58, %c0_59, %c0_60] : memref<1x128x64xbf16, #tpu.memory_space<vmem>>, vector<1x128x64xbf16>
      %73 = vector.shape_cast %72 : vector<1x128x64xbf16> to vector<128x64xbf16>
      %c0_61 = arith.constant 0 : index
      %c0_62 = arith.constant 0 : index
      %74 = vector.load %arg5[%c0_61, %c0_62] : memref<64x64xbf16, #tpu.memory_space<vmem>>, vector<64x64xbf16>
      %cst_63 = arith.constant dense<0.000000e+00> : vector<128x64xf32>
      %75 = tpu.matmul %73, %74, %cst_63 {dimension_numbers = #tpu.dot_dimension_numbers<[1], [0], [0], [1], [0, 0, 1, 1], [], []>} : vector<128x64xbf16>, vector<64x64xbf16>, vector<128x64xf32> -> vector<128x64xf32>
      %76 = arith.truncf %75 : vector<128x64xf32> to vector<128x64xbf16>
      %c0_64 = arith.constant 0 : index
      %c0_65 = arith.constant 0 : index
      %77 = vector.load %arg6[%c0_64, %c0_65] : memref<64x64xbf16, #tpu.memory_space<vmem>>, vector<64x64xbf16>
      %cst_66 = arith.constant dense<0.000000e+00> : vector<128x64xf32>
      %78 = tpu.matmul %73, %77, %cst_66 {dimension_numbers = #tpu.dot_dimension_numbers<[1], [0], [0], [1], [0, 0, 1, 1], [], []>} : vector<128x64xbf16>, vector<64x64xbf16>, vector<128x64xf32> -> vector<128x64xf32>
      %79 = arith.truncf %78 : vector<128x64xf32> to vector<128x64xbf16>
      %80 = vector.extract_strided_slice %76 {offsets = [0, 0], sizes = [128, 8], strides = [1, 1]} : vector<128x64xbf16> to vector<128x8xbf16>
      %c0_67 = arith.constant 0 : index
      %c0_68 = arith.constant 0 : index
      %c0_69 = arith.constant 0 : index
      %81 = vector.load %arg10[%c0_67, %c0_68, %c0_69] : memref<8x128x8xbf16, #tpu.memory_space<vmem>>, vector<1x128x8xbf16>
      %82 = vector.shape_cast %81 : vector<1x128x8xbf16> to vector<128x8xbf16>
      %83 = vector.shape_cast %80 : vector<128x8xbf16> to vector<1x128x8xbf16>
      tpu.vector_store %arg10[%c0_67, %c0_68, %c0_69], %83 {strides = array<i32>} : memref<8x128x8xbf16, #tpu.memory_space<vmem>>, vector<1x128x8xbf16>,
      %84 = vector.extract_strided_slice %79 {offsets = [0, 0], sizes = [128, 8], strides = [1, 1]} : vector<128x64xbf16> to vector<128x8xbf16>
      %c0_70 = arith.constant 0 : index
      %c0_71 = arith.constant 0 : index
      %c0_72 = arith.constant 0 : index
      %85 = vector.load %arg11[%c0_70, %c0_71, %c0_72] : memref<8x128x8xbf16, #tpu.memory_space<vmem>>, vector<1x128x8xbf16>
      %86 = vector.shape_cast %85 : vector<1x128x8xbf16> to vector<128x8xbf16>
      %87 = vector.shape_cast %84 : vector<128x8xbf16> to vector<1x128x8xbf16>
      tpu.vector_store %arg11[%c0_70, %c0_71, %c0_72], %87 {strides = array<i32>} : memref<8x128x8xbf16, #tpu.memory_space<vmem>>, vector<1x128x8xbf16>,
      %88 = vector.extract_strided_slice %76 {offsets = [0, 8], sizes = [128, 8], strides = [1, 1]} : vector<128x64xbf16> to vector<128x8xbf16>
      %c1_73 = arith.constant 1 : index
      %c0_74 = arith.constant 0 : index
      %c0_75 = arith.constant 0 : index
      %89 = vector.load %arg10[%c1_73, %c0_74, %c0_75] : memref<8x128x8xbf16, #tpu.memory_space<vmem>>, vector<1x128x8xbf16>
      %90 = vector.shape_cast %89 : vector<1x128x8xbf16> to vector<128x8xbf16>
      %91 = vector.shape_cast %88 : vector<128x8xbf16> to vector<1x128x8xbf16>
      tpu.vector_store %arg10[%c1_73, %c0_74, %c0_75], %91 {strides = array<i32>} : memref<8x128x8xbf16, #tpu.memory_space<vmem>>, vector<1x128x8xbf16>,
      %92 = vector.extract_strided_slice %79 {offsets = [0, 8], sizes = [128, 8], strides = [1, 1]} : vector<128x64xbf16> to vector<128x8xbf16>
      %c1_76 = arith.constant 1 : index
      %c0_77 = arith.constant 0 : index
      %c0_78 = arith.constant 0 : index
      %93 = vector.load %arg11[%c1_76, %c0_77, %c0_78] : memref<8x128x8xbf16, #tpu.memory_space<vmem>>, vector<1x128x8xbf16>
      %94 = vector.shape_cast %93 : vector<1x128x8xbf16> to vector<128x8xbf16>
      %95 = vector.shape_cast %92 : vector<128x8xbf16> to vector<1x128x8xbf16>
      tpu.vector_store %arg11[%c1_76, %c0_77, %c0_78], %95 {strides = array<i32>} : memref<8x128x8xbf16, #tpu.memory_space<vmem>>, vector<1x128x8xbf16>,
      %96 = vector.extract_strided_slice %76 {offsets = [0, 16], sizes = [128, 8], strides = [1, 1]} : vector<128x64xbf16> to vector<128x8xbf16>
      %c2_79 = arith.constant 2 : index
      %c0_80 = arith.constant 0 : index
      %c0_81 = arith.constant 0 : index
      %97 = vector.load %arg10[%c2_79, %c0_80, %c0_81] : memref<8x128x8xbf16, #tpu.memory_space<vmem>>, vector<1x128x8xbf16>
      %98 = vector.shape_cast %97 : vector<1x128x8xbf16> to vector<128x8xbf16>
      %99 = vector.shape_cast %96 : vector<128x8xbf16> to vector<1x128x8xbf16>
      tpu.vector_store %arg10[%c2_79, %c0_80, %c0_81], %99 {strides = array<i32>} : memref<8x128x8xbf16, #tpu.memory_space<vmem>>, vector<1x128x8xbf16>,
      %100 = vector.extract_strided_slice %79 {offsets = [0, 16], sizes = [128, 8], strides = [1, 1]} : vector<128x64xbf16> to vector<128x8xbf16>
      %c2_82 = arith.constant 2 : index
      %c0_83 = arith.constant 0 : index
      %c0_84 = arith.constant 0 : index
      %101 = vector.load %arg11[%c2_82, %c0_83, %c0_84] : memref<8x128x8xbf16, #tpu.memory_space<vmem>>, vector<1x128x8xbf16>
      %102 = vector.shape_cast %101 : vector<1x128x8xbf16> to vector<128x8xbf16>
      %103 = vector.shape_cast %100 : vector<128x8xbf16> to vector<1x128x8xbf16>
      tpu.vector_store %arg11[%c2_82, %c0_83, %c0_84], %103 {strides = array<i32>} : memref<8x128x8xbf16, #tpu.memory_space<vmem>>, vector<1x128x8xbf16>,
      %104 = vector.extract_strided_slice %76 {offsets = [0, 24], sizes = [128, 8], strides = [1, 1]} : vector<128x64xbf16> to vector<128x8xbf16>
      %c3_85 = arith.constant 3 : index
      %c0_86 = arith.constant 0 : index
      %c0_87 = arith.constant 0 : index
      %105 = vector.load %arg10[%c3_85, %c0_86, %c0_87] : memref<8x128x8xbf16, #tpu.memory_space<vmem>>, vector<1x128x8xbf16>
      %106 = vector.shape_cast %105 : vector<1x128x8xbf16> to vector<128x8xbf16>
      %107 = vector.shape_cast %104 : vector<128x8xbf16> to vector<1x128x8xbf16>
      tpu.vector_store %arg10[%c3_85, %c0_86, %c0_87], %107 {strides = array<i32>} : memref<8x128x8xbf16, #tpu.memory_space<vmem>>, vector<1x128x8xbf16>,
      %108 = vector.extract_strided_slice %79 {offsets = [0, 24], sizes = [128, 8], strides = [1, 1]} : vector<128x64xbf16> to vector<128x8xbf16>
      %c3_88 = arith.constant 3 : index
      %c0_89 = arith.constant 0 : index
      %c0_90 = arith.constant 0 : index
      %109 = vector.load %arg11[%c3_88, %c0_89, %c0_90] : memref<8x128x8xbf16, #tpu.memory_space<vmem>>, vector<1x128x8xbf16>
      %110 = vector.shape_cast %109 : vector<1x128x8xbf16> to vector<128x8xbf16>
      %111 = vector.shape_cast %108 : vector<128x8xbf16> to vector<1x128x8xbf16>
      tpu.vector_store %arg11[%c3_88, %c0_89, %c0_90], %111 {strides = array<i32>} : memref<8x128x8xbf16, #tpu.memory_space<vmem>>, vector<1x128x8xbf16>,
      %112 = vector.extract_strided_slice %76 {offsets = [0, 32], sizes = [128, 8], strides = [1, 1]} : vector<128x64xbf16> to vector<128x8xbf16>
      %c4_91 = arith.constant 4 : index
      %c0_92 = arith.constant 0 : index
      %c0_93 = arith.constant 0 : index
      %113 = vector.load %arg10[%c4_91, %c0_92, %c0_93] : memref<8x128x8xbf16, #tpu.memory_space<vmem>>, vector<1x128x8xbf16>
      %114 = vector.shape_cast %113 : vector<1x128x8xbf16> to vector<128x8xbf16>
      %115 = vector.shape_cast %112 : vector<128x8xbf16> to vector<1x128x8xbf16>
      tpu.vector_store %arg10[%c4_91, %c0_92, %c0_93], %115 {strides = array<i32>} : memref<8x128x8xbf16, #tpu.memory_space<vmem>>, vector<1x128x8xbf16>,
      %116 = vector.extract_strided_slice %79 {offsets = [0, 32], sizes = [128, 8], strides = [1, 1]} : vector<128x64xbf16> to vector<128x8xbf16>
      %c4_94 = arith.constant 4 : index
      %c0_95 = arith.constant 0 : index
      %c0_96 = arith.constant 0 : index
      %117 = vector.load %arg11[%c4_94, %c0_95, %c0_96] : memref<8x128x8xbf16, #tpu.memory_space<vmem>>, vector<1x128x8xbf16>
      %118 = vector.shape_cast %117 : vector<1x128x8xbf16> to vector<128x8xbf16>
      %119 = vector.shape_cast %116 : vector<128x8xbf16> to vector<1x128x8xbf16>
      tpu.vector_store %arg11[%c4_94, %c0_95, %c0_96], %119 {strides = array<i32>} : memref<8x128x8xbf16, #tpu.memory_space<vmem>>, vector<1x128x8xbf16>,
      %120 = vector.extract_strided_slice %76 {offsets = [0, 40], sizes = [128, 8], strides = [1, 1]} : vector<128x64xbf16> to vector<128x8xbf16>
      %c5_97 = arith.constant 5 : index
      %c0_98 = arith.constant 0 : index
      %c0_99 = arith.constant 0 : index
      %121 = vector.load %arg10[%c5_97, %c0_98, %c0_99] : memref<8x128x8xbf16, #tpu.memory_space<vmem>>, vector<1x128x8xbf16>
      %122 = vector.shape_cast %121 : vector<1x128x8xbf16> to vector<128x8xbf16>
      %123 = vector.shape_cast %120 : vector<128x8xbf16> to vector<1x128x8xbf16>
      tpu.vector_store %arg10[%c5_97, %c0_98, %c0_99], %123 {strides = array<i32>} : memref<8x128x8xbf16, #tpu.memory_space<vmem>>, vector<1x128x8xbf16>,
      %124 = vector.extract_strided_slice %79 {offsets = [0, 40], sizes = [128, 8], strides = [1, 1]} : vector<128x64xbf16> to vector<128x8xbf16>
      %c5_100 = arith.constant 5 : index
      %c0_101 = arith.constant 0 : index
      %c0_102 = arith.constant 0 : index
      %125 = vector.load %arg11[%c5_100, %c0_101, %c0_102] : memref<8x128x8xbf16, #tpu.memory_space<vmem>>, vector<1x128x8xbf16>
      %126 = vector.shape_cast %125 : vector<1x128x8xbf16> to vector<128x8xbf16>
      %127 = vector.shape_cast %124 : vector<128x8xbf16> to vector<1x128x8xbf16>
      tpu.vector_store %arg11[%c5_100, %c0_101, %c0_102], %127 {strides = array<i32>} : memref<8x128x8xbf16, #tpu.memory_space<vmem>>, vector<1x128x8xbf16>,
      %128 = vector.extract_strided_slice %76 {offsets = [0, 48], sizes = [128, 8], strides = [1, 1]} : vector<128x64xbf16> to vector<128x8xbf16>
      %c6_103 = arith.constant 6 : index
      %c0_104 = arith.constant 0 : index
      %c0_105 = arith.constant 0 : index
      %129 = vector.load %arg10[%c6_103, %c0_104, %c0_105] : memref<8x128x8xbf16, #tpu.memory_space<vmem>>, vector<1x128x8xbf16>
      %130 = vector.shape_cast %129 : vector<1x128x8xbf16> to vector<128x8xbf16>
      %131 = vector.shape_cast %128 : vector<128x8xbf16> to vector<1x128x8xbf16>
      tpu.vector_store %arg10[%c6_103, %c0_104, %c0_105], %131 {strides = array<i32>} : memref<8x128x8xbf16, #tpu.memory_space<vmem>>, vector<1x128x8xbf16>,
      %132 = vector.extract_strided_slice %79 {offsets = [0, 48], sizes = [128, 8], strides = [1, 1]} : vector<128x64xbf16> to vector<128x8xbf16>
      %c6_106 = arith.constant 6 : index
      %c0_107 = arith.constant 0 : index
      %c0_108 = arith.constant 0 : index
      %133 = vector.load %arg11[%c6_106, %c0_107, %c0_108] : memref<8x128x8xbf16, #tpu.memory_space<vmem>>, vector<1x128x8xbf16>
      %134 = vector.shape_cast %133 : vector<1x128x8xbf16> to vector<128x8xbf16>
      %135 = vector.shape_cast %132 : vector<128x8xbf16> to vector<1x128x8xbf16>
      tpu.vector_store %arg11[%c6_106, %c0_107, %c0_108], %135 {strides = array<i32>} : memref<8x128x8xbf16, #tpu.memory_space<vmem>>, vector<1x128x8xbf16>,
      %136 = vector.extract_strided_slice %76 {offsets = [0, 56], sizes = [128, 8], strides = [1, 1]} : vector<128x64xbf16> to vector<128x8xbf16>
      %c7_109 = arith.constant 7 : index
      %c0_110 = arith.constant 0 : index
      %c0_111 = arith.constant 0 : index
      %137 = vector.load %arg10[%c7_109, %c0_110, %c0_111] : memref<8x128x8xbf16, #tpu.memory_space<vmem>>, vector<1x128x8xbf16>
      %138 = vector.shape_cast %137 : vector<1x128x8xbf16> to vector<128x8xbf16>
      %139 = vector.shape_cast %136 : vector<128x8xbf16> to vector<1x128x8xbf16>
      tpu.vector_store %arg10[%c7_109, %c0_110, %c0_111], %139 {strides = array<i32>} : memref<8x128x8xbf16, #tpu.memory_space<vmem>>, vector<1x128x8xbf16>,
      %140 = vector.extract_strided_slice %79 {offsets = [0, 56], sizes = [128, 8], strides = [1, 1]} : vector<128x64xbf16> to vector<128x8xbf16>
      %c7_112 = arith.constant 7 : index
      %c0_113 = arith.constant 0 : index
      %c0_114 = arith.constant 0 : index
      %141 = vector.load %arg11[%c7_112, %c0_113, %c0_114] : memref<8x128x8xbf16, #tpu.memory_space<vmem>>, vector<1x128x8xbf16>
      %142 = vector.shape_cast %141 : vector<1x128x8xbf16> to vector<128x8xbf16>
      %143 = vector.shape_cast %140 : vector<128x8xbf16> to vector<1x128x8xbf16>
      tpu.vector_store %arg11[%c7_112, %c0_113, %c0_114], %143 {strides = array<i32>} : memref<8x128x8xbf16, #tpu.memory_space<vmem>>, vector<1x128x8xbf16>,
    } else {
    }
    %c0 = arith.constant 0 : index
    %c0_1 = arith.constant 0 : index
    %c0_2 = arith.constant 0 : index
    %3 = vector.load %arg2[%c0, %c0_1, %c0_2] : memref<1x128x64xbf16, #tpu.memory_space<vmem>>, vector<1x128x64xbf16>
    %4 = vector.shape_cast %3 : vector<1x128x64xbf16> to vector<128x64xbf16>
    %c0_3 = arith.constant 0 : index
    %c0_4 = arith.constant 0 : index
    %5 = vector.load %arg4[%c0_3, %c0_4] : memref<64x64xbf16, #tpu.memory_space<vmem>>, vector<64x64xbf16>
    %cst = arith.constant dense<0.000000e+00> : vector<128x64xf32>
    %6 = tpu.matmul %4, %5, %cst {dimension_numbers = #tpu.dot_dimension_numbers<[1], [0], [0], [1], [0, 0, 1, 1], [], []>} : vector<128x64xbf16>, vector<64x64xbf16>, vector<128x64xf32> -> vector<128x64xf32>
    %7 = arith.truncf %6 : vector<128x64xf32> to vector<128x64xbf16>
    %8 = vector.extract_strided_slice %7 {offsets = [0, 0], sizes = [128, 8], strides = [1, 1]} : vector<128x64xbf16> to vector<128x8xbf16>
    %c0_5 = arith.constant 0 : index
    %c0_6 = arith.constant 0 : index
    %c0_7 = arith.constant 0 : index
    %9 = vector.load %arg12[%c0_5, %c0_6, %c0_7] : memref<8x128x8xbf16, #tpu.memory_space<vmem>>, vector<1x128x8xbf16>
    %10 = vector.shape_cast %9 : vector<1x128x8xbf16> to vector<128x8xbf16>
    %11 = vector.shape_cast %8 : vector<128x8xbf16> to vector<1x128x8xbf16>
    tpu.vector_store %arg12[%c0_5, %c0_6, %c0_7], %11 {strides = array<i32>} : memref<8x128x8xbf16, #tpu.memory_space<vmem>>, vector<1x128x8xbf16>,
    %12 = vector.extract_strided_slice %7 {offsets = [0, 8], sizes = [128, 8], strides = [1, 1]} : vector<128x64xbf16> to vector<128x8xbf16>
    %c1 = arith.constant 1 : index
    %c0_8 = arith.constant 0 : index
    %c0_9 = arith.constant 0 : index
    %13 = vector.load %arg12[%c1, %c0_8, %c0_9] : memref<8x128x8xbf16, #tpu.memory_space<vmem>>, vector<1x128x8xbf16>
    %14 = vector.shape_cast %13 : vector<1x128x8xbf16> to vector<128x8xbf16>
    %15 = vector.shape_cast %12 : vector<128x8xbf16> to vector<1x128x8xbf16>
    tpu.vector_store %arg12[%c1, %c0_8, %c0_9], %15 {strides = array<i32>} : memref<8x128x8xbf16, #tpu.memory_space<vmem>>, vector<1x128x8xbf16>,
    %16 = vector.extract_strided_slice %7 {offsets = [0, 16], sizes = [128, 8], strides = [1, 1]} : vector<128x64xbf16> to vector<128x8xbf16>
    %c2 = arith.constant 2 : index
    %c0_10 = arith.constant 0 : index
    %c0_11 = arith.constant 0 : index
    %17 = vector.load %arg12[%c2, %c0_10, %c0_11] : memref<8x128x8xbf16, #tpu.memory_space<vmem>>, vector<1x128x8xbf16>
    %18 = vector.shape_cast %17 : vector<1x128x8xbf16> to vector<128x8xbf16>
    %19 = vector.shape_cast %16 : vector<128x8xbf16> to vector<1x128x8xbf16>
    tpu.vector_store %arg12[%c2, %c0_10, %c0_11], %19 {strides = array<i32>} : memref<8x128x8xbf16, #tpu.memory_space<vmem>>, vector<1x128x8xbf16>,
    %20 = vector.extract_strided_slice %7 {offsets = [0, 24], sizes = [128, 8], strides = [1, 1]} : vector<128x64xbf16> to vector<128x8xbf16>
    %c3 = arith.constant 3 : index
    %c0_12 = arith.constant 0 : index
    %c0_13 = arith.constant 0 : index
    %21 = vector.load %arg12[%c3, %c0_12, %c0_13] : memref<8x128x8xbf16, #tpu.memory_space<vmem>>, vector<1x128x8xbf16>
    %22 = vector.shape_cast %21 : vector<1x128x8xbf16> to vector<128x8xbf16>
    %23 = vector.shape_cast %20 : vector<128x8xbf16> to vector<1x128x8xbf16>
    tpu.vector_store %arg12[%c3, %c0_12, %c0_13], %23 {strides = array<i32>} : memref<8x128x8xbf16, #tpu.memory_space<vmem>>, vector<1x128x8xbf16>,
    %24 = vector.extract_strided_slice %7 {offsets = [0, 32], sizes = [128, 8], strides = [1, 1]} : vector<128x64xbf16> to vector<128x8xbf16>
    %c4 = arith.constant 4 : index
    %c0_14 = arith.constant 0 : index
    %c0_15 = arith.constant 0 : index
    %25 = vector.load %arg12[%c4, %c0_14, %c0_15] : memref<8x128x8xbf16, #tpu.memory_space<vmem>>, vector<1x128x8xbf16>
    %26 = vector.shape_cast %25 : vector<1x128x8xbf16> to vector<128x8xbf16>
    %27 = vector.shape_cast %24 : vector<128x8xbf16> to vector<1x128x8xbf16>
    tpu.vector_store %arg12[%c4, %c0_14, %c0_15], %27 {strides = array<i32>} : memref<8x128x8xbf16, #tpu.memory_space<vmem>>, vector<1x128x8xbf16>,
    %28 = vector.extract_strided_slice %7 {offsets = [0, 40], sizes = [128, 8], strides = [1, 1]} : vector<128x64xbf16> to vector<128x8xbf16>
    %c5 = arith.constant 5 : index
    %c0_16 = arith.constant 0 : index
    %c0_17 = arith.constant 0 : index
    %29 = vector.load %arg12[%c5, %c0_16, %c0_17] : memref<8x128x8xbf16, #tpu.memory_space<vmem>>, vector<1x128x8xbf16>
    %30 = vector.shape_cast %29 : vector<1x128x8xbf16> to vector<128x8xbf16>
    %31 = vector.shape_cast %28 : vector<128x8xbf16> to vector<1x128x8xbf16>
    tpu.vector_store %arg12[%c5, %c0_16, %c0_17], %31 {strides = array<i32>} : memref<8x128x8xbf16, #tpu.memory_space<vmem>>, vector<1x128x8xbf16>,
    %32 = vector.extract_strided_slice %7 {offsets = [0, 48], sizes = [128, 8], strides = [1, 1]} : vector<128x64xbf16> to vector<128x8xbf16>
    %c6 = arith.constant 6 : index
    %c0_18 = arith.constant 0 : index
    %c0_19 = arith.constant 0 : index
    %33 = vector.load %arg12[%c6, %c0_18, %c0_19] : memref<8x128x8xbf16, #tpu.memory_space<vmem>>, vector<1x128x8xbf16>
    %34 = vector.shape_cast %33 : vector<1x128x8xbf16> to vector<128x8xbf16>
    %35 = vector.shape_cast %32 : vector<128x8xbf16> to vector<1x128x8xbf16>
    tpu.vector_store %arg12[%c6, %c0_18, %c0_19], %35 {strides = array<i32>} : memref<8x128x8xbf16, #tpu.memory_space<vmem>>, vector<1x128x8xbf16>,
    %36 = vector.extract_strided_slice %7 {offsets = [0, 56], sizes = [128, 8], strides = [1, 1]} : vector<128x64xbf16> to vector<128x8xbf16>
    %c7 = arith.constant 7 : index
    %c0_20 = arith.constant 0 : index
    %c0_21 = arith.constant 0 : index
    %37 = vector.load %arg12[%c7, %c0_20, %c0_21] : memref<8x128x8xbf16, #tpu.memory_space<vmem>>, vector<1x128x8xbf16>
    %38 = vector.shape_cast %37 : vector<1x128x8xbf16> to vector<128x8xbf16>
    %39 = vector.shape_cast %36 : vector<128x8xbf16> to vector<1x128x8xbf16>
    tpu.vector_store %arg12[%c7, %c0_20, %c0_21], %39 {strides = array<i32>} : memref<8x128x8xbf16, #tpu.memory_space<vmem>>, vector<1x128x8xbf16>,
    %40 = tpu.iota {dimensions = array<i32: 1>} : vector<1x128xi32>
    %c16_i32 = arith.constant 16 : i32
    %41 = vector.broadcast %c16_i32 : i32 to vector<1x128xi32>
    %42 = arith.cmpi slt, %40, %41 : vector<1x128xi32>
    %cst_22 = arith.constant 0.000000e+00 : f32
    %cst_23 = arith.constant -1.000000e+30 : f32
    %43 = vector.broadcast %cst_22 : f32 to vector<1x128xf32>
    %44 = vector.broadcast %cst_23 : f32 to vector<1x128xf32>
    %45 = arith.select %42, %43, %44 : vector<1x128xi1>, vector<1x128xf32>
    %c0_i32_24 = arith.constant 0 : i32
    %c8_i32 = arith.constant 8 : i32
    %46 = arith.addi %c0_i32_24, %c8_i32 : i32
    %c1_i32 = arith.constant 1 : i32
    scf.for %arg14 = %c0_i32_24 to %46 step %c1_i32  : i32 {
      %72 = arith.index_cast %arg14 : i32 to index
      %c0_58 = arith.constant 0 : index
      %c0_59 = arith.constant 0 : index
      %73 = vector.load %arg12[%72, %c0_58, %c0_59] : memref<8x128x8xbf16, #tpu.memory_space<vmem>>, vector<1x128x8xbf16>
      %74 = vector.shape_cast %73 : vector<1x128x8xbf16> to vector<128x8xbf16>
      %75 = arith.index_cast %arg14 : i32 to index
      %c0_60 = arith.constant 0 : index
      %c0_61 = arith.constant 0 : index
      %76 = vector.load %arg10[%75, %c0_60, %c0_61] : memref<8x128x8xbf16, #tpu.memory_space<vmem>>, vector<1x128x8xbf16>
      %77 = vector.shape_cast %76 : vector<1x128x8xbf16> to vector<128x8xbf16>
      %78 = arith.index_cast %arg14 : i32 to index
      %c0_62 = arith.constant 0 : index
      %c0_63 = arith.constant 0 : index
      %79 = vector.load %arg11[%78, %c0_62, %c0_63] : memref<8x128x8xbf16, #tpu.memory_space<vmem>>, vector<1x128x8xbf16>
      %80 = vector.shape_cast %79 : vector<1x128x8xbf16> to vector<128x8xbf16>
      %cst_64 = arith.constant dense<0.000000e+00> : vector<128x128xf32>
      %81 = tpu.matmul %74, %77, %cst_64 {dimension_numbers = #tpu.dot_dimension_numbers<[1], [1], [0], [0], [0, 0, 1, 0], [], []>} : vector<128x8xbf16>, vector<128x8xbf16>, vector<128x128xf32> -> vector<128x128xf32>
      %82 = vector.broadcast %45 : vector<1x128xf32> to vector<128x128xf32>
      %83 = arith.addf %81, %82 : vector<128x128xf32>
      %cst_65 = arith.constant dense<0xFF800000> : vector<128xf32>
      %84 = vector.multi_reduction <maximumf>, %83, %cst_65 [1] : vector<128x128xf32> to vector<128xf32>
      %85 = vector.shape_cast %84 : vector<128xf32> to vector<128x1xf32>
      %86 = vector.broadcast %85 : vector<128x1xf32> to vector<128x128xf32>
      %87 = arith.subf %83, %86 : vector<128x128xf32>
      %88 = math.exp %87 : vector<128x128xf32>
      %cst_66 = arith.constant dense<0.000000e+00> : vector<128xf32>
      %89 = vector.multi_reduction <add>, %88, %cst_66 [1] : vector<128x128xf32> to vector<128xf32>
      %90 = vector.shape_cast %89 : vector<128xf32> to vector<128x1xf32>
      %91 = tpu.reciprocal %90 {approx = true} : vector<128x1xf32> -> vector<128x1xf32>
      %92 = vector.broadcast %91 : vector<128x1xf32> to vector<128x128xf32>
      %93 = arith.mulf %88, %92 : vector<128x128xf32>
      %94 = arith.truncf %93 : vector<128x128xf32> to vector<128x128xbf16>
      %cst_67 = arith.constant dense<0.000000e+00> : vector<128x8xf32>
      %95 = tpu.matmul %94, %80, %cst_67 {dimension_numbers = #tpu.dot_dimension_numbers<[1], [0], [0], [1], [0, 0, 1, 1], [], []>} : vector<128x128xbf16>, vector<128x8xbf16>, vector<128x8xf32> -> vector<128x8xf32>
      %96 = arith.truncf %95 : vector<128x8xf32> to vector<128x8xbf16>
      %97 = arith.index_cast %arg14 : i32 to index
      %c0_68 = arith.constant 0 : index
      %c0_69 = arith.constant 0 : index
      %98 = vector.load %arg13[%97, %c0_68, %c0_69] : memref<8x128x8xbf16, #tpu.memory_space<vmem>>, vector<1x128x8xbf16>
      %99 = vector.shape_cast %98 : vector<1x128x8xbf16> to vector<128x8xbf16>
      %100 = vector.shape_cast %96 : vector<128x8xbf16> to vector<1x128x8xbf16>
      tpu.vector_store %arg13[%97, %c0_68, %c0_69], %100 {strides = array<i32>} : memref<8x128x8xbf16, #tpu.memory_space<vmem>>, vector<1x128x8xbf16>,
    }
    %c8_i32_25 = arith.constant 8 : i32
    %c0_26 = arith.constant 0 : index
    %c0_27 = arith.constant 0 : index
    %c0_28 = arith.constant 0 : index
    %47 = vector.load %arg13[%c0_26, %c0_27, %c0_28] : memref<8x128x8xbf16, #tpu.memory_space<vmem>>, vector<1x128x8xbf16>
    %48 = vector.shape_cast %47 : vector<1x128x8xbf16> to vector<128x8xbf16>
    %c1_29 = arith.constant 1 : index
    %c0_30 = arith.constant 0 : index
    %c0_31 = arith.constant 0 : index
    %49 = vector.load %arg13[%c1_29, %c0_30, %c0_31] : memref<8x128x8xbf16, #tpu.memory_space<vmem>>, vector<1x128x8xbf16>
    %50 = vector.shape_cast %49 : vector<1x128x8xbf16> to vector<128x8xbf16>
    %c2_32 = arith.constant 2 : index
    %c0_33 = arith.constant 0 : index
    %c0_34 = arith.constant 0 : index
    %51 = vector.load %arg13[%c2_32, %c0_33, %c0_34] : memref<8x128x8xbf16, #tpu.memory_space<vmem>>, vector<1x128x8xbf16>
    %52 = vector.shape_cast %51 : vector<1x128x8xbf16> to vector<128x8xbf16>
    %c3_35 = arith.constant 3 : index
    %c0_36 = arith.constant 0 : index
    %c0_37 = arith.constant 0 : index
    %53 = vector.load %arg13[%c3_35, %c0_36, %c0_37] : memref<8x128x8xbf16, #tpu.memory_space<vmem>>, vector<1x128x8xbf16>
    %54 = vector.shape_cast %53 : vector<1x128x8xbf16> to vector<128x8xbf16>
    %c4_38 = arith.constant 4 : index
    %c0_39 = arith.constant 0 : index
    %c0_40 = arith.constant 0 : index
    %55 = vector.load %arg13[%c4_38, %c0_39, %c0_40] : memref<8x128x8xbf16, #tpu.memory_space<vmem>>, vector<1x128x8xbf16>
    %56 = vector.shape_cast %55 : vector<1x128x8xbf16> to vector<128x8xbf16>
    %c5_41 = arith.constant 5 : index
    %c0_42 = arith.constant 0 : index
    %c0_43 = arith.constant 0 : index
    %57 = vector.load %arg13[%c5_41, %c0_42, %c0_43] : memref<8x128x8xbf16, #tpu.memory_space<vmem>>, vector<1x128x8xbf16>
    %58 = vector.shape_cast %57 : vector<1x128x8xbf16> to vector<128x8xbf16>
    %c6_44 = arith.constant 6 : index
    %c0_45 = arith.constant 0 : index
    %c0_46 = arith.constant 0 : index
    %59 = vector.load %arg13[%c6_44, %c0_45, %c0_46] : memref<8x128x8xbf16, #tpu.memory_space<vmem>>, vector<1x128x8xbf16>
    %60 = vector.shape_cast %59 : vector<1x128x8xbf16> to vector<128x8xbf16>
    %c7_47 = arith.constant 7 : index
    %c0_48 = arith.constant 0 : index
    %c0_49 = arith.constant 0 : index
    %61 = vector.load %arg13[%c7_47, %c0_48, %c0_49] : memref<8x128x8xbf16, #tpu.memory_space<vmem>>, vector<1x128x8xbf16>
    %62 = vector.shape_cast %61 : vector<1x128x8xbf16> to vector<128x8xbf16>
    %63 = tpu.concatenate %48, %50, %52, %54, %56, %58, %60, %62 in 1 : vector<128x8xbf16>, vector<128x8xbf16>, vector<128x8xbf16>, vector<128x8xbf16>, vector<128x8xbf16>, vector<128x8xbf16>, vector<128x8xbf16>, vector<128x8xbf16> -> vector<128x64xbf16>
    %c0_50 = arith.constant 0 : index
    %c0_51 = arith.constant 0 : index
    %64 = vector.load %arg7[%c0_50, %c0_51] : memref<64x64xbf16, #tpu.memory_space<vmem>>, vector<64x64xbf16>
    %cst_52 = arith.constant dense<0.000000e+00> : vector<128x64xf32>
    %65 = tpu.matmul %63, %64, %cst_52 {dimension_numbers = #tpu.dot_dimension_numbers<[1], [0], [0], [1], [0, 0, 1, 1], [], []>} : vector<128x64xbf16>, vector<64x64xbf16>, vector<128x64xf32> -> vector<128x64xf32>
    %c0_53 = arith.constant 0 : index
    %c0_54 = arith.constant 0 : index
    %66 = vector.load %arg8[%c0_53, %c0_54] : memref<1x64xf32, #tpu.memory_space<vmem>>, vector<1x64xf32>
    %67 = vector.broadcast %66 : vector<1x64xf32> to vector<128x64xf32>
    %68 = arith.addf %65, %67 : vector<128x64xf32>
    %c0_55 = arith.constant 0 : index
    %c0_56 = arith.constant 0 : index
    %c0_57 = arith.constant 0 : index
    %69 = vector.load %arg9[%c0_55, %c0_56, %c0_57] : memref<1x128x64xf32, #tpu.memory_space<vmem>>, vector<1x128x64xf32>
    %70 = vector.shape_cast %69 : vector<1x128x64xf32> to vector<128x64xf32>
    %71 = vector.shape_cast %68 : vector<128x64xf32> to vector<1x128x64xf32>
    tpu.vector_store %arg9[%c0_55, %c0_56, %c0_57], %71 {strides = array<i32>} : memref<1x128x64xf32, #tpu.memory_space<vmem>>, vector<1x128x64xf32>,
    return
  }
  func.func @transform_0(%arg0: i32, %arg1: i32) -> (i32, i32, i32) {
    %c0_i32 = arith.constant 0 : i32
    %c0_i32_0 = arith.constant 0 : i32
    return %arg0, %arg1, %c0_i32 : i32, i32, i32
  }
  func.func @transform_1(%arg0: i32, %arg1: i32) -> (i32, i32, i32) {
    %c0_i32 = arith.constant 0 : i32
    %c0_i32_0 = arith.constant 0 : i32
    %c0_i32_1 = arith.constant 0 : i32
    return %arg0, %c0_i32, %c0_i32_0 : i32, i32, i32
  }
  func.func @transform_2(%arg0: i32, %arg1: i32) -> (i32, i32) {
    %c0_i32 = arith.constant 0 : i32
    %c0_i32_0 = arith.constant 0 : i32
    %c0_i32_1 = arith.constant 0 : i32
    return %c0_i32, %c0_i32_0 : i32, i32
  }
  func.func @transform_3(%arg0: i32, %arg1: i32) -> (i32, i32) {
    %c0_i32 = arith.constant 0 : i32
    %c0_i32_0 = arith.constant 0 : i32
    %c0_i32_1 = arith.constant 0 : i32
    return %c0_i32, %c0_i32_0 : i32, i32
  }
  func.func @transform_4(%arg0: i32, %arg1: i32) -> (i32, i32) {
    %c0_i32 = arith.constant 0 : i32
    %c0_i32_0 = arith.constant 0 : i32
    %c0_i32_1 = arith.constant 0 : i32
    return %c0_i32, %c0_i32_0 : i32, i32
  }
  func.func @transform_5(%arg0: i32, %arg1: i32) -> (i32, i32) {
    %c0_i32 = arith.constant 0 : i32
    %c0_i32_0 = arith.constant 0 : i32
    %c0_i32_1 = arith.constant 0 : i32
    return %c0_i32, %c0_i32_0 : i32, i32
  }
  func.func @transform_6(%arg0: i32, %arg1: i32) -> (i32, i32) {
    %c0_i32 = arith.constant 0 : i32
    %c0_i32_0 = arith.constant 0 : i32
    %c0_i32_1 = arith.constant 0 : i32
    return %c0_i32, %c0_i32_0 : i32, i32
  }
  func.func @transform_7(%arg0: i32, %arg1: i32) -> (i32, i32, i32) {
    %c0_i32 = arith.constant 0 : i32
    %c0_i32_0 = arith.constant 0 : i32
    return %arg0, %arg1, %c0_i32 : i32, i32, i32
  }
}

module attributes {stable_mosaic.version = 11 : i64} {
  func.func @_attention_kernel(%arg0: i32, %arg1: i32, %arg2: memref<1x128x64xbf16, #tpu.memory_space<vmem>>, %arg3: memref<1x128x64xbf16, #tpu.memory_space<vmem>>, %arg4: memref<64x64xbf16, #tpu.memory_space<vmem>>, %arg5: memref<64x64xbf16, #tpu.memory_space<vmem>>, %arg6: memref<64x64xbf16, #tpu.memory_space<vmem>>, %arg7: memref<64x64xbf16, #tpu.memory_space<vmem>>, %arg8: memref<1x64xf32, #tpu.memory_space<vmem>>, %arg9: memref<1x128x64xf32, #tpu.memory_space<vmem>>, %arg10: memref<8x128x8xbf16, #tpu.memory_space<vmem>>, %arg11: memref<8x128x8xbf16, #tpu.memory_space<vmem>>, %arg12: memref<8x128x8xbf16, #tpu.memory_space<vmem>>, %arg13: memref<8x128x8xbf16, #tpu.memory_space<vmem>>) attributes {dimension_semantics = [#tpu.dimension_semantics<parallel>, #tpu.dimension_semantics<arbitrary>], iteration_bounds = array<i64: 2, 1>, scalar_prefetch = 0 : i64, scratch_operands = 4 : i64, tpu.core_type = #tpu.core_type<tc>, window_params = [{transform_indices = @transform_0, window_bounds = array<i64: 1, 128, 64>}, {transform_indices = @transform_1, window_bounds = array<i64: 1, 128, 64>}, {pipeline_mode = #tpu.pipeline_mode<synchronous>, transform_indices = @transform_2, window_bounds = array<i64: 64, 64>}, {pipeline_mode = #tpu.pipeline_mode<synchronous>, transform_indices = @transform_3, window_bounds = array<i64: 64, 64>}, {pipeline_mode = #tpu.pipeline_mode<synchronous>, transform_indices = @transform_4, window_bounds = array<i64: 64, 64>}, {pipeline_mode = #tpu.pipeline_mode<synchronous>, transform_indices = @transform_5, window_bounds = array<i64: 64, 64>}, {pipeline_mode = #tpu.pipeline_mode<synchronous>, transform_indices = @transform_6, window_bounds = array<i64: 1, 64>}, {transform_indices = @transform_7, window_bounds = array<i64: 1, 128, 64>}]} {
    %c0_i32 = arith.constant 0 : i32
    %0 = arith.cmpi eq, %arg1, %c0_i32 : i32
    %1 = arith.extui %0 : i1 to i32
    %c0_i32_0 = arith.constant 0 : i32
    %2 = arith.cmpi ne, %1, %c0_i32_0 : i32
    scf.if %2 {
      %c0_58 = arith.constant 0 : index
      %c0_59 = arith.constant 0 : index
      %c0_60 = arith.constant 0 : index
      %72 = vector.load %arg3[%c0_58, %c0_59, %c0_60] : memref<1x128x64xbf16, #tpu.memory_space<vmem>>, vector<1x128x64xbf16>
      %73 = vector.shape_cast %72 : vector<1x128x64xbf16> to vector<128x64xbf16>
      %c0_61 = arith.constant 0 : index
      %c0_62 = arith.constant 0 : index
      %74 = vector.load %arg5[%c0_61, %c0_62] : memref<64x64xbf16, #tpu.memory_space<vmem>>, vector<64x64xbf16>
      %cst_63 = arith.constant dense<0.000000e+00> : vector<128x64xf32>
      %75 = tpu.matmul %73, %74, %cst_63 {dimension_numbers = #tpu.dot_dimension_numbers<[1], [0], [0], [1], [0, 0, 1, 1], [], []>} : vector<128x64xbf16>, vector<64x64xbf16>, vector<128x64xf32> -> vector<128x64xf32>
      %76 = arith.truncf %75 : vector<128x64xf32> to vector<128x64xbf16>
      %c0_64 = arith.constant 0 : index
      %c0_65 = arith.constant 0 : index
      %77 = vector.load %arg6[%c0_64, %c0_65] : memref<64x64xbf16, #tpu.memory_space<vmem>>, vector<64x64xbf16>
      %cst_66 = arith.constant dense<0.000000e+00> : vector<128x64xf32>
      %78 = tpu.matmul %73, %77, %cst_66 {dimension_numbers = #tpu.dot_dimension_numbers<[1], [0], [0], [1], [0, 0, 1, 1], [], []>} : vector<128x64xbf16>, vector<64x64xbf16>, vector<128x64xf32> -> vector<128x64xf32>
      %79 = arith.truncf %78 : vector<128x64xf32> to vector<128x64xbf16>
      %80 = vector.extract_strided_slice %76 {offsets = [0, 0], sizes = [128, 8], strides = [1, 1]} : vector<128x64xbf16> to vector<128x8xbf16>
      %c0_67 = arith.constant 0 : index
      %c0_68 = arith.constant 0 : index
      %c0_69 = arith.constant 0 : index
      %81 = vector.load %arg10[%c0_67, %c0_68, %c0_69] : memref<8x128x8xbf16, #tpu.memory_space<vmem>>, vector<1x128x8xbf16>
      %82 = vector.shape_cast %81 : vector<1x128x8xbf16> to vector<128x8xbf16>
      %83 = vector.shape_cast %80 : vector<128x8xbf16> to vector<1x128x8xbf16>
      tpu.vector_store %arg10[%c0_67, %c0_68, %c0_69], %83 {strides = array<i32>} : memref<8x128x8xbf16, #tpu.memory_space<vmem>>, vector<1x128x8xbf16>,
      %84 = vector.extract_strided_slice %79 {offsets = [0, 0], sizes = [128, 8], strides = [1, 1]} : vector<128x64xbf16> to vector<128x8xbf16>
      %c0_70 = arith.constant 0 : index
      %c0_71 = arith.constant 0 : index
      %c0_72 = arith.constant 0 : index
      %85 = vector.load %arg11[%c0_70, %c0_71, %c0_72] : memref<8x128x8xbf16, #tpu.memory_space<vmem>>, vector<1x128x8xbf16>
      %86 = vector.shape_cast %85 : vector<1x128x8xbf16> to vector<128x8xbf16>
      %87 = vector.shape_cast %84 : vector<128x8xbf16> to vector<1x128x8xbf16>
      tpu.vector_store %arg11[%c0_70, %c0_71, %c0_72], %87 {strides = array<i32>} : memref<8x128x8xbf16, #tpu.memory_space<vmem>>, vector<1x128x8xbf16>,
      %88 = vector.extract_strided_slice %76 {offsets = [0, 8], sizes = [128, 8], strides = [1, 1]} : vector<128x64xbf16> to vector<128x8xbf16>
      %c1_73 = arith.constant 1 : index
      %c0_74 = arith.constant 0 : index
      %c0_75 = arith.constant 0 : index
      %89 = vector.load %arg10[%c1_73, %c0_74, %c0_75] : memref<8x128x8xbf16, #tpu.memory_space<vmem>>, vector<1x128x8xbf16>
      %90 = vector.shape_cast %89 : vector<1x128x8xbf16> to vector<128x8xbf16>
      %91 = vector.shape_cast %88 : vector<128x8xbf16> to vector<1x128x8xbf16>
      tpu.vector_store %arg10[%c1_73, %c0_74, %c0_75], %91 {strides = array<i32>} : memref<8x128x8xbf16, #tpu.memory_space<vmem>>, vector<1x128x8xbf16>,
      %92 = vector.extract_strided_slice %79 {offsets = [0, 8], sizes = [128, 8], strides = [1, 1]} : vector<128x64xbf16> to vector<128x8xbf16>
      %c1_76 = arith.constant 1 : index
      %c0_77 = arith.constant 0 : index
      %c0_78 = arith.constant 0 : index
      %93 = vector.load %arg11[%c1_76, %c0_77, %c0_78] : memref<8x128x8xbf16, #tpu.memory_space<vmem>>, vector<1x128x8xbf16>
      %94 = vector.shape_cast %93 : vector<1x128x8xbf16> to vector<128x8xbf16>
      %95 = vector.shape_cast %92 : vector<128x8xbf16> to vector<1x128x8xbf16>
      tpu.vector_store %arg11[%c1_76, %c0_77, %c0_78], %95 {strides = array<i32>} : memref<8x128x8xbf16, #tpu.memory_space<vmem>>, vector<1x128x8xbf16>,
      %96 = vector.extract_strided_slice %76 {offsets = [0, 16], sizes = [128, 8], strides = [1, 1]} : vector<128x64xbf16> to vector<128x8xbf16>
      %c2_79 = arith.constant 2 : index
      %c0_80 = arith.constant 0 : index
      %c0_81 = arith.constant 0 : index
      %97 = vector.load %arg10[%c2_79, %c0_80, %c0_81] : memref<8x128x8xbf16, #tpu.memory_space<vmem>>, vector<1x128x8xbf16>
      %98 = vector.shape_cast %97 : vector<1x128x8xbf16> to vector<128x8xbf16>
      %99 = vector.shape_cast %96 : vector<128x8xbf16> to vector<1x128x8xbf16>
      tpu.vector_store %arg10[%c2_79, %c0_80, %c0_81], %99 {strides = array<i32>} : memref<8x128x8xbf16, #tpu.memory_space<vmem>>, vector<1x128x8xbf16>,
      %100 = vector.extract_strided_slice %79 {offsets = [0, 16], sizes = [128, 8], strides = [1, 1]} : vector<128x64xbf16> to vector<128x8xbf16>
      %c2_82 = arith.constant 2 : index
      %c0_83 = arith.constant 0 : index
      %c0_84 = arith.constant 0 : index
      %101 = vector.load %arg11[%c2_82, %c0_83, %c0_84] : memref<8x128x8xbf16, #tpu.memory_space<vmem>>, vector<1x128x8xbf16>
      %102 = vector.shape_cast %101 : vector<1x128x8xbf16> to vector<128x8xbf16>
      %103 = vector.shape_cast %100 : vector<128x8xbf16> to vector<1x128x8xbf16>
      tpu.vector_store %arg11[%c2_82, %c0_83, %c0_84], %103 {strides = array<i32>} : memref<8x128x8xbf16, #tpu.memory_space<vmem>>, vector<1x128x8xbf16>,
      %104 = vector.extract_strided_slice %76 {offsets = [0, 24], sizes = [128, 8], strides = [1, 1]} : vector<128x64xbf16> to vector<128x8xbf16>
      %c3_85 = arith.constant 3 : index
      %c0_86 = arith.constant 0 : index
      %c0_87 = arith.constant 0 : index
      %105 = vector.load %arg10[%c3_85, %c0_86, %c0_87] : memref<8x128x8xbf16, #tpu.memory_space<vmem>>, vector<1x128x8xbf16>
      %106 = vector.shape_cast %105 : vector<1x128x8xbf16> to vector<128x8xbf16>
      %107 = vector.shape_cast %104 : vector<128x8xbf16> to vector<1x128x8xbf16>
      tpu.vector_store %arg10[%c3_85, %c0_86, %c0_87], %107 {strides = array<i32>} : memref<8x128x8xbf16, #tpu.memory_space<vmem>>, vector<1x128x8xbf16>,
      %108 = vector.extract_strided_slice %79 {offsets = [0, 24], sizes = [128, 8], strides = [1, 1]} : vector<128x64xbf16> to vector<128x8xbf16>
      %c3_88 = arith.constant 3 : index
      %c0_89 = arith.constant 0 : index
      %c0_90 = arith.constant 0 : index
      %109 = vector.load %arg11[%c3_88, %c0_89, %c0_90] : memref<8x128x8xbf16, #tpu.memory_space<vmem>>, vector<1x128x8xbf16>
      %110 = vector.shape_cast %109 : vector<1x128x8xbf16> to vector<128x8xbf16>
      %111 = vector.shape_cast %108 : vector<128x8xbf16> to vector<1x128x8xbf16>
      tpu.vector_store %arg11[%c3_88, %c0_89, %c0_90], %111 {strides = array<i32>} : memref<8x128x8xbf16, #tpu.memory_space<vmem>>, vector<1x128x8xbf16>,
      %112 = vector.extract_strided_slice %76 {offsets = [0, 32], sizes = [128, 8], strides = [1, 1]} : vector<128x64xbf16> to vector<128x8xbf16>
      %c4_91 = arith.constant 4 : index
      %c0_92 = arith.constant 0 : index
      %c0_93 = arith.constant 0 : index
      %113 = vector.load %arg10[%c4_91, %c0_92, %c0_93] : memref<8x128x8xbf16, #tpu.memory_space<vmem>>, vector<1x128x8xbf16>
      %114 = vector.shape_cast %113 : vector<1x128x8xbf16> to vector<128x8xbf16>
      %115 = vector.shape_cast %112 : vector<128x8xbf16> to vector<1x128x8xbf16>
      tpu.vector_store %arg10[%c4_91, %c0_92, %c0_93], %115 {strides = array<i32>} : memref<8x128x8xbf16, #tpu.memory_space<vmem>>, vector<1x128x8xbf16>,
      %116 = vector.extract_strided_slice %79 {offsets = [0, 32], sizes = [128, 8], strides = [1, 1]} : vector<128x64xbf16> to vector<128x8xbf16>
      %c4_94 = arith.constant 4 : index
      %c0_95 = arith.constant 0 : index
      %c0_96 = arith.constant 0 : index
      %117 = vector.load %arg11[%c4_94, %c0_95, %c0_96] : memref<8x128x8xbf16, #tpu.memory_space<vmem>>, vector<1x128x8xbf16>
      %118 = vector.shape_cast %117 : vector<1x128x8xbf16> to vector<128x8xbf16>
      %119 = vector.shape_cast %116 : vector<128x8xbf16> to vector<1x128x8xbf16>
      tpu.vector_store %arg11[%c4_94, %c0_95, %c0_96], %119 {strides = array<i32>} : memref<8x128x8xbf16, #tpu.memory_space<vmem>>, vector<1x128x8xbf16>,
      %120 = vector.extract_strided_slice %76 {offsets = [0, 40], sizes = [128, 8], strides = [1, 1]} : vector<128x64xbf16> to vector<128x8xbf16>
      %c5_97 = arith.constant 5 : index
      %c0_98 = arith.constant 0 : index
      %c0_99 = arith.constant 0 : index
      %121 = vector.load %arg10[%c5_97, %c0_98, %c0_99] : memref<8x128x8xbf16, #tpu.memory_space<vmem>>, vector<1x128x8xbf16>
      %122 = vector.shape_cast %121 : vector<1x128x8xbf16> to vector<128x8xbf16>
      %123 = vector.shape_cast %120 : vector<128x8xbf16> to vector<1x128x8xbf16>
      tpu.vector_store %arg10[%c5_97, %c0_98, %c0_99], %123 {strides = array<i32>} : memref<8x128x8xbf16, #tpu.memory_space<vmem>>, vector<1x128x8xbf16>,
      %124 = vector.extract_strided_slice %79 {offsets = [0, 40], sizes = [128, 8], strides = [1, 1]} : vector<128x64xbf16> to vector<128x8xbf16>
      %c5_100 = arith.constant 5 : index
      %c0_101 = arith.constant 0 : index
      %c0_102 = arith.constant 0 : index
      %125 = vector.load %arg11[%c5_100, %c0_101, %c0_102] : memref<8x128x8xbf16, #tpu.memory_space<vmem>>, vector<1x128x8xbf16>
      %126 = vector.shape_cast %125 : vector<1x128x8xbf16> to vector<128x8xbf16>
      %127 = vector.shape_cast %124 : vector<128x8xbf16> to vector<1x128x8xbf16>
      tpu.vector_store %arg11[%c5_100, %c0_101, %c0_102], %127 {strides = array<i32>} : memref<8x128x8xbf16, #tpu.memory_space<vmem>>, vector<1x128x8xbf16>,
      %128 = vector.extract_strided_slice %76 {offsets = [0, 48], sizes = [128, 8], strides = [1, 1]} : vector<128x64xbf16> to vector<128x8xbf16>
      %c6_103 = arith.constant 6 : index
      %c0_104 = arith.constant 0 : index
      %c0_105 = arith.constant 0 : index
      %129 = vector.load %arg10[%c6_103, %c0_104, %c0_105] : memref<8x128x8xbf16, #tpu.memory_space<vmem>>, vector<1x128x8xbf16>
      %130 = vector.shape_cast %129 : vector<1x128x8xbf16> to vector<128x8xbf16>
      %131 = vector.shape_cast %128 : vector<128x8xbf16> to vector<1x128x8xbf16>
      tpu.vector_store %arg10[%c6_103, %c0_104, %c0_105], %131 {strides = array<i32>} : memref<8x128x8xbf16, #tpu.memory_space<vmem>>, vector<1x128x8xbf16>,
      %132 = vector.extract_strided_slice %79 {offsets = [0, 48], sizes = [128, 8], strides = [1, 1]} : vector<128x64xbf16> to vector<128x8xbf16>
      %c6_106 = arith.constant 6 : index
      %c0_107 = arith.constant 0 : index
      %c0_108 = arith.constant 0 : index
      %133 = vector.load %arg11[%c6_106, %c0_107, %c0_108] : memref<8x128x8xbf16, #tpu.memory_space<vmem>>, vector<1x128x8xbf16>
      %134 = vector.shape_cast %133 : vector<1x128x8xbf16> to vector<128x8xbf16>
      %135 = vector.shape_cast %132 : vector<128x8xbf16> to vector<1x128x8xbf16>
      tpu.vector_store %arg11[%c6_106, %c0_107, %c0_108], %135 {strides = array<i32>} : memref<8x128x8xbf16, #tpu.memory_space<vmem>>, vector<1x128x8xbf16>,
      %136 = vector.extract_strided_slice %76 {offsets = [0, 56], sizes = [128, 8], strides = [1, 1]} : vector<128x64xbf16> to vector<128x8xbf16>
      %c7_109 = arith.constant 7 : index
      %c0_110 = arith.constant 0 : index
      %c0_111 = arith.constant 0 : index
      %137 = vector.load %arg10[%c7_109, %c0_110, %c0_111] : memref<8x128x8xbf16, #tpu.memory_space<vmem>>, vector<1x128x8xbf16>
      %138 = vector.shape_cast %137 : vector<1x128x8xbf16> to vector<128x8xbf16>
      %139 = vector.shape_cast %136 : vector<128x8xbf16> to vector<1x128x8xbf16>
      tpu.vector_store %arg10[%c7_109, %c0_110, %c0_111], %139 {strides = array<i32>} : memref<8x128x8xbf16, #tpu.memory_space<vmem>>, vector<1x128x8xbf16>,
      %140 = vector.extract_strided_slice %79 {offsets = [0, 56], sizes = [128, 8], strides = [1, 1]} : vector<128x64xbf16> to vector<128x8xbf16>
      %c7_112 = arith.constant 7 : index
      %c0_113 = arith.constant 0 : index
      %c0_114 = arith.constant 0 : index
      %141 = vector.load %arg11[%c7_112, %c0_113, %c0_114] : memref<8x128x8xbf16, #tpu.memory_space<vmem>>, vector<1x128x8xbf16>
      %142 = vector.shape_cast %141 : vector<1x128x8xbf16> to vector<128x8xbf16>
      %143 = vector.shape_cast %140 : vector<128x8xbf16> to vector<1x128x8xbf16>
      tpu.vector_store %arg11[%c7_112, %c0_113, %c0_114], %143 {strides = array<i32>} : memref<8x128x8xbf16, #tpu.memory_space<vmem>>, vector<1x128x8xbf16>,
    } else {
    }
    %c0 = arith.constant 0 : index
    %c0_1 = arith.constant 0 : index
    %c0_2 = arith.constant 0 : index
    %3 = vector.load %arg2[%c0, %c0_1, %c0_2] : memref<1x128x64xbf16, #tpu.memory_space<vmem>>, vector<1x128x64xbf16>
    %4 = vector.shape_cast %3 : vector<1x128x64xbf16> to vector<128x64xbf16>
    %c0_3 = arith.constant 0 : index
    %c0_4 = arith.constant 0 : index
    %5 = vector.load %arg4[%c0_3, %c0_4] : memref<64x64xbf16, #tpu.memory_space<vmem>>, vector<64x64xbf16>
    %cst = arith.constant dense<0.000000e+00> : vector<128x64xf32>
    %6 = tpu.matmul %4, %5, %cst {dimension_numbers = #tpu.dot_dimension_numbers<[1], [0], [0], [1], [0, 0, 1, 1], [], []>} : vector<128x64xbf16>, vector<64x64xbf16>, vector<128x64xf32> -> vector<128x64xf32>
    %7 = arith.truncf %6 : vector<128x64xf32> to vector<128x64xbf16>
    %8 = vector.extract_strided_slice %7 {offsets = [0, 0], sizes = [128, 8], strides = [1, 1]} : vector<128x64xbf16> to vector<128x8xbf16>
    %c0_5 = arith.constant 0 : index
    %c0_6 = arith.constant 0 : index
    %c0_7 = arith.constant 0 : index
    %9 = vector.load %arg12[%c0_5, %c0_6, %c0_7] : memref<8x128x8xbf16, #tpu.memory_space<vmem>>, vector<1x128x8xbf16>
    %10 = vector.shape_cast %9 : vector<1x128x8xbf16> to vector<128x8xbf16>
    %11 = vector.shape_cast %8 : vector<128x8xbf16> to vector<1x128x8xbf16>
    tpu.vector_store %arg12[%c0_5, %c0_6, %c0_7], %11 {strides = array<i32>} : memref<8x128x8xbf16, #tpu.memory_space<vmem>>, vector<1x128x8xbf16>,
    %12 = vector.extract_strided_slice %7 {offsets = [0, 8], sizes = [128, 8], strides = [1, 1]} : vector<128x64xbf16> to vector<128x8xbf16>
    %c1 = arith.constant 1 : index
    %c0_8 = arith.constant 0 : index
    %c0_9 = arith.constant 0 : index
    %13 = vector.load %arg12[%c1, %c0_8, %c0_9] : memref<8x128x8xbf16, #tpu.memory_space<vmem>>, vector<1x128x8xbf16>
    %14 = vector.shape_cast %13 : vector<1x128x8xbf16> to vector<128x8xbf16>
    %15 = vector.shape_cast %12 : vector<128x8xbf16> to vector<1x128x8xbf16>
    tpu.vector_store %arg12[%c1, %c0_8, %c0_9], %15 {strides = array<i32>} : memref<8x128x8xbf16, #tpu.memory_space<vmem>>, vector<1x128x8xbf16>,
    %16 = vector.extract_strided_slice %7 {offsets = [0, 16], sizes = [128, 8], strides = [1, 1]} : vector<128x64xbf16> to vector<128x8xbf16>
    %c2 = arith.constant 2 : index
    %c0_10 = arith.constant 0 : index
    %c0_11 = arith.constant 0 : index
    %17 = vector.load %arg12[%c2, %c0_10, %c0_11] : memref<8x128x8xbf16, #tpu.memory_space<vmem>>, vector<1x128x8xbf16>
    %18 = vector.shape_cast %17 : vector<1x128x8xbf16> to vector<128x8xbf16>
    %19 = vector.shape_cast %16 : vector<128x8xbf16> to vector<1x128x8xbf16>
    tpu.vector_store %arg12[%c2, %c0_10, %c0_11], %19 {strides = array<i32>} : memref<8x128x8xbf16, #tpu.memory_space<vmem>>, vector<1x128x8xbf16>,
    %20 = vector.extract_strided_slice %7 {offsets = [0, 24], sizes = [128, 8], strides = [1, 1]} : vector<128x64xbf16> to vector<128x8xbf16>
    %c3 = arith.constant 3 : index
    %c0_12 = arith.constant 0 : index
    %c0_13 = arith.constant 0 : index
    %21 = vector.load %arg12[%c3, %c0_12, %c0_13] : memref<8x128x8xbf16, #tpu.memory_space<vmem>>, vector<1x128x8xbf16>
    %22 = vector.shape_cast %21 : vector<1x128x8xbf16> to vector<128x8xbf16>
    %23 = vector.shape_cast %20 : vector<128x8xbf16> to vector<1x128x8xbf16>
    tpu.vector_store %arg12[%c3, %c0_12, %c0_13], %23 {strides = array<i32>} : memref<8x128x8xbf16, #tpu.memory_space<vmem>>, vector<1x128x8xbf16>,
    %24 = vector.extract_strided_slice %7 {offsets = [0, 32], sizes = [128, 8], strides = [1, 1]} : vector<128x64xbf16> to vector<128x8xbf16>
    %c4 = arith.constant 4 : index
    %c0_14 = arith.constant 0 : index
    %c0_15 = arith.constant 0 : index
    %25 = vector.load %arg12[%c4, %c0_14, %c0_15] : memref<8x128x8xbf16, #tpu.memory_space<vmem>>, vector<1x128x8xbf16>
    %26 = vector.shape_cast %25 : vector<1x128x8xbf16> to vector<128x8xbf16>
    %27 = vector.shape_cast %24 : vector<128x8xbf16> to vector<1x128x8xbf16>
    tpu.vector_store %arg12[%c4, %c0_14, %c0_15], %27 {strides = array<i32>} : memref<8x128x8xbf16, #tpu.memory_space<vmem>>, vector<1x128x8xbf16>,
    %28 = vector.extract_strided_slice %7 {offsets = [0, 40], sizes = [128, 8], strides = [1, 1]} : vector<128x64xbf16> to vector<128x8xbf16>
    %c5 = arith.constant 5 : index
    %c0_16 = arith.constant 0 : index
    %c0_17 = arith.constant 0 : index
    %29 = vector.load %arg12[%c5, %c0_16, %c0_17] : memref<8x128x8xbf16, #tpu.memory_space<vmem>>, vector<1x128x8xbf16>
    %30 = vector.shape_cast %29 : vector<1x128x8xbf16> to vector<128x8xbf16>
    %31 = vector.shape_cast %28 : vector<128x8xbf16> to vector<1x128x8xbf16>
    tpu.vector_store %arg12[%c5, %c0_16, %c0_17], %31 {strides = array<i32>} : memref<8x128x8xbf16, #tpu.memory_space<vmem>>, vector<1x128x8xbf16>,
    %32 = vector.extract_strided_slice %7 {offsets = [0, 48], sizes = [128, 8], strides = [1, 1]} : vector<128x64xbf16> to vector<128x8xbf16>
    %c6 = arith.constant 6 : index
    %c0_18 = arith.constant 0 : index
    %c0_19 = arith.constant 0 : index
    %33 = vector.load %arg12[%c6, %c0_18, %c0_19] : memref<8x128x8xbf16, #tpu.memory_space<vmem>>, vector<1x128x8xbf16>
    %34 = vector.shape_cast %33 : vector<1x128x8xbf16> to vector<128x8xbf16>
    %35 = vector.shape_cast %32 : vector<128x8xbf16> to vector<1x128x8xbf16>
    tpu.vector_store %arg12[%c6, %c0_18, %c0_19], %35 {strides = array<i32>} : memref<8x128x8xbf16, #tpu.memory_space<vmem>>, vector<1x128x8xbf16>,
    %36 = vector.extract_strided_slice %7 {offsets = [0, 56], sizes = [128, 8], strides = [1, 1]} : vector<128x64xbf16> to vector<128x8xbf16>
    %c7 = arith.constant 7 : index
    %c0_20 = arith.constant 0 : index
    %c0_21 = arith.constant 0 : index
    %37 = vector.load %arg12[%c7, %c0_20, %c0_21] : memref<8x128x8xbf16, #tpu.memory_space<vmem>>, vector<1x128x8xbf16>
    %38 = vector.shape_cast %37 : vector<1x128x8xbf16> to vector<128x8xbf16>
    %39 = vector.shape_cast %36 : vector<128x8xbf16> to vector<1x128x8xbf16>
    tpu.vector_store %arg12[%c7, %c0_20, %c0_21], %39 {strides = array<i32>} : memref<8x128x8xbf16, #tpu.memory_space<vmem>>, vector<1x128x8xbf16>,
    %40 = tpu.iota {dimensions = array<i32: 1>} : vector<1x128xi32>
    %c16_i32 = arith.constant 16 : i32
    %41 = vector.broadcast %c16_i32 : i32 to vector<1x128xi32>
    %42 = arith.cmpi slt, %40, %41 : vector<1x128xi32>
    %cst_22 = arith.constant 0.000000e+00 : f32
    %cst_23 = arith.constant -1.000000e+30 : f32
    %43 = vector.broadcast %cst_22 : f32 to vector<1x128xf32>
    %44 = vector.broadcast %cst_23 : f32 to vector<1x128xf32>
    %45 = arith.select %42, %43, %44 : vector<1x128xi1>, vector<1x128xf32>
    %c0_i32_24 = arith.constant 0 : i32
    %c8_i32 = arith.constant 8 : i32
    %46 = arith.addi %c0_i32_24, %c8_i32 : i32
    %c1_i32 = arith.constant 1 : i32
    scf.for %arg14 = %c0_i32_24 to %46 step %c1_i32  : i32 {
      %72 = arith.index_cast %arg14 : i32 to index
      %c0_58 = arith.constant 0 : index
      %c0_59 = arith.constant 0 : index
      %73 = vector.load %arg12[%72, %c0_58, %c0_59] : memref<8x128x8xbf16, #tpu.memory_space<vmem>>, vector<1x128x8xbf16>
      %74 = vector.shape_cast %73 : vector<1x128x8xbf16> to vector<128x8xbf16>
      %75 = arith.index_cast %arg14 : i32 to index
      %c0_60 = arith.constant 0 : index
      %c0_61 = arith.constant 0 : index
      %76 = vector.load %arg10[%75, %c0_60, %c0_61] : memref<8x128x8xbf16, #tpu.memory_space<vmem>>, vector<1x128x8xbf16>
      %77 = vector.shape_cast %76 : vector<1x128x8xbf16> to vector<128x8xbf16>
      %78 = arith.index_cast %arg14 : i32 to index
      %c0_62 = arith.constant 0 : index
      %c0_63 = arith.constant 0 : index
      %79 = vector.load %arg11[%78, %c0_62, %c0_63] : memref<8x128x8xbf16, #tpu.memory_space<vmem>>, vector<1x128x8xbf16>
      %80 = vector.shape_cast %79 : vector<1x128x8xbf16> to vector<128x8xbf16>
      %cst_64 = arith.constant dense<0.000000e+00> : vector<128x128xf32>
      %81 = tpu.matmul %74, %77, %cst_64 {dimension_numbers = #tpu.dot_dimension_numbers<[1], [1], [0], [0], [0, 0, 1, 0], [], []>} : vector<128x8xbf16>, vector<128x8xbf16>, vector<128x128xf32> -> vector<128x128xf32>
      %82 = vector.broadcast %45 : vector<1x128xf32> to vector<128x128xf32>
      %83 = arith.addf %81, %82 : vector<128x128xf32>
      %cst_65 = arith.constant dense<0xFF800000> : vector<128xf32>
      %84 = vector.multi_reduction <maximumf>, %83, %cst_65 [1] : vector<128x128xf32> to vector<128xf32>
      %85 = vector.shape_cast %84 : vector<128xf32> to vector<128x1xf32>
      %86 = vector.broadcast %85 : vector<128x1xf32> to vector<128x128xf32>
      %87 = arith.subf %83, %86 : vector<128x128xf32>
      %88 = math.exp %87 : vector<128x128xf32>
      %cst_66 = arith.constant dense<0.000000e+00> : vector<128xf32>
      %89 = vector.multi_reduction <add>, %88, %cst_66 [1] : vector<128x128xf32> to vector<128xf32>
      %90 = vector.shape_cast %89 : vector<128xf32> to vector<128x1xf32>
      %91 = tpu.reciprocal %90 {approx = true} : vector<128x1xf32> -> vector<128x1xf32>
      %92 = vector.broadcast %91 : vector<128x1xf32> to vector<128x128xf32>
      %93 = arith.mulf %88, %92 : vector<128x128xf32>
      %94 = arith.truncf %93 : vector<128x128xf32> to vector<128x128xbf16>
      %cst_67 = arith.constant dense<0.000000e+00> : vector<128x8xf32>
      %95 = tpu.matmul %94, %80, %cst_67 {dimension_numbers = #tpu.dot_dimension_numbers<[1], [0], [0], [1], [0, 0, 1, 1], [], []>} : vector<128x128xbf16>, vector<128x8xbf16>, vector<128x8xf32> -> vector<128x8xf32>
      %96 = arith.truncf %95 : vector<128x8xf32> to vector<128x8xbf16>
      %97 = arith.index_cast %arg14 : i32 to index
      %c0_68 = arith.constant 0 : index
      %c0_69 = arith.constant 0 : index
      %98 = vector.load %arg13[%97, %c0_68, %c0_69] : memref<8x128x8xbf16, #tpu.memory_space<vmem>>, vector<1x128x8xbf16>
      %99 = vector.shape_cast %98 : vector<1x128x8xbf16> to vector<128x8xbf16>
      %100 = vector.shape_cast %96 : vector<128x8xbf16> to vector<1x128x8xbf16>
      tpu.vector_store %arg13[%97, %c0_68, %c0_69], %100 {strides = array<i32>} : memref<8x128x8xbf16, #tpu.memory_space<vmem>>, vector<1x128x8xbf16>,
    }
    %c8_i32_25 = arith.constant 8 : i32
    %c0_26 = arith.constant 0 : index
    %c0_27 = arith.constant 0 : index
    %c0_28 = arith.constant 0 : index
    %47 = vector.load %arg13[%c0_26, %c0_27, %c0_28] : memref<8x128x8xbf16, #tpu.memory_space<vmem>>, vector<1x128x8xbf16>
    %48 = vector.shape_cast %47 : vector<1x128x8xbf16> to vector<128x8xbf16>
    %c1_29 = arith.constant 1 : index
    %c0_30 = arith.constant 0 : index
    %c0_31 = arith.constant 0 : index
    %49 = vector.load %arg13[%c1_29, %c0_30, %c0_31] : memref<8x128x8xbf16, #tpu.memory_space<vmem>>, vector<1x128x8xbf16>
    %50 = vector.shape_cast %49 : vector<1x128x8xbf16> to vector<128x8xbf16>
    %c2_32 = arith.constant 2 : index
    %c0_33 = arith.constant 0 : index
    %c0_34 = arith.constant 0 : index
    %51 = vector.load %arg13[%c2_32, %c0_33, %c0_34] : memref<8x128x8xbf16, #tpu.memory_space<vmem>>, vector<1x128x8xbf16>
    %52 = vector.shape_cast %51 : vector<1x128x8xbf16> to vector<128x8xbf16>
    %c3_35 = arith.constant 3 : index
    %c0_36 = arith.constant 0 : index
    %c0_37 = arith.constant 0 : index
    %53 = vector.load %arg13[%c3_35, %c0_36, %c0_37] : memref<8x128x8xbf16, #tpu.memory_space<vmem>>, vector<1x128x8xbf16>
    %54 = vector.shape_cast %53 : vector<1x128x8xbf16> to vector<128x8xbf16>
    %c4_38 = arith.constant 4 : index
    %c0_39 = arith.constant 0 : index
    %c0_40 = arith.constant 0 : index
    %55 = vector.load %arg13[%c4_38, %c0_39, %c0_40] : memref<8x128x8xbf16, #tpu.memory_space<vmem>>, vector<1x128x8xbf16>
    %56 = vector.shape_cast %55 : vector<1x128x8xbf16> to vector<128x8xbf16>
    %c5_41 = arith.constant 5 : index
    %c0_42 = arith.constant 0 : index
    %c0_43 = arith.constant 0 : index
    %57 = vector.load %arg13[%c5_41, %c0_42, %c0_43] : memref<8x128x8xbf16, #tpu.memory_space<vmem>>, vector<1x128x8xbf16>
    %58 = vector.shape_cast %57 : vector<1x128x8xbf16> to vector<128x8xbf16>
    %c6_44 = arith.constant 6 : index
    %c0_45 = arith.constant 0 : index
    %c0_46 = arith.constant 0 : index
    %59 = vector.load %arg13[%c6_44, %c0_45, %c0_46] : memref<8x128x8xbf16, #tpu.memory_space<vmem>>, vector<1x128x8xbf16>
    %60 = vector.shape_cast %59 : vector<1x128x8xbf16> to vector<128x8xbf16>
    %c7_47 = arith.constant 7 : index
    %c0_48 = arith.constant 0 : index
    %c0_49 = arith.constant 0 : index
    %61 = vector.load %arg13[%c7_47, %c0_48, %c0_49] : memref<8x128x8xbf16, #tpu.memory_space<vmem>>, vector<1x128x8xbf16>
    %62 = vector.shape_cast %61 : vector<1x128x8xbf16> to vector<128x8xbf16>
    %63 = tpu.concatenate %48, %50, %52, %54, %56, %58, %60, %62 in 1 : vector<128x8xbf16>, vector<128x8xbf16>, vector<128x8xbf16>, vector<128x8xbf16>, vector<128x8xbf16>, vector<128x8xbf16>, vector<128x8xbf16>, vector<128x8xbf16> -> vector<128x64xbf16>
    %c0_50 = arith.constant 0 : index
    %c0_51 = arith.constant 0 : index
    %64 = vector.load %arg7[%c0_50, %c0_51] : memref<64x64xbf16, #tpu.memory_space<vmem>>, vector<64x64xbf16>
    %cst_52 = arith.constant dense<0.000000e+00> : vector<128x64xf32>
    %65 = tpu.matmul %63, %64, %cst_52 {dimension_numbers = #tpu.dot_dimension_numbers<[1], [0], [0], [1], [0, 0, 1, 1], [], []>} : vector<128x64xbf16>, vector<64x64xbf16>, vector<128x64xf32> -> vector<128x64xf32>
    %c0_53 = arith.constant 0 : index
    %c0_54 = arith.constant 0 : index
    %66 = vector.load %arg8[%c0_53, %c0_54] : memref<1x64xf32, #tpu.memory_space<vmem>>, vector<1x64xf32>
    %67 = vector.broadcast %66 : vector<1x64xf32> to vector<128x64xf32>
    %68 = arith.addf %65, %67 : vector<128x64xf32>
    %c0_55 = arith.constant 0 : index
    %c0_56 = arith.constant 0 : index
    %c0_57 = arith.constant 0 : index
    %69 = vector.load %arg9[%c0_55, %c0_56, %c0_57] : memref<1x128x64xf32, #tpu.memory_space<vmem>>, vector<1x128x64xf32>
    %70 = vector.shape_cast %69 : vector<1x128x64xf32> to vector<128x64xf32>
    %71 = vector.shape_cast %68 : vector<128x64xf32> to vector<1x128x64xf32>
    tpu.vector_store %arg9[%c0_55, %c0_56, %c0_57], %71 {strides = array<i32>} : memref<1x128x64xf32, #tpu.memory_space<vmem>>, vector<1x128x64xf32>,
    return
  }
  func.func @transform_0(%arg0: i32, %arg1: i32) -> (i32, i32, i32) {
    %c0_i32 = arith.constant 0 : i32
    %c0_i32_0 = arith.constant 0 : i32
    return %arg0, %arg1, %c0_i32 : i32, i32, i32
  }
  func.func @transform_1(%arg0: i32, %arg1: i32) -> (i32, i32, i32) {
    %c0_i32 = arith.constant 0 : i32
    %c0_i32_0 = arith.constant 0 : i32
    %c0_i32_1 = arith.constant 0 : i32
    return %arg0, %c0_i32, %c0_i32_0 : i32, i32, i32
  }
  func.func @transform_2(%arg0: i32, %arg1: i32) -> (i32, i32) {
    %c0_i32 = arith.constant 0 : i32
    %c0_i32_0 = arith.constant 0 : i32
    %c0_i32_1 = arith.constant 0 : i32
    return %c0_i32, %c0_i32_0 : i32, i32
  }
  func.func @transform_3(%arg0: i32, %arg1: i32) -> (i32, i32) {
    %c0_i32 = arith.constant 0 : i32
    %c0_i32_0 = arith.constant 0 : i32
    %c0_i32_1 = arith.constant 0 : i32
    return %c0_i32, %c0_i32_0 : i32, i32
  }
  func.func @transform_4(%arg0: i32, %arg1: i32) -> (i32, i32) {
    %c0_i32 = arith.constant 0 : i32
    %c0_i32_0 = arith.constant 0 : i32
    %c0_i32_1 = arith.constant 0 : i32
    return %c0_i32, %c0_i32_0 : i32, i32
  }
  func.func @transform_5(%arg0: i32, %arg1: i32) -> (i32, i32) {
    %c0_i32 = arith.constant 0 : i32
    %c0_i32_0 = arith.constant 0 : i32
    %c0_i32_1 = arith.constant 0 : i32
    return %c0_i32, %c0_i32_0 : i32, i32
  }
  func.func @transform_6(%arg0: i32, %arg1: i32) -> (i32, i32) {
    %c0_i32 = arith.constant 0 : i32
    %c0_i32_0 = arith.constant 0 : i32
    %c0_i32_1 = arith.constant 0 : i32
    return %c0_i32, %c0_i32_0 : i32, i32
  }
  func.func @transform_7(%arg0: i32, %arg1: i32) -> (i32, i32, i32) {
    %c0_i32 = arith.constant 0 : i32
    %c0_i32_0 = arith.constant 0 : i32
    return %arg0, %arg1, %c0_i32 : i32, i32, i32
  }
}

</mosaic_0001>

<bundles_post_ra>
// kernel: tpu_custom_call.1
= control target key start
LH: loop header
LB: loop body
LE: loop exit
PB: predicated region body
PF: predicated region fallthrough
CT: control target
= control target key end

     0   :  { %s5039_s24 = smov 0   ;;  %s5041_s25 = smov 0   ;;  %s6749_s0 = inlined_call_operand.vmem [shape: bf16[2,128,64], index: 0, kind: input, shape index: {}]   ;;  %s6750_s1 = inlined_call_operand.vmem [shape: bf16[2,128,64], index: 1, kind: input, shape index: {}]   ;;  %s6751_s2 = inlined_call_operand.vmem [shape: bf16[64,64], index: 2, kind: input, shape index: {}]   ;;  %s6752_s3 = inlined_call_operand.vmem [shape: bf16[64,64], index: 3, kind: input, shape index: {}]   ;;  %s6753_s4 = inlined_call_operand.vmem [shape: bf16[64,64], index: 4, kind: input, shape index: {}]   ;;  %s6754_s5 = inlined_call_operand.vmem [shape: bf16[64,64], index: 5, kind: input, shape index: {}]   ;;  %s6755_s6 = inlined_call_operand.vmem [shape: f32[1,64], index: 6, kind: input, shape index: {}]   ;;  %s6756_s7 = inlined_call_operand.vmem [shape: f32[2,128,64], index: 7, kind: output, shape index: {}]  }
   0x1   :  { %s5043_s26 = smov 0  }
   0x2 LB: > { %s29_s27 = sadd.s32 1, %s4974_s25  ;;  %p4147_p0 = scmp.ge.s32.totalorder %s4978_s26, 1  ;;  %s4978_s26 = sphi %s5043_s26, %s17_s26   ;;  %s4974_s25 = sphi %s5041_s25, %s6758_s25   ;;  %s4970_s24 = sphi %s5039_s24, %s6757_s24  }
   0x3   : > { %p31_p1 = scmp.ge.s32.totalorder %s29_s27, 2  ;;  %p268_p2 = scmp.lt.s32.totalorder %s4978_s26, 3 }
   0x5   : > { %s6760_s27 = smov (%p31_p1, %s29_s27), 0  ;;  %p269_p3 = pnand %p4147_p0, %p268_p2 }
   0x6   : > { %p314_p4 = scmp.lt.s32.totalorder (!%p269_p3), %s4970_s24, 1  ;;  %s4985_s13 = smov (!%p269_p3), 112  }
   0x7   : > { %272 = sbr.rel (%p269_p3) target bundleno = 2251 (0x8cb), region = 48  ;;  %s4986_s14 = smov (!%p269_p3), 104  }
   0x8   : > { %s4988_s16 = smov (!%p269_p3), 88   ;;  %s4989_s29 = smov (!%p269_p3), 80  }
   0x9   : > { %s6354_s8 = smov (!%p269_p3), 0  }
   0xc   : > { %v4768_v0 = vld [vmem:[%s6752_s3 + $0x18] sm:$0xff]   ;;  %v4769_v1 = vld [vmem:[%s6752_s3 + $0x10] sm:$0xff]   ;;  %s6762_s24 = smov (!%p314_p4, %s4970_s24), 1  ;;  %v4770_v2 = vld [vmem:[%s6752_s3 + $0x8] sm:$0xff]   ;;  %vm431_vm0 = vcmask 523264   ;;  %vm754_vm1 = vcmask 60416  }
   0xd   : > { %4537 = vmatprep.subr.bf16.mxu0 %v4768_v0  ;;  %4697 = vmatprep.subr.bf16.mxu1 %v4768_v0  ;;  %s4386_s11 = sshll.u32 %s6762_s24, 6  ;;  %s4388_s12 = sshll.u32 %s6762_s24, 7  ;;  %v4771_v5 = vld [vmem:[%s6752_s3] sm:$0xff]   ;;  %v4780_v6 = vld [vmem:[%s6753_s4 + $0x18] sm:$0xff]   ;;  %v4781_v11 = vld [vmem:[%s6753_s4 + $0x10] sm:$0xff]  }
   0xe   : > { %4538 = vmatpush3.bf16.msra.mxu0 %v4768_v0  ;;  %4701 = vmatpush3.bf16.msra.mxu1 %v4768_v0  ;;  %s5073_s15 = scalar_lea.vmem %s6750_s1, %s4386_s11  ;;  %s5078_s18 = scalar_lea.vmem %s6756_s7, %s4388_s12  ;;  %v4782_v12 = vld [vmem:[%s6753_s4 + $0x8] sm:$0xff]   ;;  %v4783_v15 = vld [vmem:[%s6753_s4] sm:$0xff]  }
   0xf   : > { %4539 = vmatprep.subr.bf16.mxu0 %v4769_v1  ;;  %4698 = vmatprep.subr.bf16.mxu1 %v4769_v1  ;;  %v4772_v3 = vld [vmem:[%s5073_s15] sm:$0xff]   ;;  %v4774_v7 = vld [vmem:[%s5073_s15 + $0x8] sm:$0xff]   ;;  %v4776_v9 = vld [vmem:[%s5073_s15 + $0x10] sm:$0xff]   ;;  %s5100_s30 = scalar_lea.vmem %s6749_s0, %s4386_s11  ;;  %s4984_s12 = smov 120  }
  0x10   : > { %v4773_v4 = vld [vmem:[%s5073_s15 + $0x20] sm:$0xff]   ;;  %4545 = vmatprep.mubr.msk.bf16.mxu0 %vm431_vm0, %v4772_v3  ;;  %v4775_v8 = vld [vmem:[%s5073_s15 + $0x28] sm:$0xff]   ;;  %v4778_v10 = vld [vmem:[%s5073_s15 + $0x30] sm:$0xff]  }
  0x11   : > { %4553 = vmatprep.mubr.msk.bf16.mxu1 %vm431_vm0, %v4773_v4  ;;  %v4777_v13 = vld [vmem:[%s5073_s15 + $0x18] sm:$0xff]  }
  0x12   : > { %4540 = vmatpush3.bf16.msra.mxu0 %v4769_v1  ;;  %4702 = vmatpush3.bf16.msra.mxu1 %v4769_v1  ;;  %v4779_v14 = vld [vmem:[%s5073_s15 + $0x38] sm:$0xff]   ;;  %s4987_s15 = smov 96  }
  0x13   : > { %4541 = vmatprep.subr.bf16.mxu0 %v4770_v2  ;;  %4699 = vmatprep.subr.bf16.mxu1 %v4770_v2 }
  0x16   : > { %4542 = vmatpush3.bf16.msra.mxu0 %v4770_v2  ;;  %4703 = vmatpush3.bf16.msra.mxu1 %v4770_v2 }
  0x17   : > { %4543 = vmatprep.subr.bf16.mxu0 %v4771_v5  ;;  %4700 = vmatprep.subr.bf16.mxu1 %v4771_v5 }
  0x1a   : > { %4544 = vmatpush3.bf16.msra.mxu0 %v4771_v5  ;;  %4704 = vmatpush3.bf16.msra.mxu1 %v4771_v5 }
  0x1b   : > { %4561 = vmatprep.subr.bf16.mxu1 %v4780_v6 }
  0x1d   : > { %4546 = vmatmul.mubr.msk.bf16.vlgmr.msra.gmra.mxu0 %vm431_vm0, %v4774_v7  ;;  %4554 = vmatmul.mubr.msk.bf16.vlgmr.msra.gmra.mxu1 %vm431_vm0, %v4775_v8 }
  0x1e   : > { %4549 = vmatprep.mubr.msk.bf16.mxu0 %vm431_vm0, %v4776_v9  ;;  %4557 = vmatprep.mubr.msk.bf16.mxu1 %vm431_vm0, %v4778_v10 }
  0x1f   : > { %4562 = vmatpush3.bf16.msra.mxu1 %v4780_v6 }
  0x20   : > { %4563 = vmatprep.subr.bf16.mxu1 %v4781_v11 }
  0x23   : > { %4564 = vmatpush3.bf16.msra.mxu1 %v4781_v11 }
  0x24   : > { %4565 = vmatprep.subr.bf16.mxu1 %v4782_v12 }
  0x25   : > { %4550 = vmatmul.mubr.msk.bf16.gmra.mxu0 %vm431_vm0, %v4777_v13  ;;  %4558 = vmatmul.mubr.msk.bf16.gmra.mxu1 %vm431_vm0, %v4779_v14 }
  0x26   : > { %4569 = vmatprep.mubr.msk.bf16.mxu1 %vm431_vm0, %v4772_v3 }
  0x27   : > { %4566 = vmatpush3.bf16.msra.mxu1 %v4782_v12 }
  0x28   : > { %4567 = vmatprep.subr.bf16.mxu1 %v4783_v15 }
  0x2b   : > { %4568 = vmatpush3.bf16.msra.mxu1 %v4783_v15 }
  0x2e   : > { %4570 = vmatmul.mubr.msk.bf16.vlgmr.msra.gmra.mxu1 %vm431_vm0, %v4774_v7 }
  0x2f   : > { %4573 = vmatprep.mubr.msk.bf16.mxu1 %vm431_vm0, %v4776_v9 }
  0x36   : > { %4574 = vmatmul.mubr.msk.bf16.gmra.mxu1 %vm431_vm0, %v4777_v13  ;;  %v4784_v13 = vld [vmem:[%s6751_s2 + $0x18] sm:$0xff]  }
  0x37   : > { %4577 = vmatprep.mubr.msk.bf16.mxu1 %vm431_vm0, %v4773_v4  ;;  %4585 = vmatprep.subr.bf16.mxu0 %v4784_v13 }
  0x38   : > { %4586 = vmatpush3.bf16.msra.mxu0 %v4784_v13 }
  0x3e   : > { %4578 = vmatmul.mubr.msk.bf16.gmra.mxu1 %vm431_vm0, %v4775_v8 }
  0x3f   : > { %4581 = vmatprep.mubr.msk.bf16.mxu1 %vm431_vm0, %v4778_v10 }
  0x46   : > { %4582 = vmatmul.mubr.msk.bf16.gmra.mxu1 %vm431_vm0, %v4779_v14 }
  0xdd   : > { %v4547_v16 = vpop.f32.mrf.mxu0  ;;  %v4555_v17 = vpop.f32.mrf.mxu1 }
  0xde   : > { %v5124_v18 = vpack.c.bf16 %v4547_v16, %v4547_v16  ;;  %v5126_v19 = vpack.c.bf16 %v4555_v17, %v4555_v17  ;;  %v4785_v17 = vld [vmem:[%s6751_s2 + $0x10] sm:$0xff]  }
  0xdf   : > { %v490_v20 = vpop.f32.mrf.mxu0  ;;  %v522_v21 = vpop.f32.mrf.mxu1  ;;  %4587 = vmatprep.subr.bf16.mxu0 %v4785_v17 }
  0xe0   : > { %757 = vst.msk [vmem:[#allocation2 + $0x8] sm:$0xf] %vm754_vm1, %v5124_v18  ;;  %765 = vst.msk [vmem:[#allocation2 + $0x28] sm:$0xf] %vm754_vm1, %v5126_v19  ;;  %v5132_v22 = vpack.c.bf16 %v490_v20, %v490_v20  ;;  %v5134_v23 = vpack.c.bf16 %v522_v21, %v522_v21  ;;  %863 = vrot.lane.b32.xlu0 %v5126_v19, %s4984_s12  ;;  %847 = vrot.lane.b32.xlu1 %v5124_v18, %s4984_s12  ;;  %v4786_v20 = vld [vmem:[%s6751_s2 + $0x8] sm:$0xff]   ;;  %v4787_v21 = vld [vmem:[%s6751_s2] sm:$0xff]  }
  0xe1   : > { %v4548_v24 = vpop.f32.mrf.mxu0  ;;  %v4556_v25 = vpop.f32.mrf.mxu1  ;;  %4588 = vmatpush3.bf16.msra.mxu0 %v4785_v17 }
  0xe2   : > { %755 = vst.msk [vmem:[#allocation2] sm:$0xf] %vm754_vm1, %v5132_v22  ;;  %763 = vst.msk [vmem:[#allocation2 + $0x20] sm:$0xf] %vm754_vm1, %v5134_v23  ;;  %v5144_v26 = vpack.c.bf16 %v4548_v24, %v4548_v24  ;;  %v5146_v27 = vpack.c.bf16 %v4556_v25, %v4556_v25  ;;  %4589 = vmatprep.subr.bf16.mxu0 %v4786_v20  ;;  %v4788_v24 = vld [vmem:[%s5100_s30] sm:$0xff]   ;;  %v4789_v25 = vld [vmem:[%s5100_s30 + $0x8] sm:$0xff]  }
  0xe3   : > { %v493_v28 = vpop.f32.mrf.mxu0  ;;  %v525_v29 = vpop.f32.mrf.mxu1  ;;  %4593 = vmatprep.mubr.msk.bf16.mxu0 %vm431_vm0, %v4788_v24 }
  0xe4   : > { %758 = vst.msk [vmem:[#allocation2 + $0xc] sm:$0xf] %vm754_vm1, %v5144_v26  ;;  %766 = vst.msk [vmem:[#allocation2 + $0x2c] sm:$0xf] %vm754_vm1, %v5146_v27  ;;  %v5152_v30 = vpack.c.bf16 %v493_v28, %v493_v28  ;;  %v5154_v31 = vpack.c.bf16 %v525_v29, %v525_v29  ;;  %977 = vrot.lane.b32.xlu0 %v5124_v18, %s4985_s13  ;;  %849 = vrot.lane.b32.xlu1 %v5144_v26, %s4984_s12 }
  0xe5   : > { %v4551_v32 = vpop.f32.mrf.mxu0  ;;  %v4559_v33 = vpop.f32.mrf.mxu1  ;;  %4590 = vmatpush3.bf16.msra.mxu0 %v4786_v20 }
  0xe6   : > { %756 = vst.msk [vmem:[#allocation2 + $0x4] sm:$0xf] %vm754_vm1, %v5152_v30  ;;  %764 = vst.msk [vmem:[#allocation2 + $0x24] sm:$0xf] %vm754_vm1, %v5154_v31  ;;  %v5164_v34 = vpack.c.bf16 %v4551_v32, %v4551_v32  ;;  %v5166_v35 = vpack.c.bf16 %v4559_v33, %v4559_v33  ;;  %4591 = vmatprep.subr.bf16.mxu0 %v4787_v21 }
  0xe7   : > { %v506_v36 = vpop.f32.mrf.mxu0  ;;  %v538_v37 = vpop.f32.mrf.mxu1 }
  0xe8   : > { %993 = vrot.lane.b32.xlu0 %v5126_v19, %s4985_s13  ;;  %865 = vrot.lane.b32.xlu1 %v5146_v27, %s4984_s12  ;;  %761 = vst.msk [vmem:[#allocation2 + $0x18] sm:$0xf] %vm754_vm1, %v5164_v34  ;;  %v5174_v38 = vpack.c.bf16 %v506_v36, %v506_v36  ;;  %769 = vst.msk [vmem:[#allocation2 + $0x38] sm:$0xf] %vm754_vm1, %v5166_v35  ;;  %v5178_v39 = vpack.c.bf16 %v538_v37, %v538_v37  ;;  %v4790_v36 = vld [vmem:[%s5100_s30 + $0x10] sm:$0xff]   ;;  %v4791_v37 = vld [vmem:[%s5100_s30 + $0x18] sm:$0xff]  }
  0xe9   : > { %v4552_v40 = vpop.f32.mrf.mxu0  ;;  %v4560_v41 = vpop.f32.mrf.mxu1  ;;  %4592 = vmatpush3.bf16.msra.mxu0 %v4787_v21 }
  0xea   : > { %759 = vst.msk [vmem:[#allocation2 + $0x10] sm:$0xf] %vm754_vm1, %v5174_v38  ;;  %v5182_v42 = vpack.c.bf16 %v4552_v40, %v4552_v40  ;;  %767 = vst.msk [vmem:[#allocation2 + $0x30] sm:$0xf] %vm754_vm1, %v5178_v39  ;;  %v5186_v43 = vpack.c.bf16 %v4560_v41, %v4560_v41 }
  0xeb   : > { %v509_v44 = vpop.f32.mrf.mxu0  ;;  %v541_v45 = vpop.f32.mrf.mxu1 }
  0xec   : > { %1107 = vrot.lane.b32.xlu0 %v5124_v18, %s4986_s14  ;;  %979 = vrot.lane.b32.xlu1 %v5144_v26, %s4985_s13  ;;  %762 = vst.msk [vmem:[#allocation2 + $0x1c] sm:$0xf] %vm754_vm1, %v5182_v42  ;;  %v5194_v46 = vpack.c.bf16 %v509_v44, %v509_v44  ;;  %770 = vst.msk [vmem:[#allocation2 + $0x3c] sm:$0xf] %vm754_vm1, %v5186_v43  ;;  %v5198_v47 = vpack.c.bf16 %v541_v45, %v541_v45 }
  0xed   : > { %4594 = vmatmul.mubr.msk.bf16.vlgmr.msra.gmra.mxu0 %vm431_vm0, %v4789_v25 }
  0xee   : > { %760 = vst.msk [vmem:[#allocation2 + $0x14] sm:$0xf] %vm754_vm1, %v5194_v46  ;;  %768 = vst.msk [vmem:[#allocation2 + $0x34] sm:$0xf] %vm754_vm1, %v5198_v47  ;;  %v4571_v48 = vpop.f32.mrf.mxu1  ;;  %4597 = vmatprep.mubr.msk.bf16.mxu0 %vm431_vm0, %v4790_v36 }
  0xef   : > { %v5204_v49 = vpack.c.bf16 %v4571_v48, %v4571_v48  ;;  %v4792_v48 = vld [vmem:[%s5100_s30 + $0x20] sm:$0xff]  }
  0xf0   : > { %1123 = vrot.lane.b32.xlu0 %v5126_v19, %s4986_s14  ;;  %995 = vrot.lane.b32.xlu1 %v5146_v27, %s4985_s13  ;;  %v627_v50 = vpop.f32.mrf.mxu1 }
  0xf1   : > { %829 = vst.msk [vmem:[#allocation3 + $0x8] sm:$0xf] %vm754_vm1, %v5204_v49  ;;  %v5212_v51 = vpack.c.bf16 %v627_v50, %v627_v50  ;;  %v4793_v50 = vld [vmem:[%s5100_s30 + $0x28] sm:$0xff]  }
  0xf2   : > { %v4572_v52 = vpop.f32.mrf.mxu1 }
  0xf3   : > { %827 = vst.msk [vmem:[#allocation3] sm:$0xf] %vm754_vm1, %v5212_v51  ;;  %v5216_v53 = vpack.c.bf16 %v4572_v52, %v4572_v52 }
  0xf4   : > { %1237 = vrot.lane.b32.xlu0 %v5124_v18, %s4987_s15  ;;  %1109 = vrot.lane.b32.xlu1 %v5144_v26, %s4986_s14  ;;  %v630_v54 = vpop.f32.mrf.mxu1 }
  0xf5   : > { %830 = vst.msk [vmem:[#allocation3 + $0xc] sm:$0xf] %vm754_vm1, %v5216_v53  ;;  %v5224_v55 = vpack.c.bf16 %v630_v54, %v630_v54  ;;  %4598 = vmatmul.mubr.msk.bf16.gmra.mxu0 %vm431_vm0, %v4791_v37 }
  0xf6   : > { %v4575_v56 = vpop.f32.mrf.mxu1  ;;  %4601 = vmatprep.mubr.msk.bf16.mxu0 %vm431_vm0, %v4792_v48 }
  0xf7   : > { %828 = vst.msk [vmem:[#allocation3 + $0x4] sm:$0xf] %vm754_vm1, %v5224_v55  ;;  %v5232_v57 = vpack.c.bf16 %v4575_v56, %v4575_v56 }
  0xf8   : > { %1253 = vrot.lane.b32.xlu0 %v5126_v19, %s4987_s15  ;;  %1125 = vrot.lane.b32.xlu1 %v5146_v27, %s4986_s14  ;;  %v643_v58 = vpop.f32.mrf.mxu1 }
  0xf9   : > { %833 = vst.msk [vmem:[#allocation3 + $0x18] sm:$0xf] %vm754_vm1, %v5232_v57  ;;  %v5236_v59 = vpack.c.bf16 %v643_v58, %v643_v58 }
  0xfa   : > { %v4576_v60 = vpop.f32.mrf.mxu1 }
  0xfb   : > { %831 = vst.msk [vmem:[#allocation3 + $0x10] sm:$0xf] %vm754_vm1, %v5236_v59  ;;  %v5244_v61 = vpack.c.bf16 %v4576_v60, %v4576_v60  ;;  %v4794_v60 = vld [vmem:[%s5100_s30 + $0x30] sm:$0xff]  }
  0xfc   : > { %843 = vrot.lane.b32.xlu0 %v5132_v22, %s4984_s12  ;;  %1239 = vrot.lane.b32.xlu1 %v5144_v26, %s4987_s15  ;;  %v646_v62 = vpop.f32.mrf.mxu1 }
  0xfd   : > { %834 = vst.msk [vmem:[#allocation3 + $0x1c] sm:$0xf] %vm754_vm1, %v5244_v61  ;;  %v5248_v63 = vpack.c.bf16 %v646_v62, %v646_v62  ;;  %4602 = vmatmul.mubr.msk.bf16.gmra.mxu0 %vm431_vm0, %v4793_v50  ;;  %v4795_v62 = vld [vmem:[%s5100_s30 + $0x38] sm:$0xff]   ;;  %s4990_s30 = smov 72  }
  0xfe   : > { %v4579_v0 = vpop.f32.mrf.mxu1  ;;  %4605 = vmatprep.mubr.msk.bf16.mxu0 %vm431_vm0, %v4794_v60 }
  0xff   : > { %832 = vst.msk [vmem:[#allocation3 + $0x14] sm:$0xf] %vm754_vm1, %v5248_v63  ;;  %v5280_v1 = vpack.c.bf16 %v4579_v0, %v4579_v0 }
 0x100   : > { %859 = vrot.lane.b32.xlu0 %v5134_v23, %s4984_s12  ;;  %1255 = vrot.lane.b32.xlu1 %v5146_v27, %s4987_s15  ;;  %v659_v2 = vpop.f32.mrf.mxu1 }
 0x101   : > { %837 = vst.msk [vmem:[#allocation3 + $0x28] sm:$0xf] %vm754_vm1, %v5280_v1  ;;  %v5284_v3 = vpack.c.bf16 %v659_v2, %v659_v2 }
 0x102   : > { %v4580_v4 = vpop.f32.mrf.mxu1 }
 0x103   : > { %835 = vst.msk [vmem:[#allocation3 + $0x20] sm:$0xf] %vm754_vm1, %v5284_v3  ;;  %v5292_v5 = vpack.c.bf16 %v4580_v4, %v4580_v4 }
 0x104   : > { %973 = vrot.lane.b32.xlu0 %v5132_v22, %s4985_s13  ;;  %861 = vrot.lane.b32.xlu1 %v5154_v31, %s4984_s12  ;;  %v662_v6 = vpop.f32.mrf.mxu1 }
 0x105   : > { %838 = vst.msk [vmem:[#allocation3 + $0x2c] sm:$0xf] %vm754_vm1, %v5292_v5  ;;  %v5296_v7 = vpack.c.bf16 %v662_v6, %v662_v6  ;;  %4606 = vmatmul.mubr.msk.bf16.gmra.mxu0 %vm431_vm0, %v4795_v62 }
 0x106   : > { %v4583_v8 = vpop.f32.mrf.mxu1 }
 0x107   : > { %836 = vst.msk [vmem:[#allocation3 + $0x24] sm:$0xf] %vm754_vm1, %v5296_v7  ;;  %v5332_v9 = vpack.c.bf16 %v4583_v8, %v4583_v8 }
 0x108   : > { %989 = vrot.lane.b32.xlu0 %v5134_v23, %s4985_s13  ;;  %975 = vrot.lane.b32.xlu1 %v5152_v30, %s4985_s13  ;;  %v675_v10 = vpop.f32.mrf.mxu1 }
 0x109   : > { %841 = vst.msk [vmem:[#allocation3 + $0x38] sm:$0xf] %vm754_vm1, %v5332_v9  ;;  %v5336_v11 = vpack.c.bf16 %v675_v10, %v675_v10 }
 0x10a   : > { %v4584_v12 = vpop.f32.mrf.mxu1 }
 0x10b   : > { %839 = vst.msk [vmem:[#allocation3 + $0x30] sm:$0xf] %vm754_vm1, %v5336_v11  ;;  %v5347_v14 = vpack.c.bf16 %v4584_v12, %v4584_v12 }
 0x10c   : > { %1103 = vrot.lane.b32.xlu0 %v5132_v22, %s4986_s14  ;;  %991 = vrot.lane.b32.xlu1 %v5154_v31, %s4985_s13  ;;  %v678_v15 = vpop.f32.mrf.mxu1 }
 0x10d   : > { %842 = vst.msk [vmem:[#allocation3 + $0x3c] sm:$0xf] %vm754_vm1, %v5347_v14  ;;  %v5351_v16 = vpack.c.bf16 %v678_v15, %v678_v15 }
 0x10f   : > { %840 = vst.msk [vmem:[#allocation3 + $0x34] sm:$0xf] %vm754_vm1, %v5351_v16 }
 0x110   : > { %1119 = vrot.lane.b32.xlu0 %v5134_v23, %s4986_s14  ;;  %1105 = vrot.lane.b32.xlu1 %v5152_v30, %s4986_s14 }
 0x114   : > { %1233 = vrot.lane.b32.xlu0 %v5132_v22, %s4987_s15  ;;  %1121 = vrot.lane.b32.xlu1 %v5154_v31, %s4986_s14 }
 0x118   : > { %1249 = vrot.lane.b32.xlu0 %v5134_v23, %s4987_s15  ;;  %1235 = vrot.lane.b32.xlu1 %v5152_v30, %s4987_s15 }
 0x11c   : > { %1363 = vrot.lane.b32.xlu0 %v5132_v22, %s4988_s16  ;;  %1251 = vrot.lane.b32.xlu1 %v5154_v31, %s4987_s15 }
 0x120   : > { %1365 = vrot.lane.b32.xlu1 %v5152_v30, %s4988_s16  ;;  %845 = vrot.lane.b32.xlu0 %v5152_v30, %s4984_s12 }
 0x124   : > { %855 = vrot.lane.b32.xlu0 %v5164_v34, %s4984_s12  ;;  %857 = vrot.lane.b32.xlu1 %v5182_v42, %s4984_s12 }
 0x128   : > { %871 = vrot.lane.b32.xlu0 %v5166_v35, %s4984_s12  ;;  %873 = vrot.lane.b32.xlu1 %v5186_v43, %s4984_s12 }
 0x12c   : > { %985 = vrot.lane.b32.xlu0 %v5164_v34, %s4985_s13  ;;  %987 = vrot.lane.b32.xlu1 %v5182_v42, %s4985_s13 }
 0x130   : > { %1001 = vrot.lane.b32.xlu0 %v5166_v35, %s4985_s13  ;;  %1003 = vrot.lane.b32.xlu1 %v5186_v43, %s4985_s13 }
 0x134   : > { %1115 = vrot.lane.b32.xlu0 %v5164_v34, %s4986_s14  ;;  %1117 = vrot.lane.b32.xlu1 %v5182_v42, %s4986_s14 }
 0x138   : > { %1131 = vrot.lane.b32.xlu0 %v5166_v35, %s4986_s14  ;;  %1133 = vrot.lane.b32.xlu1 %v5186_v43, %s4986_s14 }
 0x13c   : > { %1245 = vrot.lane.b32.xlu0 %v5164_v34, %s4987_s15  ;;  %1247 = vrot.lane.b32.xlu1 %v5182_v42, %s4987_s15 }
 0x140   : > { %1261 = vrot.lane.b32.xlu0 %v5166_v35, %s4987_s15  ;;  %1263 = vrot.lane.b32.xlu1 %v5186_v43, %s4987_s15 }
 0x144   : > { %851 = vrot.lane.b32.xlu0 %v5174_v38, %s4984_s12  ;;  %853 = vrot.lane.b32.xlu1 %v5194_v46, %s4984_s12 }
 0x148   : > { %867 = vrot.lane.b32.xlu0 %v5178_v39, %s4984_s12  ;;  %869 = vrot.lane.b32.xlu1 %v5198_v47, %s4984_s12 }
 0x14c   : > { %981 = vrot.lane.b32.xlu0 %v5174_v38, %s4985_s13  ;;  %983 = vrot.lane.b32.xlu1 %v5194_v46, %s4985_s13 }
 0x150   : > { %997 = vrot.lane.b32.xlu0 %v5178_v39, %s4985_s13  ;;  %999 = vrot.lane.b32.xlu1 %v5198_v47, %s4985_s13 }
 0x152   : > { %v864_v28 = vpop.permute.xlu0 %863  ;;  %v848_v29 = vpop.permute.xlu1 %847 }
 0x153   : > { %902 = vst.msk [vmem:[#allocation2 + $0x68] sm:$0xf] %vm754_vm1, %v864_v28  ;;  %894 = vst.msk [vmem:[#allocation2 + $0x48] sm:$0xf] %vm754_vm1, %v848_v29 }
 0x154   : > { %1111 = vrot.lane.b32.xlu0 %v5174_v38, %s4986_s14  ;;  %1113 = vrot.lane.b32.xlu1 %v5194_v46, %s4986_s14 }
 0x156   : > { %v978_v32 = vpop.permute.xlu0 %977  ;;  %v850_v33 = vpop.permute.xlu1 %849 }
 0x157   : > { %1024 = vst.msk [vmem:[#allocation2 + $0x88] sm:$0xf] %vm754_vm1, %v978_v32  ;;  %895 = vst.msk [vmem:[#allocation2 + $0x4c] sm:$0xf] %vm754_vm1, %v850_v33 }
 0x158   : > { %1127 = vrot.lane.b32.xlu0 %v5178_v39, %s4986_s14  ;;  %1129 = vrot.lane.b32.xlu1 %v5198_v47, %s4986_s14 }
 0x15a   : > { %v994_v40 = vpop.permute.xlu0 %993  ;;  %v866_v41 = vpop.permute.xlu1 %865 }
 0x15b   : > { %1032 = vst.msk [vmem:[#allocation2 + $0xa8] sm:$0xf] %vm754_vm1, %v994_v40  ;;  %903 = vst.msk [vmem:[#allocation2 + $0x6c] sm:$0xf] %vm754_vm1, %v866_v41 }
 0x15c   : > { %1241 = vrot.lane.b32.xlu0 %v5174_v38, %s4987_s15  ;;  %1243 = vrot.lane.b32.xlu1 %v5194_v46, %s4987_s15 }
 0x15e   : > { %v1108_v44 = vpop.permute.xlu0 %1107  ;;  %v980_v45 = vpop.permute.xlu1 %979 }
 0x15f   : > { %1154 = vst.msk [vmem:[#allocation2 + $0xc8] sm:$0xf] %vm754_vm1, %v1108_v44  ;;  %1025 = vst.msk [vmem:[#allocation2 + $0x8c] sm:$0xf] %vm754_vm1, %v980_v45 }
 0x160   : > { %1257 = vrot.lane.b32.xlu0 %v5178_v39, %s4987_s15  ;;  %1259 = vrot.lane.b32.xlu1 %v5198_v47, %s4987_s15 }
 0x162   : > { %v1124_v52 = vpop.permute.xlu0 %1123  ;;  %v996_v54 = vpop.permute.xlu1 %995 }
 0x163   : > { %1162 = vst.msk [vmem:[#allocation2 + $0xe8] sm:$0xf] %vm754_vm1, %v1124_v52  ;;  %1033 = vst.msk [vmem:[#allocation2 + $0xac] sm:$0xf] %vm754_vm1, %v996_v54 }
 0x164   : > { %912 = vrot.lane.b32.xlu0 %v5204_v49, %s4984_s12  ;;  %914 = vrot.lane.b32.xlu1 %v5216_v53, %s4984_s12 }
 0x166   : > { %v1238_v56 = vpop.permute.xlu0 %1237  ;;  %v1110_v58 = vpop.permute.xlu1 %1109 }
 0x167   : > { %1284 = vst.msk [vmem:[#allocation2 + $0x108] sm:$0xf] %vm754_vm1, %v1238_v56  ;;  %1155 = vst.msk [vmem:[#allocation2 + $0xcc] sm:$0xf] %vm754_vm1, %v1110_v58 }
 0x168   : > { %1042 = vrot.lane.b32.xlu0 %v5204_v49, %s4985_s13  ;;  %1044 = vrot.lane.b32.xlu1 %v5216_v53, %s4985_s13 }
 0x16a   : > { %v1254_v0 = vpop.permute.xlu0 %1253  ;;  %v1126_v2 = vpop.permute.xlu1 %1125 }
 0x16b   : > { %1292 = vst.msk [vmem:[#allocation2 + $0x128] sm:$0xf] %vm754_vm1, %v1254_v0  ;;  %1163 = vst.msk [vmem:[#allocation2 + $0xec] sm:$0xf] %vm754_vm1, %v1126_v2 }
 0x16c   : > { %1172 = vrot.lane.b32.xlu0 %v5204_v49, %s4986_s14  ;;  %1174 = vrot.lane.b32.xlu1 %v5216_v53, %s4986_s14 }
 0x16e   : > { %v844_v4 = vpop.permute.xlu0 %843  ;;  %v1240_v6 = vpop.permute.xlu1 %1239 }
 0x16f   : > { %892 = vst.msk [vmem:[#allocation2 + $0x40] sm:$0xf] %vm754_vm1, %v844_v4  ;;  %1285 = vst.msk [vmem:[#allocation2 + $0x10c] sm:$0xf] %vm754_vm1, %v1240_v6 }
 0x170   : > { %1302 = vrot.lane.b32.xlu0 %v5204_v49, %s4987_s15  ;;  %1304 = vrot.lane.b32.xlu1 %v5216_v53, %s4987_s15 }
 0x172   : > { %v860_v8 = vpop.permute.xlu0 %859  ;;  %v1256_v10 = vpop.permute.xlu1 %1255 }
 0x173   : > { %900 = vst.msk [vmem:[#allocation2 + $0x60] sm:$0xf] %vm754_vm1, %v860_v8  ;;  %1293 = vst.msk [vmem:[#allocation2 + $0x12c] sm:$0xf] %vm754_vm1, %v1256_v10 }
 0x174   : > { %908 = vrot.lane.b32.xlu0 %v5212_v51, %s4984_s12  ;;  %910 = vrot.lane.b32.xlu1 %v5224_v55, %s4984_s12 }
 0x176   : > { %v974_v12 = vpop.permute.xlu0 %973  ;;  %v862_v13 = vpop.permute.xlu1 %861 }
 0x177   : > { %1022 = vst.msk [vmem:[#allocation2 + $0x80] sm:$0xf] %vm754_vm1, %v974_v12  ;;  %901 = vst.msk [vmem:[#allocation2 + $0x64] sm:$0xf] %vm754_vm1, %v862_v13 }
 0x178   : > { %1038 = vrot.lane.b32.xlu0 %v5212_v51, %s4985_s13  ;;  %1040 = vrot.lane.b32.xlu1 %v5224_v55, %s4985_s13 }
 0x17a   : > { %v990_v15 = vpop.permute.xlu0 %989  ;;  %v976_v17 = vpop.permute.xlu1 %975 }
 0x17b   : > { %1030 = vst.msk [vmem:[#allocation2 + $0xa0] sm:$0xf] %vm754_vm1, %v990_v15  ;;  %1023 = vst.msk [vmem:[#allocation2 + $0x84] sm:$0xf] %vm754_vm1, %v976_v17 }
 0x17c   : > { %1168 = vrot.lane.b32.xlu0 %v5212_v51, %s4986_s14  ;;  %1170 = vrot.lane.b32.xlu1 %v5224_v55, %s4986_s14 }
 0x17e   : > { %v1104_v20 = vpop.permute.xlu0 %1103  ;;  %v992_v21 = vpop.permute.xlu1 %991 }
 0x17f   : > { %1152 = vst.msk [vmem:[#allocation2 + $0xc0] sm:$0xf] %vm754_vm1, %v1104_v20  ;;  %1031 = vst.msk [vmem:[#allocation2 + $0xa4] sm:$0xf] %vm754_vm1, %v992_v21 }
 0x180   : > { %1298 = vrot.lane.b32.xlu0 %v5212_v51, %s4987_s15  ;;  %1300 = vrot.lane.b32.xlu1 %v5224_v55, %s4987_s15 }
 0x182   : > { %v1120_v24 = vpop.permute.xlu0 %1119  ;;  %v1106_v25 = vpop.permute.xlu1 %1105 }
 0x183   : > { %1160 = vst.msk [vmem:[#allocation2 + $0xe0] sm:$0xf] %vm754_vm1, %v1120_v24  ;;  %1153 = vst.msk [vmem:[#allocation2 + $0xc4] sm:$0xf] %vm754_vm1, %v1106_v25 }
 0x184   : > { %920 = vrot.lane.b32.xlu0 %v5232_v57, %s4984_s12  ;;  %922 = vrot.lane.b32.xlu1 %v5244_v61, %s4984_s12 }
 0x186   : > { %v1234_v28 = vpop.permute.xlu0 %1233  ;;  %v1122_v29 = vpop.permute.xlu1 %1121 }
 0x187   : > { %1282 = vst.msk [vmem:[#allocation2 + $0x100] sm:$0xf] %vm754_vm1, %v1234_v28  ;;  %1161 = vst.msk [vmem:[#allocation2 + $0xe4] sm:$0xf] %vm754_vm1, %v1122_v29 }
 0x188   : > { %1050 = vrot.lane.b32.xlu0 %v5232_v57, %s4985_s13  ;;  %1052 = vrot.lane.b32.xlu1 %v5244_v61, %s4985_s13 }
 0x18a   : > { %v1250_v32 = vpop.permute.xlu0 %1249  ;;  %v1236_v33 = vpop.permute.xlu1 %1235 }
 0x18b   : > { %1290 = vst.msk [vmem:[#allocation2 + $0x120] sm:$0xf] %vm754_vm1, %v1250_v32  ;;  %1283 = vst.msk [vmem:[#allocation2 + $0x104] sm:$0xf] %vm754_vm1, %v1236_v33 }
 0x18c   : > { %1180 = vrot.lane.b32.xlu0 %v5232_v57, %s4986_s14  ;;  %1182 = vrot.lane.b32.xlu1 %v5244_v61, %s4986_s14 }
 0x18e   : > { %v1364_v36 = vpop.permute.xlu0 %1363  ;;  %v1252_v37 = vpop.permute.xlu1 %1251 }
 0x18f   : > { %1412 = vst.msk [vmem:[#allocation2 + $0x140] sm:$0xf] %vm754_vm1, %v1364_v36  ;;  %1291 = vst.msk [vmem:[#allocation2 + $0x124] sm:$0xf] %vm754_vm1, %v1252_v37 }
 0x190   : > { %1310 = vrot.lane.b32.xlu0 %v5232_v57, %s4987_s15  ;;  %1312 = vrot.lane.b32.xlu1 %v5244_v61, %s4987_s15 }
 0x192   : > { %v1366_v40 = vpop.permute.xlu1 %1365  ;;  %v846_v41 = vpop.permute.xlu0 %845 }
 0x193   : > { %1413 = vst.msk [vmem:[#allocation2 + $0x144] sm:$0xf] %vm754_vm1, %v1366_v40  ;;  %893 = vst.msk [vmem:[#allocation2 + $0x44] sm:$0xf] %vm754_vm1, %v846_v41 }
 0x194   : > { %916 = vrot.lane.b32.xlu0 %v5236_v59, %s4984_s12  ;;  %918 = vrot.lane.b32.xlu1 %v5248_v63, %s4984_s12 }
 0x196   : > { %v856_v44 = vpop.permute.xlu0 %855  ;;  %v858_v45 = vpop.permute.xlu1 %857 }
 0x197   : > { %898 = vst.msk [vmem:[#allocation2 + $0x58] sm:$0xf] %vm754_vm1, %v856_v44  ;;  %899 = vst.msk [vmem:[#allocation2 + $0x5c] sm:$0xf] %vm754_vm1, %v858_v45 }
 0x198   : > { %1046 = vrot.lane.b32.xlu0 %v5236_v59, %s4985_s13  ;;  %1048 = vrot.lane.b32.xlu1 %v5248_v63, %s4985_s13 }
 0x19a   : > { %v872_v48 = vpop.permute.xlu0 %871  ;;  %v874_v50 = vpop.permute.xlu1 %873 }
 0x19b   : > { %906 = vst.msk [vmem:[#allocation2 + $0x78] sm:$0xf] %vm754_vm1, %v872_v48  ;;  %907 = vst.msk [vmem:[#allocation2 + $0x7c] sm:$0xf] %vm754_vm1, %v874_v50 }
 0x19c   : > { %1176 = vrot.lane.b32.xlu0 %v5236_v59, %s4986_s14  ;;  %1178 = vrot.lane.b32.xlu1 %v5248_v63, %s4986_s14 }
 0x19e   : > { %v986_v52 = vpop.permute.xlu0 %985  ;;  %v988_v54 = vpop.permute.xlu1 %987 }
 0x19f   : > { %1028 = vst.msk [vmem:[#allocation2 + $0x98] sm:$0xf] %vm754_vm1, %v986_v52  ;;  %1029 = vst.msk [vmem:[#allocation2 + $0x9c] sm:$0xf] %vm754_vm1, %v988_v54 }
 0x1a0   : > { %1306 = vrot.lane.b32.xlu0 %v5236_v59, %s4987_s15  ;;  %1308 = vrot.lane.b32.xlu1 %v5248_v63, %s4987_s15 }
 0x1a2   : > { %v1002_v56 = vpop.permute.xlu0 %1001  ;;  %v1004_v58 = vpop.permute.xlu1 %1003 }
 0x1a3   : > { %1036 = vst.msk [vmem:[#allocation2 + $0xb8] sm:$0xf] %vm754_vm1, %v1002_v56  ;;  %1037 = vst.msk [vmem:[#allocation2 + $0xbc] sm:$0xf] %vm754_vm1, %v1004_v58 }
 0x1a4   : > { %928 = vrot.lane.b32.xlu0 %v5280_v1, %s4984_s12  ;;  %930 = vrot.lane.b32.xlu1 %v5292_v5, %s4984_s12 }
 0x1a6   : > { %v1116_v60 = vpop.permute.xlu0 %1115  ;;  %v1118_v62 = vpop.permute.xlu1 %1117 }
 0x1a7   : > { %1158 = vst.msk [vmem:[#allocation2 + $0xd8] sm:$0xf] %vm754_vm1, %v1116_v60  ;;  %1159 = vst.msk [vmem:[#allocation2 + $0xdc] sm:$0xf] %vm754_vm1, %v1118_v62 }
 0x1a8   : > { %1058 = vrot.lane.b32.xlu0 %v5280_v1, %s4985_s13  ;;  %1060 = vrot.lane.b32.xlu1 %v5292_v5, %s4985_s13 }
 0x1aa   : > { %v1132_v0 = vpop.permute.xlu0 %1131  ;;  %v1134_v2 = vpop.permute.xlu1 %1133 }
 0x1ab   : > { %1166 = vst.msk [vmem:[#allocation2 + $0xf8] sm:$0xf] %vm754_vm1, %v1132_v0  ;;  %1167 = vst.msk [vmem:[#allocation2 + $0xfc] sm:$0xf] %vm754_vm1, %v1134_v2 }
 0x1ac   : > { %1188 = vrot.lane.b32.xlu0 %v5280_v1, %s4986_s14  ;;  %1190 = vrot.lane.b32.xlu1 %v5292_v5, %s4986_s14 }
 0x1ae   : > { %v1246_v4 = vpop.permute.xlu0 %1245  ;;  %v1248_v6 = vpop.permute.xlu1 %1247 }
 0x1af   : > { %1288 = vst.msk [vmem:[#allocation2 + $0x118] sm:$0xf] %vm754_vm1, %v1246_v4  ;;  %1289 = vst.msk [vmem:[#allocation2 + $0x11c] sm:$0xf] %vm754_vm1, %v1248_v6 }
 0x1b0   : > { %1318 = vrot.lane.b32.xlu0 %v5280_v1, %s4987_s15  ;;  %1320 = vrot.lane.b32.xlu1 %v5292_v5, %s4987_s15 }
 0x1b2   : > { %v1262_v8 = vpop.permute.xlu0 %1261  ;;  %v1264_v10 = vpop.permute.xlu1 %1263 }
 0x1b3   : > { %1296 = vst.msk [vmem:[#allocation2 + $0x138] sm:$0xf] %vm754_vm1, %v1262_v8  ;;  %1297 = vst.msk [vmem:[#allocation2 + $0x13c] sm:$0xf] %vm754_vm1, %v1264_v10 }
 0x1b4   : > { %924 = vrot.lane.b32.xlu0 %v5284_v3, %s4984_s12  ;;  %926 = vrot.lane.b32.xlu1 %v5296_v7, %s4984_s12 }
 0x1b6   : > { %v852_v12 = vpop.permute.xlu0 %851  ;;  %v854_v13 = vpop.permute.xlu1 %853 }
 0x1b7   : > { %896 = vst.msk [vmem:[#allocation2 + $0x50] sm:$0xf] %vm754_vm1, %v852_v12  ;;  %897 = vst.msk [vmem:[#allocation2 + $0x54] sm:$0xf] %vm754_vm1, %v854_v13 }
 0x1b8   : > { %1054 = vrot.lane.b32.xlu0 %v5284_v3, %s4985_s13  ;;  %1056 = vrot.lane.b32.xlu1 %v5296_v7, %s4985_s13 }
 0x1ba   : > { %v868_v15 = vpop.permute.xlu0 %867  ;;  %v870_v17 = vpop.permute.xlu1 %869 }
 0x1bb   : > { %904 = vst.msk [vmem:[#allocation2 + $0x70] sm:$0xf] %vm754_vm1, %v868_v15  ;;  %905 = vst.msk [vmem:[#allocation2 + $0x74] sm:$0xf] %vm754_vm1, %v870_v17 }
 0x1bc   : > { %1184 = vrot.lane.b32.xlu0 %v5284_v3, %s4986_s14  ;;  %1186 = vrot.lane.b32.xlu1 %v5296_v7, %s4986_s14 }
 0x1be   : > { %v982_v20 = vpop.permute.xlu0 %981  ;;  %v984_v21 = vpop.permute.xlu1 %983 }
 0x1bf   : > { %1026 = vst.msk [vmem:[#allocation2 + $0x90] sm:$0xf] %vm754_vm1, %v982_v20  ;;  %1027 = vst.msk [vmem:[#allocation2 + $0x94] sm:$0xf] %vm754_vm1, %v984_v21 }
 0x1c0   : > { %1314 = vrot.lane.b32.xlu0 %v5284_v3, %s4987_s15  ;;  %1316 = vrot.lane.b32.xlu1 %v5296_v7, %s4987_s15 }
 0x1c2   : > { %v998_v24 = vpop.permute.xlu0 %997  ;;  %v1000_v25 = vpop.permute.xlu1 %999 }
 0x1c3   : > { %1034 = vst.msk [vmem:[#allocation2 + $0xb0] sm:$0xf] %vm754_vm1, %v998_v24  ;;  %1035 = vst.msk [vmem:[#allocation2 + $0xb4] sm:$0xf] %vm754_vm1, %v1000_v25 }
 0x1c4   : > { %936 = vrot.lane.b32.xlu0 %v5332_v9, %s4984_s12  ;;  %1369 = vrot.lane.b32.xlu1 %v5144_v26, %s4988_s16 }
 0x1c6   : > { %v1112_v28 = vpop.permute.xlu0 %1111  ;;  %v1114_v29 = vpop.permute.xlu1 %1113 }
 0x1c7   : > { %1156 = vst.msk [vmem:[#allocation2 + $0xd0] sm:$0xf] %vm754_vm1, %v1112_v28  ;;  %1157 = vst.msk [vmem:[#allocation2 + $0xd4] sm:$0xf] %vm754_vm1, %v1114_v29 }
 0x1c8   : > { %1066 = vrot.lane.b32.xlu0 %v5332_v9, %s4985_s13  ;;  %938 = vrot.lane.b32.xlu1 %v5347_v14, %s4984_s12 }
 0x1ca   : > { %v1128_v32 = vpop.permute.xlu0 %1127  ;;  %v1130_v33 = vpop.permute.xlu1 %1129 }
 0x1cb   : > { %1164 = vst.msk [vmem:[#allocation2 + $0xf0] sm:$0xf] %vm754_vm1, %v1128_v32  ;;  %1165 = vst.msk [vmem:[#allocation2 + $0xf4] sm:$0xf] %vm754_vm1, %v1130_v33 }
 0x1cc   : > { %1196 = vrot.lane.b32.xlu0 %v5332_v9, %s4986_s14  ;;  %1068 = vrot.lane.b32.xlu1 %v5347_v14, %s4985_s13 }
 0x1ce   : > { %v1242_v36 = vpop.permute.xlu0 %1241  ;;  %v1244_v37 = vpop.permute.xlu1 %1243 }
 0x1cf   : > { %1286 = vst.msk [vmem:[#allocation2 + $0x110] sm:$0xf] %vm754_vm1, %v1242_v36  ;;  %1287 = vst.msk [vmem:[#allocation2 + $0x114] sm:$0xf] %vm754_vm1, %v1244_v37 }
 0x1d0   : > { %1326 = vrot.lane.b32.xlu0 %v5332_v9, %s4987_s15  ;;  %1198 = vrot.lane.b32.xlu1 %v5347_v14, %s4986_s14 }
 0x1d2   : > { %v1258_v40 = vpop.permute.xlu0 %1257  ;;  %v1260_v41 = vpop.permute.xlu1 %1259 }
 0x1d3   : > { %1294 = vst.msk [vmem:[#allocation2 + $0x130] sm:$0xf] %vm754_vm1, %v1258_v40  ;;  %1295 = vst.msk [vmem:[#allocation2 + $0x134] sm:$0xf] %vm754_vm1, %v1260_v41 }
 0x1d4   : > { %932 = vrot.lane.b32.xlu0 %v5336_v11, %s4984_s12  ;;  %1328 = vrot.lane.b32.xlu1 %v5347_v14, %s4987_s15 }
 0x1d6   : > { %v913_v44 = vpop.permute.xlu0 %912  ;;  %v915_v45 = vpop.permute.xlu1 %914 }
 0x1d7   : > { %959 = vst.msk [vmem:[#allocation3 + $0x48] sm:$0xf] %vm754_vm1, %v913_v44  ;;  %960 = vst.msk [vmem:[#allocation3 + $0x4c] sm:$0xf] %vm754_vm1, %v915_v45  ;;  %v4595_v44 = vpop.f32.mrf.mxu0 }
 0x1d8   : > { %1062 = vrot.lane.b32.xlu0 %v5336_v11, %s4985_s13  ;;  %934 = vrot.lane.b32.xlu1 %v5351_v16, %s4984_s12  ;;  %v5690_v45 = vpack.c.bf16 %v4595_v44, %v4595_v44 }
 0x1da   : > { %v1043_v48 = vpop.permute.xlu0 %1042  ;;  %v1045_v50 = vpop.permute.xlu1 %1044  ;;  %2030 = vst.msk [vmem:[#allocation4 + $0x8] sm:$0xf] %vm754_vm1, %v5690_v45 }
 0x1db   : > { %1089 = vst.msk [vmem:[#allocation3 + $0x88] sm:$0xf] %vm754_vm1, %v1043_v48  ;;  %1090 = vst.msk [vmem:[#allocation3 + $0x8c] sm:$0xf] %vm754_vm1, %v1045_v50  ;;  %v1900_v48 = vpop.f32.mrf.mxu0 }
 0x1dc   : > { %1192 = vrot.lane.b32.xlu0 %v5336_v11, %s4986_s14  ;;  %1064 = vrot.lane.b32.xlu1 %v5351_v16, %s4985_s13 }
 0x1de   : > { %v1173_v52 = vpop.permute.xlu0 %1172  ;;  %v1175_v54 = vpop.permute.xlu1 %1174 }
 0x1df   : > { %1219 = vst.msk [vmem:[#allocation3 + $0xc8] sm:$0xf] %vm754_vm1, %v1173_v52  ;;  %1220 = vst.msk [vmem:[#allocation3 + $0xcc] sm:$0xf] %vm754_vm1, %v1175_v54  ;;  %v5694_v54 = vpack.c.bf16 %v1900_v48, %v1900_v48 }
 0x1e0   : > { %1322 = vrot.lane.b32.xlu0 %v5336_v11, %s4987_s15  ;;  %1194 = vrot.lane.b32.xlu1 %v5351_v16, %s4986_s14 }
 0x1e1   : > { %2028 = vst.msk [vmem:[#allocation4] sm:$0xf] %vm754_vm1, %v5694_v54 }
 0x1e2   : > { %v1303_v56 = vpop.permute.xlu0 %1302  ;;  %v1305_v58 = vpop.permute.xlu1 %1304 }
 0x1e3   : > { %1349 = vst.msk [vmem:[#allocation3 + $0x108] sm:$0xf] %vm754_vm1, %v1303_v56  ;;  %1350 = vst.msk [vmem:[#allocation3 + $0x10c] sm:$0xf] %vm754_vm1, %v1305_v58  ;;  %v4596_v56 = vpop.f32.mrf.mxu0 }
 0x1e4   : > { %1367 = vrot.lane.b32.xlu0 %v5124_v18, %s4988_s16  ;;  %1324 = vrot.lane.b32.xlu1 %v5351_v16, %s4987_s15  ;;  %v5704_v58 = vpack.c.bf16 %v4596_v56, %v4596_v56 }
 0x1e6   : > { %v909_v60 = vpop.permute.xlu0 %908  ;;  %v911_v62 = vpop.permute.xlu1 %910  ;;  %2031 = vst.msk [vmem:[#allocation4 + $0xc] sm:$0xf] %vm754_vm1, %v5704_v58 }
 0x1e7   : > { %957 = vst.msk [vmem:[#allocation3 + $0x40] sm:$0xf] %vm754_vm1, %v909_v60  ;;  %958 = vst.msk [vmem:[#allocation3 + $0x44] sm:$0xf] %vm754_vm1, %v911_v62  ;;  %v1903_v60 = vpop.f32.mrf.mxu0 }
 0x1e8   : > { %1371 = vrot.lane.b32.xlu0 %v5174_v38, %s4988_s16  ;;  %1373 = vrot.lane.b32.xlu1 %v5194_v46, %s4988_s16 }
 0x1ea   : > { %v1039_v0 = vpop.permute.xlu0 %1038  ;;  %v1041_v2 = vpop.permute.xlu1 %1040 }
 0x1eb   : > { %1087 = vst.msk [vmem:[#allocation3 + $0x80] sm:$0xf] %vm754_vm1, %v1039_v0  ;;  %1088 = vst.msk [vmem:[#allocation3 + $0x84] sm:$0xf] %vm754_vm1, %v1041_v2  ;;  %v5708_v2 = vpack.c.bf16 %v1903_v60, %v1903_v60 }
 0x1ec   : > { %1375 = vrot.lane.b32.xlu0 %v5164_v34, %s4988_s16  ;;  %1377 = vrot.lane.b32.xlu1 %v5182_v42, %s4988_s16 }
 0x1ed   : > { %2029 = vst.msk [vmem:[#allocation4 + $0x4] sm:$0xf] %vm754_vm1, %v5708_v2 }
 0x1ee   : > { %v1169_v4 = vpop.permute.xlu0 %1168  ;;  %v1171_v6 = vpop.permute.xlu1 %1170 }
 0x1ef   : > { %1217 = vst.msk [vmem:[#allocation3 + $0xc0] sm:$0xf] %vm754_vm1, %v1169_v4  ;;  %1218 = vst.msk [vmem:[#allocation3 + $0xc4] sm:$0xf] %vm754_vm1, %v1171_v6  ;;  %v4599_v4 = vpop.f32.mrf.mxu0 }
 0x1f0   : > { %1379 = vrot.lane.b32.xlu0 %v5134_v23, %s4988_s16  ;;  %1381 = vrot.lane.b32.xlu1 %v5154_v31, %s4988_s16  ;;  %v5718_v6 = vpack.c.bf16 %v4599_v4, %v4599_v4 }
 0x1f2   : > { %v1299_v8 = vpop.permute.xlu0 %1298  ;;  %v1301_v10 = vpop.permute.xlu1 %1300  ;;  %2034 = vst.msk [vmem:[#allocation4 + $0x18] sm:$0xf] %vm754_vm1, %v5718_v6 }
 0x1f3   : > { %1347 = vst.msk [vmem:[#allocation3 + $0x100] sm:$0xf] %vm754_vm1, %v1299_v8  ;;  %1348 = vst.msk [vmem:[#allocation3 + $0x104] sm:$0xf] %vm754_vm1, %v1301_v10  ;;  %v1916_v8 = vpop.f32.mrf.mxu0 }
 0x1f4   : > { %1383 = vrot.lane.b32.xlu0 %v5126_v19, %s4988_s16  ;;  %1385 = vrot.lane.b32.xlu1 %v5146_v27, %s4988_s16 }
 0x1f6   : > { %v921_v12 = vpop.permute.xlu0 %920  ;;  %v923_v13 = vpop.permute.xlu1 %922 }
 0x1f7   : > { %963 = vst.msk [vmem:[#allocation3 + $0x58] sm:$0xf] %vm754_vm1, %v921_v12  ;;  %964 = vst.msk [vmem:[#allocation3 + $0x5c] sm:$0xf] %vm754_vm1, %v923_v13  ;;  %v5722_v13 = vpack.c.bf16 %v1916_v8, %v1916_v8 }
 0x1f8   : > { %1387 = vrot.lane.b32.xlu0 %v5178_v39, %s4988_s16  ;;  %1389 = vrot.lane.b32.xlu1 %v5198_v47, %s4988_s16 }
 0x1f9   : > { %2032 = vst.msk [vmem:[#allocation4 + $0x10] sm:$0xf] %vm754_vm1, %v5722_v13 }
 0x1fa   : > { %v1051_v15 = vpop.permute.xlu0 %1050  ;;  %v1053_v17 = vpop.permute.xlu1 %1052 }
 0x1fb   : > { %1093 = vst.msk [vmem:[#allocation3 + $0x98] sm:$0xf] %vm754_vm1, %v1051_v15  ;;  %1094 = vst.msk [vmem:[#allocation3 + $0x9c] sm:$0xf] %vm754_vm1, %v1053_v17  ;;  %v4600_v15 = vpop.f32.mrf.mxu0 }
 0x1fc   : > { %1391 = vrot.lane.b32.xlu0 %v5166_v35, %s4988_s16  ;;  %1393 = vrot.lane.b32.xlu1 %v5186_v43, %s4988_s16  ;;  %v5732_v17 = vpack.c.bf16 %v4600_v15, %v4600_v15 }
 0x1fe   : > { %v1181_v20 = vpop.permute.xlu0 %1180  ;;  %v1183_v21 = vpop.permute.xlu1 %1182  ;;  %2035 = vst.msk [vmem:[#allocation4 + $0x1c] sm:$0xf] %vm754_vm1, %v5732_v17 }
 0x1ff   : > { %1223 = vst.msk [vmem:[#allocation3 + $0xd8] sm:$0xf] %vm754_vm1, %v1181_v20  ;;  %1224 = vst.msk [vmem:[#allocation3 + $0xdc] sm:$0xf] %vm754_vm1, %v1183_v21  ;;  %v1919_v20 = vpop.f32.mrf.mxu0 }
 0x200   : > { %1428 = vrot.lane.b32.xlu0 %v5212_v51, %s4988_s16  ;;  %1430 = vrot.lane.b32.xlu1 %v5224_v55, %s4988_s16 }
 0x202   : > { %v1311_v24 = vpop.permute.xlu0 %1310  ;;  %v1313_v25 = vpop.permute.xlu1 %1312 }
 0x203   : > { %1353 = vst.msk [vmem:[#allocation3 + $0x118] sm:$0xf] %vm754_vm1, %v1311_v24  ;;  %1354 = vst.msk [vmem:[#allocation3 + $0x11c] sm:$0xf] %vm754_vm1, %v1313_v25  ;;  %v5736_v25 = vpack.c.bf16 %v1919_v20, %v1919_v20 }
 0x204   : > { %1432 = vrot.lane.b32.xlu0 %v5204_v49, %s4988_s16  ;;  %1434 = vrot.lane.b32.xlu1 %v5216_v53, %s4988_s16 }
 0x205   : > { %2033 = vst.msk [vmem:[#allocation4 + $0x14] sm:$0xf] %vm754_vm1, %v5736_v25 }
 0x206   : > { %v917_v28 = vpop.permute.xlu0 %916  ;;  %v919_v29 = vpop.permute.xlu1 %918 }
 0x207   : > { %961 = vst.msk [vmem:[#allocation3 + $0x50] sm:$0xf] %vm754_vm1, %v917_v28  ;;  %962 = vst.msk [vmem:[#allocation3 + $0x54] sm:$0xf] %vm754_vm1, %v919_v29  ;;  %v4603_v28 = vpop.f32.mrf.mxu0 }
 0x208   : > { %1436 = vrot.lane.b32.xlu0 %v5236_v59, %s4988_s16  ;;  %1438 = vrot.lane.b32.xlu1 %v5248_v63, %s4988_s16  ;;  %v5746_v29 = vpack.c.bf16 %v4603_v28, %v4603_v28 }
 0x20a   : > { %v1047_v32 = vpop.permute.xlu0 %1046  ;;  %v1049_v33 = vpop.permute.xlu1 %1048  ;;  %2038 = vst.msk [vmem:[#allocation4 + $0x28] sm:$0xf] %vm754_vm1, %v5746_v29 }
 0x20b   : > { %1091 = vst.msk [vmem:[#allocation3 + $0x90] sm:$0xf] %vm754_vm1, %v1047_v32  ;;  %1092 = vst.msk [vmem:[#allocation3 + $0x94] sm:$0xf] %vm754_vm1, %v1049_v33  ;;  %v1932_v32 = vpop.f32.mrf.mxu0 }
 0x20c   : > { %1440 = vrot.lane.b32.xlu0 %v5232_v57, %s4988_s16  ;;  %1442 = vrot.lane.b32.xlu1 %v5244_v61, %s4988_s16 }
 0x20e   : > { %v1177_v36 = vpop.permute.xlu0 %1176  ;;  %v1179_v37 = vpop.permute.xlu1 %1178 }
 0x20f   : > { %1221 = vst.msk [vmem:[#allocation3 + $0xd0] sm:$0xf] %vm754_vm1, %v1177_v36  ;;  %1222 = vst.msk [vmem:[#allocation3 + $0xd4] sm:$0xf] %vm754_vm1, %v1179_v37  ;;  %v5750_v37 = vpack.c.bf16 %v1932_v32, %v1932_v32 }
 0x210   : > { %1444 = vrot.lane.b32.xlu0 %v5284_v3, %s4988_s16  ;;  %1446 = vrot.lane.b32.xlu1 %v5296_v7, %s4988_s16 }
 0x211   : > { %2036 = vst.msk [vmem:[#allocation4 + $0x20] sm:$0xf] %vm754_vm1, %v5750_v37 }
 0x212   : > { %v1307_v40 = vpop.permute.xlu0 %1306  ;;  %v1309_v41 = vpop.permute.xlu1 %1308 }
 0x213   : > { %1351 = vst.msk [vmem:[#allocation3 + $0x110] sm:$0xf] %vm754_vm1, %v1307_v40  ;;  %1352 = vst.msk [vmem:[#allocation3 + $0x114] sm:$0xf] %vm754_vm1, %v1309_v41  ;;  %v4604_v40 = vpop.f32.mrf.mxu0 }
 0x214   : > { %1448 = vrot.lane.b32.xlu0 %v5280_v1, %s4988_s16  ;;  %1450 = vrot.lane.b32.xlu1 %v5292_v5, %s4988_s16  ;;  %v5760_v41 = vpack.c.bf16 %v4604_v40, %v4604_v40 }
 0x215   : > { %v1935_v44 = vpop.f32.mrf.mxu0 }
 0x216   : > { %v929_v50 = vpop.permute.xlu0 %928  ;;  %v931_v52 = vpop.permute.xlu1 %930  ;;  %2039 = vst.msk [vmem:[#allocation4 + $0x2c] sm:$0xf] %vm754_vm1, %v5760_v41 }
 0x217   : > { %967 = vst.msk [vmem:[#allocation3 + $0x68] sm:$0xf] %vm754_vm1, %v929_v50  ;;  %968 = vst.msk [vmem:[#allocation3 + $0x6c] sm:$0xf] %vm754_vm1, %v931_v52  ;;  %v5764_v52 = vpack.c.bf16 %v1935_v44, %v1935_v44  ;;  %v4607_v56 = vpop.f32.mrf.mxu0 }
 0x218   : > { %1452 = vrot.lane.b32.xlu0 %v5336_v11, %s4988_s16  ;;  %1454 = vrot.lane.b32.xlu1 %v5351_v16, %s4988_s16  ;;  %v5774_v60 = vpack.c.bf16 %v4607_v56, %v4607_v56 }
 0x219   : > { %2037 = vst.msk [vmem:[#allocation4 + $0x24] sm:$0xf] %vm754_vm1, %v5764_v52 }
 0x21a   : > { %v1059_v62 = vpop.permute.xlu0 %1058  ;;  %v1061_v0 = vpop.permute.xlu1 %1060  ;;  %2042 = vst.msk [vmem:[#allocation4 + $0x38] sm:$0xf] %vm754_vm1, %v5774_v60 }
 0x21b   : > { %1097 = vst.msk [vmem:[#allocation3 + $0xa8] sm:$0xf] %vm754_vm1, %v1059_v62  ;;  %1098 = vst.msk [vmem:[#allocation3 + $0xac] sm:$0xf] %vm754_vm1, %v1061_v0  ;;  %v1948_v62 = vpop.f32.mrf.mxu0 }
 0x21c   : > { %1456 = vrot.lane.b32.xlu0 %v5332_v9, %s4988_s16  ;;  %1458 = vrot.lane.b32.xlu1 %v5347_v14, %s4988_s16  ;;  %v5778_v8 = vpack.c.bf16 %v1948_v62, %v1948_v62 }
 0x21e   : > { %v1189_v10 = vpop.permute.xlu0 %1188  ;;  %v1191_v12 = vpop.permute.xlu1 %1190  ;;  %2040 = vst.msk [vmem:[#allocation4 + $0x30] sm:$0xf] %vm754_vm1, %v5778_v8 }
 0x21f   : > { %1227 = vst.msk [vmem:[#allocation3 + $0xe8] sm:$0xf] %vm754_vm1, %v1189_v10  ;;  %1228 = vst.msk [vmem:[#allocation3 + $0xec] sm:$0xf] %vm754_vm1, %v1191_v12  ;;  %v4608_v10 = vpop.f32.mrf.mxu0 }
 0x220   : > { %1493 = vrot.lane.b32.xlu0 %v5132_v22, %s4989_s29  ;;  %1495 = vrot.lane.b32.xlu1 %v5152_v30, %s4989_s29  ;;  %v5788_v12 = vpack.c.bf16 %v4608_v10, %v4608_v10 }
 0x221   : > { %v1951_v15 = vpop.f32.mrf.mxu0 }
 0x222   : > { %v1319_v21 = vpop.permute.xlu0 %1318  ;;  %v1321_v24 = vpop.permute.xlu1 %1320  ;;  %2043 = vst.msk [vmem:[#allocation4 + $0x3c] sm:$0xf] %vm754_vm1, %v5788_v12 }
 0x223   : > { %1357 = vst.msk [vmem:[#allocation3 + $0x128] sm:$0xf] %vm754_vm1, %v1319_v21  ;;  %1358 = vst.msk [vmem:[#allocation3 + $0x12c] sm:$0xf] %vm754_vm1, %v1321_v24  ;;  %v5792_v24 = vpack.c.bf16 %v1951_v15, %v1951_v15 }
 0x224   : > { %1497 = vrot.lane.b32.xlu0 %v5124_v18, %s4989_s29  ;;  %1499 = vrot.lane.b32.xlu1 %v5144_v26, %s4989_s29 }
 0x225   : > { %2041 = vst.msk [vmem:[#allocation4 + $0x34] sm:$0xf] %vm754_vm1, %v5792_v24 }
 0x226   : > { %v925_v33 = vpop.permute.xlu0 %924  ;;  %v927_v36 = vpop.permute.xlu1 %926 }
 0x227   : > { %965 = vst.msk [vmem:[#allocation3 + $0x60] sm:$0xf] %vm754_vm1, %v925_v33  ;;  %966 = vst.msk [vmem:[#allocation3 + $0x64] sm:$0xf] %vm754_vm1, %v927_v36 }
 0x228   : > { %1501 = vrot.lane.b32.xlu0 %v5174_v38, %s4989_s29  ;;  %1503 = vrot.lane.b32.xlu1 %v5194_v46, %s4989_s29 }
 0x22a   : > { %v1055_v48 = vpop.permute.xlu0 %1054  ;;  %v1057_v50 = vpop.permute.xlu1 %1056 }
 0x22b   : > { %1095 = vst.msk [vmem:[#allocation3 + $0xa0] sm:$0xf] %vm754_vm1, %v1055_v48  ;;  %1096 = vst.msk [vmem:[#allocation3 + $0xa4] sm:$0xf] %vm754_vm1, %v1057_v50 }
 0x22c   : > { %1505 = vrot.lane.b32.xlu0 %v5164_v34, %s4989_s29  ;;  %1507 = vrot.lane.b32.xlu1 %v5182_v42, %s4989_s29 }
 0x22e   : > { %v1185_v0 = vpop.permute.xlu0 %1184  ;;  %v1187_v4 = vpop.permute.xlu1 %1186 }
 0x22f   : > { %1225 = vst.msk [vmem:[#allocation3 + $0xe0] sm:$0xf] %vm754_vm1, %v1185_v0  ;;  %1226 = vst.msk [vmem:[#allocation3 + $0xe4] sm:$0xf] %vm754_vm1, %v1187_v4 }
 0x230   : > { %1509 = vrot.lane.b32.xlu0 %v5134_v23, %s4989_s29  ;;  %1511 = vrot.lane.b32.xlu1 %v5154_v31, %s4989_s29 }
 0x232   : > { %v1315_v20 = vpop.permute.xlu0 %1314  ;;  %v1317_v21 = vpop.permute.xlu1 %1316 }
 0x233   : > { %1355 = vst.msk [vmem:[#allocation3 + $0x120] sm:$0xf] %vm754_vm1, %v1315_v20  ;;  %1356 = vst.msk [vmem:[#allocation3 + $0x124] sm:$0xf] %vm754_vm1, %v1317_v21 }
 0x234   : > { %1513 = vrot.lane.b32.xlu0 %v5126_v19, %s4989_s29  ;;  %1515 = vrot.lane.b32.xlu1 %v5146_v27, %s4989_s29 }
 0x236   : > { %v937_v28 = vpop.permute.xlu0 %936  ;;  %v1370_v32 = vpop.permute.xlu1 %1369 }
 0x237   : > { %971 = vst.msk [vmem:[#allocation3 + $0x78] sm:$0xf] %vm754_vm1, %v937_v28  ;;  %1415 = vst.msk [vmem:[#allocation2 + $0x14c] sm:$0xf] %vm754_vm1, %v1370_v32 }
 0x238   : > { %1517 = vrot.lane.b32.xlu0 %v5178_v39, %s4989_s29  ;;  %1519 = vrot.lane.b32.xlu1 %v5198_v47, %s4989_s29 }
 0x23a   : > { %v1067_v33 = vpop.permute.xlu0 %1066  ;;  %v939_v36 = vpop.permute.xlu1 %938 }
 0x23b   : > { %1101 = vst.msk [vmem:[#allocation3 + $0xb8] sm:$0xf] %vm754_vm1, %v1067_v33  ;;  %972 = vst.msk [vmem:[#allocation3 + $0x7c] sm:$0xf] %vm754_vm1, %v939_v36 }
 0x23c   : > { %1521 = vrot.lane.b32.xlu0 %v5166_v35, %s4989_s29  ;;  %1523 = vrot.lane.b32.xlu1 %v5186_v43, %s4989_s29 }
 0x23e   : > { %v1197_v40 = vpop.permute.xlu0 %1196  ;;  %v1069_v44 = vpop.permute.xlu1 %1068 }
 0x23f   : > { %1231 = vst.msk [vmem:[#allocation3 + $0xf8] sm:$0xf] %vm754_vm1, %v1197_v40  ;;  %1102 = vst.msk [vmem:[#allocation3 + $0xbc] sm:$0xf] %vm754_vm1, %v1069_v44 }
 0x240   : > { %1558 = vrot.lane.b32.xlu0 %v5212_v51, %s4989_s29  ;;  %1560 = vrot.lane.b32.xlu1 %v5224_v55, %s4989_s29 }
 0x242   : > { %v1327_v48 = vpop.permute.xlu0 %1326  ;;  %v1199_v50 = vpop.permute.xlu1 %1198 }
 0x243   : > { %1361 = vst.msk [vmem:[#allocation3 + $0x138] sm:$0xf] %vm754_vm1, %v1327_v48  ;;  %1232 = vst.msk [vmem:[#allocation3 + $0xfc] sm:$0xf] %vm754_vm1, %v1199_v50 }
 0x244   : > { %1562 = vrot.lane.b32.xlu0 %v5204_v49, %s4989_s29  ;;  %1564 = vrot.lane.b32.xlu1 %v5216_v53, %s4989_s29 }
 0x246   : > { %v933_v56 = vpop.permute.xlu0 %932  ;;  %v1329_v62 = vpop.permute.xlu1 %1328 }
 0x247   : > { %969 = vst.msk [vmem:[#allocation3 + $0x70] sm:$0xf] %vm754_vm1, %v933_v56  ;;  %1362 = vst.msk [vmem:[#allocation3 + $0x13c] sm:$0xf] %vm754_vm1, %v1329_v62 }
 0x248   : > { %1566 = vrot.lane.b32.xlu0 %v5236_v59, %s4989_s29  ;;  %1568 = vrot.lane.b32.xlu1 %v5248_v63, %s4989_s29 }
 0x24a   : > { %v1063_v0 = vpop.permute.xlu0 %1062  ;;  %v935_v4 = vpop.permute.xlu1 %934 }
 0x24b   : > { %1099 = vst.msk [vmem:[#allocation3 + $0xb0] sm:$0xf] %vm754_vm1, %v1063_v0  ;;  %970 = vst.msk [vmem:[#allocation3 + $0x74] sm:$0xf] %vm754_vm1, %v935_v4 }
 0x24c   : > { %1570 = vrot.lane.b32.xlu0 %v5232_v57, %s4989_s29  ;;  %1572 = vrot.lane.b32.xlu1 %v5244_v61, %s4989_s29 }
 0x24e   : > { %v1193_v10 = vpop.permute.xlu0 %1192  ;;  %v1065_v15 = vpop.permute.xlu1 %1064 }
 0x24f   : > { %1229 = vst.msk [vmem:[#allocation3 + $0xf0] sm:$0xf] %vm754_vm1, %v1193_v10  ;;  %1100 = vst.msk [vmem:[#allocation3 + $0xb4] sm:$0xf] %vm754_vm1, %v1065_v15 }
 0x250   : > { %1574 = vrot.lane.b32.xlu0 %v5284_v3, %s4989_s29  ;;  %1576 = vrot.lane.b32.xlu1 %v5296_v7, %s4989_s29 }
 0x252   : > { %v1323_v20 = vpop.permute.xlu0 %1322  ;;  %v1195_v21 = vpop.permute.xlu1 %1194 }
 0x253   : > { %1359 = vst.msk [vmem:[#allocation3 + $0x130] sm:$0xf] %vm754_vm1, %v1323_v20  ;;  %1230 = vst.msk [vmem:[#allocation3 + $0xf4] sm:$0xf] %vm754_vm1, %v1195_v21 }
 0x254   : > { %1578 = vrot.lane.b32.xlu0 %v5280_v1, %s4989_s29  ;;  %1580 = vrot.lane.b32.xlu1 %v5292_v5, %s4989_s29 }
 0x256   : > { %v1368_v28 = vpop.permute.xlu0 %1367  ;;  %v1325_v32 = vpop.permute.xlu1 %1324 }
 0x257   : > { %1414 = vst.msk [vmem:[#allocation2 + $0x148] sm:$0xf] %vm754_vm1, %v1368_v28  ;;  %1360 = vst.msk [vmem:[#allocation3 + $0x134] sm:$0xf] %vm754_vm1, %v1325_v32 }
 0x258   : > { %1582 = vrot.lane.b32.xlu0 %v5336_v11, %s4989_s29  ;;  %1584 = vrot.lane.b32.xlu1 %v5351_v16, %s4989_s29 }
 0x25a   : > { %v1372_v33 = vpop.permute.xlu0 %1371  ;;  %v1374_v36 = vpop.permute.xlu1 %1373 }
 0x25b   : > { %1416 = vst.msk [vmem:[#allocation2 + $0x150] sm:$0xf] %vm754_vm1, %v1372_v33  ;;  %1417 = vst.msk [vmem:[#allocation2 + $0x154] sm:$0xf] %vm754_vm1, %v1374_v36 }
 0x25c   : > { %1586 = vrot.lane.b32.xlu0 %v5332_v9, %s4989_s29  ;;  %1588 = vrot.lane.b32.xlu1 %v5347_v14, %s4989_s29 }
 0x25e   : > { %v1376_v40 = vpop.permute.xlu0 %1375  ;;  %v1378_v44 = vpop.permute.xlu1 %1377 }
 0x25f   : > { %1418 = vst.msk [vmem:[#allocation2 + $0x158] sm:$0xf] %vm754_vm1, %v1376_v40  ;;  %1419 = vst.msk [vmem:[#allocation2 + $0x15c] sm:$0xf] %vm754_vm1, %v1378_v44 }
 0x260   : > { %1623 = vrot.lane.b32.xlu0 %v5132_v22, %s4990_s30  ;;  %1625 = vrot.lane.b32.xlu1 %v5152_v30, %s4990_s30 }
 0x262   : > { %v1380_v48 = vpop.permute.xlu0 %1379  ;;  %v1382_v50 = vpop.permute.xlu1 %1381 }
 0x263   : > { %1420 = vst.msk [vmem:[#allocation2 + $0x160] sm:$0xf] %vm754_vm1, %v1380_v48  ;;  %1421 = vst.msk [vmem:[#allocation2 + $0x164] sm:$0xf] %vm754_vm1, %v1382_v50 }
 0x264   : > { %1627 = vrot.lane.b32.xlu0 %v5124_v18, %s4990_s30  ;;  %1629 = vrot.lane.b32.xlu1 %v5144_v26, %s4990_s30 }
 0x266   : > { %v1384_v56 = vpop.permute.xlu0 %1383  ;;  %v1386_v62 = vpop.permute.xlu1 %1385 }
 0x267   : > { %1422 = vst.msk [vmem:[#allocation2 + $0x168] sm:$0xf] %vm754_vm1, %v1384_v56  ;;  %1423 = vst.msk [vmem:[#allocation2 + $0x16c] sm:$0xf] %vm754_vm1, %v1386_v62 }
 0x268   : > { %1631 = vrot.lane.b32.xlu0 %v5174_v38, %s4990_s30  ;;  %1633 = vrot.lane.b32.xlu1 %v5194_v46, %s4990_s30 }
 0x26a   : > { %v1388_v22 = vpop.permute.xlu0 %1387  ;;  %v1390_v30 = vpop.permute.xlu1 %1389 }
 0x26b   : > { %1424 = vst.msk [vmem:[#allocation2 + $0x170] sm:$0xf] %vm754_vm1, %v1388_v22  ;;  %1425 = vst.msk [vmem:[#allocation2 + $0x174] sm:$0xf] %vm754_vm1, %v1390_v30 }
 0x26c   : > { %1635 = vrot.lane.b32.xlu0 %v5164_v34, %s4990_s30  ;;  %1637 = vrot.lane.b32.xlu1 %v5182_v42, %s4990_s30 }
 0x26e   : > { %v1392_v18 = vpop.permute.xlu0 %1391  ;;  %v1394_v26 = vpop.permute.xlu1 %1393 }
 0x26f   : > { %1426 = vst.msk [vmem:[#allocation2 + $0x178] sm:$0xf] %vm754_vm1, %v1392_v18  ;;  %1427 = vst.msk [vmem:[#allocation2 + $0x17c] sm:$0xf] %vm754_vm1, %v1394_v26 }
 0x270   : > { %1639 = vrot.lane.b32.xlu0 %v5134_v23, %s4990_s30  ;;  %1641 = vrot.lane.b32.xlu1 %v5154_v31, %s4990_s30 }
 0x272   : > { %v1429_v38 = vpop.permute.xlu0 %1428  ;;  %v1431_v46 = vpop.permute.xlu1 %1430 }
 0x273   : > { %1477 = vst.msk [vmem:[#allocation3 + $0x140] sm:$0xf] %vm754_vm1, %v1429_v38  ;;  %1478 = vst.msk [vmem:[#allocation3 + $0x144] sm:$0xf] %vm754_vm1, %v1431_v46 }
 0x274   : > { %1643 = vrot.lane.b32.xlu0 %v5126_v19, %s4990_s30  ;;  %1645 = vrot.lane.b32.xlu1 %v5146_v27, %s4990_s30 }
 0x276   : > { %v1433_v34 = vpop.permute.xlu0 %1432  ;;  %v1435_v42 = vpop.permute.xlu1 %1434 }
 0x277   : > { %1479 = vst.msk [vmem:[#allocation3 + $0x148] sm:$0xf] %vm754_vm1, %v1433_v34  ;;  %1480 = vst.msk [vmem:[#allocation3 + $0x14c] sm:$0xf] %vm754_vm1, %v1435_v42 }
 0x278   : > { %1647 = vrot.lane.b32.xlu0 %v5178_v39, %s4990_s30  ;;  %1649 = vrot.lane.b32.xlu1 %v5198_v47, %s4990_s30 }
 0x27a   : > { %v1437_v23 = vpop.permute.xlu0 %1436  ;;  %v1439_v31 = vpop.permute.xlu1 %1438 }
 0x27b   : > { %1481 = vst.msk [vmem:[#allocation3 + $0x150] sm:$0xf] %vm754_vm1, %v1437_v23  ;;  %1482 = vst.msk [vmem:[#allocation3 + $0x154] sm:$0xf] %vm754_vm1, %v1439_v31 }
 0x27c   : > { %1651 = vrot.lane.b32.xlu0 %v5166_v35, %s4990_s30  ;;  %1653 = vrot.lane.b32.xlu1 %v5186_v43, %s4990_s30 }
 0x27e   : > { %v1441_v19 = vpop.permute.xlu0 %1440  ;;  %v1443_v27 = vpop.permute.xlu1 %1442 }
 0x27f   : > { %1483 = vst.msk [vmem:[#allocation3 + $0x158] sm:$0xf] %vm754_vm1, %v1441_v19  ;;  %1484 = vst.msk [vmem:[#allocation3 + $0x15c] sm:$0xf] %vm754_vm1, %v1443_v27 }
 0x280   : > { %1688 = vrot.lane.b32.xlu0 %v5212_v51, %s4990_s30  ;;  %1690 = vrot.lane.b32.xlu1 %v5224_v55, %s4990_s30 }
 0x282   : > { %v1445_v39 = vpop.permute.xlu0 %1444  ;;  %v1447_v47 = vpop.permute.xlu1 %1446 }
 0x283   : > { %1485 = vst.msk [vmem:[#allocation3 + $0x160] sm:$0xf] %vm754_vm1, %v1445_v39  ;;  %1486 = vst.msk [vmem:[#allocation3 + $0x164] sm:$0xf] %vm754_vm1, %v1447_v47 }
 0x284   : > { %1692 = vrot.lane.b32.xlu0 %v5204_v49, %s4990_s30  ;;  %1694 = vrot.lane.b32.xlu1 %v5216_v53, %s4990_s30 }
 0x286   : > { %v1449_v35 = vpop.permute.xlu0 %1448  ;;  %v1451_v43 = vpop.permute.xlu1 %1450 }
 0x287   : > { %1487 = vst.msk [vmem:[#allocation3 + $0x168] sm:$0xf] %vm754_vm1, %v1449_v35  ;;  %1488 = vst.msk [vmem:[#allocation3 + $0x16c] sm:$0xf] %vm754_vm1, %v1451_v43 }
 0x288   : > { %1696 = vrot.lane.b32.xlu0 %v5236_v59, %s4990_s30  ;;  %1698 = vrot.lane.b32.xlu1 %v5248_v63, %s4990_s30 }
 0x28a   : > { %v1453_v51 = vpop.permute.xlu0 %1452  ;;  %v1455_v55 = vpop.permute.xlu1 %1454 }
 0x28b   : > { %1489 = vst.msk [vmem:[#allocation3 + $0x170] sm:$0xf] %vm754_vm1, %v1453_v51  ;;  %1490 = vst.msk [vmem:[#allocation3 + $0x174] sm:$0xf] %vm754_vm1, %v1455_v55 }
 0x28c   : > { %1700 = vrot.lane.b32.xlu0 %v5232_v57, %s4990_s30  ;;  %1702 = vrot.lane.b32.xlu1 %v5244_v61, %s4990_s30 }
 0x28e   : > { %v1457_v49 = vpop.permute.xlu0 %1456  ;;  %v1459_v53 = vpop.permute.xlu1 %1458 }
 0x28f   : > { %1491 = vst.msk [vmem:[#allocation3 + $0x178] sm:$0xf] %vm754_vm1, %v1457_v49  ;;  %1492 = vst.msk [vmem:[#allocation3 + $0x17c] sm:$0xf] %vm754_vm1, %v1459_v53 }
 0x290   : > { %1704 = vrot.lane.b32.xlu0 %v5284_v3, %s4990_s30  ;;  %1706 = vrot.lane.b32.xlu1 %v5296_v7, %s4990_s30 }
 0x292   : > { %v1494_v59 = vpop.permute.xlu0 %1493  ;;  %v1496_v63 = vpop.permute.xlu1 %1495 }
 0x293   : > { %1542 = vst.msk [vmem:[#allocation2 + $0x180] sm:$0xf] %vm754_vm1, %v1494_v59  ;;  %1543 = vst.msk [vmem:[#allocation2 + $0x184] sm:$0xf] %vm754_vm1, %v1496_v63 }
 0x294   : > { %1708 = vrot.lane.b32.xlu0 %v5280_v1, %s4990_s30  ;;  %1710 = vrot.lane.b32.xlu1 %v5292_v5, %s4990_s30 }
 0x296   : > { %v1498_v57 = vpop.permute.xlu0 %1497  ;;  %v1500_v61 = vpop.permute.xlu1 %1499 }
 0x297   : > { %1544 = vst.msk [vmem:[#allocation2 + $0x188] sm:$0xf] %vm754_vm1, %v1498_v57  ;;  %1545 = vst.msk [vmem:[#allocation2 + $0x18c] sm:$0xf] %vm754_vm1, %v1500_v61 }
 0x298   : > { %1712 = vrot.lane.b32.xlu0 %v5336_v11, %s4990_s30  ;;  %1714 = vrot.lane.b32.xlu1 %v5351_v16, %s4990_s30 }
 0x29a   : > { %v1502_v3 = vpop.permute.xlu0 %1501  ;;  %v1504_v7 = vpop.permute.xlu1 %1503 }
 0x29b   : > { %1546 = vst.msk [vmem:[#allocation2 + $0x190] sm:$0xf] %vm754_vm1, %v1502_v3  ;;  %1547 = vst.msk [vmem:[#allocation2 + $0x194] sm:$0xf] %vm754_vm1, %v1504_v7 }
 0x29c   : > { %1716 = vrot.lane.b32.xlu0 %v5332_v9, %s4990_s30  ;;  %1718 = vrot.lane.b32.xlu1 %v5347_v14, %s4990_s30 }
 0x29e   : > { %v1506_v1 = vpop.permute.xlu0 %1505  ;;  %v1508_v5 = vpop.permute.xlu1 %1507 }
 0x29f   : > { %1548 = vst.msk [vmem:[#allocation2 + $0x198] sm:$0xf] %vm754_vm1, %v1506_v1  ;;  %1549 = vst.msk [vmem:[#allocation2 + $0x19c] sm:$0xf] %vm754_vm1, %v1508_v5 }
 0x2a0   : > { %2044 = vrot.lane.b32.xlu0 %v5694_v54, %s4984_s12  ;;  %2046 = vrot.lane.b32.xlu1 %v5708_v2, %s4984_s12 }
 0x2a2   : > { %v1510_v11 = vpop.permute.xlu0 %1509  ;;  %v1512_v16 = vpop.permute.xlu1 %1511 }
 0x2a3   : > { %1550 = vst.msk [vmem:[#allocation2 + $0x1a0] sm:$0xf] %vm754_vm1, %v1510_v11  ;;  %1551 = vst.msk [vmem:[#allocation2 + $0x1a4] sm:$0xf] %vm754_vm1, %v1512_v16 }
 0x2a4   : > { %2048 = vrot.lane.b32.xlu0 %v5690_v45, %s4984_s12  ;;  %2050 = vrot.lane.b32.xlu1 %v5704_v58, %s4984_s12 }
 0x2a6   : > { %v1514_v9 = vpop.permute.xlu0 %1513  ;;  %v1516_v14 = vpop.permute.xlu1 %1515 }
 0x2a7   : > { %1552 = vst.msk [vmem:[#allocation2 + $0x1a8] sm:$0xf] %vm754_vm1, %v1514_v9  ;;  %1553 = vst.msk [vmem:[#allocation2 + $0x1ac] sm:$0xf] %vm754_vm1, %v1516_v14 }
 0x2a8   : > { %2052 = vrot.lane.b32.xlu0 %v5722_v13, %s4984_s12  ;;  %2054 = vrot.lane.b32.xlu1 %v5736_v25, %s4984_s12 }
 0x2aa   : > { %v1518_v0 = vpop.permute.xlu0 %1517  ;;  %v1520_v4 = vpop.permute.xlu1 %1519 }
 0x2ab   : > { %1554 = vst.msk [vmem:[#allocation2 + $0x1b0] sm:$0xf] %vm754_vm1, %v1518_v0  ;;  %1555 = vst.msk [vmem:[#allocation2 + $0x1b4] sm:$0xf] %vm754_vm1, %v1520_v4 }
 0x2ac   : > { %2056 = vrot.lane.b32.xlu0 %v5718_v6, %s4984_s12  ;;  %2058 = vrot.lane.b32.xlu1 %v5732_v17, %s4984_s12 }
 0x2ae   : > { %v1522_v10 = vpop.permute.xlu0 %1521  ;;  %v1524_v15 = vpop.permute.xlu1 %1523 }
 0x2af   : > { %1556 = vst.msk [vmem:[#allocation2 + $0x1b8] sm:$0xf] %vm754_vm1, %v1522_v10  ;;  %1557 = vst.msk [vmem:[#allocation2 + $0x1bc] sm:$0xf] %vm754_vm1, %v1524_v15 }
 0x2b0   : > { %2060 = vrot.lane.b32.xlu0 %v5750_v37, %s4984_s12  ;;  %2062 = vrot.lane.b32.xlu1 %v5764_v52, %s4984_s12 }
 0x2b2   : > { %v1559_v20 = vpop.permute.xlu0 %1558  ;;  %v1561_v21 = vpop.permute.xlu1 %1560 }
 0x2b3   : > { %1607 = vst.msk [vmem:[#allocation3 + $0x180] sm:$0xf] %vm754_vm1, %v1559_v20  ;;  %1608 = vst.msk [vmem:[#allocation3 + $0x184] sm:$0xf] %vm754_vm1, %v1561_v21 }
 0x2b4   : > { %2064 = vrot.lane.b32.xlu0 %v5746_v29, %s4984_s12  ;;  %2066 = vrot.lane.b32.xlu1 %v5760_v41, %s4984_s12 }
 0x2b6   : > { %v1563_v28 = vpop.permute.xlu0 %1562  ;;  %v1565_v32 = vpop.permute.xlu1 %1564 }
 0x2b7   : > { %1609 = vst.msk [vmem:[#allocation3 + $0x188] sm:$0xf] %vm754_vm1, %v1563_v28  ;;  %1610 = vst.msk [vmem:[#allocation3 + $0x18c] sm:$0xf] %vm754_vm1, %v1565_v32 }
 0x2b8   : > { %2068 = vrot.lane.b32.xlu0 %v5778_v8, %s4984_s12  ;;  %2070 = vrot.lane.b32.xlu1 %v5792_v24, %s4984_s12 }
 0x2ba   : > { %v1567_v33 = vpop.permute.xlu0 %1566  ;;  %v1569_v36 = vpop.permute.xlu1 %1568 }
 0x2bb   : > { %1611 = vst.msk [vmem:[#allocation3 + $0x190] sm:$0xf] %vm754_vm1, %v1567_v33  ;;  %1612 = vst.msk [vmem:[#allocation3 + $0x194] sm:$0xf] %vm754_vm1, %v1569_v36 }
 0x2bc   : > { %2072 = vrot.lane.b32.xlu0 %v5774_v60, %s4984_s12  ;;  %2074 = vrot.lane.b32.xlu1 %v5788_v12, %s4984_s12 }
 0x2be   : > { %v1571_v40 = vpop.permute.xlu0 %1570  ;;  %v1573_v44 = vpop.permute.xlu1 %1572 }
 0x2bf   : > { %1613 = vst.msk [vmem:[#allocation3 + $0x198] sm:$0xf] %vm754_vm1, %v1571_v40  ;;  %1614 = vst.msk [vmem:[#allocation3 + $0x19c] sm:$0xf] %vm754_vm1, %v1573_v44 }
 0x2c0   : > { %2109 = vrot.lane.b32.xlu0 %v5694_v54, %s4985_s13  ;;  %2111 = vrot.lane.b32.xlu1 %v5708_v2, %s4985_s13 }
 0x2c2   : > { %v1575_v48 = vpop.permute.xlu0 %1574  ;;  %v1577_v50 = vpop.permute.xlu1 %1576 }
 0x2c3   : > { %1615 = vst.msk [vmem:[#allocation3 + $0x1a0] sm:$0xf] %vm754_vm1, %v1575_v48  ;;  %1616 = vst.msk [vmem:[#allocation3 + $0x1a4] sm:$0xf] %vm754_vm1, %v1577_v50 }
 0x2c4   : > { %2113 = vrot.lane.b32.xlu0 %v5690_v45, %s4985_s13  ;;  %2115 = vrot.lane.b32.xlu1 %v5704_v58, %s4985_s13 }
 0x2c6   : > { %v1579_v56 = vpop.permute.xlu0 %1578  ;;  %v1581_v62 = vpop.permute.xlu1 %1580 }
 0x2c7   : > { %1617 = vst.msk [vmem:[#allocation3 + $0x1a8] sm:$0xf] %vm754_vm1, %v1579_v56  ;;  %1618 = vst.msk [vmem:[#allocation3 + $0x1ac] sm:$0xf] %vm754_vm1, %v1581_v62 }
 0x2c8   : > { %2117 = vrot.lane.b32.xlu0 %v5722_v13, %s4985_s13  ;;  %2119 = vrot.lane.b32.xlu1 %v5736_v25, %s4985_s13 }
 0x2ca   : > { %v1583_v22 = vpop.permute.xlu0 %1582  ;;  %v1585_v30 = vpop.permute.xlu1 %1584 }
 0x2cb   : > { %1619 = vst.msk [vmem:[#allocation3 + $0x1b0] sm:$0xf] %vm754_vm1, %v1583_v22  ;;  %1620 = vst.msk [vmem:[#allocation3 + $0x1b4] sm:$0xf] %vm754_vm1, %v1585_v30 }
 0x2cc   : > { %2121 = vrot.lane.b32.xlu0 %v5718_v6, %s4985_s13  ;;  %2123 = vrot.lane.b32.xlu1 %v5732_v17, %s4985_s13 }
 0x2ce   : > { %v1587_v18 = vpop.permute.xlu0 %1586  ;;  %v1589_v26 = vpop.permute.xlu1 %1588 }
 0x2cf   : > { %1621 = vst.msk [vmem:[#allocation3 + $0x1b8] sm:$0xf] %vm754_vm1, %v1587_v18  ;;  %1622 = vst.msk [vmem:[#allocation3 + $0x1bc] sm:$0xf] %vm754_vm1, %v1589_v26 }
 0x2d0   : > { %2125 = vrot.lane.b32.xlu0 %v5750_v37, %s4985_s13  ;;  %2127 = vrot.lane.b32.xlu1 %v5764_v52, %s4985_s13 }
 0x2d2   : > { %v1624_v38 = vpop.permute.xlu0 %1623  ;;  %v1626_v46 = vpop.permute.xlu1 %1625 }
 0x2d3   : > { %1672 = vst.msk [vmem:[#allocation2 + $0x1c0] sm:$0xf] %vm754_vm1, %v1624_v38  ;;  %1673 = vst.msk [vmem:[#allocation2 + $0x1c4] sm:$0xf] %vm754_vm1, %v1626_v46 }
 0x2d4   : > { %2129 = vrot.lane.b32.xlu0 %v5746_v29, %s4985_s13  ;;  %2131 = vrot.lane.b32.xlu1 %v5760_v41, %s4985_s13 }
 0x2d6   : > { %v1628_v34 = vpop.permute.xlu0 %1627  ;;  %v1630_v42 = vpop.permute.xlu1 %1629 }
 0x2d7   : > { %1674 = vst.msk [vmem:[#allocation2 + $0x1c8] sm:$0xf] %vm754_vm1, %v1628_v34  ;;  %1675 = vst.msk [vmem:[#allocation2 + $0x1cc] sm:$0xf] %vm754_vm1, %v1630_v42 }
 0x2d8   : > { %2133 = vrot.lane.b32.xlu0 %v5778_v8, %s4985_s13  ;;  %2135 = vrot.lane.b32.xlu1 %v5792_v24, %s4985_s13 }
 0x2da   : > { %v1632_v23 = vpop.permute.xlu0 %1631  ;;  %v1634_v31 = vpop.permute.xlu1 %1633 }
 0x2db   : > { %1676 = vst.msk [vmem:[#allocation2 + $0x1d0] sm:$0xf] %vm754_vm1, %v1632_v23  ;;  %1677 = vst.msk [vmem:[#allocation2 + $0x1d4] sm:$0xf] %vm754_vm1, %v1634_v31 }
 0x2dc   : > { %2137 = vrot.lane.b32.xlu0 %v5774_v60, %s4985_s13  ;;  %2139 = vrot.lane.b32.xlu1 %v5788_v12, %s4985_s13 }
 0x2de   : > { %v1636_v19 = vpop.permute.xlu0 %1635  ;;  %v1638_v27 = vpop.permute.xlu1 %1637 }
 0x2df   : > { %1678 = vst.msk [vmem:[#allocation2 + $0x1d8] sm:$0xf] %vm754_vm1, %v1636_v19  ;;  %1679 = vst.msk [vmem:[#allocation2 + $0x1dc] sm:$0xf] %vm754_vm1, %v1638_v27 }
 0x2e0   : > { %2174 = vrot.lane.b32.xlu0 %v5694_v54, %s4986_s14  ;;  %2176 = vrot.lane.b32.xlu1 %v5708_v2, %s4986_s14 }
 0x2e2   : > { %v1640_v39 = vpop.permute.xlu0 %1639  ;;  %v1642_v47 = vpop.permute.xlu1 %1641 }
 0x2e3   : > { %1680 = vst.msk [vmem:[#allocation2 + $0x1e0] sm:$0xf] %vm754_vm1, %v1640_v39  ;;  %1681 = vst.msk [vmem:[#allocation2 + $0x1e4] sm:$0xf] %vm754_vm1, %v1642_v47 }
 0x2e4   : > { %2178 = vrot.lane.b32.xlu0 %v5690_v45, %s4986_s14  ;;  %2180 = vrot.lane.b32.xlu1 %v5704_v58, %s4986_s14 }
 0x2e6   : > { %v1644_v35 = vpop.permute.xlu0 %1643  ;;  %v1646_v43 = vpop.permute.xlu1 %1645 }
 0x2e7   : > { %1682 = vst.msk [vmem:[#allocation2 + $0x1e8] sm:$0xf] %vm754_vm1, %v1644_v35  ;;  %1683 = vst.msk [vmem:[#allocation2 + $0x1ec] sm:$0xf] %vm754_vm1, %v1646_v43 }
 0x2e8   : > { %2182 = vrot.lane.b32.xlu0 %v5722_v13, %s4986_s14  ;;  %2184 = vrot.lane.b32.xlu1 %v5736_v25, %s4986_s14 }
 0x2ea   : > { %v1648_v51 = vpop.permute.xlu0 %1647  ;;  %v1650_v55 = vpop.permute.xlu1 %1649 }
 0x2eb   : > { %1684 = vst.msk [vmem:[#allocation2 + $0x1f0] sm:$0xf] %vm754_vm1, %v1648_v51  ;;  %1685 = vst.msk [vmem:[#allocation2 + $0x1f4] sm:$0xf] %vm754_vm1, %v1650_v55 }
 0x2ec   : > { %2186 = vrot.lane.b32.xlu0 %v5718_v6, %s4986_s14  ;;  %2188 = vrot.lane.b32.xlu1 %v5732_v17, %s4986_s14 }
 0x2ee   : > { %v1652_v49 = vpop.permute.xlu0 %1651  ;;  %v1654_v53 = vpop.permute.xlu1 %1653 }
 0x2ef   : > { %1686 = vst.msk [vmem:[#allocation2 + $0x1f8] sm:$0xf] %vm754_vm1, %v1652_v49  ;;  %1687 = vst.msk [vmem:[#allocation2 + $0x1fc] sm:$0xf] %vm754_vm1, %v1654_v53 }
 0x2f0   : > { %2190 = vrot.lane.b32.xlu0 %v5750_v37, %s4986_s14  ;;  %2192 = vrot.lane.b32.xlu1 %v5764_v52, %s4986_s14 }
 0x2f2   : > { %v1689_v59 = vpop.permute.xlu0 %1688  ;;  %v1691_v63 = vpop.permute.xlu1 %1690 }
 0x2f3   : > { %1737 = vst.msk [vmem:[#allocation3 + $0x1c0] sm:$0xf] %vm754_vm1, %v1689_v59  ;;  %1738 = vst.msk [vmem:[#allocation3 + $0x1c4] sm:$0xf] %vm754_vm1, %v1691_v63 }
 0x2f4   : > { %2194 = vrot.lane.b32.xlu0 %v5746_v29, %s4986_s14  ;;  %2196 = vrot.lane.b32.xlu1 %v5760_v41, %s4986_s14 }
 0x2f6   : > { %v1693_v57 = vpop.permute.xlu0 %1692  ;;  %v1695_v61 = vpop.permute.xlu1 %1694 }
 0x2f7   : > { %1739 = vst.msk [vmem:[#allocation3 + $0x1c8] sm:$0xf] %vm754_vm1, %v1693_v57  ;;  %1740 = vst.msk [vmem:[#allocation3 + $0x1cc] sm:$0xf] %vm754_vm1, %v1695_v61 }
 0x2f8   : > { %2198 = vrot.lane.b32.xlu0 %v5778_v8, %s4986_s14  ;;  %2200 = vrot.lane.b32.xlu1 %v5792_v24, %s4986_s14 }
 0x2fa   : > { %v1697_v3 = vpop.permute.xlu0 %1696  ;;  %v1699_v7 = vpop.permute.xlu1 %1698 }
 0x2fb   : > { %1741 = vst.msk [vmem:[#allocation3 + $0x1d0] sm:$0xf] %vm754_vm1, %v1697_v3  ;;  %1742 = vst.msk [vmem:[#allocation3 + $0x1d4] sm:$0xf] %vm754_vm1, %v1699_v7 }
 0x2fc   : > { %2202 = vrot.lane.b32.xlu0 %v5774_v60, %s4986_s14  ;;  %2204 = vrot.lane.b32.xlu1 %v5788_v12, %s4986_s14 }
 0x2fe   : > { %v1701_v1 = vpop.permute.xlu0 %1700  ;;  %v1703_v5 = vpop.permute.xlu1 %1702 }
 0x2ff   : > { %1743 = vst.msk [vmem:[#allocation3 + $0x1d8] sm:$0xf] %vm754_vm1, %v1701_v1  ;;  %1744 = vst.msk [vmem:[#allocation3 + $0x1dc] sm:$0xf] %vm754_vm1, %v1703_v5 }
 0x300   : > { %2239 = vrot.lane.b32.xlu0 %v5694_v54, %s4987_s15  ;;  %2241 = vrot.lane.b32.xlu1 %v5708_v2, %s4987_s15 }
 0x302   : > { %v1705_v11 = vpop.permute.xlu0 %1704  ;;  %v1707_v16 = vpop.permute.xlu1 %1706 }
 0x303   : > { %1745 = vst.msk [vmem:[#allocation3 + $0x1e0] sm:$0xf] %vm754_vm1, %v1705_v11  ;;  %1746 = vst.msk [vmem:[#allocation3 + $0x1e4] sm:$0xf] %vm754_vm1, %v1707_v16 }
 0x304   : > { %2243 = vrot.lane.b32.xlu0 %v5690_v45, %s4987_s15  ;;  %2245 = vrot.lane.b32.xlu1 %v5704_v58, %s4987_s15 }
 0x306   : > { %v1709_v9 = vpop.permute.xlu0 %1708  ;;  %v1711_v14 = vpop.permute.xlu1 %1710 }
 0x307   : > { %1747 = vst.msk [vmem:[#allocation3 + $0x1e8] sm:$0xf] %vm754_vm1, %v1709_v9  ;;  %1748 = vst.msk [vmem:[#allocation3 + $0x1ec] sm:$0xf] %vm754_vm1, %v1711_v14 }
 0x308   : > { %2247 = vrot.lane.b32.xlu0 %v5722_v13, %s4987_s15  ;;  %2249 = vrot.lane.b32.xlu1 %v5736_v25, %s4987_s15 }
 0x30a   : > { %v1713_v0 = vpop.permute.xlu0 %1712  ;;  %v1715_v4 = vpop.permute.xlu1 %1714 }
 0x30b   : > { %1749 = vst.msk [vmem:[#allocation3 + $0x1f0] sm:$0xf] %vm754_vm1, %v1713_v0  ;;  %1750 = vst.msk [vmem:[#allocation3 + $0x1f4] sm:$0xf] %vm754_vm1, %v1715_v4  ;;  %v2499_v0 = vlaneseq }
 0x30c   : > { %2251 = vrot.lane.b32.xlu0 %v5718_v6, %s4987_s15  ;;  %2253 = vrot.lane.b32.xlu1 %v5732_v17, %s4987_s15 }
 0x30e   : > { %v1717_v10 = vpop.permute.xlu0 %1716  ;;  %v1719_v15 = vpop.permute.xlu1 %1718 }
 0x30f   : > { %1751 = vst.msk [vmem:[#allocation3 + $0x1f8] sm:$0xf] %vm754_vm1, %v1717_v10  ;;  %1752 = vst.msk [vmem:[#allocation3 + $0x1fc] sm:$0xf] %vm754_vm1, %v1719_v15 }
 0x310   : > { %2255 = vrot.lane.b32.xlu0 %v5750_v37, %s4987_s15  ;;  %2257 = vrot.lane.b32.xlu1 %v5764_v52, %s4987_s15 }
 0x312   : > { %v2045_v20 = vpop.permute.xlu0 %2044  ;;  %v2047_v21 = vpop.permute.xlu1 %2046 }
 0x313   : > { %2093 = vst.msk [vmem:[#allocation4 + $0x40] sm:$0xf] %vm754_vm1, %v2045_v20  ;;  %2094 = vst.msk [vmem:[#allocation4 + $0x44] sm:$0xf] %vm754_vm1, %v2047_v21 }
 0x314   : > { %2259 = vrot.lane.b32.xlu0 %v5746_v29, %s4987_s15  ;;  %2261 = vrot.lane.b32.xlu1 %v5760_v41, %s4987_s15 }
 0x316   : > { %v2049_v28 = vpop.permute.xlu0 %2048  ;;  %v2051_v32 = vpop.permute.xlu1 %2050 }
 0x317   : > { %2095 = vst.msk [vmem:[#allocation4 + $0x48] sm:$0xf] %vm754_vm1, %v2049_v28  ;;  %2096 = vst.msk [vmem:[#allocation4 + $0x4c] sm:$0xf] %vm754_vm1, %v2051_v32 }
 0x318   : > { %2263 = vrot.lane.b32.xlu0 %v5778_v8, %s4987_s15  ;;  %2265 = vrot.lane.b32.xlu1 %v5792_v24, %s4987_s15 }
 0x31a   : > { %v2053_v33 = vpop.permute.xlu0 %2052  ;;  %v2055_v36 = vpop.permute.xlu1 %2054 }
 0x31b   : > { %2097 = vst.msk [vmem:[#allocation4 + $0x50] sm:$0xf] %vm754_vm1, %v2053_v33  ;;  %2098 = vst.msk [vmem:[#allocation4 + $0x54] sm:$0xf] %vm754_vm1, %v2055_v36 }
 0x31c   : > { %2267 = vrot.lane.b32.xlu0 %v5774_v60, %s4987_s15  ;;  %2269 = vrot.lane.b32.xlu1 %v5788_v12, %s4987_s15 }
 0x31e   : > { %v2057_v40 = vpop.permute.xlu0 %2056  ;;  %v2059_v44 = vpop.permute.xlu1 %2058 }
 0x31f   : > { %2099 = vst.msk [vmem:[#allocation4 + $0x58] sm:$0xf] %vm754_vm1, %v2057_v40  ;;  %2100 = vst.msk [vmem:[#allocation4 + $0x5c] sm:$0xf] %vm754_vm1, %v2059_v44 }
 0x320   : > { %2304 = vrot.lane.b32.xlu0 %v5694_v54, %s4988_s16  ;;  %2306 = vrot.lane.b32.xlu1 %v5708_v2, %s4988_s16 }
 0x322   : > { %v2061_v48 = vpop.permute.xlu0 %2060  ;;  %v2063_v50 = vpop.permute.xlu1 %2062 }
 0x323   : > { %2101 = vst.msk [vmem:[#allocation4 + $0x60] sm:$0xf] %vm754_vm1, %v2061_v48  ;;  %2102 = vst.msk [vmem:[#allocation4 + $0x64] sm:$0xf] %vm754_vm1, %v2063_v50 }
 0x324   : > { %2308 = vrot.lane.b32.xlu0 %v5690_v45, %s4988_s16  ;;  %2310 = vrot.lane.b32.xlu1 %v5704_v58, %s4988_s16 }
 0x326   : > { %v2065_v56 = vpop.permute.xlu0 %2064  ;;  %v2067_v62 = vpop.permute.xlu1 %2066 }
 0x327   : > { %2103 = vst.msk [vmem:[#allocation4 + $0x68] sm:$0xf] %vm754_vm1, %v2065_v56  ;;  %2104 = vst.msk [vmem:[#allocation4 + $0x6c] sm:$0xf] %vm754_vm1, %v2067_v62 }
 0x328   : > { %2312 = vrot.lane.b32.xlu0 %v5722_v13, %s4988_s16  ;;  %2314 = vrot.lane.b32.xlu1 %v5736_v25, %s4988_s16 }
 0x32a   : > { %v2069_v22 = vpop.permute.xlu0 %2068  ;;  %v2071_v30 = vpop.permute.xlu1 %2070 }
 0x32b   : > { %2105 = vst.msk [vmem:[#allocation4 + $0x70] sm:$0xf] %vm754_vm1, %v2069_v22  ;;  %2106 = vst.msk [vmem:[#allocation4 + $0x74] sm:$0xf] %vm754_vm1, %v2071_v30 }
 0x32c   : > { %2316 = vrot.lane.b32.xlu0 %v5718_v6, %s4988_s16  ;;  %2318 = vrot.lane.b32.xlu1 %v5732_v17, %s4988_s16 }
 0x32e   : > { %v2073_v18 = vpop.permute.xlu0 %2072  ;;  %v2075_v26 = vpop.permute.xlu1 %2074 }
 0x32f   : > { %2107 = vst.msk [vmem:[#allocation4 + $0x78] sm:$0xf] %vm754_vm1, %v2073_v18  ;;  %2108 = vst.msk [vmem:[#allocation4 + $0x7c] sm:$0xf] %vm754_vm1, %v2075_v26 }
 0x330   : > { %2320 = vrot.lane.b32.xlu0 %v5750_v37, %s4988_s16  ;;  %2322 = vrot.lane.b32.xlu1 %v5764_v52, %s4988_s16 }
 0x332   : > { %v2110_v38 = vpop.permute.xlu0 %2109  ;;  %v2112_v46 = vpop.permute.xlu1 %2111 }
 0x333   : > { %2158 = vst.msk [vmem:[#allocation4 + $0x80] sm:$0xf] %vm754_vm1, %v2110_v38  ;;  %2159 = vst.msk [vmem:[#allocation4 + $0x84] sm:$0xf] %vm754_vm1, %v2112_v46 }
 0x334   : > { %2324 = vrot.lane.b32.xlu0 %v5746_v29, %s4988_s16  ;;  %2326 = vrot.lane.b32.xlu1 %v5760_v41, %s4988_s16 }
 0x336   : > { %v2114_v34 = vpop.permute.xlu0 %2113  ;;  %v2116_v42 = vpop.permute.xlu1 %2115 }
 0x337   : > { %2160 = vst.msk [vmem:[#allocation4 + $0x88] sm:$0xf] %vm754_vm1, %v2114_v34  ;;  %2161 = vst.msk [vmem:[#allocation4 + $0x8c] sm:$0xf] %vm754_vm1, %v2116_v42 }
 0x338   : > { %2328 = vrot.lane.b32.xlu0 %v5778_v8, %s4988_s16  ;;  %2330 = vrot.lane.b32.xlu1 %v5792_v24, %s4988_s16 }
 0x33a   : > { %v2118_v23 = vpop.permute.xlu0 %2117  ;;  %v2120_v31 = vpop.permute.xlu1 %2119 }
 0x33b   : > { %2162 = vst.msk [vmem:[#allocation4 + $0x90] sm:$0xf] %vm754_vm1, %v2118_v23  ;;  %2163 = vst.msk [vmem:[#allocation4 + $0x94] sm:$0xf] %vm754_vm1, %v2120_v31 }
 0x33c   : > { %2332 = vrot.lane.b32.xlu0 %v5774_v60, %s4988_s16  ;;  %2334 = vrot.lane.b32.xlu1 %v5788_v12, %s4988_s16 }
 0x33e   : > { %v2122_v19 = vpop.permute.xlu0 %2121  ;;  %v2124_v27 = vpop.permute.xlu1 %2123 }
 0x33f   : > { %2164 = vst.msk [vmem:[#allocation4 + $0x98] sm:$0xf] %vm754_vm1, %v2122_v19  ;;  %2165 = vst.msk [vmem:[#allocation4 + $0x9c] sm:$0xf] %vm754_vm1, %v2124_v27 }
 0x340   : > { %2369 = vrot.lane.b32.xlu0 %v5694_v54, %s4989_s29  ;;  %2371 = vrot.lane.b32.xlu1 %v5708_v2, %s4989_s29 }
 0x342   : > { %v2126_v39 = vpop.permute.xlu0 %2125  ;;  %v2128_v47 = vpop.permute.xlu1 %2127 }
 0x343   : > { %2166 = vst.msk [vmem:[#allocation4 + $0xa0] sm:$0xf] %vm754_vm1, %v2126_v39  ;;  %2167 = vst.msk [vmem:[#allocation4 + $0xa4] sm:$0xf] %vm754_vm1, %v2128_v47 }
 0x344   : > { %2373 = vrot.lane.b32.xlu0 %v5690_v45, %s4989_s29  ;;  %2375 = vrot.lane.b32.xlu1 %v5704_v58, %s4989_s29 }
 0x346   : > { %v2130_v35 = vpop.permute.xlu0 %2129  ;;  %v2132_v43 = vpop.permute.xlu1 %2131 }
 0x347   : > { %2168 = vst.msk [vmem:[#allocation4 + $0xa8] sm:$0xf] %vm754_vm1, %v2130_v35  ;;  %2169 = vst.msk [vmem:[#allocation4 + $0xac] sm:$0xf] %vm754_vm1, %v2132_v43 }
 0x348   : > { %2377 = vrot.lane.b32.xlu0 %v5722_v13, %s4989_s29  ;;  %2379 = vrot.lane.b32.xlu1 %v5736_v25, %s4989_s29 }
 0x34a   : > { %v2134_v51 = vpop.permute.xlu0 %2133  ;;  %v2136_v55 = vpop.permute.xlu1 %2135 }
 0x34b   : > { %2170 = vst.msk [vmem:[#allocation4 + $0xb0] sm:$0xf] %vm754_vm1, %v2134_v51  ;;  %2171 = vst.msk [vmem:[#allocation4 + $0xb4] sm:$0xf] %vm754_vm1, %v2136_v55 }
 0x34c   : > { %2381 = vrot.lane.b32.xlu0 %v5718_v6, %s4989_s29  ;;  %2383 = vrot.lane.b32.xlu1 %v5732_v17, %s4989_s29 }
 0x34e   : > { %v2138_v49 = vpop.permute.xlu0 %2137  ;;  %v2140_v53 = vpop.permute.xlu1 %2139 }
 0x34f   : > { %2172 = vst.msk [vmem:[#allocation4 + $0xb8] sm:$0xf] %vm754_vm1, %v2138_v49  ;;  %2173 = vst.msk [vmem:[#allocation4 + $0xbc] sm:$0xf] %vm754_vm1, %v2140_v53 }
 0x350   : > { %2385 = vrot.lane.b32.xlu0 %v5750_v37, %s4989_s29  ;;  %2387 = vrot.lane.b32.xlu1 %v5764_v52, %s4989_s29 }
 0x352   : > { %v2175_v59 = vpop.permute.xlu0 %2174  ;;  %v2177_v63 = vpop.permute.xlu1 %2176 }
 0x353   : > { %2223 = vst.msk [vmem:[#allocation4 + $0xc0] sm:$0xf] %vm754_vm1, %v2175_v59  ;;  %2224 = vst.msk [vmem:[#allocation4 + $0xc4] sm:$0xf] %vm754_vm1, %v2177_v63 }
 0x354   : > { %2389 = vrot.lane.b32.xlu0 %v5746_v29, %s4989_s29  ;;  %2391 = vrot.lane.b32.xlu1 %v5760_v41, %s4989_s29 }
 0x356   : > { %v2179_v57 = vpop.permute.xlu0 %2178  ;;  %v2181_v61 = vpop.permute.xlu1 %2180 }
 0x357   : > { %2225 = vst.msk [vmem:[#allocation4 + $0xc8] sm:$0xf] %vm754_vm1, %v2179_v57  ;;  %2226 = vst.msk [vmem:[#allocation4 + $0xcc] sm:$0xf] %vm754_vm1, %v2181_v61 }
 0x358   : > { %2393 = vrot.lane.b32.xlu0 %v5778_v8, %s4989_s29  ;;  %2395 = vrot.lane.b32.xlu1 %v5792_v24, %s4989_s29 }
 0x35a   : > { %v2183_v3 = vpop.permute.xlu0 %2182  ;;  %v2185_v7 = vpop.permute.xlu1 %2184 }
 0x35b   : > { %2227 = vst.msk [vmem:[#allocation4 + $0xd0] sm:$0xf] %vm754_vm1, %v2183_v3  ;;  %2228 = vst.msk [vmem:[#allocation4 + $0xd4] sm:$0xf] %vm754_vm1, %v2185_v7 }
 0x35c   : > { %2397 = vrot.lane.b32.xlu0 %v5774_v60, %s4989_s29  ;;  %2399 = vrot.lane.b32.xlu1 %v5788_v12, %s4989_s29 }
 0x35e   : > { %v2187_v1 = vpop.permute.xlu0 %2186  ;;  %v2189_v5 = vpop.permute.xlu1 %2188 }
 0x35f   : > { %2229 = vst.msk [vmem:[#allocation4 + $0xd8] sm:$0xf] %vm754_vm1, %v2187_v1  ;;  %2230 = vst.msk [vmem:[#allocation4 + $0xdc] sm:$0xf] %vm754_vm1, %v2189_v5 }
 0x360   : > { %2434 = vrot.lane.b32.xlu0 %v5694_v54, %s4990_s30  ;;  %2436 = vrot.lane.b32.xlu1 %v5708_v2, %s4990_s30 }
 0x362   : > { %v2191_v11 = vpop.permute.xlu0 %2190  ;;  %v2193_v16 = vpop.permute.xlu1 %2192 }
 0x363   : > { %2231 = vst.msk [vmem:[#allocation4 + $0xe0] sm:$0xf] %vm754_vm1, %v2191_v11  ;;  %2232 = vst.msk [vmem:[#allocation4 + $0xe4] sm:$0xf] %vm754_vm1, %v2193_v16 }
 0x364   : > { %2438 = vrot.lane.b32.xlu0 %v5690_v45, %s4990_s30  ;;  %2440 = vrot.lane.b32.xlu1 %v5704_v58, %s4990_s30  ;;  %v2500_v45 = vand.u32 127, %v2499_v0 }
 0x366   : > { %v2195_v9 = vpop.permute.xlu0 %2194  ;;  %v2197_v14 = vpop.permute.xlu1 %2196  ;;  %vm2501_vm2 = vcmp.lt.s32.totalorder %v2500_v45, 16 }
 0x367   : > { %2233 = vst.msk [vmem:[#allocation4 + $0xe8] sm:$0xf] %vm754_vm1, %v2195_v9  ;;  %2234 = vst.msk [vmem:[#allocation4 + $0xec] sm:$0xf] %vm754_vm1, %v2197_v14 }
 0x368   : > { %2442 = vrot.lane.b32.xlu0 %v5722_v13, %s4990_s30  ;;  %2444 = vrot.lane.b32.xlu1 %v5736_v25, %s4990_s30  ;;  %v4991_v13 = vmov -1e+30  }
 0x369   : > { %v6272_v25 = vsel %vm2501_vm2, 0.0, %v4991_v13 }
 0x36a   : > { %v2199_v54 = vpop.permute.xlu0 %2198  ;;  %v2201_v2 = vpop.permute.xlu1 %2200 }
 0x36b   : > { %2235 = vst.msk [vmem:[#allocation4 + $0xf0] sm:$0xf] %vm754_vm1, %v2199_v54  ;;  %2236 = vst.msk [vmem:[#allocation4 + $0xf4] sm:$0xf] %vm754_vm1, %v2201_v2 }
 0x36c   : > { %2446 = vrot.lane.b32.xlu0 %v5718_v6, %s4990_s30  ;;  %2448 = vrot.lane.b32.xlu1 %v5732_v17, %s4990_s30 }
 0x36e   : > { %v2203_v58 = vpop.permute.xlu0 %2202  ;;  %v2205_v4 = vpop.permute.xlu1 %2204 }
 0x36f   : > { %2237 = vst.msk [vmem:[#allocation4 + $0xf8] sm:$0xf] %vm754_vm1, %v2203_v58  ;;  %2238 = vst.msk [vmem:[#allocation4 + $0xfc] sm:$0xf] %vm754_vm1, %v2205_v4 }
 0x370   : > { %2450 = vrot.lane.b32.xlu0 %v5750_v37, %s4990_s30  ;;  %2452 = vrot.lane.b32.xlu1 %v5764_v52, %s4990_s30 }
 0x372   : > { %v2240_v6 = vpop.permute.xlu0 %2239  ;;  %v2242_v10 = vpop.permute.xlu1 %2241 }
 0x373   : > { %2288 = vst.msk [vmem:[#allocation4 + $0x100] sm:$0xf] %vm754_vm1, %v2240_v6  ;;  %2289 = vst.msk [vmem:[#allocation4 + $0x104] sm:$0xf] %vm754_vm1, %v2242_v10 }
 0x374   : > { %2454 = vrot.lane.b32.xlu0 %v5746_v29, %s4990_s30  ;;  %2456 = vrot.lane.b32.xlu1 %v5760_v41, %s4990_s30 }
 0x376   : > { %v2244_v17 = vpop.permute.xlu0 %2243  ;;  %v2246_v15 = vpop.permute.xlu1 %2245 }
 0x377   : > { %2290 = vst.msk [vmem:[#allocation4 + $0x108] sm:$0xf] %vm754_vm1, %v2244_v17  ;;  %2291 = vst.msk [vmem:[#allocation4 + $0x10c] sm:$0xf] %vm754_vm1, %v2246_v15 }
 0x378   : > { %2458 = vrot.lane.b32.xlu0 %v5778_v8, %s4990_s30  ;;  %2460 = vrot.lane.b32.xlu1 %v5792_v24, %s4990_s30 }
 0x37a   : > { %v2248_v37 = vpop.permute.xlu0 %2247  ;;  %v2250_v52 = vpop.permute.xlu1 %2249 }
 0x37b   : > { %2292 = vst.msk [vmem:[#allocation4 + $0x110] sm:$0xf] %vm754_vm1, %v2248_v37  ;;  %2293 = vst.msk [vmem:[#allocation4 + $0x114] sm:$0xf] %vm754_vm1, %v2250_v52 }
 0x37c   : > { %2462 = vrot.lane.b32.xlu0 %v5774_v60, %s4990_s30  ;;  %2464 = vrot.lane.b32.xlu1 %v5788_v12, %s4990_s30 }
 0x37e   : > { %v2252_v29 = vpop.permute.xlu0 %2251  ;;  %v2254_v41 = vpop.permute.xlu1 %2253 }
 0x37f   : > { %2294 = vst.msk [vmem:[#allocation4 + $0x118] sm:$0xf] %vm754_vm1, %v2252_v29  ;;  %2295 = vst.msk [vmem:[#allocation4 + $0x11c] sm:$0xf] %vm754_vm1, %v2254_v41 }
 0x382   : > { %v2256_v8 = vpop.permute.xlu0 %2255  ;;  %v2258_v24 = vpop.permute.xlu1 %2257 }
 0x383   : > { %2296 = vst.msk [vmem:[#allocation4 + $0x120] sm:$0xf] %vm754_vm1, %v2256_v8  ;;  %2297 = vst.msk [vmem:[#allocation4 + $0x124] sm:$0xf] %vm754_vm1, %v2258_v24 }
 0x386   : > { %v2260_v20 = vpop.permute.xlu0 %2259  ;;  %v2262_v21 = vpop.permute.xlu1 %2261 }
 0x387   : > { %2298 = vst.msk [vmem:[#allocation4 + $0x128] sm:$0xf] %vm754_vm1, %v2260_v20  ;;  %2299 = vst.msk [vmem:[#allocation4 + $0x12c] sm:$0xf] %vm754_vm1, %v2262_v21 }
 0x38a   : > { %v2264_v60 = vpop.permute.xlu0 %2263  ;;  %v2266_v12 = vpop.permute.xlu1 %2265 }
 0x38b   : > { %2300 = vst.msk [vmem:[#allocation4 + $0x130] sm:$0xf] %vm754_vm1, %v2264_v60  ;;  %2301 = vst.msk [vmem:[#allocation4 + $0x134] sm:$0xf] %vm754_vm1, %v2266_v12 }
 0x38e   : > { %v2268_v28 = vpop.permute.xlu0 %2267  ;;  %v2270_v32 = vpop.permute.xlu1 %2269 }
 0x38f   : > { %2302 = vst.msk [vmem:[#allocation4 + $0x138] sm:$0xf] %vm754_vm1, %v2268_v28  ;;  %2303 = vst.msk [vmem:[#allocation4 + $0x13c] sm:$0xf] %vm754_vm1, %v2270_v32 }
 0x392   : > { %v2305_v33 = vpop.permute.xlu0 %2304  ;;  %v2307_v36 = vpop.permute.xlu1 %2306 }
 0x393   : > { %2353 = vst.msk [vmem:[#allocation4 + $0x140] sm:$0xf] %vm754_vm1, %v2305_v33  ;;  %2354 = vst.msk [vmem:[#allocation4 + $0x144] sm:$0xf] %vm754_vm1, %v2307_v36 }
 0x396   : > { %v2309_v40 = vpop.permute.xlu0 %2308  ;;  %v2311_v44 = vpop.permute.xlu1 %2310 }
 0x397   : > { %2355 = vst.msk [vmem:[#allocation4 + $0x148] sm:$0xf] %vm754_vm1, %v2309_v40  ;;  %2356 = vst.msk [vmem:[#allocation4 + $0x14c] sm:$0xf] %vm754_vm1, %v2311_v44 }
 0x39a   : > { %v2313_v48 = vpop.permute.xlu0 %2312  ;;  %v2315_v50 = vpop.permute.xlu1 %2314 }
 0x39b   : > { %2357 = vst.msk [vmem:[#allocation4 + $0x150] sm:$0xf] %vm754_vm1, %v2313_v48  ;;  %2358 = vst.msk [vmem:[#allocation4 + $0x154] sm:$0xf] %vm754_vm1, %v2315_v50 }
 0x39e   : > { %v2317_v56 = vpop.permute.xlu0 %2316  ;;  %v2319_v62 = vpop.permute.xlu1 %2318 }
 0x39f   : > { %2359 = vst.msk [vmem:[#allocation4 + $0x158] sm:$0xf] %vm754_vm1, %v2317_v56  ;;  %2360 = vst.msk [vmem:[#allocation4 + $0x15c] sm:$0xf] %vm754_vm1, %v2319_v62 }
 0x3a2   : > { %v2321_v22 = vpop.permute.xlu0 %2320  ;;  %v2323_v30 = vpop.permute.xlu1 %2322 }
 0x3a3   : > { %2361 = vst.msk [vmem:[#allocation4 + $0x160] sm:$0xf] %vm754_vm1, %v2321_v22  ;;  %2362 = vst.msk [vmem:[#allocation4 + $0x164] sm:$0xf] %vm754_vm1, %v2323_v30 }
 0x3a6   : > { %v2325_v18 = vpop.permute.xlu0 %2324  ;;  %v2327_v26 = vpop.permute.xlu1 %2326 }
 0x3a7   : > { %2363 = vst.msk [vmem:[#allocation4 + $0x168] sm:$0xf] %vm754_vm1, %v2325_v18  ;;  %2364 = vst.msk [vmem:[#allocation4 + $0x16c] sm:$0xf] %vm754_vm1, %v2327_v26 }
 0x3aa   : > { %v2329_v38 = vpop.permute.xlu0 %2328  ;;  %v2331_v46 = vpop.permute.xlu1 %2330 }
 0x3ab   : > { %2365 = vst.msk [vmem:[#allocation4 + $0x170] sm:$0xf] %vm754_vm1, %v2329_v38  ;;  %2366 = vst.msk [vmem:[#allocation4 + $0x174] sm:$0xf] %vm754_vm1, %v2331_v46 }
 0x3ae   : > { %v2333_v34 = vpop.permute.xlu0 %2332  ;;  %v2335_v42 = vpop.permute.xlu1 %2334 }
 0x3af   : > { %2367 = vst.msk [vmem:[#allocation4 + $0x178] sm:$0xf] %vm754_vm1, %v2333_v34  ;;  %2368 = vst.msk [vmem:[#allocation4 + $0x17c] sm:$0xf] %vm754_vm1, %v2335_v42 }
 0x3b2   : > { %v2370_v23 = vpop.permute.xlu0 %2369  ;;  %v2372_v31 = vpop.permute.xlu1 %2371 }
 0x3b3   : > { %2418 = vst.msk [vmem:[#allocation4 + $0x180] sm:$0xf] %vm754_vm1, %v2370_v23  ;;  %2419 = vst.msk [vmem:[#allocation4 + $0x184] sm:$0xf] %vm754_vm1, %v2372_v31 }
 0x3b6   : > { %v2374_v19 = vpop.permute.xlu0 %2373  ;;  %v2376_v27 = vpop.permute.xlu1 %2375 }
 0x3b7   : > { %2420 = vst.msk [vmem:[#allocation4 + $0x188] sm:$0xf] %vm754_vm1, %v2374_v19  ;;  %2421 = vst.msk [vmem:[#allocation4 + $0x18c] sm:$0xf] %vm754_vm1, %v2376_v27 }
 0x3ba   : > { %v2378_v39 = vpop.permute.xlu0 %2377  ;;  %v2380_v47 = vpop.permute.xlu1 %2379 }
 0x3bb   : > { %2422 = vst.msk [vmem:[#allocation4 + $0x190] sm:$0xf] %vm754_vm1, %v2378_v39  ;;  %2423 = vst.msk [vmem:[#allocation4 + $0x194] sm:$0xf] %vm754_vm1, %v2380_v47 }
 0x3be   : > { %v2382_v35 = vpop.permute.xlu0 %2381  ;;  %v2384_v43 = vpop.permute.xlu1 %2383 }
 0x3bf   : > { %2424 = vst.msk [vmem:[#allocation4 + $0x198] sm:$0xf] %vm754_vm1, %v2382_v35  ;;  %2425 = vst.msk [vmem:[#allocation4 + $0x19c] sm:$0xf] %vm754_vm1, %v2384_v43 }
 0x3c2   : > { %v2386_v51 = vpop.permute.xlu0 %2385  ;;  %v2388_v55 = vpop.permute.xlu1 %2387 }
 0x3c3   : > { %2426 = vst.msk [vmem:[#allocation4 + $0x1a0] sm:$0xf] %vm754_vm1, %v2386_v51  ;;  %2427 = vst.msk [vmem:[#allocation4 + $0x1a4] sm:$0xf] %vm754_vm1, %v2388_v55 }
 0x3c6   : > { %v2390_v49 = vpop.permute.xlu0 %2389  ;;  %v2392_v53 = vpop.permute.xlu1 %2391 }
 0x3c7   : > { %2428 = vst.msk [vmem:[#allocation4 + $0x1a8] sm:$0xf] %vm754_vm1, %v2390_v49  ;;  %2429 = vst.msk [vmem:[#allocation4 + $0x1ac] sm:$0xf] %vm754_vm1, %v2392_v53 }
 0x3ca   : > { %v2394_v59 = vpop.permute.xlu0 %2393  ;;  %v2396_v63 = vpop.permute.xlu1 %2395 }
 0x3cb   : > { %2430 = vst.msk [vmem:[#allocation4 + $0x1b0] sm:$0xf] %vm754_vm1, %v2394_v59  ;;  %2431 = vst.msk [vmem:[#allocation4 + $0x1b4] sm:$0xf] %vm754_vm1, %v2396_v63 }
 0x3ce   : > { %v2398_v57 = vpop.permute.xlu0 %2397  ;;  %v2400_v61 = vpop.permute.xlu1 %2399 }
 0x3cf   : > { %2432 = vst.msk [vmem:[#allocation4 + $0x1b8] sm:$0xf] %vm754_vm1, %v2398_v57  ;;  %2433 = vst.msk [vmem:[#allocation4 + $0x1bc] sm:$0xf] %vm754_vm1, %v2400_v61 }
 0x3d2   : > { %v2435_v3 = vpop.permute.xlu0 %2434  ;;  %v2437_v7 = vpop.permute.xlu1 %2436 }
 0x3d3   : > { %2483 = vst.msk [vmem:[#allocation4 + $0x1c0] sm:$0xf] %vm754_vm1, %v2435_v3  ;;  %2484 = vst.msk [vmem:[#allocation4 + $0x1c4] sm:$0xf] %vm754_vm1, %v2437_v7 }
 0x3d6   : > { %v2439_v1 = vpop.permute.xlu0 %2438  ;;  %v2441_v5 = vpop.permute.xlu1 %2440 }
 0x3d7   : > { %2485 = vst.msk [vmem:[#allocation4 + $0x1c8] sm:$0xf] %vm754_vm1, %v2439_v1  ;;  %2486 = vst.msk [vmem:[#allocation4 + $0x1cc] sm:$0xf] %vm754_vm1, %v2441_v5 }
 0x3da   : > { %v2443_v11 = vpop.permute.xlu0 %2442  ;;  %v2445_v16 = vpop.permute.xlu1 %2444 }
 0x3db   : > { %2487 = vst.msk [vmem:[#allocation4 + $0x1d0] sm:$0xf] %vm754_vm1, %v2443_v11  ;;  %2488 = vst.msk [vmem:[#allocation4 + $0x1d4] sm:$0xf] %vm754_vm1, %v2445_v16 }
 0x3de   : > { %v2447_v9 = vpop.permute.xlu0 %2446  ;;  %v2449_v14 = vpop.permute.xlu1 %2448 }
 0x3df   : > { %2489 = vst.msk [vmem:[#allocation4 + $0x1d8] sm:$0xf] %vm754_vm1, %v2447_v9  ;;  %2490 = vst.msk [vmem:[#allocation4 + $0x1dc] sm:$0xf] %vm754_vm1, %v2449_v14 }
 0x3e2   : > { %v2451_v54 = vpop.permute.xlu0 %2450  ;;  %v2453_v2 = vpop.permute.xlu1 %2452 }
 0x3e3   : > { %2491 = vst.msk [vmem:[#allocation4 + $0x1e0] sm:$0xf] %vm754_vm1, %v2451_v54  ;;  %2492 = vst.msk [vmem:[#allocation4 + $0x1e4] sm:$0xf] %vm754_vm1, %v2453_v2 }
 0x3e6   : > { %v2455_v0 = vpop.permute.xlu0 %2454  ;;  %v2457_v45 = vpop.permute.xlu1 %2456 }
 0x3e7   : > { %2493 = vst.msk [vmem:[#allocation4 + $0x1e8] sm:$0xf] %vm754_vm1, %v2455_v0  ;;  %2494 = vst.msk [vmem:[#allocation4 + $0x1ec] sm:$0xf] %vm754_vm1, %v2457_v45 }
 0x3ea   : > { %v2459_v58 = vpop.permute.xlu0 %2458  ;;  %v2461_v4 = vpop.permute.xlu1 %2460 }
 0x3eb   : > { %2495 = vst.msk [vmem:[#allocation4 + $0x1f0] sm:$0xf] %vm754_vm1, %v2459_v58  ;;  %2496 = vst.msk [vmem:[#allocation4 + $0x1f4] sm:$0xf] %vm754_vm1, %v2461_v4 }
 0x3ee   : > { %v2463_v13 = vpop.permute.xlu0 %2462  ;;  %v2465_v6 = vpop.permute.xlu1 %2464 }
 0x3ef   : > { %2497 = vst.msk [vmem:[#allocation4 + $0x1f8] sm:$0xf] %vm754_vm1, %v2463_v13  ;;  %2498 = vst.msk [vmem:[#allocation4 + $0x1fc] sm:$0xf] %vm754_vm1, %v2465_v6 }
 0x3f0 LB: >> { %s6360_s9 = sshll.u32 %s4982_s8, 6  ;;  %vm2644_vm3 = vcmask 64512   ;;  %s2508_s8 = sadd.s32 1, %s4982_s8   ;;  %s4982_s8 = sphi %s6354_s8, %s2508_s8  }
 0x3f1   : >> { %s6363_s10 = scalar_lea.vmem [#allocation2], %s6360_s9  ;;  %s6373_s11 = scalar_lea.vmem [#allocation4], %s6360_s9 }
 0x3f2   : >> { %v4796_v10 = vld [vmem:[%s6363_s10 + $0x38] sm:$0xff]   ;;  %v4797_v17 = vld [vmem:[%s6363_s10 + $0x30] sm:$0xff]   ;;  %v4798_v37 = vld [vmem:[%s6363_s10 + $0x28] sm:$0xff]   ;;  %s6452_s12 = scalar_lea.vmem [#allocation3], %s6360_s9  ;;  %s6536_s13 = scalar_lea.vmem [#allocation5], %s6360_s9 }
 0x3f3   : >> { %4713 = vmatprep.subr.msk.bf16.mxu0 %vm2644_vm3, %v4796_v10  ;;  %v2691_v15 = vsel %vm2644_vm3, %v4796_v10, 0  ;;  %v2688_v52 = vsel %vm2644_vm3, %v4797_v17, 0  ;;  %v2685_v41 = vsel %vm2644_vm3, %v4798_v37, 0  ;;  %v4799_v8 = vld [vmem:[%s6363_s10 + $0x20] sm:$0xff]   ;;  %v4800_v20 = vld [vmem:[%s6363_s10 + $0x18] sm:$0xff]   ;;  %v4801_v60 = vld [vmem:[%s6363_s10 + $0x10] sm:$0xff]  }
 0x3f4   : >> { %4610 = vmatpush3.bf16.xpose.msra.mxu0 %v2691_v15  ;;  %v2682_v24 = vsel %vm2644_vm3, %v4799_v8, 0  ;;  %v2679_v21 = vsel %vm2644_vm3, %v4800_v20, 0  ;;  %v2676_v12 = vsel %vm2644_vm3, %v4801_v60, 0  ;;  %v4802_v28 = vld [vmem:[%s6363_s10 + $0x8] sm:$0xff]   ;;  %v4803_v33 = vld [vmem:[%s6363_s10] sm:$0xff]   ;;  %v4812_v2 = vld [vmem:[%s6452_s12 + $0x38] sm:$0xff]  }
 0x3f5   : >> { %4714 = vmatprep.subr.msk.bf16.mxu0 %vm2644_vm3, %v4797_v17  ;;  %v2673_v32 = vsel %vm2644_vm3, %v4802_v28, 0  ;;  %v2670_v36 = vsel %vm2644_vm3, %v4803_v33, 0  ;;  %v4813_v0 = vld [vmem:[%s6452_s12 + $0x30] sm:$0xff]   ;;  %4641 = vmatprep.subr.bf16.mxu1 %v4812_v2  ;;  %p2505_p5 = scmp.ge.s32.totalorder %s2508_s8, 8  }
 0x3f6   : >> { %v4804_v29 = vld [vmem:[%s6373_s11] sm:$0xff]   ;;  %v4805_v40 = vld [vmem:[%s6373_s11 + $0x8] sm:$0xff]   ;;  %v4806_v44 = vld [vmem:[%s6373_s11 + $0x10] sm:$0xff]   ;;  %4642 = vmatpush3.bf16.msra.mxu1 %v4812_v2  ;;  %s4992_s14 = smov (%p2505_p5), 8   ;;  %s4993_s15 = smov (%p2505_p5), 16   ;;  %vm3761_vm4 = vcmask (%p2505_p5), 130048  }
 0x3f7   : >> { %4625 = vmatprep.mubr.msk.bf16.mxu0 %vm2644_vm3, %v4804_v29  ;;  %v4807_v48 = vld [vmem:[%s6373_s11 + $0x18] sm:$0xff]   ;;  %v4808_v50 = vld [vmem:[%s6373_s11 + $0x20] sm:$0xff]   ;;  %v4809_v56 = vld [vmem:[%s6373_s11 + $0x28] sm:$0xff]   ;;  %4643 = vmatprep.subr.bf16.mxu1 %v4813_v0  ;;  %s4994_s16 = smov (%p2505_p5), 24   ;;  %s4995_s17 = smov (%p2505_p5), 32   ;;  %vm3778_vm5 = vcmask (%p2505_p5), 195584  }
 0x3f8   : >> { %v4810_v62 = vld [vmem:[%s6373_s11 + $0x30] sm:$0xff]   ;;  %v4811_v22 = vld [vmem:[%s6373_s11 + $0x38] sm:$0xff]   ;;  %s4996_s19 = smov (%p2505_p5), 40   ;;  %s4997_s20 = smov (%p2505_p5), 48   ;;  %vm3795_vm6 = vcmask (%p2505_p5), 261120   ;;  %vm3812_vm7 = vcmask (%p2505_p5), 326656  }
 0x3f9   : >> { %v4816_v2 = vld [vmem:[%s6452_s12 + $0x18] sm:$0xff]   ;;  %s4998_s21 = smov (%p2505_p5), 56   ;;  %vm3829_vm8 = vcmask (%p2505_p5), 392192   ;;  %vm3846_vm9 = vcmask (%p2505_p5), 457728  }
 0x3fa   : >> { %4644 = vmatpush3.bf16.msra.mxu1 %v4813_v0 }
 0x3fc   : >> { %4612 = vmatpush3.bf16.xpose.msra.mxu0 %v2688_v52 }
 0x3fd   : >> { %4715 = vmatprep.subr.msk.bf16.mxu0 %vm2644_vm3, %v4798_v37 }
 0x404   : >> { %4614 = vmatpush3.bf16.xpose.msra.mxu0 %v2685_v41 }
 0x405   : >> { %4716 = vmatprep.subr.msk.bf16.mxu0 %vm2644_vm3, %v4799_v8 }
 0x40c   : >> { %4616 = vmatpush3.bf16.xpose.msra.mxu0 %v2682_v24 }
 0x40d   : >> { %4717 = vmatprep.subr.msk.bf16.mxu0 %vm2644_vm3, %v4800_v20 }
 0x414   : >> { %4618 = vmatpush3.bf16.xpose.msra.mxu0 %v2679_v21 }
 0x415   : >> { %4718 = vmatprep.subr.msk.bf16.mxu0 %vm2644_vm3, %v4801_v60 }
 0x41c   : >> { %4620 = vmatpush3.bf16.xpose.msra.mxu0 %v2676_v12 }
 0x41d   : >> { %4719 = vmatprep.subr.msk.bf16.mxu0 %vm2644_vm3, %v4802_v28 }
 0x424   : >> { %4622 = vmatpush3.bf16.xpose.msra.mxu0 %v2673_v32 }
 0x425   : >> { %4720 = vmatprep.subr.msk.bf16.mxu0 %vm2644_vm3, %v4803_v33 }
 0x42c   : >> { %4624 = vmatpush3.bf16.xpose.msra.mxu0 %v2670_v36 }
 0x433   : >> { %4626 = vmatmul.mubr.msk.bf16.vlgmr.msra.gmra.mxu0 %vm2644_vm3, %v4805_v40 }
 0x434   : >> { %4629 = vmatprep.mubr.msk.bf16.mxu0 %vm2644_vm3, %v4806_v44 }
 0x43b   : >> { %4630 = vmatmul.mubr.msk.bf16.gmra.mxu0 %vm2644_vm3, %v4807_v48 }
 0x43c   : >> { %4633 = vmatprep.mubr.msk.bf16.mxu0 %vm2644_vm3, %v4808_v50 }
 0x443   : >> { %4634 = vmatmul.mubr.msk.bf16.gmra.mxu0 %vm2644_vm3, %v4809_v56 }
 0x444   : >> { %4637 = vmatprep.mubr.msk.bf16.mxu0 %vm2644_vm3, %v4810_v62 }
 0x44b   : >> { %4638 = vmatmul.mubr.msk.bf16.gmra.mxu0 %vm2644_vm3, %v4811_v22 }
 0x4f3   : >> { %v4627_v30 = vpop.f32.mrf.mxu0 }
 0x4f4   : >> { %v2736_v18 = vadd.f32 %v4627_v30, %v6272_v25 }
 0x4f5   : >> { %v2727_v26 = vpop.f32.mrf.mxu0 }
 0x4f6   : >> { %v2728_v38 = vadd.f32 %v2727_v26, %v6272_v25  ;;  %2794 = vmax.xlane.f32.xlu1 %v2736_v18 }
 0x4f7   : >> { %v4628_v46 = vpop.f32.mrf.mxu0 }
 0x4f8   : >> { %v2739_v34 = vadd.f32 %v4628_v46, %v6272_v25  ;;  %2790 = vmax.xlane.f32.xlu0 %v2728_v38 }
 0x4f9   : >> { %v2730_v42 = vpop.f32.mrf.mxu0 }
 0x4fa   : >> { %v2731_v23 = vadd.f32 %v2730_v42, %v6272_v25  ;;  %2796 = vmax.xlane.f32.xlu1 %v2739_v34 }
 0x4fb   : >> { %v4631_v31 = vpop.f32.mrf.mxu0 }
 0x4fc   : >> { %2792 = vmax.xlane.f32.xlu0 %v2731_v23  ;;  %v2752_v35 = vadd.f32 %v4631_v31, %v6272_v25 }
 0x4fd   : >> { %v2743_v19 = vpop.f32.mrf.mxu0 }
 0x4fe   : >> { %v2744_v27 = vadd.f32 %v2743_v19, %v6272_v25 }
 0x4ff   : >> { %v4632_v39 = vpop.f32.mrf.mxu0 }
 0x500   : >> { %2798 = vmax.xlane.f32.xlu0 %v2744_v27  ;;  %v6416_v49 = vadd.f32 %v4632_v39, %v6272_v25 }
 0x501   : >> { %v2746_v47 = vpop.f32.mrf.mxu0 }
 0x502   : >> { %v2747_v43 = vadd.f32 %v2746_v47, %v6272_v25 }
 0x503   : >> { %v4635_v51 = vpop.f32.mrf.mxu0 }
 0x504   : >> { %2800 = vmax.xlane.f32.xlu1 %v2747_v43  ;;  %2802 = vmax.xlane.f32.xlu0 %v2752_v35  ;;  %v6424_v57 = vadd.f32 %v4635_v51, %v6272_v25 }
 0x505   : >> { %v2759_v55 = vpop.f32.mrf.mxu0 }
 0x506   : >> { %v6419_v53 = vadd.f32 %v2759_v55, %v6272_v25 }
 0x507   : >> { %v4636_v59 = vpop.f32.mrf.mxu0 }
 0x508   : >> { %2804 = vmax.xlane.f32.xlu1 %v6416_v49  ;;  %2806 = vmax.xlane.f32.xlu0 %v6419_v53  ;;  %v6432_v1 = vadd.f32 %v4636_v59, %v6272_v25  ;;  %v4814_v59 = vld [vmem:[%s6452_s12 + $0x28] sm:$0xff]  }
 0x509   : >> { %v2762_v63 = vpop.f32.mrf.mxu0  ;;  %4645 = vmatprep.subr.bf16.mxu1 %v4814_v59 }
 0x50a   : >> { %v6427_v61 = vadd.f32 %v2762_v63, %v6272_v25  ;;  %4646 = vmatpush3.bf16.msra.mxu1 %v4814_v59 }
 0x50b   : >> { %v4639_v3 = vpop.f32.mrf.mxu0 }
 0x50c   : >> { %2808 = vmax.xlane.f32.xlu1 %v6427_v61  ;;  %2810 = vmax.xlane.f32.xlu0 %v6424_v57  ;;  %v6440_v9 = vadd.f32 %v4639_v3, %v6272_v25 }
 0x50d   : >> { %v2775_v7 = vpop.f32.mrf.mxu0 }
 0x50e   : >> { %v6435_v5 = vadd.f32 %v2775_v7, %v6272_v25 }
 0x50f   : >> { %v4640_v11 = vpop.f32.mrf.mxu0 }
 0x510   : >> { %2812 = vmax.xlane.f32.xlu1 %v6432_v1  ;;  %2814 = vmax.xlane.f32.xlu0 %v6435_v5  ;;  %v6448_v54 = vadd.f32 %v4640_v11, %v6272_v25  ;;  %v4815_v11 = vld [vmem:[%s6452_s12 + $0x20] sm:$0xff]  }
 0x511   : >> { %v2778_v16 = vpop.f32.mrf.mxu0  ;;  %4647 = vmatprep.subr.bf16.mxu1 %v4815_v11 }
 0x512   : >> { %v6443_v14 = vadd.f32 %v2778_v16, %v6272_v25  ;;  %4648 = vmatpush3.bf16.msra.mxu1 %v4815_v11 }
 0x513   : >> { %4649 = vmatprep.subr.bf16.mxu1 %v4816_v2 }
 0x514   : >> { %2816 = vmax.xlane.f32.xlu1 %v6443_v14  ;;  %2818 = vmax.xlane.f32.xlu0 %v6440_v9 }
 0x516   : >> { %4650 = vmatpush3.bf16.msra.mxu1 %v4816_v2 }
 0x518   : >> { %2820 = vmax.xlane.f32.xlu1 %v6448_v54 }
 0x57f   : >> { %v2795_v45 = vpop.xlane.xlu1 %2794 }
 0x580   : >> { %v2824_v58 = vsub.f32 %v2736_v18, %v2795_v45  ;;  %v4817_v45 = vld [vmem:[%s6452_s12 + $0x10] sm:$0xff]  }
 0x581   : >> { %v2791_v4 = vpop.xlane.xlu0 %2790  ;;  %4651 = vmatprep.subr.bf16.mxu1 %v4817_v45 }
 0x582   : >> { %v2822_v13 = vsub.f32 %v2728_v38, %v2791_v4  ;;  %v2842_v17 = vmul.f32 1.442695, %v2824_v58  ;;  %4652 = vmatpush3.bf16.msra.mxu1 %v4817_v45 }
 0x583   : >> { %v2797_v6 = vpop.xlane.xlu1 %2796 }
 0x584   : >> { %v2838_v10 = vmul.f32 1.442695, %v2822_v13  ;;  %v2825_v15 = vsub.f32 %v2739_v34, %v2797_v6  ;;  %v4818_v13 = vld [vmem:[%s6452_s12 + $0x8] sm:$0xff]  }
 0x585   : >> { %v2793_v37 = vpop.xlane.xlu0 %2792  ;;  %4653 = vmatprep.subr.bf16.mxu1 %v4818_v13 }
 0x586   : >> { %4820 = vpow2.f32 %v2838_v10  ;;  %v2823_v52 = vsub.f32 %v2731_v23, %v2793_v37  ;;  %v2844_v41 = vmul.f32 1.442695, %v2825_v15  ;;  %4654 = vmatpush3.bf16.msra.mxu1 %v4818_v13 }
 0x587   : >> { %4822 = vpow2.f32 %v2842_v17  ;;  %v4819_v17 = vld [vmem:[%s6452_s12] sm:$0xff]  }
 0x588   : >> { %v2840_v29 = vmul.f32 1.442695, %v2823_v52  ;;  %4655 = vmatprep.subr.bf16.mxu1 %v4819_v17 }
 0x589   : >> { %v2799_v8 = vpop.xlane.xlu0 %2798 }
 0x58a   : >> { %4824 = vpow2.f32 %v2840_v29  ;;  %v2826_v24 = vsub.f32 %v2744_v27, %v2799_v8  ;;  %4656 = vmatpush3.bf16.msra.mxu1 %v4819_v17 }
 0x58b   : >> { %4826 = vpow2.f32 %v2844_v41 }
 0x58c   : >> { %v2846_v20 = vmul.f32 1.442695, %v2826_v24 }
 0x58d   : >> { %v2801_v21 = vpop.xlane.xlu1 %2800  ;;  %v2803_v60 = vpop.xlane.xlu0 %2802 }
 0x58e   : >> { %4828 = vpow2.f32 %v2846_v20  ;;  %v2827_v12 = vsub.f32 %v2747_v43, %v2801_v21  ;;  %v2828_v28 = vsub.f32 %v2752_v35, %v2803_v60 }
 0x590   : >> { %v2848_v32 = vmul.f32 1.442695, %v2827_v12  ;;  %v2850_v33 = vmul.f32 1.442695, %v2828_v28 }
 0x591   : >> { %v2805_v36 = vpop.xlane.xlu1 %2804  ;;  %v2807_v40 = vpop.xlane.xlu0 %2806 }
 0x592   : >> { %4830 = vpow2.f32 %v2848_v32  ;;  %v2829_v44 = vsub.f32 %v6416_v49, %v2805_v36  ;;  %v2830_v48 = vsub.f32 %v6419_v53, %v2807_v40 }
 0x593   : >> { %v6458_v50 = vpop.eup %4820  ;;  %4832 = vpow2.f32 %v2850_v33 }
 0x594   : >> { %v2852_v56 = vmul.f32 1.442695, %v2829_v44  ;;  %v2854_v62 = vmul.f32 1.442695, %v2830_v48  ;;  %2870 = vadd.xlane.f32.xlu0 %v6458_v50  ;;  %v6461_v18 = vpop.eup %4822 }
 0x595   : >> { %v2809_v22 = vpop.xlane.xlu1 %2808  ;;  %v2811_v30 = vpop.xlane.xlu0 %2810 }
 0x596   : >> { %4834 = vpow2.f32 %v2852_v56  ;;  %v2831_v26 = vsub.f32 %v6427_v61, %v2809_v22  ;;  %v2832_v38 = vsub.f32 %v6424_v57, %v2811_v30 }
 0x597   : >> { %v6465_v46 = vpop.eup %4824  ;;  %4836 = vpow2.f32 %v2854_v62 }
 0x598   : >> { %v2856_v34 = vmul.f32 1.442695, %v2831_v26  ;;  %v2858_v42 = vmul.f32 1.442695, %v2832_v38  ;;  %2874 = vadd.xlane.f32.xlu0 %v6461_v18  ;;  %2872 = vadd.xlane.f32.xlu1 %v6465_v46  ;;  %v6469_v19 = vpop.eup %4826 }
 0x599   : >> { %v2813_v23 = vpop.xlane.xlu1 %2812  ;;  %v2815_v31 = vpop.xlane.xlu0 %2814 }
 0x59a   : >> { %4838 = vpow2.f32 %v2856_v34  ;;  %v2833_v27 = vsub.f32 %v6432_v1, %v2813_v23  ;;  %v2834_v39 = vsub.f32 %v6435_v5, %v2815_v31 }
 0x59b   : >> { %v6473_v47 = vpop.eup %4828  ;;  %4840 = vpow2.f32 %v2858_v42 }
 0x59c   : >> { %v2860_v35 = vmul.f32 1.442695, %v2833_v27  ;;  %v2862_v43 = vmul.f32 1.442695, %v2834_v39  ;;  %2876 = vadd.xlane.f32.xlu1 %v6469_v19  ;;  %2878 = vadd.xlane.f32.xlu0 %v6473_v47 }
 0x59d   : >> { %v2817_v51 = vpop.xlane.xlu1 %2816  ;;  %v2819_v55 = vpop.xlane.xlu0 %2818 }
 0x59e   : >> { %4842 = vpow2.f32 %v2860_v35  ;;  %v2835_v49 = vsub.f32 %v6443_v14, %v2817_v51  ;;  %v2836_v53 = vsub.f32 %v6440_v9, %v2819_v55 }
 0x59f   : >> { %v6480_v63 = vpop.eup %4830  ;;  %4844 = vpow2.f32 %v2862_v43 }
 0x5a0   : >> { %v6482_v57 = vpop.eup %4832  ;;  %v2864_v61 = vmul.f32 1.442695, %v2835_v49  ;;  %v2866_v3 = vmul.f32 1.442695, %v2836_v53  ;;  %2880 = vadd.xlane.f32.xlu1 %v6480_v63 }
 0x5a1   : >> { %2882 = vadd.xlane.f32.xlu0 %v6482_v57  ;;  %v2821_v7 = vpop.xlane.xlu1 %2820 }
 0x5a2   : >> { %4846 = vpow2.f32 %v2864_v61  ;;  %v2837_v1 = vsub.f32 %v6448_v54, %v2821_v7 }
 0x5a3   : >> { %v6487_v5 = vpop.eup %4834  ;;  %4848 = vpow2.f32 %v2866_v3 }
 0x5a4   : >> { %v6490_v16 = vpop.eup %4836  ;;  %v2868_v9 = vmul.f32 1.442695, %v2837_v1  ;;  %2884 = vadd.xlane.f32.xlu1 %v6487_v5 }
 0x5a5   : >> { %2886 = vadd.xlane.f32.xlu0 %v6490_v16 }
 0x5a6   : >> { %4850 = vpow2.f32 %v2868_v9 }
 0x5a7   : >> { %v6494_v14 = vpop.eup %4838 }
 0x5a8   : >> { %v6497_v54 = vpop.eup %4840  ;;  %2888 = vadd.xlane.f32.xlu1 %v6494_v14 }
 0x5a9   : >> { %2890 = vadd.xlane.f32.xlu0 %v6497_v54 }
 0x5ab   : >> { %v6501_v0 = vpop.eup %4842 }
 0x5ac   : >> { %v6504_v58 = vpop.eup %4844  ;;  %2892 = vadd.xlane.f32.xlu1 %v6501_v0 }
 0x5ad   : >> { %2894 = vadd.xlane.f32.xlu0 %v6504_v58 }
 0x5af   : >> { %v6508_v4 = vpop.eup %4846 }
 0x5b0   : >> { %v6511_v6 = vpop.eup %4848  ;;  %2896 = vadd.xlane.f32.xlu1 %v6508_v4 }
 0x5b1   : >> { %2898 = vadd.xlane.f32.xlu0 %v6511_v6 }
 0x5b3   : >> { %v6515_v10 = vpop.eup %4850 }
 0x5b4   : >> { %2900 = vadd.xlane.f32.xlu1 %v6515_v10 }
 0x61d   : >> { %v2871_v15 = vpop.xlane.xlu0 %2870 }
 0x61e   : >> { %4852 = vrcp.f32 %v2871_v15 }
 0x621   : >> { %v2873_v37 = vpop.xlane.xlu1 %2872  ;;  %v2875_v52 = vpop.xlane.xlu0 %2874 }
 0x622   : >> { %4854 = vrcp.f32 %v2873_v37 }
 0x623   : >> { %4856 = vrcp.f32 %v2875_v52 }
 0x625   : >> { %v2877_v29 = vpop.xlane.xlu1 %2876  ;;  %v2879_v41 = vpop.xlane.xlu0 %2878 }
 0x626   : >> { %4858 = vrcp.f32 %v2877_v29 }
 0x627   : >> { %4860 = vrcp.f32 %v2879_v41 }
 0x629   : >> { %v2881_v8 = vpop.xlane.xlu1 %2880 }
 0x62a   : >> { %4862 = vrcp.f32 %v2881_v8  ;;  %v2883_v24 = vpop.xlane.xlu0 %2882 }
 0x62b   : >> { %4864 = vrcp.f32 %v2883_v24  ;;  %v4853_v20 = vpop.eup %4852 }
 0x62c   : >> { %v2918_v28 = vmul.f32 %v4853_v20, %v6458_v50 }
 0x62d   : >> { %v2885_v21 = vpop.xlane.xlu1 %2884 }
 0x62e   : >> { %4866 = vrcp.f32 %v2885_v21  ;;  %v2887_v60 = vpop.xlane.xlu0 %2886 }
 0x62f   : >> { %v4855_v12 = vpop.eup %4854  ;;  %4868 = vrcp.f32 %v2887_v60 }
 0x630   : >> { %v2919_v32 = vmul.f32 %v4855_v12, %v6465_v46  ;;  %v4857_v33 = vpop.eup %4856 }
 0x631   : >> { %v2889_v36 = vpop.xlane.xlu1 %2888  ;;  %v2920_v56 = vmul.f32 %v4857_v33, %v6461_v18 }
 0x632   : >> { %4870 = vrcp.f32 %v2889_v36  ;;  %v2891_v40 = vpop.xlane.xlu0 %2890  ;;  %v2934_v44 = vpack.c.bf16 %v2919_v32, %v2918_v28 }
 0x633   : >> { %v4859_v48 = vpop.eup %4858  ;;  %4872 = vrcp.f32 %v2891_v40 }
 0x634   : >> { %4657 = vmatprep.mubr.bf16.mxu1 %v2934_v44  ;;  %v2921_v62 = vmul.f32 %v4859_v48, %v6469_v19  ;;  %v4861_v22 = vpop.eup %4860 }
 0x635   : >> { %v2893_v30 = vpop.xlane.xlu1 %2892  ;;  %v2922_v46 = vmul.f32 %v4861_v22, %v6473_v47 }
 0x636   : >> { %4874 = vrcp.f32 %v2893_v30  ;;  %v2895_v26 = vpop.xlane.xlu0 %2894  ;;  %v2935_v38 = vpack.c.bf16 %v2921_v62, %v2920_v56 }
 0x637   : >> { %v4863_v50 = vpop.eup %4862  ;;  %4876 = vrcp.f32 %v2895_v26 }
 0x638   : >> { %4658 = vmatmul.mubr.bf16.vlgmr.msra.gmra.mxu1 %v2935_v38  ;;  %v2923_v34 = vmul.f32 %v4863_v50, %v6480_v63  ;;  %v4865_v42 = vpop.eup %4864 }
 0x639   : >> { %v2897_v23 = vpop.xlane.xlu1 %2896  ;;  %v2924_v19 = vmul.f32 %v4865_v42, %v6482_v57 }
 0x63a   : >> { %4878 = vrcp.f32 %v2897_v23  ;;  %v2899_v31 = vpop.xlane.xlu0 %2898  ;;  %v2936_v27 = vpack.c.bf16 %v2923_v34, %v2922_v46 }
 0x63b   : >> { %v4867_v18 = vpop.eup %4866  ;;  %4880 = vrcp.f32 %v2899_v31 }
 0x63c   : >> { %4661 = vmatprep.mubr.bf16.mxu1 %v2936_v27  ;;  %v2925_v39 = vmul.f32 %v4867_v18, %v6487_v5  ;;  %v4869_v35 = vpop.eup %4868 }
 0x63d   : >> { %v2901_v43 = vpop.xlane.xlu1 %2900  ;;  %v2926_v47 = vmul.f32 %v4869_v35, %v6490_v16 }
 0x63e   : >> { %4882 = vrcp.f32 %v2901_v43  ;;  %v2937_v51 = vpack.c.bf16 %v2925_v39, %v2924_v19 }
 0x63f   : >> { %v4871_v55 = vpop.eup %4870 }
 0x640   : >> { %4662 = vmatmul.mubr.bf16.gmra.mxu1 %v2937_v51  ;;  %v2927_v49 = vmul.f32 %v4871_v55, %v6494_v14  ;;  %v4873_v53 = vpop.eup %4872 }
 0x641   : >> { %v2928_v61 = vmul.f32 %v4873_v53, %v6497_v54 }
 0x642   : >> { %v2938_v59 = vpack.c.bf16 %v2927_v49, %v2926_v47 }
 0x643   : >> { %v4875_v63 = vpop.eup %4874 }
 0x644   : >> { %4665 = vmatprep.mubr.bf16.mxu1 %v2938_v59  ;;  %v2929_v57 = vmul.f32 %v4875_v63, %v6501_v0  ;;  %v4877_v3 = vpop.eup %4876 }
 0x645   : >> { %v2930_v5 = vmul.f32 %v4877_v3, %v6504_v58 }
 0x646   : >> { %v2939_v7 = vpack.c.bf16 %v2929_v57, %v2928_v61 }
 0x647   : >> { %v4879_v1 = vpop.eup %4878 }
 0x648   : >> { %4666 = vmatmul.mubr.bf16.gmra.mxu1 %v2939_v7  ;;  %v2931_v11 = vmul.f32 %v4879_v1, %v6508_v4  ;;  %v4881_v16 = vpop.eup %4880 }
 0x649   : >> { %v2932_v2 = vmul.f32 %v4881_v16, %v6511_v6 }
 0x64a   : >> { %v2940_v9 = vpack.c.bf16 %v2931_v11, %v2930_v5 }
 0x64b   : >> { %v4883_v14 = vpop.eup %4882 }
 0x64c   : >> { %4669 = vmatprep.mubr.bf16.mxu1 %v2940_v9  ;;  %v2933_v45 = vmul.f32 %v4883_v14, %v6515_v10 }
 0x64e   : >> { %v2941_v54 = vpack.c.bf16 %v2933_v45, %v2932_v2 }
 0x650   : >> { %4670 = vmatmul.mubr.bf16.gmra.mxu1 %v2941_v54 }
 0x6f8   : >> { %v4659_v0 = vpop.f32.mrf.mxu1 }
 0x6f9   : >> { %v4442_v13 = vpack.c.bf16 %v4659_v0, %v4659_v0  ;;  %v4944_v0 = vld [vmem:[%s6754_s5 + $0x18] sm:$0xff] (%p2505_p5)  }
 0x6fa   : >> { %v3024_v17 = vpop.f32.mrf.mxu1  ;;  %4673 = vmatprep.subr.bf16.mxu0 (%p2505_p5), %v4944_v0  ;;  %4705 = vmatprep.subr.bf16.mxu1 (%p2505_p5), %v4944_v0 }
 0x6fb   : >> { %3155 = vst.msk [vmem:[%s6536_s13 + $0x8] sm:$0xf] %vm754_vm1, %v4442_v13  ;;  %v4440_v58 = vpack.c.bf16 %v3024_v17, %v3024_v17  ;;  %v4945_v13 = vld [vmem:[%s6754_s5 + $0x10] sm:$0xff] (%p2505_p5)   ;;  %4674 = vmatpush3.bf16.msra.mxu0 (%p2505_p5), %v4944_v0  ;;  %4709 = vmatpush3.bf16.msra.mxu1 (%p2505_p5), %v4944_v0 }
 0x6fc   : >> { %v4660_v4 = vpop.f32.mrf.mxu1  ;;  %4675 = vmatprep.subr.bf16.mxu0 (%p2505_p5), %v4945_v13  ;;  %4706 = vmatprep.subr.bf16.mxu1 (%p2505_p5), %v4945_v13 }
 0x6fd   : >> { %3153 = vst.msk [vmem:[%s6536_s13] sm:$0xf] %vm754_vm1, %v4440_v58  ;;  %v4443_v6 = vpack.c.bf16 %v4660_v4, %v4660_v4  ;;  %v4946_v4 = vld [vmem:[%s6754_s5 + $0x8] sm:$0xff] (%p2505_p5)  }
 0x6fe   : >> { %v3027_v10 = vpop.f32.mrf.mxu1 }
 0x6ff   : >> { %3156 = vst.msk [vmem:[%s6536_s13 + $0xc] sm:$0xf] %vm754_vm1, %v4443_v6  ;;  %v4441_v15 = vpack.c.bf16 %v3027_v10, %v3027_v10  ;;  %4676 = vmatpush3.bf16.msra.mxu0 (%p2505_p5), %v4945_v13  ;;  %4710 = vmatpush3.bf16.msra.mxu1 (%p2505_p5), %v4945_v13 }
 0x700   : >> { %v4663_v37 = vpop.f32.mrf.mxu1  ;;  %4677 = vmatprep.subr.bf16.mxu0 (%p2505_p5), %v4946_v4  ;;  %4707 = vmatprep.subr.bf16.mxu1 (%p2505_p5), %v4946_v4 }
 0x701   : >> { %3154 = vst.msk [vmem:[%s6536_s13 + $0x4] sm:$0xf] %vm754_vm1, %v4441_v15  ;;  %v4446_v52 = vpack.c.bf16 %v4663_v37, %v4663_v37  ;;  %v4947_v15 = vld [vmem:[%s6754_s5] sm:$0xff] (%p2505_p5)  }
 0x702   : >> { %v3040_v29 = vpop.f32.mrf.mxu1 }
 0x703   : >> { %3159 = vst.msk [vmem:[%s6536_s13 + $0x18] sm:$0xf] %vm754_vm1, %v4446_v52  ;;  %v4444_v41 = vpack.c.bf16 %v3040_v29, %v3040_v29  ;;  %4678 = vmatpush3.bf16.msra.mxu0 (%p2505_p5), %v4946_v4  ;;  %4711 = vmatpush3.bf16.msra.mxu1 (%p2505_p5), %v4946_v4 }
 0x704   : >> { %v4664_v8 = vpop.f32.mrf.mxu1  ;;  %4679 = vmatprep.subr.bf16.mxu0 (%p2505_p5), %v4947_v15  ;;  %4708 = vmatprep.subr.bf16.mxu1 (%p2505_p5), %v4947_v15 }
 0x705   : >> { %3157 = vst.msk [vmem:[%s6536_s13 + $0x10] sm:$0xf] %vm754_vm1, %v4444_v41  ;;  %v4447_v24 = vpack.c.bf16 %v4664_v8, %v4664_v8 }
 0x706   : >> { %v3043_v20 = vpop.f32.mrf.mxu1 }
 0x707   : >> { %3160 = vst.msk [vmem:[%s6536_s13 + $0x1c] sm:$0xf] %vm754_vm1, %v4447_v24  ;;  %v4445_v21 = vpack.c.bf16 %v3043_v20, %v3043_v20  ;;  %4680 = vmatpush3.bf16.msra.mxu0 (%p2505_p5), %v4947_v15  ;;  %4712 = vmatpush3.bf16.msra.mxu1 (%p2505_p5), %v4947_v15 }
 0x708   : >> { %v4667_v60 = vpop.f32.mrf.mxu1 }
 0x709   : >> { %3158 = vst.msk [vmem:[%s6536_s13 + $0x14] sm:$0xf] %vm754_vm1, %v4445_v21  ;;  %v4450_v12 = vpack.c.bf16 %v4667_v60, %v4667_v60 }
 0x70a   : >> { %v3056_v28 = vpop.f32.mrf.mxu1 }
 0x70b   : >> { %3163 = vst.msk [vmem:[%s6536_s13 + $0x28] sm:$0xf] %vm754_vm1, %v4450_v12  ;;  %v4448_v32 = vpack.c.bf16 %v3056_v28, %v3056_v28 }
 0x70c   : >> { %v4668_v33 = vpop.f32.mrf.mxu1 }
 0x70d   : >> { %3161 = vst.msk [vmem:[%s6536_s13 + $0x20] sm:$0xf] %vm754_vm1, %v4448_v32  ;;  %v4451_v36 = vpack.c.bf16 %v4668_v33, %v4668_v33 }
 0x70e   : >> { %v3059_v40 = vpop.f32.mrf.mxu1 }
 0x70f   : >> { %3164 = vst.msk [vmem:[%s6536_s13 + $0x2c] sm:$0xf] %vm754_vm1, %v4451_v36  ;;  %v4449_v44 = vpack.c.bf16 %v3059_v40, %v3059_v40 }
 0x710   : >> { %v4671_v48 = vpop.f32.mrf.mxu1 }
 0x711   : >> { %3162 = vst.msk [vmem:[%s6536_s13 + $0x24] sm:$0xf] %vm754_vm1, %v4449_v44  ;;  %v4454_v56 = vpack.c.bf16 %v4671_v48, %v4671_v48 }
 0x712   : >> { %v3072_v62 = vpop.f32.mrf.mxu1 }
 0x713   : >> { %3167 = vst.msk [vmem:[%s6536_s13 + $0x38] sm:$0xf] %vm754_vm1, %v4454_v56  ;;  %v4452_v22 = vpack.c.bf16 %v3072_v62, %v3072_v62 }
 0x714   : >> { %v4672_v30 = vpop.f32.mrf.mxu1 }
 0x715   : >> { %3165 = vst.msk [vmem:[%s6536_s13 + $0x30] sm:$0xf] %vm754_vm1, %v4452_v22  ;;  %v4455_v26 = vpack.c.bf16 %v4672_v30, %v4672_v30  ;;  %2507 = sbr.rel (!%p2505_p5) target bundleno = 1008 (0x3f0), region = 124 }
 0x716   : >> { %v3075_v38 = vpop.f32.mrf.mxu1 }
 0x717   : >> { %3168 = vst.msk [vmem:[%s6536_s13 + $0x3c] sm:$0xf] %vm754_vm1, %v4455_v26  ;;  %v4453_v50 = vpack.c.bf16 %v3075_v38, %v3075_v38 }
 0x719   : >> { %3166 = vst.msk [vmem:[%s6536_s13 + $0x34] sm:$0xf] %vm754_vm1, %v4453_v50 }
 0x720   : > { %v4884_v46 = vld [vmem:[#allocation5 + $0x48] sm:$0xff]   ;;  %v4885_v34 = vld [vmem:[#allocation5 + $0x40] sm:$0xff]   ;;  %v4912_v14 = vld [vmem:[#allocation5 + $0x70] sm:$0xff]  }
 0x721   : > { %3386 = vrot.lane.b32.xlu1 %v4884_v46, %s4992_s14  ;;  %v4886_v42 = vld [vmem:[#allocation5 + $0x68] sm:$0xff]   ;;  %3384 = vrot.lane.b32.xlu0 %v4885_v34, %s4992_s14  ;;  %v4887_v23 = vld [vmem:[#allocation5 + $0x60] sm:$0xff]   ;;  %v4913_v2 = vld [vmem:[#allocation5 + $0x50] sm:$0xff]  }
 0x722   : > { %v4888_v31 = vld [vmem:[#allocation5 + $0xa0] sm:$0xff]   ;;  %v4890_v18 = vld [vmem:[#allocation5 + $0xa8] sm:$0xff]   ;;  %v4914_v45 = vld [vmem:[#allocation5 + $0x78] sm:$0xff]  }
 0x723   : > { %v4889_v27 = vld [vmem:[#allocation5 + $0x80] sm:$0xff]   ;;  %v4891_v25 = vld [vmem:[#allocation5 + $0x88] sm:$0xff]   ;;  %v4915_v54 = vld [vmem:[#allocation5 + $0x58] sm:$0xff]  }
 0x724   : > { %v4892_v19 = vld [vmem:[#allocation5 + $0xe0] sm:$0xff]   ;;  %v4894_v35 = vld [vmem:[#allocation5 + $0xe8] sm:$0xff]   ;;  %v4916_v17 = vld [vmem:[#allocation5 + $0xb0] sm:$0xff]  }
 0x725   : > { %3394 = vrot.lane.b32.xlu1 %v4886_v42, %s4992_s14  ;;  %3392 = vrot.lane.b32.xlu0 %v4887_v23, %s4992_s14  ;;  %v4893_v39 = vld [vmem:[#allocation5 + $0xc0] sm:$0xff]   ;;  %v4895_v43 = vld [vmem:[#allocation5 + $0xc8] sm:$0xff]   ;;  %v4917_v58 = vld [vmem:[#allocation5 + $0x90] sm:$0xff]  }
 0x726   : > { %v4896_v51 = vld [vmem:[#allocation5 + $0x120] sm:$0xff]   ;;  %v4898_v47 = vld [vmem:[#allocation5 + $0x128] sm:$0xff]   ;;  %v4918_v6 = vld [vmem:[#allocation5 + $0xb8] sm:$0xff]  }
 0x727   : > { %v4897_v55 = vld [vmem:[#allocation5 + $0x100] sm:$0xff]   ;;  %v4899_v49 = vld [vmem:[#allocation5 + $0x108] sm:$0xff]   ;;  %v4919_v10 = vld [vmem:[#allocation5 + $0x98] sm:$0xff]  }
 0x728   : > { %v4900_v53 = vld [vmem:[#allocation5 + $0x160] sm:$0xff]   ;;  %v4902_v63 = vld [vmem:[#allocation5 + $0x168] sm:$0xff]   ;;  %v4920_v37 = vld [vmem:[#allocation5 + $0xf0] sm:$0xff]  }
 0x729   : > { %3448 = vrot.lane.b32.xlu1 %v4888_v31, %s4993_s15  ;;  %3440 = vrot.lane.b32.xlu0 %v4889_v27, %s4993_s15  ;;  %v4901_v59 = vld [vmem:[#allocation5 + $0x140] sm:$0xff]   ;;  %v4903_v61 = vld [vmem:[#allocation5 + $0x148] sm:$0xff]   ;;  %v4921_v52 = vld [vmem:[#allocation5 + $0xd0] sm:$0xff]  }
 0x72a   : > { %v4904_v57 = vld [vmem:[#allocation5 + $0x1a0] sm:$0xff]   ;;  %v4906_v7 = vld [vmem:[#allocation5 + $0x1a8] sm:$0xff]   ;;  %v4922_v29 = vld [vmem:[#allocation5 + $0xf8] sm:$0xff]  }
 0x72b   : > { %v4905_v3 = vld [vmem:[#allocation5 + $0x180] sm:$0xff]   ;;  %v4907_v1 = vld [vmem:[#allocation5 + $0x188] sm:$0xff]   ;;  %v4923_v41 = vld [vmem:[#allocation5 + $0xd8] sm:$0xff]  }
 0x72c   : > { %v4908_v5 = vld [vmem:[#allocation5 + $0x1e0] sm:$0xff]   ;;  %v4910_v16 = vld [vmem:[#allocation5 + $0x1e8] sm:$0xff]   ;;  %v4924_v8 = vld [vmem:[#allocation5 + $0x130] sm:$0xff]  }
 0x72d   : > { %3450 = vrot.lane.b32.xlu1 %v4890_v18, %s4993_s15  ;;  %3442 = vrot.lane.b32.xlu0 %v4891_v25, %s4993_s15  ;;  %v4909_v11 = vld [vmem:[#allocation5 + $0x1c0] sm:$0xff]   ;;  %v4911_v9 = vld [vmem:[#allocation5 + $0x1c8] sm:$0xff]   ;;  %v4925_v24 = vld [vmem:[#allocation5 + $0x110] sm:$0xff]  }
 0x72e   : > { %v4926_v20 = vld [vmem:[#allocation5 + $0x138] sm:$0xff]   ;;  %v4928_v60 = vld [vmem:[#allocation5 + $0x170] sm:$0xff]  }
 0x72f   : > { %v4927_v21 = vld [vmem:[#allocation5 + $0x118] sm:$0xff]   ;;  %v4929_v12 = vld [vmem:[#allocation5 + $0x150] sm:$0xff]  }
 0x730   : > { %v4930_v28 = vld [vmem:[#allocation5 + $0x178] sm:$0xff]   ;;  %v4932_v33 = vld [vmem:[#allocation5 + $0x1b0] sm:$0xff]  }
 0x731   : > { %3504 = vrot.lane.b32.xlu1 %v4892_v19, %s4994_s16  ;;  %3496 = vrot.lane.b32.xlu0 %v4893_v39, %s4994_s16  ;;  %v4931_v32 = vld [vmem:[#allocation5 + $0x158] sm:$0xff]   ;;  %v4933_v36 = vld [vmem:[#allocation5 + $0x190] sm:$0xff]  }
 0x732   : > { %v4934_v40 = vld [vmem:[#allocation5 + $0x1b8] sm:$0xff]   ;;  %v4936_v48 = vld [vmem:[#allocation5 + $0x1f0] sm:$0xff]  }
 0x733   : > { %v4935_v44 = vld [vmem:[#allocation5 + $0x198] sm:$0xff]   ;;  %v4937_v56 = vld [vmem:[#allocation5 + $0x1d0] sm:$0xff]  }
 0x734   : > { %v4938_v62 = vld [vmem:[#allocation5 + $0x1f8] sm:$0xff]  }
 0x735   : > { %3506 = vrot.lane.b32.xlu1 %v4894_v35, %s4994_s16  ;;  %3498 = vrot.lane.b32.xlu0 %v4895_v43, %s4994_s16  ;;  %v4939_v22 = vld [vmem:[#allocation5 + $0x1d8] sm:$0xff]  }
 0x739   : > { %3560 = vrot.lane.b32.xlu1 %v4896_v51, %s4995_s17  ;;  %3552 = vrot.lane.b32.xlu0 %v4897_v55, %s4995_s17 }
 0x73d   : > { %3562 = vrot.lane.b32.xlu1 %v4898_v47, %s4995_s17  ;;  %3554 = vrot.lane.b32.xlu0 %v4899_v49, %s4995_s17 }
 0x741   : > { %3616 = vrot.lane.b32.xlu1 %v4900_v53, %s4996_s19  ;;  %3608 = vrot.lane.b32.xlu0 %v4901_v59, %s4996_s19  ;;  %v4943_v53 = vld [vmem:[#allocation5 + $0x20] sm:$0xff]  }
 0x742   : > { %v4941_v59 = vld [vmem:[#allocation5] sm:$0xff]  }
 0x745   : > { %3618 = vrot.lane.b32.xlu1 %v4902_v63, %s4996_s19  ;;  %3610 = vrot.lane.b32.xlu0 %v4903_v61, %s4996_s19 }
 0x749   : > { %3672 = vrot.lane.b32.xlu1 %v4904_v57, %s4997_s20  ;;  %3664 = vrot.lane.b32.xlu0 %v4905_v3, %s4997_s20  ;;  %v4942_v57 = vld [vmem:[#allocation5 + $0x28] sm:$0xff]  }
 0x74d   : > { %3674 = vrot.lane.b32.xlu1 %v4906_v7, %s4997_s20  ;;  %3666 = vrot.lane.b32.xlu0 %v4907_v1, %s4997_s20  ;;  %v4940_v7 = vld [vmem:[#allocation5 + $0x8] sm:$0xff]  }
 0x751   : > { %3728 = vrot.lane.b32.xlu1 %v4908_v5, %s4998_s21  ;;  %3720 = vrot.lane.b32.xlu0 %v4909_v11, %s4998_s21 }
 0x755   : > { %3730 = vrot.lane.b32.xlu1 %v4910_v16, %s4998_s21  ;;  %3722 = vrot.lane.b32.xlu0 %v4911_v9, %s4998_s21 }
 0x759   : > { %3396 = vrot.lane.b32.xlu1 %v4912_v14, %s4992_s14  ;;  %3388 = vrot.lane.b32.xlu0 %v4913_v2, %s4992_s14 }
 0x75d   : > { %3398 = vrot.lane.b32.xlu1 %v4914_v45, %s4992_s14  ;;  %3390 = vrot.lane.b32.xlu0 %v4915_v54, %s4992_s14 }
 0x761   : > { %3452 = vrot.lane.b32.xlu1 %v4916_v17, %s4993_s15  ;;  %3444 = vrot.lane.b32.xlu0 %v4917_v58, %s4993_s15 }
 0x765   : > { %3454 = vrot.lane.b32.xlu1 %v4918_v6, %s4993_s15  ;;  %3446 = vrot.lane.b32.xlu0 %v4919_v10, %s4993_s15 }
 0x769   : > { %3508 = vrot.lane.b32.xlu1 %v4920_v37, %s4994_s16  ;;  %3500 = vrot.lane.b32.xlu0 %v4921_v52, %s4994_s16 }
 0x76d   : > { %3510 = vrot.lane.b32.xlu1 %v4922_v29, %s4994_s16  ;;  %3502 = vrot.lane.b32.xlu0 %v4923_v41, %s4994_s16 }
 0x771   : > { %3564 = vrot.lane.b32.xlu1 %v4924_v8, %s4995_s17  ;;  %3556 = vrot.lane.b32.xlu0 %v4925_v24, %s4995_s17 }
 0x775   : > { %3566 = vrot.lane.b32.xlu1 %v4926_v20, %s4995_s17  ;;  %3558 = vrot.lane.b32.xlu0 %v4927_v21, %s4995_s17 }
 0x779   : > { %3620 = vrot.lane.b32.xlu1 %v4928_v60, %s4996_s19  ;;  %3612 = vrot.lane.b32.xlu0 %v4929_v12, %s4996_s19 }
 0x77d   : > { %3622 = vrot.lane.b32.xlu1 %v4930_v28, %s4996_s19  ;;  %3614 = vrot.lane.b32.xlu0 %v4931_v32, %s4996_s19 }
 0x781   : > { %3676 = vrot.lane.b32.xlu1 %v4932_v33, %s4997_s20  ;;  %3668 = vrot.lane.b32.xlu0 %v4933_v36, %s4997_s20 }
 0x785   : > { %3678 = vrot.lane.b32.xlu1 %v4934_v40, %s4997_s20  ;;  %3670 = vrot.lane.b32.xlu0 %v4935_v44, %s4997_s20 }
 0x789   : > { %3732 = vrot.lane.b32.xlu1 %v4936_v48, %s4998_s21  ;;  %3724 = vrot.lane.b32.xlu0 %v4937_v56, %s4998_s21 }
 0x78d   : > { %3734 = vrot.lane.b32.xlu1 %v4938_v62, %s4998_s21  ;;  %3726 = vrot.lane.b32.xlu0 %v4939_v22, %s4998_s21 }
 0x793   : > { %v3387_v30 = vpop.permute.xlu1 %3386  ;;  %v3385_v26 = vpop.permute.xlu0 %3384 }
 0x794   : > { %v3739_v1 = vsel %vm2644_vm3, %v4941_v59, %v3385_v26  ;;  %v3742_v17 = vsel %vm2644_vm3, %v4940_v7, %v3387_v30  ;;  %v4950_v59 = vld [vmem:[#allocation5 + $0x38] sm:$0xff]  }
 0x797   : > { %v3395_v38 = vpop.permute.xlu1 %3394  ;;  %v3393_v50 = vpop.permute.xlu0 %3392 }
 0x798   : > { %v3751_v3 = vsel %vm2644_vm3, %v4943_v53, %v3393_v50  ;;  %v3754_v54 = vsel %vm2644_vm3, %v4942_v57, %v3395_v38 }
 0x79b   : > { %v3449_v46 = vpop.permute.xlu1 %3448  ;;  %v3441_v34 = vpop.permute.xlu0 %3440 }
 0x79c   : > { %v3771_v5 = vsel %vm3761_vm4, %v3751_v3, %v3449_v46  ;;  %v3763_v16 = vsel %vm3761_vm4, %v3739_v1, %v3441_v34 }
 0x79f   : > { %v3451_v42 = vpop.permute.xlu1 %3450  ;;  %v3443_v23 = vpop.permute.xlu0 %3442 }
 0x7a0   : > { %v3773_v58 = vsel %vm3761_vm4, %v3754_v54, %v3451_v42  ;;  %v3765_v15 = vsel %vm3761_vm4, %v3742_v17, %v3443_v23 }
 0x7a3   : > { %v3505_v31 = vpop.permute.xlu1 %3504  ;;  %v3497_v27 = vpop.permute.xlu0 %3496 }
 0x7a4   : > { %v3788_v9 = vsel %vm3778_vm5, %v3771_v5, %v3505_v31  ;;  %v3780_v2 = vsel %vm3778_vm5, %v3763_v16, %v3497_v27 }
 0x7a7   : > { %v3507_v18 = vpop.permute.xlu1 %3506  ;;  %v3499_v25 = vpop.permute.xlu0 %3498 }
 0x7a8   : > { %v3790_v37 = vsel %vm3778_vm5, %v3773_v58, %v3507_v18  ;;  %v3782_v8 = vsel %vm3778_vm5, %v3765_v15, %v3499_v25 }
 0x7ab   : > { %v3561_v19 = vpop.permute.xlu1 %3560  ;;  %v3553_v39 = vpop.permute.xlu0 %3552 }
 0x7ac   : > { %v3805_v45 = vsel %vm3795_vm6, %v3788_v9, %v3561_v19  ;;  %v3797_v0 = vsel %vm3795_vm6, %v3780_v2, %v3553_v39 }
 0x7af   : > { %v3563_v35 = vpop.permute.xlu1 %3562  ;;  %v3555_v43 = vpop.permute.xlu0 %3554 }
 0x7b0   : > { %v3807_v24 = vsel %vm3795_vm6, %v3790_v37, %v3563_v35  ;;  %v3799_v21 = vsel %vm3795_vm6, %v3782_v8, %v3555_v43 }
 0x7b3   : > { %v3617_v51 = vpop.permute.xlu1 %3616  ;;  %v3609_v55 = vpop.permute.xlu0 %3608 }
 0x7b4   : > { %v3822_v13 = vsel %vm3812_vm7, %v3805_v45, %v3617_v51  ;;  %v3814_v4 = vsel %vm3812_vm7, %v3797_v0, %v3609_v55  ;;  %v4948_v51 = vld [vmem:[#allocation5 + $0x30] sm:$0xff]  }
 0x7b5   : > { %v4949_v55 = vld [vmem:[#allocation5 + $0x10] sm:$0xff]  }
 0x7b7   : > { %v3619_v47 = vpop.permute.xlu1 %3618  ;;  %v3611_v49 = vpop.permute.xlu0 %3610 }
 0x7b8   : > { %v3824_v60 = vsel %vm3812_vm7, %v3807_v24, %v3619_v47  ;;  %v3816_v12 = vsel %vm3812_vm7, %v3799_v21, %v3611_v49 }
 0x7bb   : > { %v3673_v63 = vpop.permute.xlu1 %3672  ;;  %v3665_v61 = vpop.permute.xlu0 %3664 }
 0x7bc   : > { %v3839_v6 = vsel %vm3829_vm8, %v3822_v13, %v3673_v63  ;;  %v3831_v52 = vsel %vm3829_vm8, %v3814_v4, %v3665_v61  ;;  %v4951_v61 = vld [vmem:[#allocation5 + $0x18] sm:$0xff]  }
 0x7bf   : > { %v3675_v11 = vpop.permute.xlu1 %3674  ;;  %v3667_v14 = vpop.permute.xlu0 %3666 }
 0x7c0   : > { %v3841_v28 = vsel %vm3829_vm8, %v3824_v60, %v3675_v11  ;;  %v3833_v33 = vsel %vm3829_vm8, %v3816_v12, %v3667_v14 }
 0x7c3   : > { %v3729_v10 = vpop.permute.xlu1 %3728  ;;  %v3721_v29 = vpop.permute.xlu0 %3720 }
 0x7c4   : > { %v3856_v41 = vsel %vm3846_vm9, %v3839_v6, %v3729_v10  ;;  %v3848_v20 = vsel %vm3846_vm9, %v3831_v52, %v3721_v29 }
 0x7c5   : > { %4689 = vmatprep.mubr.msk.bf16.mxu1 %vm431_vm0, %v3856_v41  ;;  %4681 = vmatprep.mubr.msk.bf16.mxu0 %vm431_vm0, %v3848_v20 }
 0x7c7   : > { %v3731_v32 = vpop.permute.xlu1 %3730  ;;  %v3723_v36 = vpop.permute.xlu0 %3722 }
 0x7c8   : > { %v3858_v40 = vsel %vm3846_vm9, %v3841_v28, %v3731_v32  ;;  %v3850_v44 = vsel %vm3846_vm9, %v3833_v33, %v3723_v36  ;;  %v4371_v33 = vld [vmem:[%s6755_s6] ss:$0 sm:$0xff] }
 0x7c9   : > { %4690 = vmatmul.mubr.msk.bf16.vlgmr.msra.gmra.mxu1 %vm431_vm0, %v3858_v40  ;;  %4682 = vmatmul.mubr.msk.bf16.vlgmr.msra.gmra.mxu0 %vm431_vm0, %v3850_v44 }
 0x7cb   : > { %v3397_v48 = vpop.permute.xlu1 %3396  ;;  %v3389_v56 = vpop.permute.xlu0 %3388 }
 0x7cc   : > { %v3757_v53 = vsel %vm2644_vm3, %v4948_v51, %v3397_v48  ;;  %v3745_v63 = vsel %vm2644_vm3, %v4949_v55, %v3389_v56 }
 0x7cf   : > { %v3399_v62 = vpop.permute.xlu1 %3398  ;;  %v3391_v22 = vpop.permute.xlu0 %3390 }
 0x7d0   : > { %v3760_v9 = vsel %vm2644_vm3, %v4950_v59, %v3399_v62  ;;  %v3748_v45 = vsel %vm2644_vm3, %v4951_v61, %v3391_v22 }
 0x7d3   : > { %v3453_v30 = vpop.permute.xlu1 %3452  ;;  %v3445_v26 = vpop.permute.xlu0 %3444 }
 0x7d4   : > { %v3775_v57 = vsel %vm3761_vm4, %v3757_v53, %v3453_v30  ;;  %v3767_v7 = vsel %vm3761_vm4, %v3745_v63, %v3445_v26 }
 0x7d7   : > { %v3455_v38 = vpop.permute.xlu1 %3454  ;;  %v3447_v50 = vpop.permute.xlu0 %3446 }
 0x7d8   : > { %v3777_v54 = vsel %vm3761_vm4, %v3760_v9, %v3455_v38  ;;  %v3769_v58 = vsel %vm3761_vm4, %v3748_v45, %v3447_v50 }
 0x7db   : > { %v3509_v46 = vpop.permute.xlu1 %3508  ;;  %v3501_v34 = vpop.permute.xlu0 %3500 }
 0x7dc   : > { %v3792_v1 = vsel %vm3778_vm5, %v3775_v57, %v3509_v46  ;;  %v3784_v11 = vsel %vm3778_vm5, %v3767_v7, %v3501_v34 }
 0x7df   : > { %v3511_v42 = vpop.permute.xlu1 %3510  ;;  %v3503_v23 = vpop.permute.xlu0 %3502 }
 0x7e0   : > { %v3794_v4 = vsel %vm3778_vm5, %v3777_v54, %v3511_v42  ;;  %v3786_v37 = vsel %vm3778_vm5, %v3769_v58, %v3503_v23 }
 0x7e3   : > { %v3565_v31 = vpop.permute.xlu1 %3564  ;;  %v3557_v27 = vpop.permute.xlu0 %3556 }
 0x7e4   : > { %v3809_v16 = vsel %vm3795_vm6, %v3792_v1, %v3565_v31  ;;  %v3801_v14 = vsel %vm3795_vm6, %v3784_v11, %v3557_v27 }
 0x7e7   : > { %v3567_v18 = vpop.permute.xlu1 %3566  ;;  %v3559_v25 = vpop.permute.xlu0 %3558 }
 0x7e8   : > { %v3811_v52 = vsel %vm3795_vm6, %v3794_v4, %v3567_v18  ;;  %v3803_v41 = vsel %vm3795_vm6, %v3786_v37, %v3559_v25 }
 0x7eb   : > { %v3621_v19 = vpop.permute.xlu1 %3620  ;;  %v3613_v39 = vpop.permute.xlu0 %3612 }
 0x7ec   : > { %v3826_v2 = vsel %vm3812_vm7, %v3809_v16, %v3621_v19  ;;  %v3818_v0 = vsel %vm3812_vm7, %v3801_v14, %v3613_v39 }
 0x7ef   : > { %v3623_v35 = vpop.permute.xlu1 %3622  ;;  %v3615_v43 = vpop.permute.xlu0 %3614 }
 0x7f0   : > { %v3828_v8 = vsel %vm3812_vm7, %v3811_v52, %v3623_v35  ;;  %v3820_v24 = vsel %vm3812_vm7, %v3803_v41, %v3615_v43 }
 0x7f3   : > { %v3677_v47 = vpop.permute.xlu1 %3676  ;;  %v3669_v49 = vpop.permute.xlu0 %3668 }
 0x7f4   : > { %v3843_v13 = vsel %vm3829_vm8, %v3826_v2, %v3677_v47  ;;  %v3835_v6 = vsel %vm3829_vm8, %v3818_v0, %v3669_v49 }
 0x7f7   : > { %v3679_v3 = vpop.permute.xlu1 %3678  ;;  %v3671_v5 = vpop.permute.xlu0 %3670 }
 0x7f8   : > { %v3845_v20 = vsel %vm3829_vm8, %v3828_v8, %v3679_v3  ;;  %v3837_v60 = vsel %vm3829_vm8, %v3820_v24, %v3671_v5 }
 0x7fb   : > { %v3733_v17 = vpop.permute.xlu1 %3732  ;;  %v3725_v10 = vpop.permute.xlu0 %3724 }
 0x7fc   : > { %v3860_v15 = vsel %vm3846_vm9, %v3843_v13, %v3733_v17  ;;  %v3852_v29 = vsel %vm3846_vm9, %v3835_v6, %v3725_v10 }
 0x7fd   : > { %4693 = vmatprep.mubr.msk.bf16.mxu1 %vm431_vm0, %v3860_v15  ;;  %4685 = vmatprep.mubr.msk.bf16.mxu0 %vm431_vm0, %v3852_v29 }
 0x7ff   : > { %v3735_v21 = vpop.permute.xlu1 %3734  ;;  %v3727_v12 = vpop.permute.xlu0 %3726 }
 0x800   : > { %v3862_v28 = vsel %vm3846_vm9, %v3845_v20, %v3735_v21  ;;  %v3854_v32 = vsel %vm3846_vm9, %v3837_v60, %v3727_v12 }
 0x801   : > { %4694 = vmatmul.mubr.msk.bf16.gmra.mxu1 %vm431_vm0, %v3862_v28  ;;  %4686 = vmatmul.mubr.msk.bf16.gmra.mxu0 %vm431_vm0, %v3854_v32 }
 0x889   : > { %v4691_v36 = vpop.f32.mrf.mxu1  ;;  %v4683_v40 = vpop.f32.mrf.mxu0 }
 0x88a   : > { %v3993_v44 = vadd.f32 %v4691_v36, %v4371_v33  ;;  %v3961_v48 = vadd.f32 %v4683_v40, %v4371_v33 }
 0x88b   : > { %v3984_v56 = vpop.f32.mrf.mxu1  ;;  %v3952_v62 = vpop.f32.mrf.mxu0 }
 0x88c   : > { %4025 = vst.msk [vmem:[%s5078_s18 + $0x50] sm:$0xff] %vm431_vm0, %v3993_v44  ;;  %v3985_v22 = vadd.f32 %v4371_v33, %v3984_v56  ;;  %4017 = vst.msk [vmem:[%s5078_s18 + $0x10] sm:$0xff] %vm431_vm0, %v3961_v48  ;;  %v3953_v30 = vadd.f32 %v4371_v33, %v3952_v62 }
 0x88d   : > { %v4692_v26 = vpop.f32.mrf.mxu1  ;;  %v4684_v38 = vpop.f32.mrf.mxu0 }
 0x88e   : > { %4023 = vst.msk [vmem:[%s5078_s18 + $0x40] sm:$0xff] %vm431_vm0, %v3985_v22  ;;  %v3996_v50 = vadd.f32 %v4692_v26, %v4371_v33  ;;  %4015 = vst.msk [vmem:[%s5078_s18] sm:$0xff] %vm431_vm0, %v3953_v30  ;;  %v3964_v46 = vadd.f32 %v4684_v38, %v4371_v33 }
 0x88f   : > { %v3987_v34 = vpop.f32.mrf.mxu1  ;;  %v3955_v42 = vpop.f32.mrf.mxu0 }
 0x890   : > { %4026 = vst.msk [vmem:[%s5078_s18 + $0x58] sm:$0xff] %vm431_vm0, %v3996_v50  ;;  %v3988_v23 = vadd.f32 %v4371_v33, %v3987_v34  ;;  %4018 = vst.msk [vmem:[%s5078_s18 + $0x18] sm:$0xff] %vm431_vm0, %v3964_v46  ;;  %v3956_v31 = vadd.f32 %v4371_v33, %v3955_v42 }
 0x892   : > { %4024 = vst.msk [vmem:[%s5078_s18 + $0x48] sm:$0xff] %vm431_vm0, %v3988_v23  ;;  %4016 = vst.msk [vmem:[%s5078_s18 + $0x8] sm:$0xff] %vm431_vm0, %v3956_v31 }
 0x8c1   : > { %v4695_v27 = vpop.f32.mrf.mxu1  ;;  %v4687_v18 = vpop.f32.mrf.mxu0 }
 0x8c2   : > { %v4009_v25 = vadd.f32 %v4695_v27, %v4371_v33  ;;  %v3977_v19 = vadd.f32 %v4687_v18, %v4371_v33 }
 0x8c3   : > { %v4000_v39 = vpop.f32.mrf.mxu1  ;;  %v3968_v35 = vpop.f32.mrf.mxu0 }
 0x8c4   : > { %4029 = vst.msk [vmem:[%s5078_s18 + $0x70] sm:$0xff] %vm431_vm0, %v4009_v25  ;;  %v4001_v43 = vadd.f32 %v4371_v33, %v4000_v39  ;;  %4021 = vst.msk [vmem:[%s5078_s18 + $0x30] sm:$0xff] %vm431_vm0, %v3977_v19  ;;  %v3969_v51 = vadd.f32 %v4371_v33, %v3968_v35 }
 0x8c5   : > { %v4696_v55 = vpop.f32.mrf.mxu1  ;;  %v4688_v47 = vpop.f32.mrf.mxu0 }
 0x8c6   : > { %4027 = vst.msk [vmem:[%s5078_s18 + $0x60] sm:$0xff] %vm431_vm0, %v4001_v43  ;;  %v4012_v49 = vadd.f32 %v4696_v55, %v4371_v33  ;;  %4019 = vst.msk [vmem:[%s5078_s18 + $0x20] sm:$0xff] %vm431_vm0, %v3969_v51  ;;  %v3980_v53 = vadd.f32 %v4688_v47, %v4371_v33 }
 0x8c7   : > { %v4003_v59 = vpop.f32.mrf.mxu1  ;;  %v3971_v63 = vpop.f32.mrf.mxu0 }
 0x8c8   : > { %4030 = vst.msk [vmem:[%s5078_s18 + $0x78] sm:$0xff] %vm431_vm0, %v4012_v49  ;;  %v4004_v61 = vadd.f32 %v4371_v33, %v4003_v59  ;;  %4022 = vst.msk [vmem:[%s5078_s18 + $0x38] sm:$0xff] %vm431_vm0, %v3980_v53  ;;  %v3972_v57 = vadd.f32 %v4371_v33, %v3971_v63 }
 0x8ca   : > { %4028 = vst.msk [vmem:[%s5078_s18 + $0x68] sm:$0xff] %vm431_vm0, %v4004_v61  ;;  %4020 = vst.msk [vmem:[%s5078_s18 + $0x28] sm:$0xff] %vm431_vm0, %v3972_v57 }
 0x8cb PF: > { %s17_s26 = sadd.s32 1, %s4978_s26   ;;  %s6757_s24 = smov %s4974_s25 }
 0x8cc   : > { %p14_p6 = scmp.ge.s32.totalorder %s17_s26, 4   ;;  %s6758_s25 = smov %s6760_s27 }
 0x8ce   :  { %16 = sbr.rel (!%p14_p6) target bundleno = 2 (0x2), region = 135 }

// kernel: tpu_custom_call.1
= control target key start
LH: loop header
LB: loop body
LE: loop exit
PB: predicated region body
PF: predicated region fallthrough
CT: control target
= control target key end

     0   :  { %s5039_s24 = smov 0   ;;  %s5041_s25 = smov 0   ;;  %s6749_s0 = inlined_call_operand.vmem [shape: bf16[2,128,64], index: 0, kind: input, shape index: {}]   ;;  %s6750_s1 = inlined_call_operand.vmem [shape: bf16[2,128,64], index: 1, kind: input, shape index: {}]   ;;  %s6751_s2 = inlined_call_operand.vmem [shape: bf16[64,64], index: 2, kind: input, shape index: {}]   ;;  %s6752_s3 = inlined_call_operand.vmem [shape: bf16[64,64], index: 3, kind: input, shape index: {}]   ;;  %s6753_s4 = inlined_call_operand.vmem [shape: bf16[64,64], index: 4, kind: input, shape index: {}]   ;;  %s6754_s5 = inlined_call_operand.vmem [shape: bf16[64,64], index: 5, kind: input, shape index: {}]   ;;  %s6755_s6 = inlined_call_operand.vmem [shape: f32[1,64], index: 6, kind: input, shape index: {}]   ;;  %s6756_s7 = inlined_call_operand.vmem [shape: f32[2,128,64], index: 7, kind: output, shape index: {}]  }
   0x1   :  { %s5043_s26 = smov 0  }
   0x2 LB: > { %s29_s27 = sadd.s32 1, %s4974_s25  ;;  %p4147_p0 = scmp.ge.s32.totalorder %s4978_s26, 1  ;;  %s4978_s26 = sphi %s5043_s26, %s17_s26   ;;  %s4974_s25 = sphi %s5041_s25, %s6758_s25   ;;  %s4970_s24 = sphi %s5039_s24, %s6757_s24  }
   0x3   : > { %p31_p1 = scmp.ge.s32.totalorder %s29_s27, 2  ;;  %p268_p2 = scmp.lt.s32.totalorder %s4978_s26, 3 }
   0x5   : > { %s6760_s27 = smov (%p31_p1, %s29_s27), 0  ;;  %p269_p3 = pnand %p4147_p0, %p268_p2 }
   0x6   : > { %p314_p4 = scmp.lt.s32.totalorder (!%p269_p3), %s4970_s24, 1  ;;  %s4985_s13 = smov (!%p269_p3), 112  }
   0x7   : > { %272 = sbr.rel (%p269_p3) target bundleno = 2251 (0x8cb), region = 48  ;;  %s4986_s14 = smov (!%p269_p3), 104  }
   0x8   : > { %s4988_s16 = smov (!%p269_p3), 88   ;;  %s4989_s29 = smov (!%p269_p3), 80  }
   0x9   : > { %s6354_s8 = smov (!%p269_p3), 0  }
   0xc   : > { %v4768_v0 = vld [vmem:[%s6752_s3 + $0x18] sm:$0xff]   ;;  %v4769_v1 = vld [vmem:[%s6752_s3 + $0x10] sm:$0xff]   ;;  %s6762_s24 = smov (!%p314_p4, %s4970_s24), 1  ;;  %v4770_v2 = vld [vmem:[%s6752_s3 + $0x8] sm:$0xff]   ;;  %vm431_vm0 = vcmask 523264   ;;  %vm754_vm1 = vcmask 60416  }
   0xd   : > { %4537 = vmatprep.subr.bf16.mxu0 %v4768_v0  ;;  %4697 = vmatprep.subr.bf16.mxu1 %v4768_v0  ;;  %s4386_s11 = sshll.u32 %s6762_s24, 6  ;;  %s4388_s12 = sshll.u32 %s6762_s24, 7  ;;  %v4771_v5 = vld [vmem:[%s6752_s3] sm:$0xff]   ;;  %v4780_v6 = vld [vmem:[%s6753_s4 + $0x18] sm:$0xff]   ;;  %v4781_v11 = vld [vmem:[%s6753_s4 + $0x10] sm:$0xff]  }
   0xe   : > { %4538 = vmatpush3.bf16.msra.mxu0 %v4768_v0  ;;  %4701 = vmatpush3.bf16.msra.mxu1 %v4768_v0  ;;  %s5073_s15 = scalar_lea.vmem %s6750_s1, %s4386_s11  ;;  %s5078_s18 = scalar_lea.vmem %s6756_s7, %s4388_s12  ;;  %v4782_v12 = vld [vmem:[%s6753_s4 + $0x8] sm:$0xff]   ;;  %v4783_v15 = vld [vmem:[%s6753_s4] sm:$0xff]  }
   0xf   : > { %4539 = vmatprep.subr.bf16.mxu0 %v4769_v1  ;;  %4698 = vmatprep.subr.bf16.mxu1 %v4769_v1  ;;  %v4772_v3 = vld [vmem:[%s5073_s15] sm:$0xff]   ;;  %v4774_v7 = vld [vmem:[%s5073_s15 + $0x8] sm:$0xff]   ;;  %v4776_v9 = vld [vmem:[%s5073_s15 + $0x10] sm:$0xff]   ;;  %s5100_s30 = scalar_lea.vmem %s6749_s0, %s4386_s11  ;;  %s4984_s12 = smov 120  }
  0x10   : > { %v4773_v4 = vld [vmem:[%s5073_s15 + $0x20] sm:$0xff]   ;;  %4545 = vmatprep.mubr.msk.bf16.mxu0 %vm431_vm0, %v4772_v3  ;;  %v4775_v8 = vld [vmem:[%s5073_s15 + $0x28] sm:$0xff]   ;;  %v4778_v10 = vld [vmem:[%s5073_s15 + $0x30] sm:$0xff]  }
  0x11   : > { %4553 = vmatprep.mubr.msk.bf16.mxu1 %vm431_vm0, %v4773_v4  ;;  %v4777_v13 = vld [vmem:[%s5073_s15 + $0x18] sm:$0xff]  }
  0x12   : > { %4540 = vmatpush3.bf16.msra.mxu0 %v4769_v1  ;;  %4702 = vmatpush3.bf16.msra.mxu1 %v4769_v1  ;;  %v4779_v14 = vld [vmem:[%s5073_s15 + $0x38] sm:$0xff]   ;;  %s4987_s15 = smov 96  }
  0x13   : > { %4541 = vmatprep.subr.bf16.mxu0 %v4770_v2  ;;  %4699 = vmatprep.subr.bf16.mxu1 %v4770_v2 }
  0x16   : > { %4542 = vmatpush3.bf16.msra.mxu0 %v4770_v2  ;;  %4703 = vmatpush3.bf16.msra.mxu1 %v4770_v2 }
  0x17   : > { %4543 = vmatprep.subr.bf16.mxu0 %v4771_v5  ;;  %4700 = vmatprep.subr.bf16.mxu1 %v4771_v5 }
  0x1a   : > { %4544 = vmatpush3.bf16.msra.mxu0 %v4771_v5  ;;  %4704 = vmatpush3.bf16.msra.mxu1 %v4771_v5 }
  0x1b   : > { %4561 = vmatprep.subr.bf16.mxu1 %v4780_v6 }
  0x1d   : > { %4546 = vmatmul.mubr.msk.bf16.vlgmr.msra.gmra.mxu0 %vm431_vm0, %v4774_v7  ;;  %4554 = vmatmul.mubr.msk.bf16.vlgmr.msra.gmra.mxu1 %vm431_vm0, %v4775_v8 }
  0x1e   : > { %4549 = vmatprep.mubr.msk.bf16.mxu0 %vm431_vm0, %v4776_v9  ;;  %4557 = vmatprep.mubr.msk.bf16.mxu1 %vm431_vm0, %v4778_v10 }
  0x1f   : > { %4562 = vmatpush3.bf16.msra.mxu1 %v4780_v6 }
  0x20   : > { %4563 = vmatprep.subr.bf16.mxu1 %v4781_v11 }
  0x23   : > { %4564 = vmatpush3.bf16.msra.mxu1 %v4781_v11 }
  0x24   : > { %4565 = vmatprep.subr.bf16.mxu1 %v4782_v12 }
  0x25   : > { %4550 = vmatmul.mubr.msk.bf16.gmra.mxu0 %vm431_vm0, %v4777_v13  ;;  %4558 = vmatmul.mubr.msk.bf16.gmra.mxu1 %vm431_vm0, %v4779_v14 }
  0x26   : > { %4569 = vmatprep.mubr.msk.bf16.mxu1 %vm431_vm0, %v4772_v3 }
  0x27   : > { %4566 = vmatpush3.bf16.msra.mxu1 %v4782_v12 }
  0x28   : > { %4567 = vmatprep.subr.bf16.mxu1 %v4783_v15 }
  0x2b   : > { %4568 = vmatpush3.bf16.msra.mxu1 %v4783_v15 }
  0x2e   : > { %4570 = vmatmul.mubr.msk.bf16.vlgmr.msra.gmra.mxu1 %vm431_vm0, %v4774_v7 }
  0x2f   : > { %4573 = vmatprep.mubr.msk.bf16.mxu1 %vm431_vm0, %v4776_v9 }
  0x36   : > { %4574 = vmatmul.mubr.msk.bf16.gmra.mxu1 %vm431_vm0, %v4777_v13  ;;  %v4784_v13 = vld [vmem:[%s6751_s2 + $0x18] sm:$0xff]  }
  0x37   : > { %4577 = vmatprep.mubr.msk.bf16.mxu1 %vm431_vm0, %v4773_v4  ;;  %4585 = vmatprep.subr.bf16.mxu0 %v4784_v13 }
  0x38   : > { %4586 = vmatpush3.bf16.msra.mxu0 %v4784_v13 }
  0x3e   : > { %4578 = vmatmul.mubr.msk.bf16.gmra.mxu1 %vm431_vm0, %v4775_v8 }
  0x3f   : > { %4581 = vmatprep.mubr.msk.bf16.mxu1 %vm431_vm0, %v4778_v10 }
  0x46   : > { %4582 = vmatmul.mubr.msk.bf16.gmra.mxu1 %vm431_vm0, %v4779_v14 }
  0xdd   : > { %v4547_v16 = vpop.f32.mrf.mxu0  ;;  %v4555_v17 = vpop.f32.mrf.mxu1 }
  0xde   : > { %v5124_v18 = vpack.c.bf16 %v4547_v16, %v4547_v16  ;;  %v5126_v19 = vpack.c.bf16 %v4555_v17, %v4555_v17  ;;  %v4785_v17 = vld [vmem:[%s6751_s2 + $0x10] sm:$0xff]  }
  0xdf   : > { %v490_v20 = vpop.f32.mrf.mxu0  ;;  %v522_v21 = vpop.f32.mrf.mxu1  ;;  %4587 = vmatprep.subr.bf16.mxu0 %v4785_v17 }
  0xe0   : > { %757 = vst.msk [vmem:[#allocation2 + $0x8] sm:$0xf] %vm754_vm1, %v5124_v18  ;;  %765 = vst.msk [vmem:[#allocation2 + $0x28] sm:$0xf] %vm754_vm1, %v5126_v19  ;;  %v5132_v22 = vpack.c.bf16 %v490_v20, %v490_v20  ;;  %v5134_v23 = vpack.c.bf16 %v522_v21, %v522_v21  ;;  %863 = vrot.lane.b32.xlu0 %v5126_v19, %s4984_s12  ;;  %847 = vrot.lane.b32.xlu1 %v5124_v18, %s4984_s12  ;;  %v4786_v20 = vld [vmem:[%s6751_s2 + $0x8] sm:$0xff]   ;;  %v4787_v21 = vld [vmem:[%s6751_s2] sm:$0xff]  }
  0xe1   : > { %v4548_v24 = vpop.f32.mrf.mxu0  ;;  %v4556_v25 = vpop.f32.mrf.mxu1  ;;  %4588 = vmatpush3.bf16.msra.mxu0 %v4785_v17 }
  0xe2   : > { %755 = vst.msk [vmem:[#allocation2] sm:$0xf] %vm754_vm1, %v5132_v22  ;;  %763 = vst.msk [vmem:[#allocation2 + $0x20] sm:$0xf] %vm754_vm1, %v5134_v23  ;;  %v5144_v26 = vpack.c.bf16 %v4548_v24, %v4548_v24  ;;  %v5146_v27 = vpack.c.bf16 %v4556_v25, %v4556_v25  ;;  %4589 = vmatprep.subr.bf16.mxu0 %v4786_v20  ;;  %v4788_v24 = vld [vmem:[%s5100_s30] sm:$0xff]   ;;  %v4789_v25 = vld [vmem:[%s5100_s30 + $0x8] sm:$0xff]  }
  0xe3   : > { %v493_v28 = vpop.f32.mrf.mxu0  ;;  %v525_v29 = vpop.f32.mrf.mxu1  ;;  %4593 = vmatprep.mubr.msk.bf16.mxu0 %vm431_vm0, %v4788_v24 }
  0xe4   : > { %758 = vst.msk [vmem:[#allocation2 + $0xc] sm:$0xf] %vm754_vm1, %v5144_v26  ;;  %766 = vst.msk [vmem:[#allocation2 + $0x2c] sm:$0xf] %vm754_vm1, %v5146_v27  ;;  %v5152_v30 = vpack.c.bf16 %v493_v28, %v493_v28  ;;  %v5154_v31 = vpack.c.bf16 %v525_v29, %v525_v29  ;;  %977 = vrot.lane.b32.xlu0 %v5124_v18, %s4985_s13  ;;  %849 = vrot.lane.b32.xlu1 %v5144_v26, %s4984_s12 }
  0xe5   : > { %v4551_v32 = vpop.f32.mrf.mxu0  ;;  %v4559_v33 = vpop.f32.mrf.mxu1  ;;  %4590 = vmatpush3.bf16.msra.mxu0 %v4786_v20 }
  0xe6   : > { %756 = vst.msk [vmem:[#allocation2 + $0x4] sm:$0xf] %vm754_vm1, %v5152_v30  ;;  %764 = vst.msk [vmem:[#allocation2 + $0x24] sm:$0xf] %vm754_vm1, %v5154_v31  ;;  %v5164_v34 = vpack.c.bf16 %v4551_v32, %v4551_v32  ;;  %v5166_v35 = vpack.c.bf16 %v4559_v33, %v4559_v33  ;;  %4591 = vmatprep.subr.bf16.mxu0 %v4787_v21 }
  0xe7   : > { %v506_v36 = vpop.f32.mrf.mxu0  ;;  %v538_v37 = vpop.f32.mrf.mxu1 }
  0xe8   : > { %993 = vrot.lane.b32.xlu0 %v5126_v19, %s4985_s13  ;;  %865 = vrot.lane.b32.xlu1 %v5146_v27, %s4984_s12  ;;  %761 = vst.msk [vmem:[#allocation2 + $0x18] sm:$0xf] %vm754_vm1, %v5164_v34  ;;  %v5174_v38 = vpack.c.bf16 %v506_v36, %v506_v36  ;;  %769 = vst.msk [vmem:[#allocation2 + $0x38] sm:$0xf] %vm754_vm1, %v5166_v35  ;;  %v5178_v39 = vpack.c.bf16 %v538_v37, %v538_v37  ;;  %v4790_v36 = vld [vmem:[%s5100_s30 + $0x10] sm:$0xff]   ;;  %v4791_v37 = vld [vmem:[%s5100_s30 + $0x18] sm:$0xff]  }
  0xe9   : > { %v4552_v40 = vpop.f32.mrf.mxu0  ;;  %v4560_v41 = vpop.f32.mrf.mxu1  ;;  %4592 = vmatpush3.bf16.msra.mxu0 %v4787_v21 }
  0xea   : > { %759 = vst.msk [vmem:[#allocation2 + $0x10] sm:$0xf] %vm754_vm1, %v5174_v38  ;;  %v5182_v42 = vpack.c.bf16 %v4552_v40, %v4552_v40  ;;  %767 = vst.msk [vmem:[#allocation2 + $0x30] sm:$0xf] %vm754_vm1, %v5178_v39  ;;  %v5186_v43 = vpack.c.bf16 %v4560_v41, %v4560_v41 }
  0xeb   : > { %v509_v44 = vpop.f32.mrf.mxu0  ;;  %v541_v45 = vpop.f32.mrf.mxu1 }
  0xec   : > { %1107 = vrot.lane.b32.xlu0 %v5124_v18, %s4986_s14  ;;  %979 = vrot.lane.b32.xlu1 %v5144_v26, %s4985_s13  ;;  %762 = vst.msk [vmem:[#allocation2 + $0x1c] sm:$0xf] %vm754_vm1, %v5182_v42  ;;  %v5194_v46 = vpack.c.bf16 %v509_v44, %v509_v44  ;;  %770 = vst.msk [vmem:[#allocation2 + $0x3c] sm:$0xf] %vm754_vm1, %v5186_v43  ;;  %v5198_v47 = vpack.c.bf16 %v541_v45, %v541_v45 }
  0xed   : > { %4594 = vmatmul.mubr.msk.bf16.vlgmr.msra.gmra.mxu0 %vm431_vm0, %v4789_v25 }
  0xee   : > { %760 = vst.msk [vmem:[#allocation2 + $0x14] sm:$0xf] %vm754_vm1, %v5194_v46  ;;  %768 = vst.msk [vmem:[#allocation2 + $0x34] sm:$0xf] %vm754_vm1, %v5198_v47  ;;  %v4571_v48 = vpop.f32.mrf.mxu1  ;;  %4597 = vmatprep.mubr.msk.bf16.mxu0 %vm431_vm0, %v4790_v36 }
  0xef   : > { %v5204_v49 = vpack.c.bf16 %v4571_v48, %v4571_v48  ;;  %v4792_v48 = vld [vmem:[%s5100_s30 + $0x20] sm:$0xff]  }
  0xf0   : > { %1123 = vrot.lane.b32.xlu0 %v5126_v19, %s4986_s14  ;;  %995 = vrot.lane.b32.xlu1 %v5146_v27, %s4985_s13  ;;  %v627_v50 = vpop.f32.mrf.mxu1 }
  0xf1   : > { %829 = vst.msk [vmem:[#allocation3 + $0x8] sm:$0xf] %vm754_vm1, %v5204_v49  ;;  %v5212_v51 = vpack.c.bf16 %v627_v50, %v627_v50  ;;  %v4793_v50 = vld [vmem:[%s5100_s30 + $0x28] sm:$0xff]  }
  0xf2   : > { %v4572_v52 = vpop.f32.mrf.mxu1 }
  0xf3   : > { %827 = vst.msk [vmem:[#allocation3] sm:$0xf] %vm754_vm1, %v5212_v51  ;;  %v5216_v53 = vpack.c.bf16 %v4572_v52, %v4572_v52 }
  0xf4   : > { %1237 = vrot.lane.b32.xlu0 %v5124_v18, %s4987_s15  ;;  %1109 = vrot.lane.b32.xlu1 %v5144_v26, %s4986_s14  ;;  %v630_v54 = vpop.f32.mrf.mxu1 }
  0xf5   : > { %830 = vst.msk [vmem:[#allocation3 + $0xc] sm:$0xf] %vm754_vm1, %v5216_v53  ;;  %v5224_v55 = vpack.c.bf16 %v630_v54, %v630_v54  ;;  %4598 = vmatmul.mubr.msk.bf16.gmra.mxu0 %vm431_vm0, %v4791_v37 }
  0xf6   : > { %v4575_v56 = vpop.f32.mrf.mxu1  ;;  %4601 = vmatprep.mubr.msk.bf16.mxu0 %vm431_vm0, %v4792_v48 }
  0xf7   : > { %828 = vst.msk [vmem:[#allocation3 + $0x4] sm:$0xf] %vm754_vm1, %v5224_v55  ;;  %v5232_v57 = vpack.c.bf16 %v4575_v56, %v4575_v56 }
  0xf8   : > { %1253 = vrot.lane.b32.xlu0 %v5126_v19, %s4987_s15  ;;  %1125 = vrot.lane.b32.xlu1 %v5146_v27, %s4986_s14  ;;  %v643_v58 = vpop.f32.mrf.mxu1 }
  0xf9   : > { %833 = vst.msk [vmem:[#allocation3 + $0x18] sm:$0xf] %vm754_vm1, %v5232_v57  ;;  %v5236_v59 = vpack.c.bf16 %v643_v58, %v643_v58 }
  0xfa   : > { %v4576_v60 = vpop.f32.mrf.mxu1 }
  0xfb   : > { %831 = vst.msk [vmem:[#allocation3 + $0x10] sm:$0xf] %vm754_vm1, %v5236_v59  ;;  %v5244_v61 = vpack.c.bf16 %v4576_v60, %v4576_v60  ;;  %v4794_v60 = vld [vmem:[%s5100_s30 + $0x30] sm:$0xff]  }
  0xfc   : > { %843 = vrot.lane.b32.xlu0 %v5132_v22, %s4984_s12  ;;  %1239 = vrot.lane.b32.xlu1 %v5144_v26, %s4987_s15  ;;  %v646_v62 = vpop.f32.mrf.mxu1 }
  0xfd   : > { %834 = vst.msk [vmem:[#allocation3 + $0x1c] sm:$0xf] %vm754_vm1, %v5244_v61  ;;  %v5248_v63 = vpack.c.bf16 %v646_v62, %v646_v62  ;;  %4602 = vmatmul.mubr.msk.bf16.gmra.mxu0 %vm431_vm0, %v4793_v50  ;;  %v4795_v62 = vld [vmem:[%s5100_s30 + $0x38] sm:$0xff]   ;;  %s4990_s30 = smov 72  }
  0xfe   : > { %v4579_v0 = vpop.f32.mrf.mxu1  ;;  %4605 = vmatprep.mubr.msk.bf16.mxu0 %vm431_vm0, %v4794_v60 }
  0xff   : > { %832 = vst.msk [vmem:[#allocation3 + $0x14] sm:$0xf] %vm754_vm1, %v5248_v63  ;;  %v5280_v1 = vpack.c.bf16 %v4579_v0, %v4579_v0 }
 0x100   : > { %859 = vrot.lane.b32.xlu0 %v5134_v23, %s4984_s12  ;;  %1255 = vrot.lane.b32.xlu1 %v5146_v27, %s4987_s15  ;;  %v659_v2 = vpop.f32.mrf.mxu1 }
 0x101   : > { %837 = vst.msk [vmem:[#allocation3 + $0x28] sm:$0xf] %vm754_vm1, %v5280_v1  ;;  %v5284_v3 = vpack.c.bf16 %v659_v2, %v659_v2 }
 0x102   : > { %v4580_v4 = vpop.f32.mrf.mxu1 }
 0x103   : > { %835 = vst.msk [vmem:[#allocation3 + $0x20] sm:$0xf] %vm754_vm1, %v5284_v3  ;;  %v5292_v5 = vpack.c.bf16 %v4580_v4, %v4580_v4 }
 0x104   : > { %973 = vrot.lane.b32.xlu0 %v5132_v22, %s4985_s13  ;;  %861 = vrot.lane.b32.xlu1 %v5154_v31, %s4984_s12  ;;  %v662_v6 = vpop.f32.mrf.mxu1 }
 0x105   : > { %838 = vst.msk [vmem:[#allocation3 + $0x2c] sm:$0xf] %vm754_vm1, %v5292_v5  ;;  %v5296_v7 = vpack.c.bf16 %v662_v6, %v662_v6  ;;  %4606 = vmatmul.mubr.msk.bf16.gmra.mxu0 %vm431_vm0, %v4795_v62 }
 0x106   : > { %v4583_v8 = vpop.f32.mrf.mxu1 }
 0x107   : > { %836 = vst.msk [vmem:[#allocation3 + $0x24] sm:$0xf] %vm754_vm1, %v5296_v7  ;;  %v5332_v9 = vpack.c.bf16 %v4583_v8, %v4583_v8 }
 0x108   : > { %989 = vrot.lane.b32.xlu0 %v5134_v23, %s4985_s13  ;;  %975 = vrot.lane.b32.xlu1 %v5152_v30, %s4985_s13  ;;  %v675_v10 = vpop.f32.mrf.mxu1 }
 0x109   : > { %841 = vst.msk [vmem:[#allocation3 + $0x38] sm:$0xf] %vm754_vm1, %v5332_v9  ;;  %v5336_v11 = vpack.c.bf16 %v675_v10, %v675_v10 }
 0x10a   : > { %v4584_v12 = vpop.f32.mrf.mxu1 }
 0x10b   : > { %839 = vst.msk [vmem:[#allocation3 + $0x30] sm:$0xf] %vm754_vm1, %v5336_v11  ;;  %v5347_v14 = vpack.c.bf16 %v4584_v12, %v4584_v12 }
 0x10c   : > { %1103 = vrot.lane.b32.xlu0 %v5132_v22, %s4986_s14  ;;  %991 = vrot.lane.b32.xlu1 %v5154_v31, %s4985_s13  ;;  %v678_v15 = vpop.f32.mrf.mxu1 }
 0x10d   : > { %842 = vst.msk [vmem:[#allocation3 + $0x3c] sm:$0xf] %vm754_vm1, %v5347_v14  ;;  %v5351_v16 = vpack.c.bf16 %v678_v15, %v678_v15 }
 0x10f   : > { %840 = vst.msk [vmem:[#allocation3 + $0x34] sm:$0xf] %vm754_vm1, %v5351_v16 }
 0x110   : > { %1119 = vrot.lane.b32.xlu0 %v5134_v23, %s4986_s14  ;;  %1105 = vrot.lane.b32.xlu1 %v5152_v30, %s4986_s14 }
 0x114   : > { %1233 = vrot.lane.b32.xlu0 %v5132_v22, %s4987_s15  ;;  %1121 = vrot.lane.b32.xlu1 %v5154_v31, %s4986_s14 }
 0x118   : > { %1249 = vrot.lane.b32.xlu0 %v5134_v23, %s4987_s15  ;;  %1235 = vrot.lane.b32.xlu1 %v5152_v30, %s4987_s15 }
 0x11c   : > { %1363 = vrot.lane.b32.xlu0 %v5132_v22, %s4988_s16  ;;  %1251 = vrot.lane.b32.xlu1 %v5154_v31, %s4987_s15 }
 0x120   : > { %1365 = vrot.lane.b32.xlu1 %v5152_v30, %s4988_s16  ;;  %845 = vrot.lane.b32.xlu0 %v5152_v30, %s4984_s12 }
 0x124   : > { %855 = vrot.lane.b32.xlu0 %v5164_v34, %s4984_s12  ;;  %857 = vrot.lane.b32.xlu1 %v5182_v42, %s4984_s12 }
 0x128   : > { %871 = vrot.lane.b32.xlu0 %v5166_v35, %s4984_s12  ;;  %873 = vrot.lane.b32.xlu1 %v5186_v43, %s4984_s12 }
 0x12c   : > { %985 = vrot.lane.b32.xlu0 %v5164_v34, %s4985_s13  ;;  %987 = vrot.lane.b32.xlu1 %v5182_v42, %s4985_s13 }
 0x130   : > { %1001 = vrot.lane.b32.xlu0 %v5166_v35, %s4985_s13  ;;  %1003 = vrot.lane.b32.xlu1 %v5186_v43, %s4985_s13 }
 0x134   : > { %1115 = vrot.lane.b32.xlu0 %v5164_v34, %s4986_s14  ;;  %1117 = vrot.lane.b32.xlu1 %v5182_v42, %s4986_s14 }
 0x138   : > { %1131 = vrot.lane.b32.xlu0 %v5166_v35, %s4986_s14  ;;  %1133 = vrot.lane.b32.xlu1 %v5186_v43, %s4986_s14 }
 0x13c   : > { %1245 = vrot.lane.b32.xlu0 %v5164_v34, %s4987_s15  ;;  %1247 = vrot.lane.b32.xlu1 %v5182_v42, %s4987_s15 }
 0x140   : > { %1261 = vrot.lane.b32.xlu0 %v5166_v35, %s4987_s15  ;;  %1263 = vrot.lane.b32.xlu1 %v5186_v43, %s4987_s15 }
 0x144   : > { %851 = vrot.lane.b32.xlu0 %v5174_v38, %s4984_s12  ;;  %853 = vrot.lane.b32.xlu1 %v5194_v46, %s4984_s12 }
 0x148   : > { %867 = vrot.lane.b32.xlu0 %v5178_v39, %s4984_s12  ;;  %869 = vrot.lane.b32.xlu1 %v5198_v47, %s4984_s12 }
 0x14c   : > { %981 = vrot.lane.b32.xlu0 %v5174_v38, %s4985_s13  ;;  %983 = vrot.lane.b32.xlu1 %v5194_v46, %s4985_s13 }
 0x150   : > { %997 = vrot.lane.b32.xlu0 %v5178_v39, %s4985_s13  ;;  %999 = vrot.lane.b32.xlu1 %v5198_v47, %s4985_s13 }
 0x152   : > { %v864_v28 = vpop.permute.xlu0 %863  ;;  %v848_v29 = vpop.permute.xlu1 %847 }
 0x153   : > { %902 = vst.msk [vmem:[#allocation2 + $0x68] sm:$0xf] %vm754_vm1, %v864_v28  ;;  %894 = vst.msk [vmem:[#allocation2 + $0x48] sm:$0xf] %vm754_vm1, %v848_v29 }
 0x154   : > { %1111 = vrot.lane.b32.xlu0 %v5174_v38, %s4986_s14  ;;  %1113 = vrot.lane.b32.xlu1 %v5194_v46, %s4986_s14 }
 0x156   : > { %v978_v32 = vpop.permute.xlu0 %977  ;;  %v850_v33 = vpop.permute.xlu1 %849 }
 0x157   : > { %1024 = vst.msk [vmem:[#allocation2 + $0x88] sm:$0xf] %vm754_vm1, %v978_v32  ;;  %895 = vst.msk [vmem:[#allocation2 + $0x4c] sm:$0xf] %vm754_vm1, %v850_v33 }
 0x158   : > { %1127 = vrot.lane.b32.xlu0 %v5178_v39, %s4986_s14  ;;  %1129 = vrot.lane.b32.xlu1 %v5198_v47, %s4986_s14 }
 0x15a   : > { %v994_v40 = vpop.permute.xlu0 %993  ;;  %v866_v41 = vpop.permute.xlu1 %865 }
 0x15b   : > { %1032 = vst.msk [vmem:[#allocation2 + $0xa8] sm:$0xf] %vm754_vm1, %v994_v40  ;;  %903 = vst.msk [vmem:[#allocation2 + $0x6c] sm:$0xf] %vm754_vm1, %v866_v41 }
 0x15c   : > { %1241 = vrot.lane.b32.xlu0 %v5174_v38, %s4987_s15  ;;  %1243 = vrot.lane.b32.xlu1 %v5194_v46, %s4987_s15 }
 0x15e   : > { %v1108_v44 = vpop.permute.xlu0 %1107  ;;  %v980_v45 = vpop.permute.xlu1 %979 }
 0x15f   : > { %1154 = vst.msk [vmem:[#allocation2 + $0xc8] sm:$0xf] %vm754_vm1, %v1108_v44  ;;  %1025 = vst.msk [vmem:[#allocation2 + $0x8c] sm:$0xf] %vm754_vm1, %v980_v45 }
 0x160   : > { %1257 = vrot.lane.b32.xlu0 %v5178_v39, %s4987_s15  ;;  %1259 = vrot.lane.b32.xlu1 %v5198_v47, %s4987_s15 }
 0x162   : > { %v1124_v52 = vpop.permute.xlu0 %1123  ;;  %v996_v54 = vpop.permute.xlu1 %995 }
 0x163   : > { %1162 = vst.msk [vmem:[#allocation2 + $0xe8] sm:$0xf] %vm754_vm1, %v1124_v52  ;;  %1033 = vst.msk [vmem:[#allocation2 + $0xac] sm:$0xf] %vm754_vm1, %v996_v54 }
 0x164   : > { %912 = vrot.lane.b32.xlu0 %v5204_v49, %s4984_s12  ;;  %914 = vrot.lane.b32.xlu1 %v5216_v53, %s4984_s12 }
 0x166   : > { %v1238_v56 = vpop.permute.xlu0 %1237  ;;  %v1110_v58 = vpop.permute.xlu1 %1109 }
 0x167   : > { %1284 = vst.msk [vmem:[#allocation2 + $0x108] sm:$0xf] %vm754_vm1, %v1238_v56  ;;  %1155 = vst.msk [vmem:[#allocation2 + $0xcc] sm:$0xf] %vm754_vm1, %v1110_v58 }
 0x168   : > { %1042 = vrot.lane.b32.xlu0 %v5204_v49, %s4985_s13  ;;  %1044 = vrot.lane.b32.xlu1 %v5216_v53, %s4985_s13 }
 0x16a   : > { %v1254_v0 = vpop.permute.xlu0 %1253  ;;  %v1126_v2 = vpop.permute.xlu1 %1125 }
 0x16b   : > { %1292 = vst.msk [vmem:[#allocation2 + $0x128] sm:$0xf] %vm754_vm1, %v1254_v0  ;;  %1163 = vst.msk [vmem:[#allocation2 + $0xec] sm:$0xf] %vm754_vm1, %v1126_v2 }
 0x16c   : > { %1172 = vrot.lane.b32.xlu0 %v5204_v49, %s4986_s14  ;;  %1174 = vrot.lane.b32.xlu1 %v5216_v53, %s4986_s14 }
 0x16e   : > { %v844_v4 = vpop.permute.xlu0 %843  ;;  %v1240_v6 = vpop.permute.xlu1 %1239 }
 0x16f   : > { %892 = vst.msk [vmem:[#allocation2 + $0x40] sm:$0xf] %vm754_vm1, %v844_v4  ;;  %1285 = vst.msk [vmem:[#allocation2 + $0x10c] sm:$0xf] %vm754_vm1, %v1240_v6 }
 0x170   : > { %1302 = vrot.lane.b32.xlu0 %v5204_v49, %s4987_s15  ;;  %1304 = vrot.lane.b32.xlu1 %v5216_v53, %s4987_s15 }
 0x172   : > { %v860_v8 = vpop.permute.xlu0 %859  ;;  %v1256_v10 = vpop.permute.xlu1 %1255 }
 0x173   : > { %900 = vst.msk [vmem:[#allocation2 + $0x60] sm:$0xf] %vm754_vm1, %v860_v8  ;;  %1293 = vst.msk [vmem:[#allocation2 + $0x12c] sm:$0xf] %vm754_vm1, %v1256_v10 }
 0x174   : > { %908 = vrot.lane.b32.xlu0 %v5212_v51, %s4984_s12  ;;  %910 = vrot.lane.b32.xlu1 %v5224_v55, %s4984_s12 }
 0x176   : > { %v974_v12 = vpop.permute.xlu0 %973  ;;  %v862_v13 = vpop.permute.xlu1 %861 }
 0x177   : > { %1022 = vst.msk [vmem:[#allocation2 + $0x80] sm:$0xf] %vm754_vm1, %v974_v12  ;;  %901 = vst.msk [vmem:[#allocation2 + $0x64] sm:$0xf] %vm754_vm1, %v862_v13 }
 0x178   : > { %1038 = vrot.lane.b32.xlu0 %v5212_v51, %s4985_s13  ;;  %1040 = vrot.lane.b32.xlu1 %v5224_v55, %s4985_s13 }
 0x17a   : > { %v990_v15 = vpop.permute.xlu0 %989  ;;  %v976_v17 = vpop.permute.xlu1 %975 }
 0x17b   : > { %1030 = vst.msk [vmem:[#allocation2 + $0xa0] sm:$0xf] %vm754_vm1, %v990_v15  ;;  %1023 = vst.msk [vmem:[#allocation2 + $0x84] sm:$0xf] %vm754_vm1, %v976_v17 }
 0x17c   : > { %1168 = vrot.lane.b32.xlu0 %v5212_v51, %s4986_s14  ;;  %1170 = vrot.lane.b32.xlu1 %v5224_v55, %s4986_s14 }
 0x17e   : > { %v1104_v20 = vpop.permute.xlu0 %1103  ;;  %v992_v21 = vpop.permute.xlu1 %991 }
 0x17f   : > { %1152 = vst.msk [vmem:[#allocation2 + $0xc0] sm:$0xf] %vm754_vm1, %v1104_v20  ;;  %1031 = vst.msk [vmem:[#allocation2 + $0xa4] sm:$0xf] %vm754_vm1, %v992_v21 }
 0x180   : > { %1298 = vrot.lane.b32.xlu0 %v5212_v51, %s4987_s15  ;;  %1300 = vrot.lane.b32.xlu1 %v5224_v55, %s4987_s15 }
 0x182   : > { %v1120_v24 = vpop.permute.xlu0 %1119  ;;  %v1106_v25 = vpop.permute.xlu1 %1105 }
 0x183   : > { %1160 = vst.msk [vmem:[#allocation2 + $0xe0] sm:$0xf] %vm754_vm1, %v1120_v24  ;;  %1153 = vst.msk [vmem:[#allocation2 + $0xc4] sm:$0xf] %vm754_vm1, %v1106_v25 }
 0x184   : > { %920 = vrot.lane.b32.xlu0 %v5232_v57, %s4984_s12  ;;  %922 = vrot.lane.b32.xlu1 %v5244_v61, %s4984_s12 }
 0x186   : > { %v1234_v28 = vpop.permute.xlu0 %1233  ;;  %v1122_v29 = vpop.permute.xlu1 %1121 }
 0x187   : > { %1282 = vst.msk [vmem:[#allocation2 + $0x100] sm:$0xf] %vm754_vm1, %v1234_v28  ;;  %1161 = vst.msk [vmem:[#allocation2 + $0xe4] sm:$0xf] %vm754_vm1, %v1122_v29 }
 0x188   : > { %1050 = vrot.lane.b32.xlu0 %v5232_v57, %s4985_s13  ;;  %1052 = vrot.lane.b32.xlu1 %v5244_v61, %s4985_s13 }
 0x18a   : > { %v1250_v32 = vpop.permute.xlu0 %1249  ;;  %v1236_v33 = vpop.permute.xlu1 %1235 }
 0x18b   : > { %1290 = vst.msk [vmem:[#allocation2 + $0x120] sm:$0xf] %vm754_vm1, %v1250_v32  ;;  %1283 = vst.msk [vmem:[#allocation2 + $0x104] sm:$0xf] %vm754_vm1, %v1236_v33 }
 0x18c   : > { %1180 = vrot.lane.b32.xlu0 %v5232_v57, %s4986_s14  ;;  %1182 = vrot.lane.b32.xlu1 %v5244_v61, %s4986_s14 }
 0x18e   : > { %v1364_v36 = vpop.permute.xlu0 %1363  ;;  %v1252_v37 = vpop.permute.xlu1 %1251 }
 0x18f   : > { %1412 = vst.msk [vmem:[#allocation2 + $0x140] sm:$0xf] %vm754_vm1, %v1364_v36  ;;  %1291 = vst.msk [vmem:[#allocation2 + $0x124] sm:$0xf] %vm754_vm1, %v1252_v37 }
 0x190   : > { %1310 = vrot.lane.b32.xlu0 %v5232_v57, %s4987_s15  ;;  %1312 = vrot.lane.b32.xlu1 %v5244_v61, %s4987_s15 }
 0x192   : > { %v1366_v40 = vpop.permute.xlu1 %1365  ;;  %v846_v41 = vpop.permute.xlu0 %845 }
 0x193   : > { %1413 = vst.msk [vmem:[#allocation2 + $0x144] sm:$0xf] %vm754_vm1, %v1366_v40  ;;  %893 = vst.msk [vmem:[#allocation2 + $0x44] sm:$0xf] %vm754_vm1, %v846_v41 }
 0x194   : > { %916 = vrot.lane.b32.xlu0 %v5236_v59, %s4984_s12  ;;  %918 = vrot.lane.b32.xlu1 %v5248_v63, %s4984_s12 }
 0x196   : > { %v856_v44 = vpop.permute.xlu0 %855  ;;  %v858_v45 = vpop.permute.xlu1 %857 }
 0x197   : > { %898 = vst.msk [vmem:[#allocation2 + $0x58] sm:$0xf] %vm754_vm1, %v856_v44  ;;  %899 = vst.msk [vmem:[#allocation2 + $0x5c] sm:$0xf] %vm754_vm1, %v858_v45 }
 0x198   : > { %1046 = vrot.lane.b32.xlu0 %v5236_v59, %s4985_s13  ;;  %1048 = vrot.lane.b32.xlu1 %v5248_v63, %s4985_s13 }
 0x19a   : > { %v872_v48 = vpop.permute.xlu0 %871  ;;  %v874_v50 = vpop.permute.xlu1 %873 }
 0x19b   : > { %906 = vst.msk [vmem:[#allocation2 + $0x78] sm:$0xf] %vm754_vm1, %v872_v48  ;;  %907 = vst.msk [vmem:[#allocation2 + $0x7c] sm:$0xf] %vm754_vm1, %v874_v50 }
 0x19c   : > { %1176 = vrot.lane.b32.xlu0 %v5236_v59, %s4986_s14  ;;  %1178 = vrot.lane.b32.xlu1 %v5248_v63, %s4986_s14 }
 0x19e   : > { %v986_v52 = vpop.permute.xlu0 %985  ;;  %v988_v54 = vpop.permute.xlu1 %987 }
 0x19f   : > { %1028 = vst.msk [vmem:[#allocation2 + $0x98] sm:$0xf] %vm754_vm1, %v986_v52  ;;  %1029 = vst.msk [vmem:[#allocation2 + $0x9c] sm:$0xf] %vm754_vm1, %v988_v54 }
 0x1a0   : > { %1306 = vrot.lane.b32.xlu0 %v5236_v59, %s4987_s15  ;;  %1308 = vrot.lane.b32.xlu1 %v5248_v63, %s4987_s15 }
 0x1a2   : > { %v1002_v56 = vpop.permute.xlu0 %1001  ;;  %v1004_v58 = vpop.permute.xlu1 %1003 }
 0x1a3   : > { %1036 = vst.msk [vmem:[#allocation2 + $0xb8] sm:$0xf] %vm754_vm1, %v1002_v56  ;;  %1037 = vst.msk [vmem:[#allocation2 + $0xbc] sm:$0xf] %vm754_vm1, %v1004_v58 }
 0x1a4   : > { %928 = vrot.lane.b32.xlu0 %v5280_v1, %s4984_s12  ;;  %930 = vrot.lane.b32.xlu1 %v5292_v5, %s4984_s12 }
 0x1a6   : > { %v1116_v60 = vpop.permute.xlu0 %1115  ;;  %v1118_v62 = vpop.permute.xlu1 %1117 }
 0x1a7   : > { %1158 = vst.msk [vmem:[#allocation2 + $0xd8] sm:$0xf] %vm754_vm1, %v1116_v60  ;;  %1159 = vst.msk [vmem:[#allocation2 + $0xdc] sm:$0xf] %vm754_vm1, %v1118_v62 }
 0x1a8   : > { %1058 = vrot.lane.b32.xlu0 %v5280_v1, %s4985_s13  ;;  %1060 = vrot.lane.b32.xlu1 %v5292_v5, %s4985_s13 }
 0x1aa   : > { %v1132_v0 = vpop.permute.xlu0 %1131  ;;  %v1134_v2 = vpop.permute.xlu1 %1133 }
 0x1ab   : > { %1166 = vst.msk [vmem:[#allocation2 + $0xf8] sm:$0xf] %vm754_vm1, %v1132_v0  ;;  %1167 = vst.msk [vmem:[#allocation2 + $0xfc] sm:$0xf] %vm754_vm1, %v1134_v2 }
 0x1ac   : > { %1188 = vrot.lane.b32.xlu0 %v5280_v1, %s4986_s14  ;;  %1190 = vrot.lane.b32.xlu1 %v5292_v5, %s4986_s14 }
 0x1ae   : > { %v1246_v4 = vpop.permute.xlu0 %1245  ;;  %v1248_v6 = vpop.permute.xlu1 %1247 }
 0x1af   : > { %1288 = vst.msk [vmem:[#allocation2 + $0x118] sm:$0xf] %vm754_vm1, %v1246_v4  ;;  %1289 = vst.msk [vmem:[#allocation2 + $0x11c] sm:$0xf] %vm754_vm1, %v1248_v6 }
 0x1b0   : > { %1318 = vrot.lane.b32.xlu0 %v5280_v1, %s4987_s15  ;;  %1320 = vrot.lane.b32.xlu1 %v5292_v5, %s4987_s15 }
 0x1b2   : > { %v1262_v8 = vpop.permute.xlu0 %1261  ;;  %v1264_v10 = vpop.permute.xlu1 %1263 }
 0x1b3   : > { %1296 = vst.msk [vmem:[#allocation2 + $0x138] sm:$0xf] %vm754_vm1, %v1262_v8  ;;  %1297 = vst.msk [vmem:[#allocation2 + $0x13c] sm:$0xf] %vm754_vm1, %v1264_v10 }
 0x1b4   : > { %924 = vrot.lane.b32.xlu0 %v5284_v3, %s4984_s12  ;;  %926 = vrot.lane.b32.xlu1 %v5296_v7, %s4984_s12 }
 0x1b6   : > { %v852_v12 = vpop.permute.xlu0 %851  ;;  %v854_v13 = vpop.permute.xlu1 %853 }
 0x1b7   : > { %896 = vst.msk [vmem:[#allocation2 + $0x50] sm:$0xf] %vm754_vm1, %v852_v12  ;;  %897 = vst.msk [vmem:[#allocation2 + $0x54] sm:$0xf] %vm754_vm1, %v854_v13 }
 0x1b8   : > { %1054 = vrot.lane.b32.xlu0 %v5284_v3, %s4985_s13  ;;  %1056 = vrot.lane.b32.xlu1 %v5296_v7, %s4985_s13 }
 0x1ba   : > { %v868_v15 = vpop.permute.xlu0 %867  ;;  %v870_v17 = vpop.permute.xlu1 %869 }
 0x1bb   : > { %904 = vst.msk [vmem:[#allocation2 + $0x70] sm:$0xf] %vm754_vm1, %v868_v15  ;;  %905 = vst.msk [vmem:[#allocation2 + $0x74] sm:$0xf] %vm754_vm1, %v870_v17 }
 0x1bc   : > { %1184 = vrot.lane.b32.xlu0 %v5284_v3, %s4986_s14  ;;  %1186 = vrot.lane.b32.xlu1 %v5296_v7, %s4986_s14 }
 0x1be   : > { %v982_v20 = vpop.permute.xlu0 %981  ;;  %v984_v21 = vpop.permute.xlu1 %983 }
 0x1bf   : > { %1026 = vst.msk [vmem:[#allocation2 + $0x90] sm:$0xf] %vm754_vm1, %v982_v20  ;;  %1027 = vst.msk [vmem:[#allocation2 + $0x94] sm:$0xf] %vm754_vm1, %v984_v21 }
 0x1c0   : > { %1314 = vrot.lane.b32.xlu0 %v5284_v3, %s4987_s15  ;;  %1316 = vrot.lane.b32.xlu1 %v5296_v7, %s4987_s15 }
 0x1c2   : > { %v998_v24 = vpop.permute.xlu0 %997  ;;  %v1000_v25 = vpop.permute.xlu1 %999 }
 0x1c3   : > { %1034 = vst.msk [vmem:[#allocation2 + $0xb0] sm:$0xf] %vm754_vm1, %v998_v24  ;;  %1035 = vst.msk [vmem:[#allocation2 + $0xb4] sm:$0xf] %vm754_vm1, %v1000_v25 }
 0x1c4   : > { %936 = vrot.lane.b32.xlu0 %v5332_v9, %s4984_s12  ;;  %1369 = vrot.lane.b32.xlu1 %v5144_v26, %s4988_s16 }
 0x1c6   : > { %v1112_v28 = vpop.permute.xlu0 %1111  ;;  %v1114_v29 = vpop.permute.xlu1 %1113 }
 0x1c7   : > { %1156 = vst.msk [vmem:[#allocation2 + $0xd0] sm:$0xf] %vm754_vm1, %v1112_v28  ;;  %1157 = vst.msk [vmem:[#allocation2 + $0xd4] sm:$0xf] %vm754_vm1, %v1114_v29 }
 0x1c8   : > { %1066 = vrot.lane.b32.xlu0 %v5332_v9, %s4985_s13  ;;  %938 = vrot.lane.b32.xlu1 %v5347_v14, %s4984_s12 }
 0x1ca   : > { %v1128_v32 = vpop.permute.xlu0 %1127  ;;  %v1130_v33 = vpop.permute.xlu1 %1129 }
 0x1cb   : > { %1164 = vst.msk [vmem:[#allocation2 + $0xf0] sm:$0xf] %vm754_vm1, %v1128_v32  ;;  %1165 = vst.msk [vmem:[#allocation2 + $0xf4] sm:$0xf] %vm754_vm1, %v1130_v33 }
 0x1cc   : > { %1196 = vrot.lane.b32.xlu0 %v5332_v9, %s4986_s14  ;;  %1068 = vrot.lane.b32.xlu1 %v5347_v14, %s4985_s13 }
 0x1ce   : > { %v1242_v36 = vpop.permute.xlu0 %1241  ;;  %v1244_v37 = vpop.permute.xlu1 %1243 }
 0x1cf   : > { %1286 = vst.msk [vmem:[#allocation2 + $0x110] sm:$0xf] %vm754_vm1, %v1242_v36  ;;  %1287 = vst.msk [vmem:[#allocation2 + $0x114] sm:$0xf] %vm754_vm1, %v1244_v37 }
 0x1d0   : > { %1326 = vrot.lane.b32.xlu0 %v5332_v9, %s4987_s15  ;;  %1198 = vrot.lane.b32.xlu1 %v5347_v14, %s4986_s14 }
 0x1d2   : > { %v1258_v40 = vpop.permute.xlu0 %1257  ;;  %v1260_v41 = vpop.permute.xlu1 %1259 }
 0x1d3   : > { %1294 = vst.msk [vmem:[#allocation2 + $0x130] sm:$0xf] %vm754_vm1, %v1258_v40  ;;  %1295 = vst.msk [vmem:[#allocation2 + $0x134] sm:$0xf] %vm754_vm1, %v1260_v41 }
 0x1d4   : > { %932 = vrot.lane.b32.xlu0 %v5336_v11, %s4984_s12  ;;  %1328 = vrot.lane.b32.xlu1 %v5347_v14, %s4987_s15 }
 0x1d6   : > { %v913_v44 = vpop.permute.xlu0 %912  ;;  %v915_v45 = vpop.permute.xlu1 %914 }
 0x1d7   : > { %959 = vst.msk [vmem:[#allocation3 + $0x48] sm:$0xf] %vm754_vm1, %v913_v44  ;;  %960 = vst.msk [vmem:[#allocation3 + $0x4c] sm:$0xf] %vm754_vm1, %v915_v45  ;;  %v4595_v44 = vpop.f32.mrf.mxu0 }
 0x1d8   : > { %1062 = vrot.lane.b32.xlu0 %v5336_v11, %s4985_s13  ;;  %934 = vrot.lane.b32.xlu1 %v5351_v16, %s4984_s12  ;;  %v5690_v45 = vpack.c.bf16 %v4595_v44, %v4595_v44 }
 0x1da   : > { %v1043_v48 = vpop.permute.xlu0 %1042  ;;  %v1045_v50 = vpop.permute.xlu1 %1044  ;;  %2030 = vst.msk [vmem:[#allocation4 + $0x8] sm:$0xf] %vm754_vm1, %v5690_v45 }
 0x1db   : > { %1089 = vst.msk [vmem:[#allocation3 + $0x88] sm:$0xf] %vm754_vm1, %v1043_v48  ;;  %1090 = vst.msk [vmem:[#allocation3 + $0x8c] sm:$0xf] %vm754_vm1, %v1045_v50  ;;  %v1900_v48 = vpop.f32.mrf.mxu0 }
 0x1dc   : > { %1192 = vrot.lane.b32.xlu0 %v5336_v11, %s4986_s14  ;;  %1064 = vrot.lane.b32.xlu1 %v5351_v16, %s4985_s13 }
 0x1de   : > { %v1173_v52 = vpop.permute.xlu0 %1172  ;;  %v1175_v54 = vpop.permute.xlu1 %1174 }
 0x1df   : > { %1219 = vst.msk [vmem:[#allocation3 + $0xc8] sm:$0xf] %vm754_vm1, %v1173_v52  ;;  %1220 = vst.msk [vmem:[#allocation3 + $0xcc] sm:$0xf] %vm754_vm1, %v1175_v54  ;;  %v5694_v54 = vpack.c.bf16 %v1900_v48, %v1900_v48 }
 0x1e0   : > { %1322 = vrot.lane.b32.xlu0 %v5336_v11, %s4987_s15  ;;  %1194 = vrot.lane.b32.xlu1 %v5351_v16, %s4986_s14 }
 0x1e1   : > { %2028 = vst.msk [vmem:[#allocation4] sm:$0xf] %vm754_vm1, %v5694_v54 }
 0x1e2   : > { %v1303_v56 = vpop.permute.xlu0 %1302  ;;  %v1305_v58 = vpop.permute.xlu1 %1304 }
 0x1e3   : > { %1349 = vst.msk [vmem:[#allocation3 + $0x108] sm:$0xf] %vm754_vm1, %v1303_v56  ;;  %1350 = vst.msk [vmem:[#allocation3 + $0x10c] sm:$0xf] %vm754_vm1, %v1305_v58  ;;  %v4596_v56 = vpop.f32.mrf.mxu0 }
 0x1e4   : > { %1367 = vrot.lane.b32.xlu0 %v5124_v18, %s4988_s16  ;;  %1324 = vrot.lane.b32.xlu1 %v5351_v16, %s4987_s15  ;;  %v5704_v58 = vpack.c.bf16 %v4596_v56, %v4596_v56 }
 0x1e6   : > { %v909_v60 = vpop.permute.xlu0 %908  ;;  %v911_v62 = vpop.permute.xlu1 %910  ;;  %2031 = vst.msk [vmem:[#allocation4 + $0xc] sm:$0xf] %vm754_vm1, %v5704_v58 }
 0x1e7   : > { %957 = vst.msk [vmem:[#allocation3 + $0x40] sm:$0xf] %vm754_vm1, %v909_v60  ;;  %958 = vst.msk [vmem:[#allocation3 + $0x44] sm:$0xf] %vm754_vm1, %v911_v62  ;;  %v1903_v60 = vpop.f32.mrf.mxu0 }
 0x1e8   : > { %1371 = vrot.lane.b32.xlu0 %v5174_v38, %s4988_s16  ;;  %1373 = vrot.lane.b32.xlu1 %v5194_v46, %s4988_s16 }
 0x1ea   : > { %v1039_v0 = vpop.permute.xlu0 %1038  ;;  %v1041_v2 = vpop.permute.xlu1 %1040 }
 0x1eb   : > { %1087 = vst.msk [vmem:[#allocation3 + $0x80] sm:$0xf] %vm754_vm1, %v1039_v0  ;;  %1088 = vst.msk [vmem:[#allocation3 + $0x84] sm:$0xf] %vm754_vm1, %v1041_v2  ;;  %v5708_v2 = vpack.c.bf16 %v1903_v60, %v1903_v60 }
 0x1ec   : > { %1375 = vrot.lane.b32.xlu0 %v5164_v34, %s4988_s16  ;;  %1377 = vrot.lane.b32.xlu1 %v5182_v42, %s4988_s16 }
 0x1ed   : > { %2029 = vst.msk [vmem:[#allocation4 + $0x4] sm:$0xf] %vm754_vm1, %v5708_v2 }
 0x1ee   : > { %v1169_v4 = vpop.permute.xlu0 %1168  ;;  %v1171_v6 = vpop.permute.xlu1 %1170 }
 0x1ef   : > { %1217 = vst.msk [vmem:[#allocation3 + $0xc0] sm:$0xf] %vm754_vm1, %v1169_v4  ;;  %1218 = vst.msk [vmem:[#allocation3 + $0xc4] sm:$0xf] %vm754_vm1, %v1171_v6  ;;  %v4599_v4 = vpop.f32.mrf.mxu0 }
 0x1f0   : > { %1379 = vrot.lane.b32.xlu0 %v5134_v23, %s4988_s16  ;;  %1381 = vrot.lane.b32.xlu1 %v5154_v31, %s4988_s16  ;;  %v5718_v6 = vpack.c.bf16 %v4599_v4, %v4599_v4 }
 0x1f2   : > { %v1299_v8 = vpop.permute.xlu0 %1298  ;;  %v1301_v10 = vpop.permute.xlu1 %1300  ;;  %2034 = vst.msk [vmem:[#allocation4 + $0x18] sm:$0xf] %vm754_vm1, %v5718_v6 }
 0x1f3   : > { %1347 = vst.msk [vmem:[#allocation3 + $0x100] sm:$0xf] %vm754_vm1, %v1299_v8  ;;  %1348 = vst.msk [vmem:[#allocation3 + $0x104] sm:$0xf] %vm754_vm1, %v1301_v10  ;;  %v1916_v8 = vpop.f32.mrf.mxu0 }
 0x1f4   : > { %1383 = vrot.lane.b32.xlu0 %v5126_v19, %s4988_s16  ;;  %1385 = vrot.lane.b32.xlu1 %v5146_v27, %s4988_s16 }
 0x1f6   : > { %v921_v12 = vpop.permute.xlu0 %920  ;;  %v923_v13 = vpop.permute.xlu1 %922 }
 0x1f7   : > { %963 = vst.msk [vmem:[#allocation3 + $0x58] sm:$0xf] %vm754_vm1, %v921_v12  ;;  %964 = vst.msk [vmem:[#allocation3 + $0x5c] sm:$0xf] %vm754_vm1, %v923_v13  ;;  %v5722_v13 = vpack.c.bf16 %v1916_v8, %v1916_v8 }
 0x1f8   : > { %1387 = vrot.lane.b32.xlu0 %v5178_v39, %s4988_s16  ;;  %1389 = vrot.lane.b32.xlu1 %v5198_v47, %s4988_s16 }
 0x1f9   : > { %2032 = vst.msk [vmem:[#allocation4 + $0x10] sm:$0xf] %vm754_vm1, %v5722_v13 }
 0x1fa   : > { %v1051_v15 = vpop.permute.xlu0 %1050  ;;  %v1053_v17 = vpop.permute.xlu1 %1052 }
 0x1fb   : > { %1093 = vst.msk [vmem:[#allocation3 + $0x98] sm:$0xf] %vm754_vm1, %v1051_v15  ;;  %1094 = vst.msk [vmem:[#allocation3 + $0x9c] sm:$0xf] %vm754_vm1, %v1053_v17  ;;  %v4600_v15 = vpop.f32.mrf.mxu0 }
 0x1fc   : > { %1391 = vrot.lane.b32.xlu0 %v5166_v35, %s4988_s16  ;;  %1393 = vrot.lane.b32.xlu1 %v5186_v43, %s4988_s16  ;;  %v5732_v17 = vpack.c.bf16 %v4600_v15, %v4600_v15 }
 0x1fe   : > { %v1181_v20 = vpop.permute.xlu0 %1180  ;;  %v1183_v21 = vpop.permute.xlu1 %1182  ;;  %2035 = vst.msk [vmem:[#allocation4 + $0x1c] sm:$0xf] %vm754_vm1, %v5732_v17 }
 0x1ff   : > { %1223 = vst.msk [vmem:[#allocation3 + $0xd8] sm:$0xf] %vm754_vm1, %v1181_v20  ;;  %1224 = vst.msk [vmem:[#allocation3 + $0xdc] sm:$0xf] %vm754_vm1, %v1183_v21  ;;  %v1919_v20 = vpop.f32.mrf.mxu0 }
 0x200   : > { %1428 = vrot.lane.b32.xlu0 %v5212_v51, %s4988_s16  ;;  %1430 = vrot.lane.b32.xlu1 %v5224_v55, %s4988_s16 }
 0x202   : > { %v1311_v24 = vpop.permute.xlu0 %1310  ;;  %v1313_v25 = vpop.permute.xlu1 %1312 }
 0x203   : > { %1353 = vst.msk [vmem:[#allocation3 + $0x118] sm:$0xf] %vm754_vm1, %v1311_v24  ;;  %1354 = vst.msk [vmem:[#allocation3 + $0x11c] sm:$0xf] %vm754_vm1, %v1313_v25  ;;  %v5736_v25 = vpack.c.bf16 %v1919_v20, %v1919_v20 }
 0x204   : > { %1432 = vrot.lane.b32.xlu0 %v5204_v49, %s4988_s16  ;;  %1434 = vrot.lane.b32.xlu1 %v5216_v53, %s4988_s16 }
 0x205   : > { %2033 = vst.msk [vmem:[#allocation4 + $0x14] sm:$0xf] %vm754_vm1, %v5736_v25 }
 0x206   : > { %v917_v28 = vpop.permute.xlu0 %916  ;;  %v919_v29 = vpop.permute.xlu1 %918 }
 0x207   : > { %961 = vst.msk [vmem:[#allocation3 + $0x50] sm:$0xf] %vm754_vm1, %v917_v28  ;;  %962 = vst.msk [vmem:[#allocation3 + $0x54] sm:$0xf] %vm754_vm1, %v919_v29  ;;  %v4603_v28 = vpop.f32.mrf.mxu0 }
 0x208   : > { %1436 = vrot.lane.b32.xlu0 %v5236_v59, %s4988_s16  ;;  %1438 = vrot.lane.b32.xlu1 %v5248_v63, %s4988_s16  ;;  %v5746_v29 = vpack.c.bf16 %v4603_v28, %v4603_v28 }
 0x20a   : > { %v1047_v32 = vpop.permute.xlu0 %1046  ;;  %v1049_v33 = vpop.permute.xlu1 %1048  ;;  %2038 = vst.msk [vmem:[#allocation4 + $0x28] sm:$0xf] %vm754_vm1, %v5746_v29 }
 0x20b   : > { %1091 = vst.msk [vmem:[#allocation3 + $0x90] sm:$0xf] %vm754_vm1, %v1047_v32  ;;  %1092 = vst.msk [vmem:[#allocation3 + $0x94] sm:$0xf] %vm754_vm1, %v1049_v33  ;;  %v1932_v32 = vpop.f32.mrf.mxu0 }
 0x20c   : > { %1440 = vrot.lane.b32.xlu0 %v5232_v57, %s4988_s16  ;;  %1442 = vrot.lane.b32.xlu1 %v5244_v61, %s4988_s16 }
 0x20e   : > { %v1177_v36 = vpop.permute.xlu0 %1176  ;;  %v1179_v37 = vpop.permute.xlu1 %1178 }
 0x20f   : > { %1221 = vst.msk [vmem:[#allocation3 + $0xd0] sm:$0xf] %vm754_vm1, %v1177_v36  ;;  %1222 = vst.msk [vmem:[#allocation3 + $0xd4] sm:$0xf] %vm754_vm1, %v1179_v37  ;;  %v5750_v37 = vpack.c.bf16 %v1932_v32, %v1932_v32 }
 0x210   : > { %1444 = vrot.lane.b32.xlu0 %v5284_v3, %s4988_s16  ;;  %1446 = vrot.lane.b32.xlu1 %v5296_v7, %s4988_s16 }
 0x211   : > { %2036 = vst.msk [vmem:[#allocation4 + $0x20] sm:$0xf] %vm754_vm1, %v5750_v37 }
 0x212   : > { %v1307_v40 = vpop.permute.xlu0 %1306  ;;  %v1309_v41 = vpop.permute.xlu1 %1308 }
 0x213   : > { %1351 = vst.msk [vmem:[#allocation3 + $0x110] sm:$0xf] %vm754_vm1, %v1307_v40  ;;  %1352 = vst.msk [vmem:[#allocation3 + $0x114] sm:$0xf] %vm754_vm1, %v1309_v41  ;;  %v4604_v40 = vpop.f32.mrf.mxu0 }
 0x214   : > { %1448 = vrot.lane.b32.xlu0 %v5280_v1, %s4988_s16  ;;  %1450 = vrot.lane.b32.xlu1 %v5292_v5, %s4988_s16  ;;  %v5760_v41 = vpack.c.bf16 %v4604_v40, %v4604_v40 }
 0x215   : > { %v1935_v44 = vpop.f32.mrf.mxu0 }
 0x216   : > { %v929_v50 = vpop.permute.xlu0 %928  ;;  %v931_v52 = vpop.permute.xlu1 %930  ;;  %2039 = vst.msk [vmem:[#allocation4 + $0x2c] sm:$0xf] %vm754_vm1, %v5760_v41 }
 0x217   : > { %967 = vst.msk [vmem:[#allocation3 + $0x68] sm:$0xf] %vm754_vm1, %v929_v50  ;;  %968 = vst.msk [vmem:[#allocation3 + $0x6c] sm:$0xf] %vm754_vm1, %v931_v52  ;;  %v5764_v52 = vpack.c.bf16 %v1935_v44, %v1935_v44  ;;  %v4607_v56 = vpop.f32.mrf.mxu0 }
 0x218   : > { %1452 = vrot.lane.b32.xlu0 %v5336_v11, %s4988_s16  ;;  %1454 = vrot.lane.b32.xlu1 %v5351_v16, %s4988_s16  ;;  %v5774_v60 = vpack.c.bf16 %v4607_v56, %v4607_v56 }
 0x219   : > { %2037 = vst.msk [vmem:[#allocation4 + $0x24] sm:$0xf] %vm754_vm1, %v5764_v52 }
 0x21a   : > { %v1059_v62 = vpop.permute.xlu0 %1058  ;;  %v1061_v0 = vpop.permute.xlu1 %1060  ;;  %2042 = vst.msk [vmem:[#allocation4 + $0x38] sm:$0xf] %vm754_vm1, %v5774_v60 }
 0x21b   : > { %1097 = vst.msk [vmem:[#allocation3 + $0xa8] sm:$0xf] %vm754_vm1, %v1059_v62  ;;  %1098 = vst.msk [vmem:[#allocation3 + $0xac] sm:$0xf] %vm754_vm1, %v1061_v0  ;;  %v1948_v62 = vpop.f32.mrf.mxu0 }
 0x21c   : > { %1456 = vrot.lane.b32.xlu0 %v5332_v9, %s4988_s16  ;;  %1458 = vrot.lane.b32.xlu1 %v5347_v14, %s4988_s16  ;;  %v5778_v8 = vpack.c.bf16 %v1948_v62, %v1948_v62 }
 0x21e   : > { %v1189_v10 = vpop.permute.xlu0 %1188  ;;  %v1191_v12 = vpop.permute.xlu1 %1190  ;;  %2040 = vst.msk [vmem:[#allocation4 + $0x30] sm:$0xf] %vm754_vm1, %v5778_v8 }
 0x21f   : > { %1227 = vst.msk [vmem:[#allocation3 + $0xe8] sm:$0xf] %vm754_vm1, %v1189_v10  ;;  %1228 = vst.msk [vmem:[#allocation3 + $0xec] sm:$0xf] %vm754_vm1, %v1191_v12  ;;  %v4608_v10 = vpop.f32.mrf.mxu0 }
 0x220   : > { %1493 = vrot.lane.b32.xlu0 %v5132_v22, %s4989_s29  ;;  %1495 = vrot.lane.b32.xlu1 %v5152_v30, %s4989_s29  ;;  %v5788_v12 = vpack.c.bf16 %v4608_v10, %v4608_v10 }
 0x221   : > { %v1951_v15 = vpop.f32.mrf.mxu0 }
 0x222   : > { %v1319_v21 = vpop.permute.xlu0 %1318  ;;  %v1321_v24 = vpop.permute.xlu1 %1320  ;;  %2043 = vst.msk [vmem:[#allocation4 + $0x3c] sm:$0xf] %vm754_vm1, %v5788_v12 }
 0x223   : > { %1357 = vst.msk [vmem:[#allocation3 + $0x128] sm:$0xf] %vm754_vm1, %v1319_v21  ;;  %1358 = vst.msk [vmem:[#allocation3 + $0x12c] sm:$0xf] %vm754_vm1, %v1321_v24  ;;  %v5792_v24 = vpack.c.bf16 %v1951_v15, %v1951_v15 }
 0x224   : > { %1497 = vrot.lane.b32.xlu0 %v5124_v18, %s4989_s29  ;;  %1499 = vrot.lane.b32.xlu1 %v5144_v26, %s4989_s29 }
 0x225   : > { %2041 = vst.msk [vmem:[#allocation4 + $0x34] sm:$0xf] %vm754_vm1, %v5792_v24 }
 0x226   : > { %v925_v33 = vpop.permute.xlu0 %924  ;;  %v927_v36 = vpop.permute.xlu1 %926 }
 0x227   : > { %965 = vst.msk [vmem:[#allocation3 + $0x60] sm:$0xf] %vm754_vm1, %v925_v33  ;;  %966 = vst.msk [vmem:[#allocation3 + $0x64] sm:$0xf] %vm754_vm1, %v927_v36 }
 0x228   : > { %1501 = vrot.lane.b32.xlu0 %v5174_v38, %s4989_s29  ;;  %1503 = vrot.lane.b32.xlu1 %v5194_v46, %s4989_s29 }
 0x22a   : > { %v1055_v48 = vpop.permute.xlu0 %1054  ;;  %v1057_v50 = vpop.permute.xlu1 %1056 }
 0x22b   : > { %1095 = vst.msk [vmem:[#allocation3 + $0xa0] sm:$0xf] %vm754_vm1, %v1055_v48  ;;  %1096 = vst.msk [vmem:[#allocation3 + $0xa4] sm:$0xf] %vm754_vm1, %v1057_v50 }
 0x22c   : > { %1505 = vrot.lane.b32.xlu0 %v5164_v34, %s4989_s29  ;;  %1507 = vrot.lane.b32.xlu1 %v5182_v42, %s4989_s29 }
 0x22e   : > { %v1185_v0 = vpop.permute.xlu0 %1184  ;;  %v1187_v4 = vpop.permute.xlu1 %1186 }
 0x22f   : > { %1225 = vst.msk [vmem:[#allocation3 + $0xe0] sm:$0xf] %vm754_vm1, %v1185_v0  ;;  %1226 = vst.msk [vmem:[#allocation3 + $0xe4] sm:$0xf] %vm754_vm1, %v1187_v4 }
 0x230   : > { %1509 = vrot.lane.b32.xlu0 %v5134_v23, %s4989_s29  ;;  %1511 = vrot.lane.b32.xlu1 %v5154_v31, %s4989_s29 }
 0x232   : > { %v1315_v20 = vpop.permute.xlu0 %1314  ;;  %v1317_v21 = vpop.permute.xlu1 %1316 }
 0x233   : > { %1355 = vst.msk [vmem:[#allocation3 + $0x120] sm:$0xf] %vm754_vm1, %v1315_v20  ;;  %1356 = vst.msk [vmem:[#allocation3 + $0x124] sm:$0xf] %vm754_vm1, %v1317_v21 }
 0x234   : > { %1513 = vrot.lane.b32.xlu0 %v5126_v19, %s4989_s29  ;;  %1515 = vrot.lane.b32.xlu1 %v5146_v27, %s4989_s29 }
 0x236   : > { %v937_v28 = vpop.permute.xlu0 %936  ;;  %v1370_v32 = vpop.permute.xlu1 %1369 }
 0x237   : > { %971 = vst.msk [vmem:[#allocation3 + $0x78] sm:$0xf] %vm754_vm1, %v937_v28  ;;  %1415 = vst.msk [vmem:[#allocation2 + $0x14c] sm:$0xf] %vm754_vm1, %v1370_v32 }
 0x238   : > { %1517 = vrot.lane.b32.xlu0 %v5178_v39, %s4989_s29  ;;  %1519 = vrot.lane.b32.xlu1 %v5198_v47, %s4989_s29 }
 0x23a   : > { %v1067_v33 = vpop.permute.xlu0 %1066  ;;  %v939_v36 = vpop.permute.xlu1 %938 }
 0x23b   : > { %1101 = vst.msk [vmem:[#allocation3 + $0xb8] sm:$0xf] %vm754_vm1, %v1067_v33  ;;  %972 = vst.msk [vmem:[#allocation3 + $0x7c] sm:$0xf] %vm754_vm1, %v939_v36 }
 0x23c   : > { %1521 = vrot.lane.b32.xlu0 %v5166_v35, %s4989_s29  ;;  %1523 = vrot.lane.b32.xlu1 %v5186_v43, %s4989_s29 }
 0x23e   : > { %v1197_v40 = vpop.permute.xlu0 %1196  ;;  %v1069_v44 = vpop.permute.xlu1 %1068 }
 0x23f   : > { %1231 = vst.msk [vmem:[#allocation3 + $0xf8] sm:$0xf] %vm754_vm1, %v1197_v40  ;;  %1102 = vst.msk [vmem:[#allocation3 + $0xbc] sm:$0xf] %vm754_vm1, %v1069_v44 }
 0x240   : > { %1558 = vrot.lane.b32.xlu0 %v5212_v51, %s4989_s29  ;;  %1560 = vrot.lane.b32.xlu1 %v5224_v55, %s4989_s29 }
 0x242   : > { %v1327_v48 = vpop.permute.xlu0 %1326  ;;  %v1199_v50 = vpop.permute.xlu1 %1198 }
 0x243   : > { %1361 = vst.msk [vmem:[#allocation3 + $0x138] sm:$0xf] %vm754_vm1, %v1327_v48  ;;  %1232 = vst.msk [vmem:[#allocation3 + $0xfc] sm:$0xf] %vm754_vm1, %v1199_v50 }
 0x244   : > { %1562 = vrot.lane.b32.xlu0 %v5204_v49, %s4989_s29  ;;  %1564 = vrot.lane.b32.xlu1 %v5216_v53, %s4989_s29 }
 0x246   : > { %v933_v56 = vpop.permute.xlu0 %932  ;;  %v1329_v62 = vpop.permute.xlu1 %1328 }
 0x247   : > { %969 = vst.msk [vmem:[#allocation3 + $0x70] sm:$0xf] %vm754_vm1, %v933_v56  ;;  %1362 = vst.msk [vmem:[#allocation3 + $0x13c] sm:$0xf] %vm754_vm1, %v1329_v62 }
 0x248   : > { %1566 = vrot.lane.b32.xlu0 %v5236_v59, %s4989_s29  ;;  %1568 = vrot.lane.b32.xlu1 %v5248_v63, %s4989_s29 }
 0x24a   : > { %v1063_v0 = vpop.permute.xlu0 %1062  ;;  %v935_v4 = vpop.permute.xlu1 %934 }
 0x24b   : > { %1099 = vst.msk [vmem:[#allocation3 + $0xb0] sm:$0xf] %vm754_vm1, %v1063_v0  ;;  %970 = vst.msk [vmem:[#allocation3 + $0x74] sm:$0xf] %vm754_vm1, %v935_v4 }
 0x24c   : > { %1570 = vrot.lane.b32.xlu0 %v5232_v57, %s4989_s29  ;;  %1572 = vrot.lane.b32.xlu1 %v5244_v61, %s4989_s29 }
 0x24e   : > { %v1193_v10 = vpop.permute.xlu0 %1192  ;;  %v1065_v15 = vpop.permute.xlu1 %1064 }
 0x24f   : > { %1229 = vst.msk [vmem:[#allocation3 + $0xf0] sm:$0xf] %vm754_vm1, %v1193_v10  ;;  %1100 = vst.msk [vmem:[#allocation3 + $0xb4] sm:$0xf] %vm754_vm1, %v1065_v15 }
 0x250   : > { %1574 = vrot.lane.b32.xlu0 %v5284_v3, %s4989_s29  ;;  %1576 = vrot.lane.b32.xlu1 %v5296_v7, %s4989_s29 }
 0x252   : > { %v1323_v20 = vpop.permute.xlu0 %1322  ;;  %v1195_v21 = vpop.permute.xlu1 %1194 }
 0x253   : > { %1359 = vst.msk [vmem:[#allocation3 + $0x130] sm:$0xf] %vm754_vm1, %v1323_v20  ;;  %1230 = vst.msk [vmem:[#allocation3 + $0xf4] sm:$0xf] %vm754_vm1, %v1195_v21 }
 0x254   : > { %1578 = vrot.lane.b32.xlu0 %v5280_v1, %s4989_s29  ;;  %1580 = vrot.lane.b32.xlu1 %v5292_v5, %s4989_s29 }
 0x256   : > { %v1368_v28 = vpop.permute.xlu0 %1367  ;;  %v1325_v32 = vpop.permute.xlu1 %1324 }
 0x257   : > { %1414 = vst.msk [vmem:[#allocation2 + $0x148] sm:$0xf] %vm754_vm1, %v1368_v28  ;;  %1360 = vst.msk [vmem:[#allocation3 + $0x134] sm:$0xf] %vm754_vm1, %v1325_v32 }
 0x258   : > { %1582 = vrot.lane.b32.xlu0 %v5336_v11, %s4989_s29  ;;  %1584 = vrot.lane.b32.xlu1 %v5351_v16, %s4989_s29 }
 0x25a   : > { %v1372_v33 = vpop.permute.xlu0 %1371  ;;  %v1374_v36 = vpop.permute.xlu1 %1373 }
 0x25b   : > { %1416 = vst.msk [vmem:[#allocation2 + $0x150] sm:$0xf] %vm754_vm1, %v1372_v33  ;;  %1417 = vst.msk [vmem:[#allocation2 + $0x154] sm:$0xf] %vm754_vm1, %v1374_v36 }
 0x25c   : > { %1586 = vrot.lane.b32.xlu0 %v5332_v9, %s4989_s29  ;;  %1588 = vrot.lane.b32.xlu1 %v5347_v14, %s4989_s29 }
 0x25e   : > { %v1376_v40 = vpop.permute.xlu0 %1375  ;;  %v1378_v44 = vpop.permute.xlu1 %1377 }
 0x25f   : > { %1418 = vst.msk [vmem:[#allocation2 + $0x158] sm:$0xf] %vm754_vm1, %v1376_v40  ;;  %1419 = vst.msk [vmem:[#allocation2 + $0x15c] sm:$0xf] %vm754_vm1, %v1378_v44 }
 0x260   : > { %1623 = vrot.lane.b32.xlu0 %v5132_v22, %s4990_s30  ;;  %1625 = vrot.lane.b32.xlu1 %v5152_v30, %s4990_s30 }
 0x262   : > { %v1380_v48 = vpop.permute.xlu0 %1379  ;;  %v1382_v50 = vpop.permute.xlu1 %1381 }
 0x263   : > { %1420 = vst.msk [vmem:[#allocation2 + $0x160] sm:$0xf] %vm754_vm1, %v1380_v48  ;;  %1421 = vst.msk [vmem:[#allocation2 + $0x164] sm:$0xf] %vm754_vm1, %v1382_v50 }
 0x264   : > { %1627 = vrot.lane.b32.xlu0 %v5124_v18, %s4990_s30  ;;  %1629 = vrot.lane.b32.xlu1 %v5144_v26, %s4990_s30 }
 0x266   : > { %v1384_v56 = vpop.permute.xlu0 %1383  ;;  %v1386_v62 = vpop.permute.xlu1 %1385 }
 0x267   : > { %1422 = vst.msk [vmem:[#allocation2 + $0x168] sm:$0xf] %vm754_vm1, %v1384_v56  ;;  %1423 = vst.msk [vmem:[#allocation2 + $0x16c] sm:$0xf] %vm754_vm1, %v1386_v62 }
 0x268   : > { %1631 = vrot.lane.b32.xlu0 %v5174_v38, %s4990_s30  ;;  %1633 = vrot.lane.b32.xlu1 %v5194_v46, %s4990_s30 }
 0x26a   : > { %v1388_v22 = vpop.permute.xlu0 %1387  ;;  %v1390_v30 = vpop.permute.xlu1 %1389 }
 0x26b   : > { %1424 = vst.msk [vmem:[#allocation2 + $0x170] sm:$0xf] %vm754_vm1, %v1388_v22  ;;  %1425 = vst.msk [vmem:[#allocation2 + $0x174] sm:$0xf] %vm754_vm1, %v1390_v30 }
 0x26c   : > { %1635 = vrot.lane.b32.xlu0 %v5164_v34, %s4990_s30  ;;  %1637 = vrot.lane.b32.xlu1 %v5182_v42, %s4990_s30 }
 0x26e   : > { %v1392_v18 = vpop.permute.xlu0 %1391  ;;  %v1394_v26 = vpop.permute.xlu1 %1393 }
 0x26f   : > { %1426 = vst.msk [vmem:[#allocation2 + $0x178] sm:$0xf] %vm754_vm1, %v1392_v18  ;;  %1427 = vst.msk [vmem:[#allocation2 + $0x17c] sm:$0xf] %vm754_vm1, %v1394_v26 }
 0x270   : > { %1639 = vrot.lane.b32.xlu0 %v5134_v23, %s4990_s30  ;;  %1641 = vrot.lane.b32.xlu1 %v5154_v31, %s4990_s30 }
 0x272   : > { %v1429_v38 = vpop.permute.xlu0 %1428  ;;  %v1431_v46 = vpop.permute.xlu1 %1430 }
 0x273   : > { %1477 = vst.msk [vmem:[#allocation3 + $0x140] sm:$0xf] %vm754_vm1, %v1429_v38  ;;  %1478 = vst.msk [vmem:[#allocation3 + $0x144] sm:$0xf] %vm754_vm1, %v1431_v46 }
 0x274   : > { %1643 = vrot.lane.b32.xlu0 %v5126_v19, %s4990_s30  ;;  %1645 = vrot.lane.b32.xlu1 %v5146_v27, %s4990_s30 }
 0x276   : > { %v1433_v34 = vpop.permute.xlu0 %1432  ;;  %v1435_v42 = vpop.permute.xlu1 %1434 }
 0x277   : > { %1479 = vst.msk [vmem:[#allocation3 + $0x148] sm:$0xf] %vm754_vm1, %v1433_v34  ;;  %1480 = vst.msk [vmem:[#allocation3 + $0x14c] sm:$0xf] %vm754_vm1, %v1435_v42 }
 0x278   : > { %1647 = vrot.lane.b32.xlu0 %v5178_v39, %s4990_s30  ;;  %1649 = vrot.lane.b32.xlu1 %v5198_v47, %s4990_s30 }
 0x27a   : > { %v1437_v23 = vpop.permute.xlu0 %1436  ;;  %v1439_v31 = vpop.permute.xlu1 %1438 }
 0x27b   : > { %1481 = vst.msk [vmem:[#allocation3 + $0x150] sm:$0xf] %vm754_vm1, %v1437_v23  ;;  %1482 = vst.msk [vmem:[#allocation3 + $0x154] sm:$0xf] %vm754_vm1, %v1439_v31 }
 0x27c   : > { %1651 = vrot.lane.b32.xlu0 %v5166_v35, %s4990_s30  ;;  %1653 = vrot.lane.b32.xlu1 %v5186_v43, %s4990_s30 }
 0x27e   : > { %v1441_v19 = vpop.permute.xlu0 %1440  ;;  %v1443_v27 = vpop.permute.xlu1 %1442 }
 0x27f   : > { %1483 = vst.msk [vmem:[#allocation3 + $0x158] sm:$0xf] %vm754_vm1, %v1441_v19  ;;  %1484 = vst.msk [vmem:[#allocation3 + $0x15c] sm:$0xf] %vm754_vm1, %v1443_v27 }
 0x280   : > { %1688 = vrot.lane.b32.xlu0 %v5212_v51, %s4990_s30  ;;  %1690 = vrot.lane.b32.xlu1 %v5224_v55, %s4990_s30 }
 0x282   : > { %v1445_v39 = vpop.permute.xlu0 %1444  ;;  %v1447_v47 = vpop.permute.xlu1 %1446 }
 0x283   : > { %1485 = vst.msk [vmem:[#allocation3 + $0x160] sm:$0xf] %vm754_vm1, %v1445_v39  ;;  %1486 = vst.msk [vmem:[#allocation3 + $0x164] sm:$0xf] %vm754_vm1, %v1447_v47 }
 0x284   : > { %1692 = vrot.lane.b32.xlu0 %v5204_v49, %s4990_s30  ;;  %1694 = vrot.lane.b32.xlu1 %v5216_v53, %s4990_s30 }
 0x286   : > { %v1449_v35 = vpop.permute.xlu0 %1448  ;;  %v1451_v43 = vpop.permute.xlu1 %1450 }
 0x287   : > { %1487 = vst.msk [vmem:[#allocation3 + $0x168] sm:$0xf] %vm754_vm1, %v1449_v35  ;;  %1488 = vst.msk [vmem:[#allocation3 + $0x16c] sm:$0xf] %vm754_vm1, %v1451_v43 }
 0x288   : > { %1696 = vrot.lane.b32.xlu0 %v5236_v59, %s4990_s30  ;;  %1698 = vrot.lane.b32.xlu1 %v5248_v63, %s4990_s30 }
 0x28a   : > { %v1453_v51 = vpop.permute.xlu0 %1452  ;;  %v1455_v55 = vpop.permute.xlu1 %1454 }
 0x28b   : > { %1489 = vst.msk [vmem:[#allocation3 + $0x170] sm:$0xf] %vm754_vm1, %v1453_v51  ;;  %1490 = vst.msk [vmem:[#allocation3 + $0x174] sm:$0xf] %vm754_vm1, %v1455_v55 }
 0x28c   : > { %1700 = vrot.lane.b32.xlu0 %v5232_v57, %s4990_s30  ;;  %1702 = vrot.lane.b32.xlu1 %v5244_v61, %s4990_s30 }
 0x28e   : > { %v1457_v49 = vpop.permute.xlu0 %1456  ;;  %v1459_v53 = vpop.permute.xlu1 %1458 }
 0x28f   : > { %1491 = vst.msk [vmem:[#allocation3 + $0x178] sm:$0xf] %vm754_vm1, %v1457_v49  ;;  %1492 = vst.msk [vmem:[#allocation3 + $0x17c] sm:$0xf] %vm754_vm1, %v1459_v53 }
 0x290   : > { %1704 = vrot.lane.b32.xlu0 %v5284_v3, %s4990_s30  ;;  %1706 = vrot.lane.b32.xlu1 %v5296_v7, %s4990_s30 }
 0x292   : > { %v1494_v59 = vpop.permute.xlu0 %1493  ;;  %v1496_v63 = vpop.permute.xlu1 %1495 }
 0x293   : > { %1542 = vst.msk [vmem:[#allocation2 + $0x180] sm:$0xf] %vm754_vm1, %v1494_v59  ;;  %1543 = vst.msk [vmem:[#allocation2 + $0x184] sm:$0xf] %vm754_vm1, %v1496_v63 }
 0x294   : > { %1708 = vrot.lane.b32.xlu0 %v5280_v1, %s4990_s30  ;;  %1710 = vrot.lane.b32.xlu1 %v5292_v5, %s4990_s30 }
 0x296   : > { %v1498_v57 = vpop.permute.xlu0 %1497  ;;  %v1500_v61 = vpop.permute.xlu1 %1499 }
 0x297   : > { %1544 = vst.msk [vmem:[#allocation2 + $0x188] sm:$0xf] %vm754_vm1, %v1498_v57  ;;  %1545 = vst.msk [vmem:[#allocation2 + $0x18c] sm:$0xf] %vm754_vm1, %v1500_v61 }
 0x298   : > { %1712 = vrot.lane.b32.xlu0 %v5336_v11, %s4990_s30  ;;  %1714 = vrot.lane.b32.xlu1 %v5351_v16, %s4990_s30 }
 0x29a   : > { %v1502_v3 = vpop.permute.xlu0 %1501  ;;  %v1504_v7 = vpop.permute.xlu1 %1503 }
 0x29b   : > { %1546 = vst.msk [vmem:[#allocation2 + $0x190] sm:$0xf] %vm754_vm1, %v1502_v3  ;;  %1547 = vst.msk [vmem:[#allocation2 + $0x194] sm:$0xf] %vm754_vm1, %v1504_v7 }
 0x29c   : > { %1716 = vrot.lane.b32.xlu0 %v5332_v9, %s4990_s30  ;;  %1718 = vrot.lane.b32.xlu1 %v5347_v14, %s4990_s30 }
 0x29e   : > { %v1506_v1 = vpop.permute.xlu0 %1505  ;;  %v1508_v5 = vpop.permute.xlu1 %1507 }
 0x29f   : > { %1548 = vst.msk [vmem:[#allocation2 + $0x198] sm:$0xf] %vm754_vm1, %v1506_v1  ;;  %1549 = vst.msk [vmem:[#allocation2 + $0x19c] sm:$0xf] %vm754_vm1, %v1508_v5 }
 0x2a0   : > { %2044 = vrot.lane.b32.xlu0 %v5694_v54, %s4984_s12  ;;  %2046 = vrot.lane.b32.xlu1 %v5708_v2, %s4984_s12 }
 0x2a2   : > { %v1510_v11 = vpop.permute.xlu0 %1509  ;;  %v1512_v16 = vpop.permute.xlu1 %1511 }
 0x2a3   : > { %1550 = vst.msk [vmem:[#allocation2 + $0x1a0] sm:$0xf] %vm754_vm1, %v1510_v11  ;;  %1551 = vst.msk [vmem:[#allocation2 + $0x1a4] sm:$0xf] %vm754_vm1, %v1512_v16 }
 0x2a4   : > { %2048 = vrot.lane.b32.xlu0 %v5690_v45, %s4984_s12  ;;  %2050 = vrot.lane.b32.xlu1 %v5704_v58, %s4984_s12 }
 0x2a6   : > { %v1514_v9 = vpop.permute.xlu0 %1513  ;;  %v1516_v14 = vpop.permute.xlu1 %1515 }
 0x2a7   : > { %1552 = vst.msk [vmem:[#allocation2 + $0x1a8] sm:$0xf] %vm754_vm1, %v1514_v9  ;;  %1553 = vst.msk [vmem:[#allocation2 + $0x1ac] sm:$0xf] %vm754_vm1, %v1516_v14 }
 0x2a8   : > { %2052 = vrot.lane.b32.xlu0 %v5722_v13, %s4984_s12  ;;  %2054 = vrot.lane.b32.xlu1 %v5736_v25, %s4984_s12 }
 0x2aa   : > { %v1518_v0 = vpop.permute.xlu0 %1517  ;;  %v1520_v4 = vpop.permute.xlu1 %1519 }
 0x2ab   : > { %1554 = vst.msk [vmem:[#allocation2 + $0x1b0] sm:$0xf] %vm754_vm1, %v1518_v0  ;;  %1555 = vst.msk [vmem:[#allocation2 + $0x1b4] sm:$0xf] %vm754_vm1, %v1520_v4 }
 0x2ac   : > { %2056 = vrot.lane.b32.xlu0 %v5718_v6, %s4984_s12  ;;  %2058 = vrot.lane.b32.xlu1 %v5732_v17, %s4984_s12 }
 0x2ae   : > { %v1522_v10 = vpop.permute.xlu0 %1521  ;;  %v1524_v15 = vpop.permute.xlu1 %1523 }
 0x2af   : > { %1556 = vst.msk [vmem:[#allocation2 + $0x1b8] sm:$0xf] %vm754_vm1, %v1522_v10  ;;  %1557 = vst.msk [vmem:[#allocation2 + $0x1bc] sm:$0xf] %vm754_vm1, %v1524_v15 }
 0x2b0   : > { %2060 = vrot.lane.b32.xlu0 %v5750_v37, %s4984_s12  ;;  %2062 = vrot.lane.b32.xlu1 %v5764_v52, %s4984_s12 }
 0x2b2   : > { %v1559_v20 = vpop.permute.xlu0 %1558  ;;  %v1561_v21 = vpop.permute.xlu1 %1560 }
 0x2b3   : > { %1607 = vst.msk [vmem:[#allocation3 + $0x180] sm:$0xf] %vm754_vm1, %v1559_v20  ;;  %1608 = vst.msk [vmem:[#allocation3 + $0x184] sm:$0xf] %vm754_vm1, %v1561_v21 }
 0x2b4   : > { %2064 = vrot.lane.b32.xlu0 %v5746_v29, %s4984_s12  ;;  %2066 = vrot.lane.b32.xlu1 %v5760_v41, %s4984_s12 }
 0x2b6   : > { %v1563_v28 = vpop.permute.xlu0 %1562  ;;  %v1565_v32 = vpop.permute.xlu1 %1564 }
 0x2b7   : > { %1609 = vst.msk [vmem:[#allocation3 + $0x188] sm:$0xf] %vm754_vm1, %v1563_v28  ;;  %1610 = vst.msk [vmem:[#allocation3 + $0x18c] sm:$0xf] %vm754_vm1, %v1565_v32 }
 0x2b8   : > { %2068 = vrot.lane.b32.xlu0 %v5778_v8, %s4984_s12  ;;  %2070 = vrot.lane.b32.xlu1 %v5792_v24, %s4984_s12 }
 0x2ba   : > { %v1567_v33 = vpop.permute.xlu0 %1566  ;;  %v1569_v36 = vpop.permute.xlu1 %1568 }
 0x2bb   : > { %1611 = vst.msk [vmem:[#allocation3 + $0x190] sm:$0xf] %vm754_vm1, %v1567_v33  ;;  %1612 = vst.msk [vmem:[#allocation3 + $0x194] sm:$0xf] %vm754_vm1, %v1569_v36 }
 0x2bc   : > { %2072 = vrot.lane.b32.xlu0 %v5774_v60, %s4984_s12  ;;  %2074 = vrot.lane.b32.xlu1 %v5788_v12, %s4984_s12 }
 0x2be   : > { %v1571_v40 = vpop.permute.xlu0 %1570  ;;  %v1573_v44 = vpop.permute.xlu1 %1572 }
 0x2bf   : > { %1613 = vst.msk [vmem:[#allocation3 + $0x198] sm:$0xf] %vm754_vm1, %v1571_v40  ;;  %1614 = vst.msk [vmem:[#allocation3 + $0x19c] sm:$0xf] %vm754_vm1, %v1573_v44 }
 0x2c0   : > { %2109 = vrot.lane.b32.xlu0 %v5694_v54, %s4985_s13  ;;  %2111 = vrot.lane.b32.xlu1 %v5708_v2, %s4985_s13 }
 0x2c2   : > { %v1575_v48 = vpop.permute.xlu0 %1574  ;;  %v1577_v50 = vpop.permute.xlu1 %1576 }
 0x2c3   : > { %1615 = vst.msk [vmem:[#allocation3 + $0x1a0] sm:$0xf] %vm754_vm1, %v1575_v48  ;;  %1616 = vst.msk [vmem:[#allocation3 + $0x1a4] sm:$0xf] %vm754_vm1, %v1577_v50 }
 0x2c4   : > { %2113 = vrot.lane.b32.xlu0 %v5690_v45, %s4985_s13  ;;  %2115 = vrot.lane.b32.xlu1 %v5704_v58, %s4985_s13 }
 0x2c6   : > { %v1579_v56 = vpop.permute.xlu0 %1578  ;;  %v1581_v62 = vpop.permute.xlu1 %1580 }
 0x2c7   : > { %1617 = vst.msk [vmem:[#allocation3 + $0x1a8] sm:$0xf] %vm754_vm1, %v1579_v56  ;;  %1618 = vst.msk [vmem:[#allocation3 + $0x1ac] sm:$0xf] %vm754_vm1, %v1581_v62 }
 0x2c8   : > { %2117 = vrot.lane.b32.xlu0 %v5722_v13, %s4985_s13  ;;  %2119 = vrot.lane.b32.xlu1 %v5736_v25, %s4985_s13 }
 0x2ca   : > { %v1583_v22 = vpop.permute.xlu0 %1582  ;;  %v1585_v30 = vpop.permute.xlu1 %1584 }
 0x2cb   : > { %1619 = vst.msk [vmem:[#allocation3 + $0x1b0] sm:$0xf] %vm754_vm1, %v1583_v22  ;;  %1620 = vst.msk [vmem:[#allocation3 + $0x1b4] sm:$0xf] %vm754_vm1, %v1585_v30 }
 0x2cc   : > { %2121 = vrot.lane.b32.xlu0 %v5718_v6, %s4985_s13  ;;  %2123 = vrot.lane.b32.xlu1 %v5732_v17, %s4985_s13 }
 0x2ce   : > { %v1587_v18 = vpop.permute.xlu0 %1586  ;;  %v1589_v26 = vpop.permute.xlu1 %1588 }
 0x2cf   : > { %1621 = vst.msk [vmem:[#allocation3 + $0x1b8] sm:$0xf] %vm754_vm1, %v1587_v18  ;;  %1622 = vst.msk [vmem:[#allocation3 + $0x1bc] sm:$0xf] %vm754_vm1, %v1589_v26 }
 0x2d0   : > { %2125 = vrot.lane.b32.xlu0 %v5750_v37, %s4985_s13  ;;  %2127 = vrot.lane.b32.xlu1 %v5764_v52, %s4985_s13 }
 0x2d2   : > { %v1624_v38 = vpop.permute.xlu0 %1623  ;;  %v1626_v46 = vpop.permute.xlu1 %1625 }
 0x2d3   : > { %1672 = vst.msk [vmem:[#allocation2 + $0x1c0] sm:$0xf] %vm754_vm1, %v1624_v38  ;;  %1673 = vst.msk [vmem:[#allocation2 + $0x1c4] sm:$0xf] %vm754_vm1, %v1626_v46 }
 0x2d4   : > { %2129 = vrot.lane.b32.xlu0 %v5746_v29, %s4985_s13  ;;  %2131 = vrot.lane.b32.xlu1 %v5760_v41, %s4985_s13 }
 0x2d6   : > { %v1628_v34 = vpop.permute.xlu0 %1627  ;;  %v1630_v42 = vpop.permute.xlu1 %1629 }
 0x2d7   : > { %1674 = vst.msk [vmem:[#allocation2 + $0x1c8] sm:$0xf] %vm754_vm1, %v1628_v34  ;;  %1675 = vst.msk [vmem:[#allocation2 + $0x1cc] sm:$0xf] %vm754_vm1, %v1630_v42 }
 0x2d8   : > { %2133 = vrot.lane.b32.xlu0 %v5778_v8, %s4985_s13  ;;  %2135 = vrot.lane.b32.xlu1 %v5792_v24, %s4985_s13 }
 0x2da   : > { %v1632_v23 = vpop.permute.xlu0 %1631  ;;  %v1634_v31 = vpop.permute.xlu1 %1633 }
 0x2db   : > { %1676 = vst.msk [vmem:[#allocation2 + $0x1d0] sm:$0xf] %vm754_vm1, %v1632_v23  ;;  %1677 = vst.msk [vmem:[#allocation2 + $0x1d4] sm:$0xf] %vm754_vm1, %v1634_v31 }
 0x2dc   : > { %2137 = vrot.lane.b32.xlu0 %v5774_v60, %s4985_s13  ;;  %2139 = vrot.lane.b32.xlu1 %v5788_v12, %s4985_s13 }
 0x2de   : > { %v1636_v19 = vpop.permute.xlu0 %1635  ;;  %v1638_v27 = vpop.permute.xlu1 %1637 }
 0x2df   : > { %1678 = vst.msk [vmem:[#allocation2 + $0x1d8] sm:$0xf] %vm754_vm1, %v1636_v19  ;;  %1679 = vst.msk [vmem:[#allocation2 + $0x1dc] sm:$0xf] %vm754_vm1, %v1638_v27 }
 0x2e0   : > { %2174 = vrot.lane.b32.xlu0 %v5694_v54, %s4986_s14  ;;  %2176 = vrot.lane.b32.xlu1 %v5708_v2, %s4986_s14 }
 0x2e2   : > { %v1640_v39 = vpop.permute.xlu0 %1639  ;;  %v1642_v47 = vpop.permute.xlu1 %1641 }
 0x2e3   : > { %1680 = vst.msk [vmem:[#allocation2 + $0x1e0] sm:$0xf] %vm754_vm1, %v1640_v39  ;;  %1681 = vst.msk [vmem:[#allocation2 + $0x1e4] sm:$0xf] %vm754_vm1, %v1642_v47 }
 0x2e4   : > { %2178 = vrot.lane.b32.xlu0 %v5690_v45, %s4986_s14  ;;  %2180 = vrot.lane.b32.xlu1 %v5704_v58, %s4986_s14 }
 0x2e6   : > { %v1644_v35 = vpop.permute.xlu0 %1643  ;;  %v1646_v43 = vpop.permute.xlu1 %1645 }
 0x2e7   : > { %1682 = vst.msk [vmem:[#allocation2 + $0x1e8] sm:$0xf] %vm754_vm1, %v1644_v35  ;;  %1683 = vst.msk [vmem:[#allocation2 + $0x1ec] sm:$0xf] %vm754_vm1, %v1646_v43 }
 0x2e8   : > { %2182 = vrot.lane.b32.xlu0 %v5722_v13, %s4986_s14  ;;  %2184 = vrot.lane.b32.xlu1 %v5736_v25, %s4986_s14 }
 0x2ea   : > { %v1648_v51 = vpop.permute.xlu0 %1647  ;;  %v1650_v55 = vpop.permute.xlu1 %1649 }
 0x2eb   : > { %1684 = vst.msk [vmem:[#allocation2 + $0x1f0] sm:$0xf] %vm754_vm1, %v1648_v51  ;;  %1685 = vst.msk [vmem:[#allocation2 + $0x1f4] sm:$0xf] %vm754_vm1, %v1650_v55 }
 0x2ec   : > { %2186 = vrot.lane.b32.xlu0 %v5718_v6, %s4986_s14  ;;  %2188 = vrot.lane.b32.xlu1 %v5732_v17, %s4986_s14 }
 0x2ee   : > { %v1652_v49 = vpop.permute.xlu0 %1651  ;;  %v1654_v53 = vpop.permute.xlu1 %1653 }
 0x2ef   : > { %1686 = vst.msk [vmem:[#allocation2 + $0x1f8] sm:$0xf] %vm754_vm1, %v1652_v49  ;;  %1687 = vst.msk [vmem:[#allocation2 + $0x1fc] sm:$0xf] %vm754_vm1, %v1654_v53 }
 0x2f0   : > { %2190 = vrot.lane.b32.xlu0 %v5750_v37, %s4986_s14  ;;  %2192 = vrot.lane.b32.xlu1 %v5764_v52, %s4986_s14 }
 0x2f2   : > { %v1689_v59 = vpop.permute.xlu0 %1688  ;;  %v1691_v63 = vpop.permute.xlu1 %1690 }
 0x2f3   : > { %1737 = vst.msk [vmem:[#allocation3 + $0x1c0] sm:$0xf] %vm754_vm1, %v1689_v59  ;;  %1738 = vst.msk [vmem:[#allocation3 + $0x1c4] sm:$0xf] %vm754_vm1, %v1691_v63 }
 0x2f4   : > { %2194 = vrot.lane.b32.xlu0 %v5746_v29, %s4986_s14  ;;  %2196 = vrot.lane.b32.xlu1 %v5760_v41, %s4986_s14 }
 0x2f6   : > { %v1693_v57 = vpop.permute.xlu0 %1692  ;;  %v1695_v61 = vpop.permute.xlu1 %1694 }
 0x2f7   : > { %1739 = vst.msk [vmem:[#allocation3 + $0x1c8] sm:$0xf] %vm754_vm1, %v1693_v57  ;;  %1740 = vst.msk [vmem:[#allocation3 + $0x1cc] sm:$0xf] %vm754_vm1, %v1695_v61 }
 0x2f8   : > { %2198 = vrot.lane.b32.xlu0 %v5778_v8, %s4986_s14  ;;  %2200 = vrot.lane.b32.xlu1 %v5792_v24, %s4986_s14 }
 0x2fa   : > { %v1697_v3 = vpop.permute.xlu0 %1696  ;;  %v1699_v7 = vpop.permute.xlu1 %1698 }
 0x2fb   : > { %1741 = vst.msk [vmem:[#allocation3 + $0x1d0] sm:$0xf] %vm754_vm1, %v1697_v3  ;;  %1742 = vst.msk [vmem:[#allocation3 + $0x1d4] sm:$0xf] %vm754_vm1, %v1699_v7 }
 0x2fc   : > { %2202 = vrot.lane.b32.xlu0 %v5774_v60, %s4986_s14  ;;  %2204 = vrot.lane.b32.xlu1 %v5788_v12, %s4986_s14 }
 0x2fe   : > { %v1701_v1 = vpop.permute.xlu0 %1700  ;;  %v1703_v5 = vpop.permute.xlu1 %1702 }
 0x2ff   : > { %1743 = vst.msk [vmem:[#allocation3 + $0x1d8] sm:$0xf] %vm754_vm1, %v1701_v1  ;;  %1744 = vst.msk [vmem:[#allocation3 + $0x1dc] sm:$0xf] %vm754_vm1, %v1703_v5 }
 0x300   : > { %2239 = vrot.lane.b32.xlu0 %v5694_v54, %s4987_s15  ;;  %2241 = vrot.lane.b32.xlu1 %v5708_v2, %s4987_s15 }
 0x302   : > { %v1705_v11 = vpop.permute.xlu0 %1704  ;;  %v1707_v16 = vpop.permute.xlu1 %1706 }
 0x303   : > { %1745 = vst.msk [vmem:[#allocation3 + $0x1e0] sm:$0xf] %vm754_vm1, %v1705_v11  ;;  %1746 = vst.msk [vmem:[#allocation3 + $0x1e4] sm:$0xf] %vm754_vm1, %v1707_v16 }
 0x304   : > { %2243 = vrot.lane.b32.xlu0 %v5690_v45, %s4987_s15  ;;  %2245 = vrot.lane.b32.xlu1 %v5704_v58, %s4987_s15 }
 0x306   : > { %v1709_v9 = vpop.permute.xlu0 %1708  ;;  %v1711_v14 = vpop.permute.xlu1 %1710 }
 0x307   : > { %1747 = vst.msk [vmem:[#allocation3 + $0x1e8] sm:$0xf] %vm754_vm1, %v1709_v9  ;;  %1748 = vst.msk [vmem:[#allocation3 + $0x1ec] sm:$0xf] %vm754_vm1, %v1711_v14 }
 0x308   : > { %2247 = vrot.lane.b32.xlu0 %v5722_v13, %s4987_s15  ;;  %2249 = vrot.lane.b32.xlu1 %v5736_v25, %s4987_s15 }
 0x30a   : > { %v1713_v0 = vpop.permute.xlu0 %1712  ;;  %v1715_v4 = vpop.permute.xlu1 %1714 }
 0x30b   : > { %1749 = vst.msk [vmem:[#allocation3 + $0x1f0] sm:$0xf] %vm754_vm1, %v1713_v0  ;;  %1750 = vst.msk [vmem:[#allocation3 + $0x1f4] sm:$0xf] %vm754_vm1, %v1715_v4  ;;  %v2499_v0 = vlaneseq }
 0x30c   : > { %2251 = vrot.lane.b32.xlu0 %v5718_v6, %s4987_s15  ;;  %2253 = vrot.lane.b32.xlu1 %v5732_v17, %s4987_s15 }
 0x30e   : > { %v1717_v10 = vpop.permute.xlu0 %1716  ;;  %v1719_v15 = vpop.permute.xlu1 %1718 }
 0x30f   : > { %1751 = vst.msk [vmem:[#allocation3 + $0x1f8] sm:$0xf] %vm754_vm1, %v1717_v10  ;;  %1752 = vst.msk [vmem:[#allocation3 + $0x1fc] sm:$0xf] %vm754_vm1, %v1719_v15 }
 0x310   : > { %2255 = vrot.lane.b32.xlu0 %v5750_v37, %s4987_s15  ;;  %2257 = vrot.lane.b32.xlu1 %v5764_v52, %s4987_s15 }
 0x312   : > { %v2045_v20 = vpop.permute.xlu0 %2044  ;;  %v2047_v21 = vpop.permute.xlu1 %2046 }
 0x313   : > { %2093 = vst.msk [vmem:[#allocation4 + $0x40] sm:$0xf] %vm754_vm1, %v2045_v20  ;;  %2094 = vst.msk [vmem:[#allocation4 + $0x44] sm:$0xf] %vm754_vm1, %v2047_v21 }
 0x314   : > { %2259 = vrot.lane.b32.xlu0 %v5746_v29, %s4987_s15  ;;  %2261 = vrot.lane.b32.xlu1 %v5760_v41, %s4987_s15 }
 0x316   : > { %v2049_v28 = vpop.permute.xlu0 %2048  ;;  %v2051_v32 = vpop.permute.xlu1 %2050 }
 0x317   : > { %2095 = vst.msk [vmem:[#allocation4 + $0x48] sm:$0xf] %vm754_vm1, %v2049_v28  ;;  %2096 = vst.msk [vmem:[#allocation4 + $0x4c] sm:$0xf] %vm754_vm1, %v2051_v32 }
 0x318   : > { %2263 = vrot.lane.b32.xlu0 %v5778_v8, %s4987_s15  ;;  %2265 = vrot.lane.b32.xlu1 %v5792_v24, %s4987_s15 }
 0x31a   : > { %v2053_v33 = vpop.permute.xlu0 %2052  ;;  %v2055_v36 = vpop.permute.xlu1 %2054 }
 0x31b   : > { %2097 = vst.msk [vmem:[#allocation4 + $0x50] sm:$0xf] %vm754_vm1, %v2053_v33  ;;  %2098 = vst.msk [vmem:[#allocation4 + $0x54] sm:$0xf] %vm754_vm1, %v2055_v36 }
 0x31c   : > { %2267 = vrot.lane.b32.xlu0 %v5774_v60, %s4987_s15  ;;  %2269 = vrot.lane.b32.xlu1 %v5788_v12, %s4987_s15 }
 0x31e   : > { %v2057_v40 = vpop.permute.xlu0 %2056  ;;  %v2059_v44 = vpop.permute.xlu1 %2058 }
 0x31f   : > { %2099 = vst.msk [vmem:[#allocation4 + $0x58] sm:$0xf] %vm754_vm1, %v2057_v40  ;;  %2100 = vst.msk [vmem:[#allocation4 + $0x5c] sm:$0xf] %vm754_vm1, %v2059_v44 }
 0x320   : > { %2304 = vrot.lane.b32.xlu0 %v5694_v54, %s4988_s16  ;;  %2306 = vrot.lane.b32.xlu1 %v5708_v2, %s4988_s16 }
 0x322   : > { %v2061_v48 = vpop.permute.xlu0 %2060  ;;  %v2063_v50 = vpop.permute.xlu1 %2062 }
 0x323   : > { %2101 = vst.msk [vmem:[#allocation4 + $0x60] sm:$0xf] %vm754_vm1, %v2061_v48  ;;  %2102 = vst.msk [vmem:[#allocation4 + $0x64] sm:$0xf] %vm754_vm1, %v2063_v50 }
 0x324   : > { %2308 = vrot.lane.b32.xlu0 %v5690_v45, %s4988_s16  ;;  %2310 = vrot.lane.b32.xlu1 %v5704_v58, %s4988_s16 }
 0x326   : > { %v2065_v56 = vpop.permute.xlu0 %2064  ;;  %v2067_v62 = vpop.permute.xlu1 %2066 }
 0x327   : > { %2103 = vst.msk [vmem:[#allocation4 + $0x68] sm:$0xf] %vm754_vm1, %v2065_v56  ;;  %2104 = vst.msk [vmem:[#allocation4 + $0x6c] sm:$0xf] %vm754_vm1, %v2067_v62 }
 0x328   : > { %2312 = vrot.lane.b32.xlu0 %v5722_v13, %s4988_s16  ;;  %2314 = vrot.lane.b32.xlu1 %v5736_v25, %s4988_s16 }
 0x32a   : > { %v2069_v22 = vpop.permute.xlu0 %2068  ;;  %v2071_v30 = vpop.permute.xlu1 %2070 }
 0x32b   : > { %2105 = vst.msk [vmem:[#allocation4 + $0x70] sm:$0xf] %vm754_vm1, %v2069_v22  ;;  %2106 = vst.msk [vmem:[#allocation4 + $0x74] sm:$0xf] %vm754_vm1, %v2071_v30 }
 0x32c   : > { %2316 = vrot.lane.b32.xlu0 %v5718_v6, %s4988_s16  ;;  %2318 = vrot.lane.b32.xlu1 %v5732_v17, %s4988_s16 }
 0x32e   : > { %v2073_v18 = vpop.permute.xlu0 %2072  ;;  %v2075_v26 = vpop.permute.xlu1 %2074 }
 0x32f   : > { %2107 = vst.msk [vmem:[#allocation4 + $0x78] sm:$0xf] %vm754_vm1, %v2073_v18  ;;  %2108 = vst.msk [vmem:[#allocation4 + $0x7c] sm:$0xf] %vm754_vm1, %v2075_v26 }
 0x330   : > { %2320 = vrot.lane.b32.xlu0 %v5750_v37, %s4988_s16  ;;  %2322 = vrot.lane.b32.xlu1 %v5764_v52, %s4988_s16 }
 0x332   : > { %v2110_v38 = vpop.permute.xlu0 %2109  ;;  %v2112_v46 = vpop.permute.xlu1 %2111 }
 0x333   : > { %2158 = vst.msk [vmem:[#allocation4 + $0x80] sm:$0xf] %vm754_vm1, %v2110_v38  ;;  %2159 = vst.msk [vmem:[#allocation4 + $0x84] sm:$0xf] %vm754_vm1, %v2112_v46 }
 0x334   : > { %2324 = vrot.lane.b32.xlu0 %v5746_v29, %s4988_s16  ;;  %2326 = vrot.lane.b32.xlu1 %v5760_v41, %s4988_s16 }
 0x336   : > { %v2114_v34 = vpop.permute.xlu0 %2113  ;;  %v2116_v42 = vpop.permute.xlu1 %2115 }
 0x337   : > { %2160 = vst.msk [vmem:[#allocation4 + $0x88] sm:$0xf] %vm754_vm1, %v2114_v34  ;;  %2161 = vst.msk [vmem:[#allocation4 + $0x8c] sm:$0xf] %vm754_vm1, %v2116_v42 }
 0x338   : > { %2328 = vrot.lane.b32.xlu0 %v5778_v8, %s4988_s16  ;;  %2330 = vrot.lane.b32.xlu1 %v5792_v24, %s4988_s16 }
 0x33a   : > { %v2118_v23 = vpop.permute.xlu0 %2117  ;;  %v2120_v31 = vpop.permute.xlu1 %2119 }
 0x33b   : > { %2162 = vst.msk [vmem:[#allocation4 + $0x90] sm:$0xf] %vm754_vm1, %v2118_v23  ;;  %2163 = vst.msk [vmem:[#allocation4 + $0x94] sm:$0xf] %vm754_vm1, %v2120_v31 }
 0x33c   : > { %2332 = vrot.lane.b32.xlu0 %v5774_v60, %s4988_s16  ;;  %2334 = vrot.lane.b32.xlu1 %v5788_v12, %s4988_s16 }
 0x33e   : > { %v2122_v19 = vpop.permute.xlu0 %2121  ;;  %v2124_v27 = vpop.permute.xlu1 %2123 }
 0x33f   : > { %2164 = vst.msk [vmem:[#allocation4 + $0x98] sm:$0xf] %vm754_vm1, %v2122_v19  ;;  %2165 = vst.msk [vmem:[#allocation4 + $0x9c] sm:$0xf] %vm754_vm1, %v2124_v27 }
 0x340   : > { %2369 = vrot.lane.b32.xlu0 %v5694_v54, %s4989_s29  ;;  %2371 = vrot.lane.b32.xlu1 %v5708_v2, %s4989_s29 }
 0x342   : > { %v2126_v39 = vpop.permute.xlu0 %2125  ;;  %v2128_v47 = vpop.permute.xlu1 %2127 }
 0x343   : > { %2166 = vst.msk [vmem:[#allocation4 + $0xa0] sm:$0xf] %vm754_vm1, %v2126_v39  ;;  %2167 = vst.msk [vmem:[#allocation4 + $0xa4] sm:$0xf] %vm754_vm1, %v2128_v47 }
 0x344   : > { %2373 = vrot.lane.b32.xlu0 %v5690_v45, %s4989_s29  ;;  %2375 = vrot.lane.b32.xlu1 %v5704_v58, %s4989_s29 }
 0x346   : > { %v2130_v35 = vpop.permute.xlu0 %2129  ;;  %v2132_v43 = vpop.permute.xlu1 %2131 }
 0x347   : > { %2168 = vst.msk [vmem:[#allocation4 + $0xa8] sm:$0xf] %vm754_vm1, %v2130_v35  ;;  %2169 = vst.msk [vmem:[#allocation4 + $0xac] sm:$0xf] %vm754_vm1, %v2132_v43 }
 0x348   : > { %2377 = vrot.lane.b32.xlu0 %v5722_v13, %s4989_s29  ;;  %2379 = vrot.lane.b32.xlu1 %v5736_v25, %s4989_s29 }
 0x34a   : > { %v2134_v51 = vpop.permute.xlu0 %2133  ;;  %v2136_v55 = vpop.permute.xlu1 %2135 }
 0x34b   : > { %2170 = vst.msk [vmem:[#allocation4 + $0xb0] sm:$0xf] %vm754_vm1, %v2134_v51  ;;  %2171 = vst.msk [vmem:[#allocation4 + $0xb4] sm:$0xf] %vm754_vm1, %v2136_v55 }
 0x34c   : > { %2381 = vrot.lane.b32.xlu0 %v5718_v6, %s4989_s29  ;;  %2383 = vrot.lane.b32.xlu1 %v5732_v17, %s4989_s29 }
 0x34e   : > { %v2138_v49 = vpop.permute.xlu0 %2137  ;;  %v2140_v53 = vpop.permute.xlu1 %2139 }
 0x34f   : > { %2172 = vst.msk [vmem:[#allocation4 + $0xb8] sm:$0xf] %vm754_vm1, %v2138_v49  ;;  %2173 = vst.msk [vmem:[#allocation4 + $0xbc] sm:$0xf] %vm754_vm1, %v2140_v53 }
 0x350   : > { %2385 = vrot.lane.b32.xlu0 %v5750_v37, %s4989_s29  ;;  %2387 = vrot.lane.b32.xlu1 %v5764_v52, %s4989_s29 }
 0x352   : > { %v2175_v59 = vpop.permute.xlu0 %2174  ;;  %v2177_v63 = vpop.permute.xlu1 %2176 }
 0x353   : > { %2223 = vst.msk [vmem:[#allocation4 + $0xc0] sm:$0xf] %vm754_vm1, %v2175_v59  ;;  %2224 = vst.msk [vmem:[#allocation4 + $0xc4] sm:$0xf] %vm754_vm1, %v2177_v63 }
 0x354   : > { %2389 = vrot.lane.b32.xlu0 %v5746_v29, %s4989_s29  ;;  %2391 = vrot.lane.b32.xlu1 %v5760_v41, %s4989_s29 }
 0x356   : > { %v2179_v57 = vpop.permute.xlu0 %2178  ;;  %v2181_v61 = vpop.permute.xlu1 %2180 }
 0x357   : > { %2225 = vst.msk [vmem:[#allocation4 + $0xc8] sm:$0xf] %vm754_vm1, %v2179_v57  ;;  %2226 = vst.msk [vmem:[#allocation4 + $0xcc] sm:$0xf] %vm754_vm1, %v2181_v61 }
 0x358   : > { %2393 = vrot.lane.b32.xlu0 %v5778_v8, %s4989_s29  ;;  %2395 = vrot.lane.b32.xlu1 %v5792_v24, %s4989_s29 }
 0x35a   : > { %v2183_v3 = vpop.permute.xlu0 %2182  ;;  %v2185_v7 = vpop.permute.xlu1 %2184 }
 0x35b   : > { %2227 = vst.msk [vmem:[#allocation4 + $0xd0] sm:$0xf] %vm754_vm1, %v2183_v3  ;;  %2228 = vst.msk [vmem:[#allocation4 + $0xd4] sm:$0xf] %vm754_vm1, %v2185_v7 }
 0x35c   : > { %2397 = vrot.lane.b32.xlu0 %v5774_v60, %s4989_s29  ;;  %2399 = vrot.lane.b32.xlu1 %v5788_v12, %s4989_s29 }
 0x35e   : > { %v2187_v1 = vpop.permute.xlu0 %2186  ;;  %v2189_v5 = vpop.permute.xlu1 %2188 }
 0x35f   : > { %2229 = vst.msk [vmem:[#allocation4 + $0xd8] sm:$0xf] %vm754_vm1, %v2187_v1  ;;  %2230 = vst.msk [vmem:[#allocation4 + $0xdc] sm:$0xf] %vm754_vm1, %v2189_v5 }
 0x360   : > { %2434 = vrot.lane.b32.xlu0 %v5694_v54, %s4990_s30  ;;  %2436 = vrot.lane.b32.xlu1 %v5708_v2, %s4990_s30 }
 0x362   : > { %v2191_v11 = vpop.permute.xlu0 %2190  ;;  %v2193_v16 = vpop.permute.xlu1 %2192 }
 0x363   : > { %2231 = vst.msk [vmem:[#allocation4 + $0xe0] sm:$0xf] %vm754_vm1, %v2191_v11  ;;  %2232 = vst.msk [vmem:[#allocation4 + $0xe4] sm:$0xf] %vm754_vm1, %v2193_v16 }
 0x364   : > { %2438 = vrot.lane.b32.xlu0 %v5690_v45, %s4990_s30  ;;  %2440 = vrot.lane.b32.xlu1 %v5704_v58, %s4990_s30  ;;  %v2500_v45 = vand.u32 127, %v2499_v0 }
 0x366   : > { %v2195_v9 = vpop.permute.xlu0 %2194  ;;  %v2197_v14 = vpop.permute.xlu1 %2196  ;;  %vm2501_vm2 = vcmp.lt.s32.totalorder %v2500_v45, 16 }
 0x367   : > { %2233 = vst.msk [vmem:[#allocation4 + $0xe8] sm:$0xf] %vm754_vm1, %v2195_v9  ;;  %2234 = vst.msk [vmem:[#allocation4 + $0xec] sm:$0xf] %vm754_vm1, %v2197_v14 }
 0x368   : > { %2442 = vrot.lane.b32.xlu0 %v5722_v13, %s4990_s30  ;;  %2444 = vrot.lane.b32.xlu1 %v5736_v25, %s4990_s30  ;;  %v4991_v13 = vmov -1e+30  }
 0x369   : > { %v6272_v25 = vsel %vm2501_vm2, 0.0, %v4991_v13 }
 0x36a   : > { %v2199_v54 = vpop.permute.xlu0 %2198  ;;  %v2201_v2 = vpop.permute.xlu1 %2200 }
 0x36b   : > { %2235 = vst.msk [vmem:[#allocation4 + $0xf0] sm:$0xf] %vm754_vm1, %v2199_v54  ;;  %2236 = vst.msk [vmem:[#allocation4 + $0xf4] sm:$0xf] %vm754_vm1, %v2201_v2 }
 0x36c   : > { %2446 = vrot.lane.b32.xlu0 %v5718_v6, %s4990_s30  ;;  %2448 = vrot.lane.b32.xlu1 %v5732_v17, %s4990_s30 }
 0x36e   : > { %v2203_v58 = vpop.permute.xlu0 %2202  ;;  %v2205_v4 = vpop.permute.xlu1 %2204 }
 0x36f   : > { %2237 = vst.msk [vmem:[#allocation4 + $0xf8] sm:$0xf] %vm754_vm1, %v2203_v58  ;;  %2238 = vst.msk [vmem:[#allocation4 + $0xfc] sm:$0xf] %vm754_vm1, %v2205_v4 }
 0x370   : > { %2450 = vrot.lane.b32.xlu0 %v5750_v37, %s4990_s30  ;;  %2452 = vrot.lane.b32.xlu1 %v5764_v52, %s4990_s30 }
 0x372   : > { %v2240_v6 = vpop.permute.xlu0 %2239  ;;  %v2242_v10 = vpop.permute.xlu1 %2241 }
 0x373   : > { %2288 = vst.msk [vmem:[#allocation4 + $0x100] sm:$0xf] %vm754_vm1, %v2240_v6  ;;  %2289 = vst.msk [vmem:[#allocation4 + $0x104] sm:$0xf] %vm754_vm1, %v2242_v10 }
 0x374   : > { %2454 = vrot.lane.b32.xlu0 %v5746_v29, %s4990_s30  ;;  %2456 = vrot.lane.b32.xlu1 %v5760_v41, %s4990_s30 }
 0x376   : > { %v2244_v17 = vpop.permute.xlu0 %2243  ;;  %v2246_v15 = vpop.permute.xlu1 %2245 }
 0x377   : > { %2290 = vst.msk [vmem:[#allocation4 + $0x108] sm:$0xf] %vm754_vm1, %v2244_v17  ;;  %2291 = vst.msk [vmem:[#allocation4 + $0x10c] sm:$0xf] %vm754_vm1, %v2246_v15 }
 0x378   : > { %2458 = vrot.lane.b32.xlu0 %v5778_v8, %s4990_s30  ;;  %2460 = vrot.lane.b32.xlu1 %v5792_v24, %s4990_s30 }
 0x37a   : > { %v2248_v37 = vpop.permute.xlu0 %2247  ;;  %v2250_v52 = vpop.permute.xlu1 %2249 }
 0x37b   : > { %2292 = vst.msk [vmem:[#allocation4 + $0x110] sm:$0xf] %vm754_vm1, %v2248_v37  ;;  %2293 = vst.msk [vmem:[#allocation4 + $0x114] sm:$0xf] %vm754_vm1, %v2250_v52 }
 0x37c   : > { %2462 = vrot.lane.b32.xlu0 %v5774_v60, %s4990_s30  ;;  %2464 = vrot.lane.b32.xlu1 %v5788_v12, %s4990_s30 }
 0x37e   : > { %v2252_v29 = vpop.permute.xlu0 %2251  ;;  %v2254_v41 = vpop.permute.xlu1 %2253 }
 0x37f   : > { %2294 = vst.msk [vmem:[#allocation4 + $0x118] sm:$0xf] %vm754_vm1, %v2252_v29  ;;  %2295 = vst.msk [vmem:[#allocation4 + $0x11c] sm:$0xf] %vm754_vm1, %v2254_v41 }
 0x382   : > { %v2256_v8 = vpop.permute.xlu0 %2255  ;;  %v2258_v24 = vpop.permute.xlu1 %2257 }
 0x383   : > { %2296 = vst.msk [vmem:[#allocation4 + $0x120] sm:$0xf] %vm754_vm1, %v2256_v8  ;;  %2297 = vst.msk [vmem:[#allocation4 + $0x124] sm:$0xf] %vm754_vm1, %v2258_v24 }
 0x386   : > { %v2260_v20 = vpop.permute.xlu0 %2259  ;;  %v2262_v21 = vpop.permute.xlu1 %2261 }
 0x387   : > { %2298 = vst.msk [vmem:[#allocation4 + $0x128] sm:$0xf] %vm754_vm1, %v2260_v20  ;;  %2299 = vst.msk [vmem:[#allocation4 + $0x12c] sm:$0xf] %vm754_vm1, %v2262_v21 }
 0x38a   : > { %v2264_v60 = vpop.permute.xlu0 %2263  ;;  %v2266_v12 = vpop.permute.xlu1 %2265 }
 0x38b   : > { %2300 = vst.msk [vmem:[#allocation4 + $0x130] sm:$0xf] %vm754_vm1, %v2264_v60  ;;  %2301 = vst.msk [vmem:[#allocation4 + $0x134] sm:$0xf] %vm754_vm1, %v2266_v12 }
 0x38e   : > { %v2268_v28 = vpop.permute.xlu0 %2267  ;;  %v2270_v32 = vpop.permute.xlu1 %2269 }
 0x38f   : > { %2302 = vst.msk [vmem:[#allocation4 + $0x138] sm:$0xf] %vm754_vm1, %v2268_v28  ;;  %2303 = vst.msk [vmem:[#allocation4 + $0x13c] sm:$0xf] %vm754_vm1, %v2270_v32 }
 0x392   : > { %v2305_v33 = vpop.permute.xlu0 %2304  ;;  %v2307_v36 = vpop.permute.xlu1 %2306 }
 0x393   : > { %2353 = vst.msk [vmem:[#allocation4 + $0x140] sm:$0xf] %vm754_vm1, %v2305_v33  ;;  %2354 = vst.msk [vmem:[#allocation4 + $0x144] sm:$0xf] %vm754_vm1, %v2307_v36 }
 0x396   : > { %v2309_v40 = vpop.permute.xlu0 %2308  ;;  %v2311_v44 = vpop.permute.xlu1 %2310 }
 0x397   : > { %2355 = vst.msk [vmem:[#allocation4 + $0x148] sm:$0xf] %vm754_vm1, %v2309_v40  ;;  %2356 = vst.msk [vmem:[#allocation4 + $0x14c] sm:$0xf] %vm754_vm1, %v2311_v44 }
 0x39a   : > { %v2313_v48 = vpop.permute.xlu0 %2312  ;;  %v2315_v50 = vpop.permute.xlu1 %2314 }
 0x39b   : > { %2357 = vst.msk [vmem:[#allocation4 + $0x150] sm:$0xf] %vm754_vm1, %v2313_v48  ;;  %2358 = vst.msk [vmem:[#allocation4 + $0x154] sm:$0xf] %vm754_vm1, %v2315_v50 }
 0x39e   : > { %v2317_v56 = vpop.permute.xlu0 %2316  ;;  %v2319_v62 = vpop.permute.xlu1 %2318 }
 0x39f   : > { %2359 = vst.msk [vmem:[#allocation4 + $0x158] sm:$0xf] %vm754_vm1, %v2317_v56  ;;  %2360 = vst.msk [vmem:[#allocation4 + $0x15c] sm:$0xf] %vm754_vm1, %v2319_v62 }
 0x3a2   : > { %v2321_v22 = vpop.permute.xlu0 %2320  ;;  %v2323_v30 = vpop.permute.xlu1 %2322 }
 0x3a3   : > { %2361 = vst.msk [vmem:[#allocation4 + $0x160] sm:$0xf] %vm754_vm1, %v2321_v22  ;;  %2362 = vst.msk [vmem:[#allocation4 + $0x164] sm:$0xf] %vm754_vm1, %v2323_v30 }
 0x3a6   : > { %v2325_v18 = vpop.permute.xlu0 %2324  ;;  %v2327_v26 = vpop.permute.xlu1 %2326 }
 0x3a7   : > { %2363 = vst.msk [vmem:[#allocation4 + $0x168] sm:$0xf] %vm754_vm1, %v2325_v18  ;;  %2364 = vst.msk [vmem:[#allocation4 + $0x16c] sm:$0xf] %vm754_vm1, %v2327_v26 }
 0x3aa   : > { %v2329_v38 = vpop.permute.xlu0 %2328  ;;  %v2331_v46 = vpop.permute.xlu1 %2330 }
 0x3ab   : > { %2365 = vst.msk [vmem:[#allocation4 + $0x170] sm:$0xf] %vm754_vm1, %v2329_v38  ;;  %2366 = vst.msk [vmem:[#allocation4 + $0x174] sm:$0xf] %vm754_vm1, %v2331_v46 }
 0x3ae   : > { %v2333_v34 = vpop.permute.xlu0 %2332  ;;  %v2335_v42 = vpop.permute.xlu1 %2334 }
 0x3af   : > { %2367 = vst.msk [vmem:[#allocation4 + $0x178] sm:$0xf] %vm754_vm1, %v2333_v34  ;;  %2368 = vst.msk [vmem:[#allocation4 + $0x17c] sm:$0xf] %vm754_vm1, %v2335_v42 }
 0x3b2   : > { %v2370_v23 = vpop.permute.xlu0 %2369  ;;  %v2372_v31 = vpop.permute.xlu1 %2371 }
 0x3b3   : > { %2418 = vst.msk [vmem:[#allocation4 + $0x180] sm:$0xf] %vm754_vm1, %v2370_v23  ;;  %2419 = vst.msk [vmem:[#allocation4 + $0x184] sm:$0xf] %vm754_vm1, %v2372_v31 }
 0x3b6   : > { %v2374_v19 = vpop.permute.xlu0 %2373  ;;  %v2376_v27 = vpop.permute.xlu1 %2375 }
 0x3b7   : > { %2420 = vst.msk [vmem:[#allocation4 + $0x188] sm:$0xf] %vm754_vm1, %v2374_v19  ;;  %2421 = vst.msk [vmem:[#allocation4 + $0x18c] sm:$0xf] %vm754_vm1, %v2376_v27 }
 0x3ba   : > { %v2378_v39 = vpop.permute.xlu0 %2377  ;;  %v2380_v47 = vpop.permute.xlu1 %2379 }
 0x3bb   : > { %2422 = vst.msk [vmem:[#allocation4 + $0x190] sm:$0xf] %vm754_vm1, %v2378_v39  ;;  %2423 = vst.msk [vmem:[#allocation4 + $0x194] sm:$0xf] %vm754_vm1, %v2380_v47 }
 0x3be   : > { %v2382_v35 = vpop.permute.xlu0 %2381  ;;  %v2384_v43 = vpop.permute.xlu1 %2383 }
 0x3bf   : > { %2424 = vst.msk [vmem:[#allocation4 + $0x198] sm:$0xf] %vm754_vm1, %v2382_v35  ;;  %2425 = vst.msk [vmem:[#allocation4 + $0x19c] sm:$0xf] %vm754_vm1, %v2384_v43 }
 0x3c2   : > { %v2386_v51 = vpop.permute.xlu0 %2385  ;;  %v2388_v55 = vpop.permute.xlu1 %2387 }
 0x3c3   : > { %2426 = vst.msk [vmem:[#allocation4 + $0x1a0] sm:$0xf] %vm754_vm1, %v2386_v51  ;;  %2427 = vst.msk [vmem:[#allocation4 + $0x1a4] sm:$0xf] %vm754_vm1, %v2388_v55 }
 0x3c6   : > { %v2390_v49 = vpop.permute.xlu0 %2389  ;;  %v2392_v53 = vpop.permute.xlu1 %2391 }
 0x3c7   : > { %2428 = vst.msk [vmem:[#allocation4 + $0x1a8] sm:$0xf] %vm754_vm1, %v2390_v49  ;;  %2429 = vst.msk [vmem:[#allocation4 + $0x1ac] sm:$0xf] %vm754_vm1, %v2392_v53 }
 0x3ca   : > { %v2394_v59 = vpop.permute.xlu0 %2393  ;;  %v2396_v63 = vpop.permute.xlu1 %2395 }
 0x3cb   : > { %2430 = vst.msk [vmem:[#allocation4 + $0x1b0] sm:$0xf] %vm754_vm1, %v2394_v59  ;;  %2431 = vst.msk [vmem:[#allocation4 + $0x1b4] sm:$0xf] %vm754_vm1, %v2396_v63 }
 0x3ce   : > { %v2398_v57 = vpop.permute.xlu0 %2397  ;;  %v2400_v61 = vpop.permute.xlu1 %2399 }
 0x3cf   : > { %2432 = vst.msk [vmem:[#allocation4 + $0x1b8] sm:$0xf] %vm754_vm1, %v2398_v57  ;;  %2433 = vst.msk [vmem:[#allocation4 + $0x1bc] sm:$0xf] %vm754_vm1, %v2400_v61 }
 0x3d2   : > { %v2435_v3 = vpop.permute.xlu0 %2434  ;;  %v2437_v7 = vpop.permute.xlu1 %2436 }
 0x3d3   : > { %2483 = vst.msk [vmem:[#allocation4 + $0x1c0] sm:$0xf] %vm754_vm1, %v2435_v3  ;;  %2484 = vst.msk [vmem:[#allocation4 + $0x1c4] sm:$0xf] %vm754_vm1, %v2437_v7 }
 0x3d6   : > { %v2439_v1 = vpop.permute.xlu0 %2438  ;;  %v2441_v5 = vpop.permute.xlu1 %2440 }
 0x3d7   : > { %2485 = vst.msk [vmem:[#allocation4 + $0x1c8] sm:$0xf] %vm754_vm1, %v2439_v1  ;;  %2486 = vst.msk [vmem:[#allocation4 + $0x1cc] sm:$0xf] %vm754_vm1, %v2441_v5 }
 0x3da   : > { %v2443_v11 = vpop.permute.xlu0 %2442  ;;  %v2445_v16 = vpop.permute.xlu1 %2444 }
 0x3db   : > { %2487 = vst.msk [vmem:[#allocation4 + $0x1d0] sm:$0xf] %vm754_vm1, %v2443_v11  ;;  %2488 = vst.msk [vmem:[#allocation4 + $0x1d4] sm:$0xf] %vm754_vm1, %v2445_v16 }
 0x3de   : > { %v2447_v9 = vpop.permute.xlu0 %2446  ;;  %v2449_v14 = vpop.permute.xlu1 %2448 }
 0x3df   : > { %2489 = vst.msk [vmem:[#allocation4 + $0x1d8] sm:$0xf] %vm754_vm1, %v2447_v9  ;;  %2490 = vst.msk [vmem:[#allocation4 + $0x1dc] sm:$0xf] %vm754_vm1, %v2449_v14 }
 0x3e2   : > { %v2451_v54 = vpop.permute.xlu0 %2450  ;;  %v2453_v2 = vpop.permute.xlu1 %2452 }
 0x3e3   : > { %2491 = vst.msk [vmem:[#allocation4 + $0x1e0] sm:$0xf] %vm754_vm1, %v2451_v54  ;;  %2492 = vst.msk [vmem:[#allocation4 + $0x1e4] sm:$0xf] %vm754_vm1, %v2453_v2 }
 0x3e6   : > { %v2455_v0 = vpop.permute.xlu0 %2454  ;;  %v2457_v45 = vpop.permute.xlu1 %2456 }
 0x3e7   : > { %2493 = vst.msk [vmem:[#allocation4 + $0x1e8] sm:$0xf] %vm754_vm1, %v2455_v0  ;;  %2494 = vst.msk [vmem:[#allocation4 + $0x1ec] sm:$0xf] %vm754_vm1, %v2457_v45 }
 0x3ea   : > { %v2459_v58 = vpop.permute.xlu0 %2458  ;;  %v2461_v4 = vpop.permute.xlu1 %2460 }
 0x3eb   : > { %2495 = vst.msk [vmem:[#allocation4 + $0x1f0] sm:$0xf] %vm754_vm1, %v2459_v58  ;;  %2496 = vst.msk [vmem:[#allocation4 + $0x1f4] sm:$0xf] %vm754_vm1, %v2461_v4 }
 0x3ee   : > { %v2463_v13 = vpop.permute.xlu0 %2462  ;;  %v2465_v6 = vpop.permute.xlu1 %2464 }
 0x3ef   : > { %2497 = vst.msk [vmem:[#allocation4 + $0x1f8] sm:$0xf] %vm754_vm1, %v2463_v13  ;;  %2498 = vst.msk [vmem:[#allocation4 + $0x1fc] sm:$0xf] %vm754_vm1, %v2465_v6 }
 0x3f0 LB: >> { %s6360_s9 = sshll.u32 %s4982_s8, 6  ;;  %vm2644_vm3 = vcmask 64512   ;;  %s2508_s8 = sadd.s32 1, %s4982_s8   ;;  %s4982_s8 = sphi %s6354_s8, %s2508_s8  }
 0x3f1   : >> { %s6363_s10 = scalar_lea.vmem [#allocation2], %s6360_s9  ;;  %s6373_s11 = scalar_lea.vmem [#allocation4], %s6360_s9 }
 0x3f2   : >> { %v4796_v10 = vld [vmem:[%s6363_s10 + $0x38] sm:$0xff]   ;;  %v4797_v17 = vld [vmem:[%s6363_s10 + $0x30] sm:$0xff]   ;;  %v4798_v37 = vld [vmem:[%s6363_s10 + $0x28] sm:$0xff]   ;;  %s6452_s12 = scalar_lea.vmem [#allocation3], %s6360_s9  ;;  %s6536_s13 = scalar_lea.vmem [#allocation5], %s6360_s9 }
 0x3f3   : >> { %4713 = vmatprep.subr.msk.bf16.mxu0 %vm2644_vm3, %v4796_v10  ;;  %v2691_v15 = vsel %vm2644_vm3, %v4796_v10, 0  ;;  %v2688_v52 = vsel %vm2644_vm3, %v4797_v17, 0  ;;  %v2685_v41 = vsel %vm2644_vm3, %v4798_v37, 0  ;;  %v4799_v8 = vld [vmem:[%s6363_s10 + $0x20] sm:$0xff]   ;;  %v4800_v20 = vld [vmem:[%s6363_s10 + $0x18] sm:$0xff]   ;;  %v4801_v60 = vld [vmem:[%s6363_s10 + $0x10] sm:$0xff]  }
 0x3f4   : >> { %4610 = vmatpush3.bf16.xpose.msra.mxu0 %v2691_v15  ;;  %v2682_v24 = vsel %vm2644_vm3, %v4799_v8, 0  ;;  %v2679_v21 = vsel %vm2644_vm3, %v4800_v20, 0  ;;  %v2676_v12 = vsel %vm2644_vm3, %v4801_v60, 0  ;;  %v4802_v28 = vld [vmem:[%s6363_s10 + $0x8] sm:$0xff]   ;;  %v4803_v33 = vld [vmem:[%s6363_s10] sm:$0xff]   ;;  %v4812_v2 = vld [vmem:[%s6452_s12 + $0x38] sm:$0xff]  }
 0x3f5   : >> { %4714 = vmatprep.subr.msk.bf16.mxu0 %vm2644_vm3, %v4797_v17  ;;  %v2673_v32 = vsel %vm2644_vm3, %v4802_v28, 0  ;;  %v2670_v36 = vsel %vm2644_vm3, %v4803_v33, 0  ;;  %v4813_v0 = vld [vmem:[%s6452_s12 + $0x30] sm:$0xff]   ;;  %4641 = vmatprep.subr.bf16.mxu1 %v4812_v2  ;;  %p2505_p5 = scmp.ge.s32.totalorder %s2508_s8, 8  }
 0x3f6   : >> { %v4804_v29 = vld [vmem:[%s6373_s11] sm:$0xff]   ;;  %v4805_v40 = vld [vmem:[%s6373_s11 + $0x8] sm:$0xff]   ;;  %v4806_v44 = vld [vmem:[%s6373_s11 + $0x10] sm:$0xff]   ;;  %4642 = vmatpush3.bf16.msra.mxu1 %v4812_v2  ;;  %s4992_s14 = smov (%p2505_p5), 8   ;;  %s4993_s15 = smov (%p2505_p5), 16   ;;  %vm3761_vm4 = vcmask (%p2505_p5), 130048  }
 0x3f7   : >> { %4625 = vmatprep.mubr.msk.bf16.mxu0 %vm2644_vm3, %v4804_v29  ;;  %v4807_v48 = vld [vmem:[%s6373_s11 + $0x18] sm:$0xff]   ;;  %v4808_v50 = vld [vmem:[%s6373_s11 + $0x20] sm:$0xff]   ;;  %v4809_v56 = vld [vmem:[%s6373_s11 + $0x28] sm:$0xff]   ;;  %4643 = vmatprep.subr.bf16.mxu1 %v4813_v0  ;;  %s4994_s16 = smov (%p2505_p5), 24   ;;  %s4995_s17 = smov (%p2505_p5), 32   ;;  %vm3778_vm5 = vcmask (%p2505_p5), 195584  }
 0x3f8   : >> { %v4810_v62 = vld [vmem:[%s6373_s11 + $0x30] sm:$0xff]   ;;  %v4811_v22 = vld [vmem:[%s6373_s11 + $0x38] sm:$0xff]   ;;  %s4996_s19 = smov (%p2505_p5), 40   ;;  %s4997_s20 = smov (%p2505_p5), 48   ;;  %vm3795_vm6 = vcmask (%p2505_p5), 261120   ;;  %vm3812_vm7 = vcmask (%p2505_p5), 326656  }
 0x3f9   : >> { %v4816_v2 = vld [vmem:[%s6452_s12 + $0x18] sm:$0xff]   ;;  %s4998_s21 = smov (%p2505_p5), 56   ;;  %vm3829_vm8 = vcmask (%p2505_p5), 392192   ;;  %vm3846_vm9 = vcmask (%p2505_p5), 457728  }
 0x3fa   : >> { %4644 = vmatpush3.bf16.msra.mxu1 %v4813_v0 }
 0x3fc   : >> { %4612 = vmatpush3.bf16.xpose.msra.mxu0 %v2688_v52 }
 0x3fd   : >> { %4715 = vmatprep.subr.msk.bf16.mxu0 %vm2644_vm3, %v4798_v37 }
 0x404   : >> { %4614 = vmatpush3.bf16.xpose.msra.mxu0 %v2685_v41 }
 0x405   : >> { %4716 = vmatprep.subr.msk.bf16.mxu0 %vm2644_vm3, %v4799_v8 }
 0x40c   : >> { %4616 = vmatpush3.bf16.xpose.msra.mxu0 %v2682_v24 }
 0x40d   : >> { %4717 = vmatprep.subr.msk.bf16.mxu0 %vm2644_vm3, %v4800_v20 }
 0x414   : >> { %4618 = vmatpush3.bf16.xpose.msra.mxu0 %v2679_v21 }
 0x415   : >> { %4718 = vmatprep.subr.msk.bf16.mxu0 %vm2644_vm3, %v4801_v60 }
 0x41c   : >> { %4620 = vmatpush3.bf16.xpose.msra.mxu0 %v2676_v12 }
 0x41d   : >> { %4719 = vmatprep.subr.msk.bf16.mxu0 %vm2644_vm3, %v4802_v28 }
 0x424   : >> { %4622 = vmatpush3.bf16.xpose.msra.mxu0 %v2673_v32 }
 0x425   : >> { %4720 = vmatprep.subr.msk.bf16.mxu0 %vm2644_vm3, %v4803_v33 }
 0x42c   : >> { %4624 = vmatpush3.bf16.xpose.msra.mxu0 %v2670_v36 }
 0x433   : >> { %4626 = vmatmul.mubr.msk.bf16.vlgmr.msra.gmra.mxu0 %vm2644_vm3, %v4805_v40 }
 0x434   : >> { %4629 = vmatprep.mubr.msk.bf16.mxu0 %vm2644_vm3, %v4806_v44 }
 0x43b   : >> { %4630 = vmatmul.mubr.msk.bf16.gmra.mxu0 %vm2644_vm3, %v4807_v48 }
 0x43c   : >> { %4633 = vmatprep.mubr.msk.bf16.mxu0 %vm2644_vm3, %v4808_v50 }
 0x443   : >> { %4634 = vmatmul.mubr.msk.bf16.gmra.mxu0 %vm2644_vm3, %v4809_v56 }
 0x444   : >> { %4637 = vmatprep.mubr.msk.bf16.mxu0 %vm2644_vm3, %v4810_v62 }
 0x44b   : >> { %4638 = vmatmul.mubr.msk.bf16.gmra.mxu0 %vm2644_vm3, %v4811_v22 }
 0x4f3   : >> { %v4627_v30 = vpop.f32.mrf.mxu0 }
 0x4f4   : >> { %v2736_v18 = vadd.f32 %v4627_v30, %v6272_v25 }
 0x4f5   : >> { %v2727_v26 = vpop.f32.mrf.mxu0 }
 0x4f6   : >> { %v2728_v38 = vadd.f32 %v2727_v26, %v6272_v25  ;;  %2794 = vmax.xlane.f32.xlu1 %v2736_v18 }
 0x4f7   : >> { %v4628_v46 = vpop.f32.mrf.mxu0 }
 0x4f8   : >> { %v2739_v34 = vadd.f32 %v4628_v46, %v6272_v25  ;;  %2790 = vmax.xlane.f32.xlu0 %v2728_v38 }
 0x4f9   : >> { %v2730_v42 = vpop.f32.mrf.mxu0 }
 0x4fa   : >> { %v2731_v23 = vadd.f32 %v2730_v42, %v6272_v25  ;;  %2796 = vmax.xlane.f32.xlu1 %v2739_v34 }
 0x4fb   : >> { %v4631_v31 = vpop.f32.mrf.mxu0 }
 0x4fc   : >> { %2792 = vmax.xlane.f32.xlu0 %v2731_v23  ;;  %v2752_v35 = vadd.f32 %v4631_v31, %v6272_v25 }
 0x4fd   : >> { %v2743_v19 = vpop.f32.mrf.mxu0 }
 0x4fe   : >> { %v2744_v27 = vadd.f32 %v2743_v19, %v6272_v25 }
 0x4ff   : >> { %v4632_v39 = vpop.f32.mrf.mxu0 }
 0x500   : >> { %2798 = vmax.xlane.f32.xlu0 %v2744_v27  ;;  %v6416_v49 = vadd.f32 %v4632_v39, %v6272_v25 }
 0x501   : >> { %v2746_v47 = vpop.f32.mrf.mxu0 }
 0x502   : >> { %v2747_v43 = vadd.f32 %v2746_v47, %v6272_v25 }
 0x503   : >> { %v4635_v51 = vpop.f32.mrf.mxu0 }
 0x504   : >> { %2800 = vmax.xlane.f32.xlu1 %v2747_v43  ;;  %2802 = vmax.xlane.f32.xlu0 %v2752_v35  ;;  %v6424_v57 = vadd.f32 %v4635_v51, %v6272_v25 }
 0x505   : >> { %v2759_v55 = vpop.f32.mrf.mxu0 }
 0x506   : >> { %v6419_v53 = vadd.f32 %v2759_v55, %v6272_v25 }
 0x507   : >> { %v4636_v59 = vpop.f32.mrf.mxu0 }
 0x508   : >> { %2804 = vmax.xlane.f32.xlu1 %v6416_v49  ;;  %2806 = vmax.xlane.f32.xlu0 %v6419_v53  ;;  %v6432_v1 = vadd.f32 %v4636_v59, %v6272_v25  ;;  %v4814_v59 = vld [vmem:[%s6452_s12 + $0x28] sm:$0xff]  }
 0x509   : >> { %v2762_v63 = vpop.f32.mrf.mxu0  ;;  %4645 = vmatprep.subr.bf16.mxu1 %v4814_v59 }
 0x50a   : >> { %v6427_v61 = vadd.f32 %v2762_v63, %v6272_v25  ;;  %4646 = vmatpush3.bf16.msra.mxu1 %v4814_v59 }
 0x50b   : >> { %v4639_v3 = vpop.f32.mrf.mxu0 }
 0x50c   : >> { %2808 = vmax.xlane.f32.xlu1 %v6427_v61  ;;  %2810 = vmax.xlane.f32.xlu0 %v6424_v57  ;;  %v6440_v9 = vadd.f32 %v4639_v3, %v6272_v25 }
 0x50d   : >> { %v2775_v7 = vpop.f32.mrf.mxu0 }
 0x50e   : >> { %v6435_v5 = vadd.f32 %v2775_v7, %v6272_v25 }
 0x50f   : >> { %v4640_v11 = vpop.f32.mrf.mxu0 }
 0x510   : >> { %2812 = vmax.xlane.f32.xlu1 %v6432_v1  ;;  %2814 = vmax.xlane.f32.xlu0 %v6435_v5  ;;  %v6448_v54 = vadd.f32 %v4640_v11, %v6272_v25  ;;  %v4815_v11 = vld [vmem:[%s6452_s12 + $0x20] sm:$0xff]  }
 0x511   : >> { %v2778_v16 = vpop.f32.mrf.mxu0  ;;  %4647 = vmatprep.subr.bf16.mxu1 %v4815_v11 }
 0x512   : >> { %v6443_v14 = vadd.f32 %v2778_v16, %v6272_v25  ;;  %4648 = vmatpush3.bf16.msra.mxu1 %v4815_v11 }
 0x513   : >> { %4649 = vmatprep.subr.bf16.mxu1 %v4816_v2 }
 0x514   : >> { %2816 = vmax.xlane.f32.xlu1 %v6443_v14  ;;  %2818 = vmax.xlane.f32.xlu0 %v6440_v9 }
 0x516   : >> { %4650 = vmatpush3.bf16.msra.mxu1 %v4816_v2 }
 0x518   : >> { %2820 = vmax.xlane.f32.xlu1 %v6448_v54 }
 0x57f   : >> { %v2795_v45 = vpop.xlane.xlu1 %2794 }
 0x580   : >> { %v2824_v58 = vsub.f32 %v2736_v18, %v2795_v45  ;;  %v4817_v45 = vld [vmem:[%s6452_s12 + $0x10] sm:$0xff]  }
 0x581   : >> { %v2791_v4 = vpop.xlane.xlu0 %2790  ;;  %4651 = vmatprep.subr.bf16.mxu1 %v4817_v45 }
 0x582   : >> { %v2822_v13 = vsub.f32 %v2728_v38, %v2791_v4  ;;  %v2842_v17 = vmul.f32 1.442695, %v2824_v58  ;;  %4652 = vmatpush3.bf16.msra.mxu1 %v4817_v45 }
 0x583   : >> { %v2797_v6 = vpop.xlane.xlu1 %2796 }
 0x584   : >> { %v2838_v10 = vmul.f32 1.442695, %v2822_v13  ;;  %v2825_v15 = vsub.f32 %v2739_v34, %v2797_v6  ;;  %v4818_v13 = vld [vmem:[%s6452_s12 + $0x8] sm:$0xff]  }
 0x585   : >> { %v2793_v37 = vpop.xlane.xlu0 %2792  ;;  %4653 = vmatprep.subr.bf16.mxu1 %v4818_v13 }
 0x586   : >> { %4820 = vpow2.f32 %v2838_v10  ;;  %v2823_v52 = vsub.f32 %v2731_v23, %v2793_v37  ;;  %v2844_v41 = vmul.f32 1.442695, %v2825_v15  ;;  %4654 = vmatpush3.bf16.msra.mxu1 %v4818_v13 }
 0x587   : >> { %4822 = vpow2.f32 %v2842_v17  ;;  %v4819_v17 = vld [vmem:[%s6452_s12] sm:$0xff]  }
 0x588   : >> { %v2840_v29 = vmul.f32 1.442695, %v2823_v52  ;;  %4655 = vmatprep.subr.bf16.mxu1 %v4819_v17 }
 0x589   : >> { %v2799_v8 = vpop.xlane.xlu0 %2798 }
 0x58a   : >> { %4824 = vpow2.f32 %v2840_v29  ;;  %v2826_v24 = vsub.f32 %v2744_v27, %v2799_v8  ;;  %4656 = vmatpush3.bf16.msra.mxu1 %v4819_v17 }
 0x58b   : >> { %4826 = vpow2.f32 %v2844_v41 }
 0x58c   : >> { %v2846_v20 = vmul.f32 1.442695, %v2826_v24 }
 0x58d   : >> { %v2801_v21 = vpop.xlane.xlu1 %2800  ;;  %v2803_v60 = vpop.xlane.xlu0 %2802 }
 0x58e   : >> { %4828 = vpow2.f32 %v2846_v20  ;;  %v2827_v12 = vsub.f32 %v2747_v43, %v2801_v21  ;;  %v2828_v28 = vsub.f32 %v2752_v35, %v2803_v60 }
 0x590   : >> { %v2848_v32 = vmul.f32 1.442695, %v2827_v12  ;;  %v2850_v33 = vmul.f32 1.442695, %v2828_v28 }
 0x591   : >> { %v2805_v36 = vpop.xlane.xlu1 %2804  ;;  %v2807_v40 = vpop.xlane.xlu0 %2806 }
 0x592   : >> { %4830 = vpow2.f32 %v2848_v32  ;;  %v2829_v44 = vsub.f32 %v6416_v49, %v2805_v36  ;;  %v2830_v48 = vsub.f32 %v6419_v53, %v2807_v40 }
 0x593   : >> { %v6458_v50 = vpop.eup %4820  ;;  %4832 = vpow2.f32 %v2850_v33 }
 0x594   : >> { %v2852_v56 = vmul.f32 1.442695, %v2829_v44  ;;  %v2854_v62 = vmul.f32 1.442695, %v2830_v48  ;;  %2870 = vadd.xlane.f32.xlu0 %v6458_v50  ;;  %v6461_v18 = vpop.eup %4822 }
 0x595   : >> { %v2809_v22 = vpop.xlane.xlu1 %2808  ;;  %v2811_v30 = vpop.xlane.xlu0 %2810 }
 0x596   : >> { %4834 = vpow2.f32 %v2852_v56  ;;  %v2831_v26 = vsub.f32 %v6427_v61, %v2809_v22  ;;  %v2832_v38 = vsub.f32 %v6424_v57, %v2811_v30 }
 0x597   : >> { %v6465_v46 = vpop.eup %4824  ;;  %4836 = vpow2.f32 %v2854_v62 }
 0x598   : >> { %v2856_v34 = vmul.f32 1.442695, %v2831_v26  ;;  %v2858_v42 = vmul.f32 1.442695, %v2832_v38  ;;  %2874 = vadd.xlane.f32.xlu0 %v6461_v18  ;;  %2872 = vadd.xlane.f32.xlu1 %v6465_v46  ;;  %v6469_v19 = vpop.eup %4826 }
 0x599   : >> { %v2813_v23 = vpop.xlane.xlu1 %2812  ;;  %v2815_v31 = vpop.xlane.xlu0 %2814 }
 0x59a   : >> { %4838 = vpow2.f32 %v2856_v34  ;;  %v2833_v27 = vsub.f32 %v6432_v1, %v2813_v23  ;;  %v2834_v39 = vsub.f32 %v6435_v5, %v2815_v31 }
 0x59b   : >> { %v6473_v47 = vpop.eup %4828  ;;  %4840 = vpow2.f32 %v2858_v42 }
 0x59c   : >> { %v2860_v35 = vmul.f32 1.442695, %v2833_v27  ;;  %v2862_v43 = vmul.f32 1.442695, %v2834_v39  ;;  %2876 = vadd.xlane.f32.xlu1 %v6469_v19  ;;  %2878 = vadd.xlane.f32.xlu0 %v6473_v47 }
 0x59d   : >> { %v2817_v51 = vpop.xlane.xlu1 %2816  ;;  %v2819_v55 = vpop.xlane.xlu0 %2818 }
 0x59e   : >> { %4842 = vpow2.f32 %v2860_v35  ;;  %v2835_v49 = vsub.f32 %v6443_v14, %v2817_v51  ;;  %v2836_v53 = vsub.f32 %v6440_v9, %v2819_v55 }
 0x59f   : >> { %v6480_v63 = vpop.eup %4830  ;;  %4844 = vpow2.f32 %v2862_v43 }
 0x5a0   : >> { %v6482_v57 = vpop.eup %4832  ;;  %v2864_v61 = vmul.f32 1.442695, %v2835_v49  ;;  %v2866_v3 = vmul.f32 1.442695, %v2836_v53  ;;  %2880 = vadd.xlane.f32.xlu1 %v6480_v63 }
 0x5a1   : >> { %2882 = vadd.xlane.f32.xlu0 %v6482_v57  ;;  %v2821_v7 = vpop.xlane.xlu1 %2820 }
 0x5a2   : >> { %4846 = vpow2.f32 %v2864_v61  ;;  %v2837_v1 = vsub.f32 %v6448_v54, %v2821_v7 }
 0x5a3   : >> { %v6487_v5 = vpop.eup %4834  ;;  %4848 = vpow2.f32 %v2866_v3 }
 0x5a4   : >> { %v6490_v16 = vpop.eup %4836  ;;  %v2868_v9 = vmul.f32 1.442695, %v2837_v1  ;;  %2884 = vadd.xlane.f32.xlu1 %v6487_v5 }
 0x5a5   : >> { %2886 = vadd.xlane.f32.xlu0 %v6490_v16 }
 0x5a6   : >> { %4850 = vpow2.f32 %v2868_v9 }
 0x5a7   : >> { %v6494_v14 = vpop.eup %4838 }
 0x5a8   : >> { %v6497_v54 = vpop.eup %4840  ;;  %2888 = vadd.xlane.f32.xlu1 %v6494_v14 }
 0x5a9   : >> { %2890 = vadd.xlane.f32.xlu0 %v6497_v54 }
 0x5ab   : >> { %v6501_v0 = vpop.eup %4842 }
 0x5ac   : >> { %v6504_v58 = vpop.eup %4844  ;;  %2892 = vadd.xlane.f32.xlu1 %v6501_v0 }
 0x5ad   : >> { %2894 = vadd.xlane.f32.xlu0 %v6504_v58 }
 0x5af   : >> { %v6508_v4 = vpop.eup %4846 }
 0x5b0   : >> { %v6511_v6 = vpop.eup %4848  ;;  %2896 = vadd.xlane.f32.xlu1 %v6508_v4 }
 0x5b1   : >> { %2898 = vadd.xlane.f32.xlu0 %v6511_v6 }
 0x5b3   : >> { %v6515_v10 = vpop.eup %4850 }
 0x5b4   : >> { %2900 = vadd.xlane.f32.xlu1 %v6515_v10 }
 0x61d   : >> { %v2871_v15 = vpop.xlane.xlu0 %2870 }
 0x61e   : >> { %4852 = vrcp.f32 %v2871_v15 }
 0x621   : >> { %v2873_v37 = vpop.xlane.xlu1 %2872  ;;  %v2875_v52 = vpop.xlane.xlu0 %2874 }
 0x622   : >> { %4854 = vrcp.f32 %v2873_v37 }
 0x623   : >> { %4856 = vrcp.f32 %v2875_v52 }
 0x625   : >> { %v2877_v29 = vpop.xlane.xlu1 %2876  ;;  %v2879_v41 = vpop.xlane.xlu0 %2878 }
 0x626   : >> { %4858 = vrcp.f32 %v2877_v29 }
 0x627   : >> { %4860 = vrcp.f32 %v2879_v41 }
 0x629   : >> { %v2881_v8 = vpop.xlane.xlu1 %2880 }
 0x62a   : >> { %4862 = vrcp.f32 %v2881_v8  ;;  %v2883_v24 = vpop.xlane.xlu0 %2882 }
 0x62b   : >> { %4864 = vrcp.f32 %v2883_v24  ;;  %v4853_v20 = vpop.eup %4852 }
 0x62c   : >> { %v2918_v28 = vmul.f32 %v4853_v20, %v6458_v50 }
 0x62d   : >> { %v2885_v21 = vpop.xlane.xlu1 %2884 }
 0x62e   : >> { %4866 = vrcp.f32 %v2885_v21  ;;  %v2887_v60 = vpop.xlane.xlu0 %2886 }
 0x62f   : >> { %v4855_v12 = vpop.eup %4854  ;;  %4868 = vrcp.f32 %v2887_v60 }
 0x630   : >> { %v2919_v32 = vmul.f32 %v4855_v12, %v6465_v46  ;;  %v4857_v33 = vpop.eup %4856 }
 0x631   : >> { %v2889_v36 = vpop.xlane.xlu1 %2888  ;;  %v2920_v56 = vmul.f32 %v4857_v33, %v6461_v18 }
 0x632   : >> { %4870 = vrcp.f32 %v2889_v36  ;;  %v2891_v40 = vpop.xlane.xlu0 %2890  ;;  %v2934_v44 = vpack.c.bf16 %v2919_v32, %v2918_v28 }
 0x633   : >> { %v4859_v48 = vpop.eup %4858  ;;  %4872 = vrcp.f32 %v2891_v40 }
 0x634   : >> { %4657 = vmatprep.mubr.bf16.mxu1 %v2934_v44  ;;  %v2921_v62 = vmul.f32 %v4859_v48, %v6469_v19  ;;  %v4861_v22 = vpop.eup %4860 }
 0x635   : >> { %v2893_v30 = vpop.xlane.xlu1 %2892  ;;  %v2922_v46 = vmul.f32 %v4861_v22, %v6473_v47 }
 0x636   : >> { %4874 = vrcp.f32 %v2893_v30  ;;  %v2895_v26 = vpop.xlane.xlu0 %2894  ;;  %v2935_v38 = vpack.c.bf16 %v2921_v62, %v2920_v56 }
 0x637   : >> { %v4863_v50 = vpop.eup %4862  ;;  %4876 = vrcp.f32 %v2895_v26 }
 0x638   : >> { %4658 = vmatmul.mubr.bf16.vlgmr.msra.gmra.mxu1 %v2935_v38  ;;  %v2923_v34 = vmul.f32 %v4863_v50, %v6480_v63  ;;  %v4865_v42 = vpop.eup %4864 }
 0x639   : >> { %v2897_v23 = vpop.xlane.xlu1 %2896  ;;  %v2924_v19 = vmul.f32 %v4865_v42, %v6482_v57 }
 0x63a   : >> { %4878 = vrcp.f32 %v2897_v23  ;;  %v2899_v31 = vpop.xlane.xlu0 %2898  ;;  %v2936_v27 = vpack.c.bf16 %v2923_v34, %v2922_v46 }
 0x63b   : >> { %v4867_v18 = vpop.eup %4866  ;;  %4880 = vrcp.f32 %v2899_v31 }
 0x63c   : >> { %4661 = vmatprep.mubr.bf16.mxu1 %v2936_v27  ;;  %v2925_v39 = vmul.f32 %v4867_v18, %v6487_v5  ;;  %v4869_v35 = vpop.eup %4868 }
 0x63d   : >> { %v2901_v43 = vpop.xlane.xlu1 %2900  ;;  %v2926_v47 = vmul.f32 %v4869_v35, %v6490_v16 }
 0x63e   : >> { %4882 = vrcp.f32 %v2901_v43  ;;  %v2937_v51 = vpack.c.bf16 %v2925_v39, %v2924_v19 }
 0x63f   : >> { %v4871_v55 = vpop.eup %4870 }
 0x640   : >> { %4662 = vmatmul.mubr.bf16.gmra.mxu1 %v2937_v51  ;;  %v2927_v49 = vmul.f32 %v4871_v55, %v6494_v14  ;;  %v4873_v53 = vpop.eup %4872 }
 0x641   : >> { %v2928_v61 = vmul.f32 %v4873_v53, %v6497_v54 }
 0x642   : >> { %v2938_v59 = vpack.c.bf16 %v2927_v49, %v2926_v47 }
 0x643   : >> { %v4875_v63 = vpop.eup %4874 }
 0x644   : >> { %4665 = vmatprep.mubr.bf16.mxu1 %v2938_v59  ;;  %v2929_v57 = vmul.f32 %v4875_v63, %v6501_v0  ;;  %v4877_v3 = vpop.eup %4876 }
 0x645   : >> { %v2930_v5 = vmul.f32 %v4877_v3, %v6504_v58 }
 0x646   : >> { %v2939_v7 = vpack.c.bf16 %v2929_v57, %v2928_v61 }
 0x647   : >> { %v4879_v1 = vpop.eup %4878 }
 0x648   : >> { %4666 = vmatmul.mubr.bf16.gmra.mxu1 %v2939_v7  ;;  %v2931_v11 = vmul.f32 %v4879_v1, %v6508_v4  ;;  %v4881_v16 = vpop.eup %4880 }
 0x649   : >> { %v2932_v2 = vmul.f32 %v4881_v16, %v6511_v6 }
 0x64a   : >> { %v2940_v9 = vpack.c.bf16 %v2931_v11, %v2930_v5 }
 0x64b   : >> { %v4883_v14 = vpop.eup %4882 }
 0x64c   : >> { %4669 = vmatprep.mubr.bf16.mxu1 %v2940_v9  ;;  %v2933_v45 = vmul.f32 %v4883_v14, %v6515_v10 }
 0x64e   : >> { %v2941_v54 = vpack.c.bf16 %v2933_v45, %v2932_v2 }
 0x650   : >> { %4670 = vmatmul.mubr.bf16.gmra.mxu1 %v2941_v54 }
 0x6f8   : >> { %v4659_v0 = vpop.f32.mrf.mxu1 }
 0x6f9   : >> { %v4442_v13 = vpack.c.bf16 %v4659_v0, %v4659_v0  ;;  %v4944_v0 = vld [vmem:[%s6754_s5 + $0x18] sm:$0xff] (%p2505_p5)  }
 0x6fa   : >> { %v3024_v17 = vpop.f32.mrf.mxu1  ;;  %4673 = vmatprep.subr.bf16.mxu0 (%p2505_p5), %v4944_v0  ;;  %4705 = vmatprep.subr.bf16.mxu1 (%p2505_p5), %v4944_v0 }
 0x6fb   : >> { %3155 = vst.msk [vmem:[%s6536_s13 + $0x8] sm:$0xf] %vm754_vm1, %v4442_v13  ;;  %v4440_v58 = vpack.c.bf16 %v3024_v17, %v3024_v17  ;;  %v4945_v13 = vld [vmem:[%s6754_s5 + $0x10] sm:$0xff] (%p2505_p5)   ;;  %4674 = vmatpush3.bf16.msra.mxu0 (%p2505_p5), %v4944_v0  ;;  %4709 = vmatpush3.bf16.msra.mxu1 (%p2505_p5), %v4944_v0 }
 0x6fc   : >> { %v4660_v4 = vpop.f32.mrf.mxu1  ;;  %4675 = vmatprep.subr.bf16.mxu0 (%p2505_p5), %v4945_v13  ;;  %4706 = vmatprep.subr.bf16.mxu1 (%p2505_p5), %v4945_v13 }
 0x6fd   : >> { %3153 = vst.msk [vmem:[%s6536_s13] sm:$0xf] %vm754_vm1, %v4440_v58  ;;  %v4443_v6 = vpack.c.bf16 %v4660_v4, %v4660_v4  ;;  %v4946_v4 = vld [vmem:[%s6754_s5 + $0x8] sm:$0xff] (%p2505_p5)  }
 0x6fe   : >> { %v3027_v10 = vpop.f32.mrf.mxu1 }
 0x6ff   : >> { %3156 = vst.msk [vmem:[%s6536_s13 + $0xc] sm:$0xf] %vm754_vm1, %v4443_v6  ;;  %v4441_v15 = vpack.c.bf16 %v3027_v10, %v3027_v10  ;;  %4676 = vmatpush3.bf16.msra.mxu0 (%p2505_p5), %v4945_v13  ;;  %4710 = vmatpush3.bf16.msra.mxu1 (%p2505_p5), %v4945_v13 }
 0x700   : >> { %v4663_v37 = vpop.f32.mrf.mxu1  ;;  %4677 = vmatprep.subr.bf16.mxu0 (%p2505_p5), %v4946_v4  ;;  %4707 = vmatprep.subr.bf16.mxu1 (%p2505_p5), %v4946_v4 }
 0x701   : >> { %3154 = vst.msk [vmem:[%s6536_s13 + $0x4] sm:$0xf] %vm754_vm1, %v4441_v15  ;;  %v4446_v52 = vpack.c.bf16 %v4663_v37, %v4663_v37  ;;  %v4947_v15 = vld [vmem:[%s6754_s5] sm:$0xff] (%p2505_p5)  }
 0x702   : >> { %v3040_v29 = vpop.f32.mrf.mxu1 }
 0x703   : >> { %3159 = vst.msk [vmem:[%s6536_s13 + $0x18] sm:$0xf] %vm754_vm1, %v4446_v52  ;;  %v4444_v41 = vpack.c.bf16 %v3040_v29, %v3040_v29  ;;  %4678 = vmatpush3.bf16.msra.mxu0 (%p2505_p5), %v4946_v4  ;;  %4711 = vmatpush3.bf16.msra.mxu1 (%p2505_p5), %v4946_v4 }
 0x704   : >> { %v4664_v8 = vpop.f32.mrf.mxu1  ;;  %4679 = vmatprep.subr.bf16.mxu0 (%p2505_p5), %v4947_v15  ;;  %4708 = vmatprep.subr.bf16.mxu1 (%p2505_p5), %v4947_v15 }
 0x705   : >> { %3157 = vst.msk [vmem:[%s6536_s13 + $0x10] sm:$0xf] %vm754_vm1, %v4444_v41  ;;  %v4447_v24 = vpack.c.bf16 %v4664_v8, %v4664_v8 }
 0x706   : >> { %v3043_v20 = vpop.f32.mrf.mxu1 }
 0x707   : >> { %3160 = vst.msk [vmem:[%s6536_s13 + $0x1c] sm:$0xf] %vm754_vm1, %v4447_v24  ;;  %v4445_v21 = vpack.c.bf16 %v3043_v20, %v3043_v20  ;;  %4680 = vmatpush3.bf16.msra.mxu0 (%p2505_p5), %v4947_v15  ;;  %4712 = vmatpush3.bf16.msra.mxu1 (%p2505_p5), %v4947_v15 }
 0x708   : >> { %v4667_v60 = vpop.f32.mrf.mxu1 }
 0x709   : >> { %3158 = vst.msk [vmem:[%s6536_s13 + $0x14] sm:$0xf] %vm754_vm1, %v4445_v21  ;;  %v4450_v12 = vpack.c.bf16 %v4667_v60, %v4667_v60 }
 0x70a   : >> { %v3056_v28 = vpop.f32.mrf.mxu1 }
 0x70b   : >> { %3163 = vst.msk [vmem:[%s6536_s13 + $0x28] sm:$0xf] %vm754_vm1, %v4450_v12  ;;  %v4448_v32 = vpack.c.bf16 %v3056_v28, %v3056_v28 }
 0x70c   : >> { %v4668_v33 = vpop.f32.mrf.mxu1 }
 0x70d   : >> { %3161 = vst.msk [vmem:[%s6536_s13 + $0x20] sm:$0xf] %vm754_vm1, %v4448_v32  ;;  %v4451_v36 = vpack.c.bf16 %v4668_v33, %v4668_v33 }
 0x70e   : >> { %v3059_v40 = vpop.f32.mrf.mxu1 }
 0x70f   : >> { %3164 = vst.msk [vmem:[%s6536_s13 + $0x2c] sm:$0xf] %vm754_vm1, %v4451_v36  ;;  %v4449_v44 = vpack.c.bf16 %v3059_v40, %v3059_v40 }
 0x710   : >> { %v4671_v48 = vpop.f32.mrf.mxu1 }
 0x711   : >> { %3162 = vst.msk [vmem:[%s6536_s13 + $0x24] sm:$0xf] %vm754_vm1, %v4449_v44  ;;  %v4454_v56 = vpack.c.bf16 %v4671_v48, %v4671_v48 }
 0x712   : >> { %v3072_v62 = vpop.f32.mrf.mxu1 }
 0x713   : >> { %3167 = vst.msk [vmem:[%s6536_s13 + $0x38] sm:$0xf] %vm754_vm1, %v4454_v56  ;;  %v4452_v22 = vpack.c.bf16 %v3072_v62, %v3072_v62 }
 0x714   : >> { %v4672_v30 = vpop.f32.mrf.mxu1 }
 0x715   : >> { %3165 = vst.msk [vmem:[%s6536_s13 + $0x30] sm:$0xf] %vm754_vm1, %v4452_v22  ;;  %v4455_v26 = vpack.c.bf16 %v4672_v30, %v4672_v30  ;;  %2507 = sbr.rel (!%p2505_p5) target bundleno = 1008 (0x3f0), region = 124 }
 0x716   : >> { %v3075_v38 = vpop.f32.mrf.mxu1 }
 0x717   : >> { %3168 = vst.msk [vmem:[%s6536_s13 + $0x3c] sm:$0xf] %vm754_vm1, %v4455_v26  ;;  %v4453_v50 = vpack.c.bf16 %v3075_v38, %v3075_v38 }
 0x719   : >> { %3166 = vst.msk [vmem:[%s6536_s13 + $0x34] sm:$0xf] %vm754_vm1, %v4453_v50 }
 0x720   : > { %v4884_v46 = vld [vmem:[#allocation5 + $0x48] sm:$0xff]   ;;  %v4885_v34 = vld [vmem:[#allocation5 + $0x40] sm:$0xff]   ;;  %v4912_v14 = vld [vmem:[#allocation5 + $0x70] sm:$0xff]  }
 0x721   : > { %3386 = vrot.lane.b32.xlu1 %v4884_v46, %s4992_s14  ;;  %v4886_v42 = vld [vmem:[#allocation5 + $0x68] sm:$0xff]   ;;  %3384 = vrot.lane.b32.xlu0 %v4885_v34, %s4992_s14  ;;  %v4887_v23 = vld [vmem:[#allocation5 + $0x60] sm:$0xff]   ;;  %v4913_v2 = vld [vmem:[#allocation5 + $0x50] sm:$0xff]  }
 0x722   : > { %v4888_v31 = vld [vmem:[#allocation5 + $0xa0] sm:$0xff]   ;;  %v4890_v18 = vld [vmem:[#allocation5 + $0xa8] sm:$0xff]   ;;  %v4914_v45 = vld [vmem:[#allocation5 + $0x78] sm:$0xff]  }
 0x723   : > { %v4889_v27 = vld [vmem:[#allocation5 + $0x80] sm:$0xff]   ;;  %v4891_v25 = vld [vmem:[#allocation5 + $0x88] sm:$0xff]   ;;  %v4915_v54 = vld [vmem:[#allocation5 + $0x58] sm:$0xff]  }
 0x724   : > { %v4892_v19 = vld [vmem:[#allocation5 + $0xe0] sm:$0xff]   ;;  %v4894_v35 = vld [vmem:[#allocation5 + $0xe8] sm:$0xff]   ;;  %v4916_v17 = vld [vmem:[#allocation5 + $0xb0] sm:$0xff]  }
 0x725   : > { %3394 = vrot.lane.b32.xlu1 %v4886_v42, %s4992_s14  ;;  %3392 = vrot.lane.b32.xlu0 %v4887_v23, %s4992_s14  ;;  %v4893_v39 = vld [vmem:[#allocation5 + $0xc0] sm:$0xff]   ;;  %v4895_v43 = vld [vmem:[#allocation5 + $0xc8] sm:$0xff]   ;;  %v4917_v58 = vld [vmem:[#allocation5 + $0x90] sm:$0xff]  }
 0x726   : > { %v4896_v51 = vld [vmem:[#allocation5 + $0x120] sm:$0xff]   ;;  %v4898_v47 = vld [vmem:[#allocation5 + $0x128] sm:$0xff]   ;;  %v4918_v6 = vld [vmem:[#allocation5 + $0xb8] sm:$0xff]  }
 0x727   : > { %v4897_v55 = vld [vmem:[#allocation5 + $0x100] sm:$0xff]   ;;  %v4899_v49 = vld [vmem:[#allocation5 + $0x108] sm:$0xff]   ;;  %v4919_v10 = vld [vmem:[#allocation5 + $0x98] sm:$0xff]  }
 0x728   : > { %v4900_v53 = vld [vmem:[#allocation5 + $0x160] sm:$0xff]   ;;  %v4902_v63 = vld [vmem:[#allocation5 + $0x168] sm:$0xff]   ;;  %v4920_v37 = vld [vmem:[#allocation5 + $0xf0] sm:$0xff]  }
 0x729   : > { %3448 = vrot.lane.b32.xlu1 %v4888_v31, %s4993_s15  ;;  %3440 = vrot.lane.b32.xlu0 %v4889_v27, %s4993_s15  ;;  %v4901_v59 = vld [vmem:[#allocation5 + $0x140] sm:$0xff]   ;;  %v4903_v61 = vld [vmem:[#allocation5 + $0x148] sm:$0xff]   ;;  %v4921_v52 = vld [vmem:[#allocation5 + $0xd0] sm:$0xff]  }
 0x72a   : > { %v4904_v57 = vld [vmem:[#allocation5 + $0x1a0] sm:$0xff]   ;;  %v4906_v7 = vld [vmem:[#allocation5 + $0x1a8] sm:$0xff]   ;;  %v4922_v29 = vld [vmem:[#allocation5 + $0xf8] sm:$0xff]  }
 0x72b   : > { %v4905_v3 = vld [vmem:[#allocation5 + $0x180] sm:$0xff]   ;;  %v4907_v1 = vld [vmem:[#allocation5 + $0x188] sm:$0xff]   ;;  %v4923_v41 = vld [vmem:[#allocation5 + $0xd8] sm:$0xff]  }
 0x72c   : > { %v4908_v5 = vld [vmem:[#allocation5 + $0x1e0] sm:$0xff]   ;;  %v4910_v16 = vld [vmem:[#allocation5 + $0x1e8] sm:$0xff]   ;;  %v4924_v8 = vld [vmem:[#allocation5 + $0x130] sm:$0xff]  }
 0x72d   : > { %3450 = vrot.lane.b32.xlu1 %v4890_v18, %s4993_s15  ;;  %3442 = vrot.lane.b32.xlu0 %v4891_v25, %s4993_s15  ;;  %v4909_v11 = vld [vmem:[#allocation5 + $0x1c0] sm:$0xff]   ;;  %v4911_v9 = vld [vmem:[#allocation5 + $0x1c8] sm:$0xff]   ;;  %v4925_v24 = vld [vmem:[#allocation5 + $0x110] sm:$0xff]  }
 0x72e   : > { %v4926_v20 = vld [vmem:[#allocation5 + $0x138] sm:$0xff]   ;;  %v4928_v60 = vld [vmem:[#allocation5 + $0x170] sm:$0xff]  }
 0x72f   : > { %v4927_v21 = vld [vmem:[#allocation5 + $0x118] sm:$0xff]   ;;  %v4929_v12 = vld [vmem:[#allocation5 + $0x150] sm:$0xff]  }
 0x730   : > { %v4930_v28 = vld [vmem:[#allocation5 + $0x178] sm:$0xff]   ;;  %v4932_v33 = vld [vmem:[#allocation5 + $0x1b0] sm:$0xff]  }
 0x731   : > { %3504 = vrot.lane.b32.xlu1 %v4892_v19, %s4994_s16  ;;  %3496 = vrot.lane.b32.xlu0 %v4893_v39, %s4994_s16  ;;  %v4931_v32 = vld [vmem:[#allocation5 + $0x158] sm:$0xff]   ;;  %v4933_v36 = vld [vmem:[#allocation5 + $0x190] sm:$0xff]  }
 0x732   : > { %v4934_v40 = vld [vmem:[#allocation5 + $0x1b8] sm:$0xff]   ;;  %v4936_v48 = vld [vmem:[#allocation5 + $0x1f0] sm:$0xff]  }
 0x733   : > { %v4935_v44 = vld [vmem:[#allocation5 + $0x198] sm:$0xff]   ;;  %v4937_v56 = vld [vmem:[#allocation5 + $0x1d0] sm:$0xff]  }
 0x734   : > { %v4938_v62 = vld [vmem:[#allocation5 + $0x1f8] sm:$0xff]  }
 0x735   : > { %3506 = vrot.lane.b32.xlu1 %v4894_v35, %s4994_s16  ;;  %3498 = vrot.lane.b32.xlu0 %v4895_v43, %s4994_s16  ;;  %v4939_v22 = vld [vmem:[#allocation5 + $0x1d8] sm:$0xff]  }
 0x739   : > { %3560 = vrot.lane.b32.xlu1 %v4896_v51, %s4995_s17  ;;  %3552 = vrot.lane.b32.xlu0 %v4897_v55, %s4995_s17 }
 0x73d   : > { %3562 = vrot.lane.b32.xlu1 %v4898_v47, %s4995_s17  ;;  %3554 = vrot.lane.b32.xlu0 %v4899_v49, %s4995_s17 }
 0x741   : > { %3616 = vrot.lane.b32.xlu1 %v4900_v53, %s4996_s19  ;;  %3608 = vrot.lane.b32.xlu0 %v4901_v59, %s4996_s19  ;;  %v4943_v53 = vld [vmem:[#allocation5 + $0x20] sm:$0xff]  }
 0x742   : > { %v4941_v59 = vld [vmem:[#allocation5] sm:$0xff]  }
 0x745   : > { %3618 = vrot.lane.b32.xlu1 %v4902_v63, %s4996_s19  ;;  %3610 = vrot.lane.b32.xlu0 %v4903_v61, %s4996_s19 }
 0x749   : > { %3672 = vrot.lane.b32.xlu1 %v4904_v57, %s4997_s20  ;;  %3664 = vrot.lane.b32.xlu0 %v4905_v3, %s4997_s20  ;;  %v4942_v57 = vld [vmem:[#allocation5 + $0x28] sm:$0xff]  }
 0x74d   : > { %3674 = vrot.lane.b32.xlu1 %v4906_v7, %s4997_s20  ;;  %3666 = vrot.lane.b32.xlu0 %v4907_v1, %s4997_s20  ;;  %v4940_v7 = vld [vmem:[#allocation5 + $0x8] sm:$0xff]  }
 0x751   : > { %3728 = vrot.lane.b32.xlu1 %v4908_v5, %s4998_s21  ;;  %3720 = vrot.lane.b32.xlu0 %v4909_v11, %s4998_s21 }
 0x755   : > { %3730 = vrot.lane.b32.xlu1 %v4910_v16, %s4998_s21  ;;  %3722 = vrot.lane.b32.xlu0 %v4911_v9, %s4998_s21 }
 0x759   : > { %3396 = vrot.lane.b32.xlu1 %v4912_v14, %s4992_s14  ;;  %3388 = vrot.lane.b32.xlu0 %v4913_v2, %s4992_s14 }
 0x75d   : > { %3398 = vrot.lane.b32.xlu1 %v4914_v45, %s4992_s14  ;;  %3390 = vrot.lane.b32.xlu0 %v4915_v54, %s4992_s14 }
 0x761   : > { %3452 = vrot.lane.b32.xlu1 %v4916_v17, %s4993_s15  ;;  %3444 = vrot.lane.b32.xlu0 %v4917_v58, %s4993_s15 }
 0x765   : > { %3454 = vrot.lane.b32.xlu1 %v4918_v6, %s4993_s15  ;;  %3446 = vrot.lane.b32.xlu0 %v4919_v10, %s4993_s15 }
 0x769   : > { %3508 = vrot.lane.b32.xlu1 %v4920_v37, %s4994_s16  ;;  %3500 = vrot.lane.b32.xlu0 %v4921_v52, %s4994_s16 }
 0x76d   : > { %3510 = vrot.lane.b32.xlu1 %v4922_v29, %s4994_s16  ;;  %3502 = vrot.lane.b32.xlu0 %v4923_v41, %s4994_s16 }
 0x771   : > { %3564 = vrot.lane.b32.xlu1 %v4924_v8, %s4995_s17  ;;  %3556 = vrot.lane.b32.xlu0 %v4925_v24, %s4995_s17 }
 0x775   : > { %3566 = vrot.lane.b32.xlu1 %v4926_v20, %s4995_s17  ;;  %3558 = vrot.lane.b32.xlu0 %v4927_v21, %s4995_s17 }
 0x779   : > { %3620 = vrot.lane.b32.xlu1 %v4928_v60, %s4996_s19  ;;  %3612 = vrot.lane.b32.xlu0 %v4929_v12, %s4996_s19 }
 0x77d   : > { %3622 = vrot.lane.b32.xlu1 %v4930_v28, %s4996_s19  ;;  %3614 = vrot.lane.b32.xlu0 %v4931_v32, %s4996_s19 }
 0x781   : > { %3676 = vrot.lane.b32.xlu1 %v4932_v33, %s4997_s20  ;;  %3668 = vrot.lane.b32.xlu0 %v4933_v36, %s4997_s20 }
 0x785   : > { %3678 = vrot.lane.b32.xlu1 %v4934_v40, %s4997_s20  ;;  %3670 = vrot.lane.b32.xlu0 %v4935_v44, %s4997_s20 }
 0x789   : > { %3732 = vrot.lane.b32.xlu1 %v4936_v48, %s4998_s21  ;;  %3724 = vrot.lane.b32.xlu0 %v4937_v56, %s4998_s21 }
 0x78d   : > { %3734 = vrot.lane.b32.xlu1 %v4938_v62, %s4998_s21  ;;  %3726 = vrot.lane.b32.xlu0 %v4939_v22, %s4998_s21 }
 0x793   : > { %v3387_v30 = vpop.permute.xlu1 %3386  ;;  %v3385_v26 = vpop.permute.xlu0 %3384 }
 0x794   : > { %v3739_v1 = vsel %vm2644_vm3, %v4941_v59, %v3385_v26  ;;  %v3742_v17 = vsel %vm2644_vm3, %v4940_v7, %v3387_v30  ;;  %v4950_v59 = vld [vmem:[#allocation5 + $0x38] sm:$0xff]  }
 0x797   : > { %v3395_v38 = vpop.permute.xlu1 %3394  ;;  %v3393_v50 = vpop.permute.xlu0 %3392 }
 0x798   : > { %v3751_v3 = vsel %vm2644_vm3, %v4943_v53, %v3393_v50  ;;  %v3754_v54 = vsel %vm2644_vm3, %v4942_v57, %v3395_v38 }
 0x79b   : > { %v3449_v46 = vpop.permute.xlu1 %3448  ;;  %v3441_v34 = vpop.permute.xlu0 %3440 }
 0x79c   : > { %v3771_v5 = vsel %vm3761_vm4, %v3751_v3, %v3449_v46  ;;  %v3763_v16 = vsel %vm3761_vm4, %v3739_v1, %v3441_v34 }
 0x79f   : > { %v3451_v42 = vpop.permute.xlu1 %3450  ;;  %v3443_v23 = vpop.permute.xlu0 %3442 }
 0x7a0   : > { %v3773_v58 = vsel %vm3761_vm4, %v3754_v54, %v3451_v42  ;;  %v3765_v15 = vsel %vm3761_vm4, %v3742_v17, %v3443_v23 }
 0x7a3   : > { %v3505_v31 = vpop.permute.xlu1 %3504  ;;  %v3497_v27 = vpop.permute.xlu0 %3496 }
 0x7a4   : > { %v3788_v9 = vsel %vm3778_vm5, %v3771_v5, %v3505_v31  ;;  %v3780_v2 = vsel %vm3778_vm5, %v3763_v16, %v3497_v27 }
 0x7a7   : > { %v3507_v18 = vpop.permute.xlu1 %3506  ;;  %v3499_v25 = vpop.permute.xlu0 %3498 }
 0x7a8   : > { %v3790_v37 = vsel %vm3778_vm5, %v3773_v58, %v3507_v18  ;;  %v3782_v8 = vsel %vm3778_vm5, %v3765_v15, %v3499_v25 }
 0x7ab   : > { %v3561_v19 = vpop.permute.xlu1 %3560  ;;  %v3553_v39 = vpop.permute.xlu0 %3552 }
 0x7ac   : > { %v3805_v45 = vsel %vm3795_vm6, %v3788_v9, %v3561_v19  ;;  %v3797_v0 = vsel %vm3795_vm6, %v3780_v2, %v3553_v39 }
 0x7af   : > { %v3563_v35 = vpop.permute.xlu1 %3562  ;;  %v3555_v43 = vpop.permute.xlu0 %3554 }
 0x7b0   : > { %v3807_v24 = vsel %vm3795_vm6, %v3790_v37, %v3563_v35  ;;  %v3799_v21 = vsel %vm3795_vm6, %v3782_v8, %v3555_v43 }
 0x7b3   : > { %v3617_v51 = vpop.permute.xlu1 %3616  ;;  %v3609_v55 = vpop.permute.xlu0 %3608 }
 0x7b4   : > { %v3822_v13 = vsel %vm3812_vm7, %v3805_v45, %v3617_v51  ;;  %v3814_v4 = vsel %vm3812_vm7, %v3797_v0, %v3609_v55  ;;  %v4948_v51 = vld [vmem:[#allocation5 + $0x30] sm:$0xff]  }
 0x7b5   : > { %v4949_v55 = vld [vmem:[#allocation5 + $0x10] sm:$0xff]  }
 0x7b7   : > { %v3619_v47 = vpop.permute.xlu1 %3618  ;;  %v3611_v49 = vpop.permute.xlu0 %3610 }
 0x7b8   : > { %v3824_v60 = vsel %vm3812_vm7, %v3807_v24, %v3619_v47  ;;  %v3816_v12 = vsel %vm3812_vm7, %v3799_v21, %v3611_v49 }
 0x7bb   : > { %v3673_v63 = vpop.permute.xlu1 %3672  ;;  %v3665_v61 = vpop.permute.xlu0 %3664 }
 0x7bc   : > { %v3839_v6 = vsel %vm3829_vm8, %v3822_v13, %v3673_v63  ;;  %v3831_v52 = vsel %vm3829_vm8, %v3814_v4, %v3665_v61  ;;  %v4951_v61 = vld [vmem:[#allocation5 + $0x18] sm:$0xff]  }
 0x7bf   : > { %v3675_v11 = vpop.permute.xlu1 %3674  ;;  %v3667_v14 = vpop.permute.xlu0 %3666 }
 0x7c0   : > { %v3841_v28 = vsel %vm3829_vm8, %v3824_v60, %v3675_v11  ;;  %v3833_v33 = vsel %vm3829_vm8, %v3816_v12, %v3667_v14 }
 0x7c3   : > { %v3729_v10 = vpop.permute.xlu1 %3728  ;;  %v3721_v29 = vpop.permute.xlu0 %3720 }
 0x7c4   : > { %v3856_v41 = vsel %vm3846_vm9, %v3839_v6, %v3729_v10  ;;  %v3848_v20 = vsel %vm3846_vm9, %v3831_v52, %v3721_v29 }
 0x7c5   : > { %4689 = vmatprep.mubr.msk.bf16.mxu1 %vm431_vm0, %v3856_v41  ;;  %4681 = vmatprep.mubr.msk.bf16.mxu0 %vm431_vm0, %v3848_v20 }
 0x7c7   : > { %v3731_v32 = vpop.permute.xlu1 %3730  ;;  %v3723_v36 = vpop.permute.xlu0 %3722 }
 0x7c8   : > { %v3858_v40 = vsel %vm3846_vm9, %v3841_v28, %v3731_v32  ;;  %v3850_v44 = vsel %vm3846_vm9, %v3833_v33, %v3723_v36  ;;  %v4371_v33 = vld [vmem:[%s6755_s6] ss:$0 sm:$0xff] }
 0x7c9   : > { %4690 = vmatmul.mubr.msk.bf16.vlgmr.msra.gmra.mxu1 %vm431_vm0, %v3858_v40  ;;  %4682 = vmatmul.mubr.msk.bf16.vlgmr.msra.gmra.mxu0 %vm431_vm0, %v3850_v44 }
 0x7cb   : > { %v3397_v48 = vpop.permute.xlu1 %3396  ;;  %v3389_v56 = vpop.permute.xlu0 %3388 }
 0x7cc   : > { %v3757_v53 = vsel %vm2644_vm3, %v4948_v51, %v3397_v48  ;;  %v3745_v63 = vsel %vm2644_vm3, %v4949_v55, %v3389_v56 }
 0x7cf   : > { %v3399_v62 = vpop.permute.xlu1 %3398  ;;  %v3391_v22 = vpop.permute.xlu0 %3390 }
 0x7d0   : > { %v3760_v9 = vsel %vm2644_vm3, %v4950_v59, %v3399_v62  ;;  %v3748_v45 = vsel %vm2644_vm3, %v4951_v61, %v3391_v22 }
 0x7d3   : > { %v3453_v30 = vpop.permute.xlu1 %3452  ;;  %v3445_v26 = vpop.permute.xlu0 %3444 }
 0x7d4   : > { %v3775_v57 = vsel %vm3761_vm4, %v3757_v53, %v3453_v30  ;;  %v3767_v7 = vsel %vm3761_vm4, %v3745_v63, %v3445_v26 }
 0x7d7   : > { %v3455_v38 = vpop.permute.xlu1 %3454  ;;  %v3447_v50 = vpop.permute.xlu0 %3446 }
 0x7d8   : > { %v3777_v54 = vsel %vm3761_vm4, %v3760_v9, %v3455_v38  ;;  %v3769_v58 = vsel %vm3761_vm4, %v3748_v45, %v3447_v50 }
 0x7db   : > { %v3509_v46 = vpop.permute.xlu1 %3508  ;;  %v3501_v34 = vpop.permute.xlu0 %3500 }
 0x7dc   : > { %v3792_v1 = vsel %vm3778_vm5, %v3775_v57, %v3509_v46  ;;  %v3784_v11 = vsel %vm3778_vm5, %v3767_v7, %v3501_v34 }
 0x7df   : > { %v3511_v42 = vpop.permute.xlu1 %3510  ;;  %v3503_v23 = vpop.permute.xlu0 %3502 }
 0x7e0   : > { %v3794_v4 = vsel %vm3778_vm5, %v3777_v54, %v3511_v42  ;;  %v3786_v37 = vsel %vm3778_vm5, %v3769_v58, %v3503_v23 }
 0x7e3   : > { %v3565_v31 = vpop.permute.xlu1 %3564  ;;  %v3557_v27 = vpop.permute.xlu0 %3556 }
 0x7e4   : > { %v3809_v16 = vsel %vm3795_vm6, %v3792_v1, %v3565_v31  ;;  %v3801_v14 = vsel %vm3795_vm6, %v3784_v11, %v3557_v27 }
 0x7e7   : > { %v3567_v18 = vpop.permute.xlu1 %3566  ;;  %v3559_v25 = vpop.permute.xlu0 %3558 }
 0x7e8   : > { %v3811_v52 = vsel %vm3795_vm6, %v3794_v4, %v3567_v18  ;;  %v3803_v41 = vsel %vm3795_vm6, %v3786_v37, %v3559_v25 }
 0x7eb   : > { %v3621_v19 = vpop.permute.xlu1 %3620  ;;  %v3613_v39 = vpop.permute.xlu0 %3612 }
 0x7ec   : > { %v3826_v2 = vsel %vm3812_vm7, %v3809_v16, %v3621_v19  ;;  %v3818_v0 = vsel %vm3812_vm7, %v3801_v14, %v3613_v39 }
 0x7ef   : > { %v3623_v35 = vpop.permute.xlu1 %3622  ;;  %v3615_v43 = vpop.permute.xlu0 %3614 }
 0x7f0   : > { %v3828_v8 = vsel %vm3812_vm7, %v3811_v52, %v3623_v35  ;;  %v3820_v24 = vsel %vm3812_vm7, %v3803_v41, %v3615_v43 }
 0x7f3   : > { %v3677_v47 = vpop.permute.xlu1 %3676  ;;  %v3669_v49 = vpop.permute.xlu0 %3668 }
 0x7f4   : > { %v3843_v13 = vsel %vm3829_vm8, %v3826_v2, %v3677_v47  ;;  %v3835_v6 = vsel %vm3829_vm8, %v3818_v0, %v3669_v49 }
 0x7f7   : > { %v3679_v3 = vpop.permute.xlu1 %3678  ;;  %v3671_v5 = vpop.permute.xlu0 %3670 }
 0x7f8   : > { %v3845_v20 = vsel %vm3829_vm8, %v3828_v8, %v3679_v3  ;;  %v3837_v60 = vsel %vm3829_vm8, %v3820_v24, %v3671_v5 }
 0x7fb   : > { %v3733_v17 = vpop.permute.xlu1 %3732  ;;  %v3725_v10 = vpop.permute.xlu0 %3724 }
 0x7fc   : > { %v3860_v15 = vsel %vm3846_vm9, %v3843_v13, %v3733_v17  ;;  %v3852_v29 = vsel %vm3846_vm9, %v3835_v6, %v3725_v10 }
 0x7fd   : > { %4693 = vmatprep.mubr.msk.bf16.mxu1 %vm431_vm0, %v3860_v15  ;;  %4685 = vmatprep.mubr.msk.bf16.mxu0 %vm431_vm0, %v3852_v29 }
 0x7ff   : > { %v3735_v21 = vpop.permute.xlu1 %3734  ;;  %v3727_v12 = vpop.permute.xlu0 %3726 }
 0x800   : > { %v3862_v28 = vsel %vm3846_vm9, %v3845_v20, %v3735_v21  ;;  %v3854_v32 = vsel %vm3846_vm9, %v3837_v60, %v3727_v12 }
 0x801   : > { %4694 = vmatmul.mubr.msk.bf16.gmra.mxu1 %vm431_vm0, %v3862_v28  ;;  %4686 = vmatmul.mubr.msk.bf16.gmra.mxu0 %vm431_vm0, %v3854_v32 }
 0x889   : > { %v4691_v36 = vpop.f32.mrf.mxu1  ;;  %v4683_v40 = vpop.f32.mrf.mxu0 }
 0x88a   : > { %v3993_v44 = vadd.f32 %v4691_v36, %v4371_v33  ;;  %v3961_v48 = vadd.f32 %v4683_v40, %v4371_v33 }
 0x88b   : > { %v3984_v56 = vpop.f32.mrf.mxu1  ;;  %v3952_v62 = vpop.f32.mrf.mxu0 }
 0x88c   : > { %4025 = vst.msk [vmem:[%s5078_s18 + $0x50] sm:$0xff] %vm431_vm0, %v3993_v44  ;;  %v3985_v22 = vadd.f32 %v4371_v33, %v3984_v56  ;;  %4017 = vst.msk [vmem:[%s5078_s18 + $0x10] sm:$0xff] %vm431_vm0, %v3961_v48  ;;  %v3953_v30 = vadd.f32 %v4371_v33, %v3952_v62 }
 0x88d   : > { %v4692_v26 = vpop.f32.mrf.mxu1  ;;  %v4684_v38 = vpop.f32.mrf.mxu0 }
 0x88e   : > { %4023 = vst.msk [vmem:[%s5078_s18 + $0x40] sm:$0xff] %vm431_vm0, %v3985_v22  ;;  %v3996_v50 = vadd.f32 %v4692_v26, %v4371_v33  ;;  %4015 = vst.msk [vmem:[%s5078_s18] sm:$0xff] %vm431_vm0, %v3953_v30  ;;  %v3964_v46 = vadd.f32 %v4684_v38, %v4371_v33 }
 0x88f   : > { %v3987_v34 = vpop.f32.mrf.mxu1  ;;  %v3955_v42 = vpop.f32.mrf.mxu0 }
 0x890   : > { %4026 = vst.msk [vmem:[%s5078_s18 + $0x58] sm:$0xff] %vm431_vm0, %v3996_v50  ;;  %v3988_v23 = vadd.f32 %v4371_v33, %v3987_v34  ;;  %4018 = vst.msk [vmem:[%s5078_s18 + $0x18] sm:$0xff] %vm431_vm0, %v3964_v46  ;;  %v3956_v31 = vadd.f32 %v4371_v33, %v3955_v42 }
 0x892   : > { %4024 = vst.msk [vmem:[%s5078_s18 + $0x48] sm:$0xff] %vm431_vm0, %v3988_v23  ;;  %4016 = vst.msk [vmem:[%s5078_s18 + $0x8] sm:$0xff] %vm431_vm0, %v3956_v31 }
 0x8c1   : > { %v4695_v27 = vpop.f32.mrf.mxu1  ;;  %v4687_v18 = vpop.f32.mrf.mxu0 }
 0x8c2   : > { %v4009_v25 = vadd.f32 %v4695_v27, %v4371_v33  ;;  %v3977_v19 = vadd.f32 %v4687_v18, %v4371_v33 }
 0x8c3   : > { %v4000_v39 = vpop.f32.mrf.mxu1  ;;  %v3968_v35 = vpop.f32.mrf.mxu0 }
 0x8c4   : > { %4029 = vst.msk [vmem:[%s5078_s18 + $0x70] sm:$0xff] %vm431_vm0, %v4009_v25  ;;  %v4001_v43 = vadd.f32 %v4371_v33, %v4000_v39  ;;  %4021 = vst.msk [vmem:[%s5078_s18 + $0x30] sm:$0xff] %vm431_vm0, %v3977_v19  ;;  %v3969_v51 = vadd.f32 %v4371_v33, %v3968_v35 }
 0x8c5   : > { %v4696_v55 = vpop.f32.mrf.mxu1  ;;  %v4688_v47 = vpop.f32.mrf.mxu0 }
 0x8c6   : > { %4027 = vst.msk [vmem:[%s5078_s18 + $0x60] sm:$0xff] %vm431_vm0, %v4001_v43  ;;  %v4012_v49 = vadd.f32 %v4696_v55, %v4371_v33  ;;  %4019 = vst.msk [vmem:[%s5078_s18 + $0x20] sm:$0xff] %vm431_vm0, %v3969_v51  ;;  %v3980_v53 = vadd.f32 %v4688_v47, %v4371_v33 }
 0x8c7   : > { %v4003_v59 = vpop.f32.mrf.mxu1  ;;  %v3971_v63 = vpop.f32.mrf.mxu0 }
 0x8c8   : > { %4030 = vst.msk [vmem:[%s5078_s18 + $0x78] sm:$0xff] %vm431_vm0, %v4012_v49  ;;  %v4004_v61 = vadd.f32 %v4371_v33, %v4003_v59  ;;  %4022 = vst.msk [vmem:[%s5078_s18 + $0x38] sm:$0xff] %vm431_vm0, %v3980_v53  ;;  %v3972_v57 = vadd.f32 %v4371_v33, %v3971_v63 }
 0x8ca   : > { %4028 = vst.msk [vmem:[%s5078_s18 + $0x68] sm:$0xff] %vm431_vm0, %v4004_v61  ;;  %4020 = vst.msk [vmem:[%s5078_s18 + $0x28] sm:$0xff] %vm431_vm0, %v3972_v57 }
 0x8cb PF: > { %s17_s26 = sadd.s32 1, %s4978_s26   ;;  %s6757_s24 = smov %s4974_s25 }
 0x8cc   : > { %p14_p6 = scmp.ge.s32.totalorder %s17_s26, 4   ;;  %s6758_s25 = smov %s6760_s27 }
 0x8ce   :  { %16 = sbr.rel (!%p14_p6) target bundleno = 2 (0x2), region = 135 }

</bundles_post_ra>
